<compile_context>
chip_gen: v6e
topology: v6e:2x2x1
jax: 0.10.0
libtpu: 0.0.40
codegen_flags: <defaults>
</compile_context>

<pallas_src>
import math

import jax
import jax.numpy as jnp
from jax.experimental import pallas as pl
from jax.experimental.pallas import tpu as pltpu

MXU_DTYPE = jnp.bfloat16  # MXU operand dtype; accumulation & VPU/EUP math stay f32.

_ATTN_W = ("wq", "wk", "wv", "wo", "bq", "bk", "bv", "bo")
_BLOCK_W = _ATTN_W + ("g1", "n1", "w1", "c1", "w2", "c2", "g2", "n2")


# ----------------------------- in-kernel math helpers -----------------------------

def _gelu(x):
    # exact (erf) GELU, matching torch.nn.GELU() / F.gelu default
    return 0.5 * x * (1.0 + jax.lax.erf(x * 0.7071067811865476))


def _dot(x, w):
    return jnp.dot(x.astype(MXU_DTYPE), w.astype(MXU_DTYPE),
                   preferred_element_type=jnp.float32)


def _bdot(x, w, dims):
    return jax.lax.dot_general(x.astype(MXU_DTYPE), w.astype(MXU_DTYPE), dims,
                               preferred_element_type=jnp.float32)


def _layernorm(x, g, b):
    mu = jnp.mean(x, axis=-1, keepdims=True)
    xc = x - mu
    var = jnp.mean(xc * xc, axis=-1, keepdims=True)
    return xc * jax.lax.rsqrt(var + 1e-5) * g + b


def _mha(x, kv, w):
    """PyTorch nn.MultiheadAttention (batch_first, key == value) for one batch element.

    x: [Lq, D] f32, kv: [Lk, D] f32.  Heads are a leading batch axis of the
    pre-reshaped weights (wq/wk/wv: [H, D, dh], wo: [H, dh, D]) -> batched MXU
    matmuls; no lane-dim slicing or concatenation in-kernel.
    """
    H, D, dh = w["wq"].shape
    Lq, Lk = x.shape[0], kv.shape[0]
    xb = jnp.broadcast_to(x[None], (H, Lq, D))
    kvb = jnp.broadcast_to(kv[None], (H, Lk, D))
    proj = (((2,), (1,)), ((0,), (0,)))
    q = _bdot(xb, w["wq"], proj) + w["bq"]                    # [H, Lq, dh]
    k = _bdot(kvb, w["wk"], proj) + w["bk"]                   # [H, Lk, dh]
    v = _bdot(kvb, w["wv"], proj) + w["bv"]                   # [H, Lk, dh]
    q = q * (1.0 / math.sqrt(dh))
    s = _bdot(q, k, (((2,), (2,)), ((0,), (0,))))             # [H, Lq, Lk]
    s = s - jnp.max(s, axis=-1, keepdims=True)
    p = jnp.exp(s)
    p = p * pl.reciprocal(jnp.sum(p, axis=-1, keepdims=True), approx=True)
    o = _bdot(p, v, (((2,), (1,)), ((0,), (0,))))             # [H, Lq, dh]
    o = _bdot(o, w["wo"], (((2,), (1,)), ((0,), (0,))))       # [H, Lq, D]
    out = o[0]
    for h in range(1, H):                                     # static unrolled head sum
        out = out + o[h]
    return out + w["bo"]                                      # [Lq, D]


def _block(x, kv, w):
    """Post-norm cross-attention + FFN block.

    Matches CrossAttentionFFNBlock and nn.TransformerEncoderLayer (post-norm, gelu)
    when kv == x.  Dropout / DropPath are identity (eval semantics).
    """
    x1 = _layernorm(x + _mha(x, kv, w), w["g1"], w["n1"])
    h = _gelu(_dot(x1, w["w1"]) + w["c1"])
    y = _dot(h, w["w2"]) + w["c2"]
    return _layernorm(x1 + y, w["g2"], w["n2"])


# ----------------------------- fused Pallas kernels -------------------------------

def _fusion_stack_kernel(a_ref, b_ref, paw_ref, pab_ref, pbw_ref, pbb_ref, *rest):
    """EEGFusionBlock: input projection (layer 0) + all bidirectional cross-attention
    layers + final LayerNorm; a/b stay resident in VMEM across the layer grid axis."""
    wa_refs = rest[0:16]
    wb_refs = rest[16:32]
    gf_ref, nf_ref = rest[32], rest[33]
    oa_ref, ob_ref = rest[34], rest[35]
    l = pl.program_id(1)
    n_l = pl.num_programs(1)

    @pl.when(l == 0)
    def _init():
        oa_ref[0] = _dot(a_ref[0], paw_ref[...]) + pab_ref[...]
        ob_ref[0] = _dot(b_ref[0], pbw_ref[...]) + pbb_ref[...]

    wa = {k: r[0] for k, r in zip(_BLOCK_W, wa_refs)}
    wb = {k: r[0] for k, r in zip(_BLOCK_W, wb_refs)}
    a = oa_ref[0]
    b = ob_ref[0]
    a_new = _block(a, b, wa)
    b_new = _block(b, a_new, wb)
    ob_ref[0] = b_new

    @pl.when(l < n_l - 1)
    def _store():
        oa_ref[0] = a_new

    @pl.when(l == n_l - 1)
    def _store_final():
        oa_ref[0] = _layernorm(a_new, gf_ref[...], nf_ref[...])


def _encoder_stack_kernel(x_ref, *rest):
    """TransformerEncoderWithCLS body: all self-attention layers + final LayerNorm,
    activation resident in VMEM across the layer axis."""
    w_refs = rest[0:16]
    gf_ref, nf_ref = rest[16], rest[17]
    o_ref = rest[18]
    l = pl.program_id(1)
    n_l = pl.num_programs(1)

    @pl.when(l == 0)
    def _init():
        o_ref[...] = x_ref[...]

    w = {k: r[0] for k, r in zip(_BLOCK_W, w_refs)}
    x = o_ref[0]
    y = _block(x, x, w)

    @pl.when(l < n_l - 1)
    def _store():
        o_ref[0] = y

    @pl.when(l == n_l - 1)
    def _store_final():
        o_ref[0] = _layernorm(y, gf_ref[...], nf_ref[...])


def _enhance_block_kernel(eeg_ref, ecg_ref, a1w_ref, a1b_ref, a2w_ref, a2b_ref, *rest):
    """ECGGuidedEnhancementBlock fully fused (adapter + 2 MHAs + gate + GLU + LN)."""
    weeg_refs = rest[0:8]
    wecg_refs = rest[8:16]
    g1w_ref, g2w_ref, gb_ref = rest[16], rest[17], rest[18]
    eaw_ref, eab_ref, ebw_ref, ebb_ref = rest[19], rest[20], rest[21], rest[22]
    ng_ref, nb_ref = rest[23], rest[24]
    o_ref = rest[25]

    eeg = eeg_ref[0]                                           # [1, D]
    ecg = ecg_ref[0]                                           # [1, Dc]
    h = _gelu(_dot(ecg, a1w_ref[...]) + a1b_ref[...])
    ecg_proj = _dot(h, a2w_ref[...]) + a2b_ref[...]            # [1, D]

    weeg = {k: r[...] for k, r in zip(_ATTN_W, weeg_refs)}
    wecg = {k: r[...] for k, r in zip(_ATTN_W, wecg_refs)}
    eeg_att = _mha(eeg, ecg_proj, weeg)
    ecg_att = _mha(ecg_proj, eeg, wecg)

    # gate(cat([eeg_att, ecg_att], -1)) as two column-split matmuls (no lane concat)
    gate = jax.nn.sigmoid(_dot(eeg_att, g1w_ref[...]) + _dot(ecg_att, g2w_ref[...])
                          + gb_ref[...])
    enhanced = eeg + gate * ecg_att
    # Linear(D -> 2D) + GLU(dim=-1), halves pre-split host-side (no lane slicing)
    ya = _dot(enhanced, eaw_ref[...]) + eab_ref[...]
    yb = _dot(enhanced, ebw_ref[...]) + ebb_ref[...]
    y = ya * jax.nn.sigmoid(yb)
    o_ref[0] = _layernorm(y, ng_ref[...], nb_ref[...])


def _classifier_kernel(x_ref, w1_ref, b1_ref, g_ref, nb_ref, w2_ref, b2_ref, o_ref):
    h = _dot(x_ref[...], w1_ref[...]) + b1_ref[...]
    h = _gelu(_layernorm(h, g_ref[...], nb_ref[...]))
    o_ref[...] = _dot(h, w2_ref[...]) + b2_ref[...]


def _linear_kernel(x_ref, w_ref, b_ref, o_ref):
    o_ref[...] = _dot(x_ref[...], w_ref[...]) + b_ref[...]


# ----------------------------- BlockSpec helpers -----------------------------------

def _const_spec(arr, grid_rank):
    zeros = (0,) * arr.ndim
    idx = (lambda i: zeros) if grid_rank == 1 else (lambda i, j: zeros)
    return pl.BlockSpec(arr.shape, idx)


def _stacked_spec(arr):  # per-layer weight, grid = (batch, layer)
    zeros = (0,) * (arr.ndim - 1)
    return pl.BlockSpec((1,) + arr.shape[1:], lambda b, l: (l,) + zeros)


def _batched_spec(arr, grid_rank):  # per-batch activation block
    zeros = (0,) * (arr.ndim - 1)
    idx = (lambda b: (b,) + zeros) if grid_rank == 1 else (lambda b, l: (b,) + zeros)
    return pl.BlockSpec((1,) + arr.shape[1:], idx)


# ----------------------------- model wrappers (one pallas_call each) ---------------

def eeg_fusion_forward(a, b, p):
    B, S, _ = a.shape
    Dp = p["norm_g"].shape[-1]
    L = p["a2b"]["wq"].shape[0]
    a = a + p["pos_a"]   # positional-embedding adds: trivial XLA glue
    b = b + p["pos_b"]

    inputs = [a, b, p["proj_a_w"], p["proj_a_b"], p["proj_b_w"], p["proj_b_b"]]
    in_specs = [_batched_spec(a, 2), _batched_spec(b, 2),
                _const_spec(p["proj_a_w"], 2), _const_spec(p["proj_a_b"], 2),
                _const_spec(p["proj_b_w"], 2), _const_spec(p["proj_b_b"], 2)]
    for name in _BLOCK_W:
        arr = p["a2b"][name]
        inputs.append(arr)
        in_specs.append(_stacked_spec(arr))
    for name in _BLOCK_W:
        arr = p["b2a"][name]
        inputs.append(arr)
        in_specs.append(_stacked_spec(arr))
    inputs += [p["norm_g"], p["norm_b"]]
    in_specs += [_const_spec(p["norm_g"], 2), _const_spec(p["norm_b"], 2)]

    out_spec = pl.BlockSpec((1, S, Dp), lambda bb, l: (bb, 0, 0))
    fused, _ = pl.pallas_call(
        _fusion_stack_kernel,
        out_shape=(jax.ShapeDtypeStruct((B, S, Dp), jnp.float32),
                   jax.ShapeDtypeStruct((B, S, Dp), jnp.float32)),
        grid=(B, L),
        in_specs=in_specs,
        out_specs=(out_spec, out_spec),
        compiler_params=pltpu.CompilerParams(
            dimension_semantics=("parallel", "arbitrary")),
    )(*inputs)
    return fused


def encoder_with_cls_forward(x, p):
    B, S, D = x.shape
    cls = jnp.broadcast_to(p["cls"], (B, 1, D))
    x = jnp.concatenate([cls, x], axis=1) + p["pos"][:, : S + 1, :]
    S1 = S + 1
    L = p["layers"]["wq"].shape[0]

    inputs = [x]
    in_specs = [_batched_spec(x, 2)]
    for name in _BLOCK_W:
        arr = p["layers"][name]
        inputs.append(arr)
        in_specs.append(_stacked_spec(arr))
    inputs += [p["norm_g"], p["norm_b"]]
    in_specs += [_const_spec(p["norm_g"], 2), _const_spec(p["norm_b"], 2)]

    out = pl.pallas_call(
        _encoder_stack_kernel,
        out_shape=jax.ShapeDtypeStruct((B, S1, D), jnp.float32),
        grid=(B, L),
        in_specs=in_specs,
        out_specs=pl.BlockSpec((1, S1, D), lambda b, l: (b, 0, 0)),
        compiler_params=pltpu.CompilerParams(
            dimension_semantics=("parallel", "arbitrary")),
    )(*inputs)
    return out[:, 0]      # CLS token


def ecg_enhance_block(eeg, ecg, p):
    B, _, D = eeg.shape
    inputs = [eeg, ecg, p["a1w"], p["a1b"], p["a2w"], p["a2b"]]
    in_specs = [_batched_spec(eeg, 1), _batched_spec(ecg, 1),
                _const_spec(p["a1w"], 1), _const_spec(p["a1b"], 1),
                _const_spec(p["a2w"], 1), _const_spec(p["a2b"], 1)]
    for name in _ATTN_W:
        arr = p["eeg_attn"][name]
        inputs.append(arr)
        in_specs.append(_const_spec(arr, 1))
    for name in _ATTN_W:
        arr = p["ecg_attn"][name]
        inputs.append(arr)
        in_specs.append(_const_spec(arr, 1))
    for key in ("g1w", "g2w", "gb", "eaw", "eab", "ebw", "ebb", "ng", "nb"):
        arr = p[key]
        inputs.append(arr)
        in_specs.append(_const_spec(arr, 1))

    return pl.pallas_call(
        _enhance_block_kernel,
        out_shape=jax.ShapeDtypeStruct((B, 1, D), jnp.float32),
        grid=(B,),
        in_specs=in_specs,
        out_specs=pl.BlockSpec((1, 1, D), lambda b: (b, 0, 0)),
        compiler_params=pltpu.CompilerParams(dimension_semantics=("parallel",)),
    )(*inputs)


def linear_pallas(x, w, b):
    shp = x.shape
    K = shp[-1]
    M = math.prod(shp[:-1])
    x2 = x.reshape(M, K)
    N = w.shape[1]
    out = pl.pallas_call(
        _linear_kernel,
        out_shape=jax.ShapeDtypeStruct((M, N), jnp.float32),
        grid=(1,),
        in_specs=[_const_spec(x2, 1), _const_spec(w, 1), _const_spec(b, 1)],
        out_specs=pl.BlockSpec((M, N), lambda i: (0, 0)),
    )(x2, w, b)
    return out.reshape(shp[:-1] + (N,))


def classifier_forward(feat, p):
    B = feat.shape[0]
    C = p["w2"].shape[1]
    args = [feat, p["w1"], p["b1"], p["g"], p["nb"], p["w2"], p["b2"]]
    return pl.pallas_call(
        _classifier_kernel,
        out_shape=jax.ShapeDtypeStruct((B, C), jnp.float32),
        grid=(1,),
        in_specs=[_const_spec(a, 1) for a in args],
        out_specs=pl.BlockSpec((B, C), lambda i: (0, 0)),
    )(*args)


def camft_forward(pp, eeg_a, eeg_b, ecg):
    fused = eeg_fusion_forward(eeg_a, eeg_b, pp["eeg_fusion"])
    eeg_feat = encoder_with_cls_forward(fused, pp["eeg_encoder"])
    if ecg.ndim == 2:
        ecg = ecg[:, None, :]
    ecg = linear_pallas(ecg, pp["ecg_trans_w"], pp["ecg_trans_b"])
    ecg_feat = encoder_with_cls_forward(ecg, pp["ecg_encoder"])
    out = eeg_feat[:, None, :]          # ECGGuidedEnhancement unsqueeze(1)
    ecg_feat3 = ecg_feat[:, None, :]
    for blk in pp["ecg_enhancement"]:
        out = ecg_enhance_block(out, ecg_feat3, blk)
    feat = out[:, 0]                    # squeeze(1)
    return classifier_forward(feat, pp["classifier"])


# ----------------------------- deterministic parameter init ------------------------

def init_params(key, cfg):
    keys = iter(jax.random.split(key, 1024))

    def nk():
        return next(keys)

    def lin(i, o):
        return {"w": 0.02 * jax.random.normal(nk(), (i, o), jnp.float32),
                "b": 0.02 * jax.random.normal(nk(), (o,), jnp.float32)}

    def ln(d):
        return {"g": jnp.ones((d,), jnp.float32), "b": jnp.zeros((d,), jnp.float32)}

    def mha(d):
        def w():
            return 0.02 * jax.random.normal(nk(), (d, d), jnp.float32)

        def b():
            return 0.02 * jax.random.normal(nk(), (d,), jnp.float32)

        return {"wq": w(), "wk": w(), "wv": w(), "wo": w(),
                "bq": b(), "bk": b(), "bv": b(), "bo": b()}

    def cross_block(d):
        return {"attn": mha(d), "norm1": ln(d),
                "ffn1": lin(d, 4 * d), "ffn2": lin(4 * d, d), "norm2": ln(d)}

    def encoder_with_cls(d, seq, n_layers):
        return {"cls": 0.02 * jax.random.normal(nk(), (1, 1, d), jnp.float32),
                "pos": 0.02 * jax.random.normal(nk(), (1, seq + 1, d), jnp.float32),
                "layers": [cross_block(d) for _ in range(n_layers)],
                "norm": ln(d)}

    fd = cfg["fusion_dim"]
    ed = cfg["ecg_transformer_dim"]
    hid = int(fd * cfg["ecg_enhance_expansion"])
    params = {
        "eeg_fusion": {
            "pos_a": 0.02 * jax.random.normal(nk(), (1, cfg["eeg_seq_len"], cfg["eeg_input_dim"]), jnp.float32),
            "pos_b": 0.02 * jax.random.normal(nk(), (1, cfg["eeg_seq_len"], cfg["eeg_input_dim"]), jnp.float32),
            "proj_a": lin(cfg["eeg_input_dim"], fd),
            "proj_b": lin(cfg["eeg_input_dim"], fd),
            "blocks_a2b": [cross_block(fd) for _ in range(cfg["fusion_layers"])],
            "blocks_b2a": [cross_block(fd) for _ in range(cfg["fusion_layers"])],
            "norm": ln(fd),
        },
        "eeg_encoder": encoder_with_cls(fd, cfg["eeg_seq_len"], cfg["encoder_layers"]),
        "ecg_trans": lin(cfg["ecg_embed_dim"], ed),
        "ecg_encoder": encoder_with_cls(ed, cfg["ecg_seq_len"], cfg["ecg_layers"]),
        "ecg_enhancement": [
            {"adapter1": lin(ed, hid), "adapter2": lin(hid, fd),
             "eeg_attn": mha(fd), "ecg_attn": mha(fd),
             "gate": lin(2 * fd, fd),
             "enhance_lin": lin(fd, 2 * fd), "enhance_norm": ln(fd)}
            for _ in range(cfg["ecg_enhance_layers"])
        ],
        "cls_lin1": lin(fd, fd // 2),
        "cls_ln": ln(fd // 2),
        "cls_lin2": lin(fd // 2, cfg["num_classes"]),
    }
    return params


# ----------------------------- host-side weight preparation ------------------------

def _prep_attn(m, num_heads):
    D = m["wq"].shape[0]
    H = num_heads
    dh = D // H

    def wh(w):  # [D, D] -> [H, D, dh]  (head h = columns h*dh:(h+1)*dh)
        return jnp.transpose(w.reshape(D, H, dh), (1, 0, 2)).astype(MXU_DTYPE)

    return {
        "wq": wh(m["wq"]), "wk": wh(m["wk"]), "wv": wh(m["wv"]),
        "wo": m["wo"].reshape(H, dh, D).astype(MXU_DTYPE),
        "bq": m["bq"].reshape(H, 1, dh),
        "bk": m["bk"].reshape(H, 1, dh),
        "bv": m["bv"].reshape(H, 1, dh),
        "bo": m["bo"].reshape(1, D),
    }


def _prep_block(blk, num_heads):
    w = _prep_attn(blk["attn"], num_heads)
    D = blk["norm1"]["g"].shape[0]
    w.update({
        "g1": blk["norm1"]["g"].reshape(1, D), "n1": blk["norm1"]["b"].reshape(1, D),
        "w1": blk["ffn1"]["w"].astype(MXU_DTYPE), "c1": blk["ffn1"]["b"].reshape(1, -1),
        "w2": blk["ffn2"]["w"].astype(MXU_DTYPE), "c2": blk["ffn2"]["b"].reshape(1, D),
        "g2": blk["norm2"]["g"].reshape(1, D), "n2": blk["norm2"]["b"].reshape(1, D),
    })
    return w


def _stack_blocks(blocks, num_heads):
    prepped = [_prep_block(b, num_heads) for b in blocks]
    return {k: jnp.stack([p[k] for p in prepped]) for k in _BLOCK_W}


def prepare_params(params, cfg):
    fd = cfg["fusion_dim"]
    pf = params["eeg_fusion"]

    def prep_encoder(pe, heads):
        return {"cls": pe["cls"], "pos": pe["pos"],
                "layers": _stack_blocks(pe["layers"], heads),
                "norm_g": pe["norm"]["g"].reshape(1, -1),
                "norm_b": pe["norm"]["b"].reshape(1, -1)}

    pp = {
        "eeg_fusion": {
            "pos_a": pf["pos_a"], "pos_b": pf["pos_b"],
            "proj_a_w": pf["proj_a"]["w"].astype(MXU_DTYPE),
            "proj_a_b": pf["proj_a"]["b"].reshape(1, -1),
            "proj_b_w": pf["proj_b"]["w"].astype(MXU_DTYPE),
            "proj_b_b": pf["proj_b"]["b"].reshape(1, -1),
            "a2b": _stack_blocks(pf["blocks_a2b"], cfg["fusion_heads"]),
            "b2a": _stack_blocks(pf["blocks_b2a"], cfg["fusion_heads"]),
            "norm_g": pf["norm"]["g"].reshape(1, -1),
            "norm_b": pf["norm"]["b"].reshape(1, -1),
        },
        "eeg_encoder": prep_encoder(params["eeg_encoder"], cfg["encoder_heads"]),
        "ecg_trans_w": params["ecg_trans"]["w"].astype(MXU_DTYPE),
        "ecg_trans_b": params["ecg_trans"]["b"].reshape(1, -1),
        "ecg_encoder": prep_encoder(params["ecg_encoder"], cfg["ecg_heads"]),
        "classifier": {
            "w1": params["cls_lin1"]["w"].astype(MXU_DTYPE),
            "b1": params["cls_lin1"]["b"].reshape(1, -1),
            "g": params["cls_ln"]["g"].reshape(1, -1),
            "nb": params["cls_ln"]["b"].reshape(1, -1),
            "w2": params["cls_lin2"]["w"].astype(MXU_DTYPE),
            "b2": params["cls_lin2"]["b"].reshape(1, -1),
        },
    }
    enh = []
    for blk in params["ecg_enhancement"]:
        D = fd
        gw = blk["gate"]["w"]          # [2D, D]
        ew = blk["enhance_lin"]["w"]   # [D, 2D]
        eb = blk["enhance_lin"]["b"]   # [2D]
        enh.append({
            "a1w": blk["adapter1"]["w"].astype(MXU_DTYPE),
            "a1b": blk["adapter1"]["b"].reshape(1, -1),
            "a2w": blk["adapter2"]["w"].astype(MXU_DTYPE),
            "a2b": blk["adapter2"]["b"].reshape(1, -1),
            "eeg_attn": _prep_attn(blk["eeg_attn"], cfg["ecg_enhance_heads"]),
            "ecg_attn": _prep_attn(blk["ecg_attn"], cfg["ecg_enhance_heads"]),
            "g1w": gw[:D].astype(MXU_DTYPE), "g2w": gw[D:].astype(MXU_DTYPE),
            "gb": blk["gate"]["b"].reshape(1, -1),
            "eaw": ew[:, :D].astype(MXU_DTYPE), "ebw": ew[:, D:].astype(MXU_DTYPE),
            "eab": eb[:D].reshape(1, -1), "ebb": eb[D:].reshape(1, -1),
            "ng": blk["enhance_norm"]["g"].reshape(1, -1),
            "nb": blk["enhance_norm"]["b"].reshape(1, -1),
        })
    pp["ecg_enhancement"] = enh
    return pp


# ----------------------------- main -------------------------------------------------

if __name__ == "__main__":
    # Small, self-consistent hyperparameters (same structure as CAMFT defaults).
    cfg = dict(
        eeg_input_dim=32, ecg_input_dim=16, num_classes=4,
        eeg_seq_len=4, ecg_seq_len=1,
        fusion_dim=64, fusion_heads=4, fusion_layers=2,
        encoder_heads=4, encoder_layers=2,
        ecg_embed_dim=16, ecg_transformer_dim=64, ecg_heads=4, ecg_layers=2,
        ecg_enhance_layers=2, ecg_enhance_heads=4, ecg_enhance_expansion=0.5,
    )
    key = jax.random.PRNGKey(0)
    kp, ka, kb, kc = jax.random.split(key, 4)
    params = init_params(kp, cfg)
    pp = prepare_params(params, cfg)   # stack layers, reshape heads, split GLU, cast bf16

    B = 2
    eeg_a = jax.random.normal(ka, (B, cfg["eeg_seq_len"], cfg["eeg_input_dim"]), jnp.float32)
    eeg_b = jax.random.normal(kb, (B, cfg["eeg_seq_len"], cfg["eeg_input_dim"]), jnp.float32)
    ecg = jax.random.normal(kc, (B, cfg["ecg_seq_len"], cfg["ecg_input_dim"]), jnp.float32)

    fwd = jax.jit(camft_forward)
    logits = fwd(pp, eeg_a, eeg_b, ecg)
    jax.block_until_ready(logits)
    assert logits.shape == (B, cfg["num_classes"]), logits.shape
    print("KERNEL_OK")
</pallas_src>

<mosaic_0001>
module attributes {stable_mosaic.version = 11 : i64} {
  func.func @_fusion_stack_kernel(%arg0: i32, %arg1: i32, %arg2: memref<1x4x32xf32, #tpu.memory_space<vmem>>, %arg3: memref<1x4x32xf32, #tpu.memory_space<vmem>>, %arg4: memref<32x64xbf16, #tpu.memory_space<vmem>>, %arg5: memref<1x64xf32, #tpu.memory_space<vmem>>, %arg6: memref<32x64xbf16, #tpu.memory_space<vmem>>, %arg7: memref<1x64xf32, #tpu.memory_space<vmem>>, %arg8: memref<1x4x64x16xbf16, #tpu.memory_space<vmem>>, %arg9: memref<1x4x64x16xbf16, #tpu.memory_space<vmem>>, %arg10: memref<1x4x64x16xbf16, #tpu.memory_space<vmem>>, %arg11: memref<1x4x16x64xbf16, #tpu.memory_space<vmem>>, %arg12: memref<1x4x1x16xf32, #tpu.memory_space<vmem>>, %arg13: memref<1x4x1x16xf32, #tpu.memory_space<vmem>>, %arg14: memref<1x4x1x16xf32, #tpu.memory_space<vmem>>, %arg15: memref<1x1x64xf32, #tpu.memory_space<vmem>>, %arg16: memref<1x1x64xf32, #tpu.memory_space<vmem>>, %arg17: memref<1x1x64xf32, #tpu.memory_space<vmem>>, %arg18: memref<1x64x256xbf16, #tpu.memory_space<vmem>>, %arg19: memref<1x1x256xf32, #tpu.memory_space<vmem>>, %arg20: memref<1x256x64xbf16, #tpu.memory_space<vmem>>, %arg21: memref<1x1x64xf32, #tpu.memory_space<vmem>>, %arg22: memref<1x1x64xf32, #tpu.memory_space<vmem>>, %arg23: memref<1x1x64xf32, #tpu.memory_space<vmem>>, %arg24: memref<1x4x64x16xbf16, #tpu.memory_space<vmem>>, %arg25: memref<1x4x64x16xbf16, #tpu.memory_space<vmem>>, %arg26: memref<1x4x64x16xbf16, #tpu.memory_space<vmem>>, %arg27: memref<1x4x16x64xbf16, #tpu.memory_space<vmem>>, %arg28: memref<1x4x1x16xf32, #tpu.memory_space<vmem>>, %arg29: memref<1x4x1x16xf32, #tpu.memory_space<vmem>>, %arg30: memref<1x4x1x16xf32, #tpu.memory_space<vmem>>, %arg31: memref<1x1x64xf32, #tpu.memory_space<vmem>>, %arg32: memref<1x1x64xf32, #tpu.memory_space<vmem>>, %arg33: memref<1x1x64xf32, #tpu.memory_space<vmem>>, %arg34: memref<1x64x256xbf16, #tpu.memory_space<vmem>>, %arg35: memref<1x1x256xf32, #tpu.memory_space<vmem>>, %arg36: memref<1x256x64xbf16, #tpu.memory_space<vmem>>, %arg37: memref<1x1x64xf32, #tpu.memory_space<vmem>>, %arg38: memref<1x1x64xf32, #tpu.memory_space<vmem>>, %arg39: memref<1x1x64xf32, #tpu.memory_space<vmem>>, %arg40: memref<1x64xf32, #tpu.memory_space<vmem>>, %arg41: memref<1x64xf32, #tpu.memory_space<vmem>>, %arg42: memref<1x4x64xf32, #tpu.memory_space<vmem>>, %arg43: memref<1x4x64xf32, #tpu.memory_space<vmem>>) attributes {dimension_semantics = [#tpu.dimension_semantics<parallel>, #tpu.dimension_semantics<arbitrary>], iteration_bounds = array<i64: 2, 2>, scalar_prefetch = 0 : i64, scratch_operands = 0 : i64, tpu.core_type = #tpu.core_type<tc>, window_params = [{transform_indices = @transform_0, window_bounds = array<i64: 1, 4, 32>}, {transform_indices = @transform_1, window_bounds = array<i64: 1, 4, 32>}, {pipeline_mode = #tpu.pipeline_mode<synchronous>, transform_indices = @transform_2, window_bounds = array<i64: 32, 64>}, {pipeline_mode = #tpu.pipeline_mode<synchronous>, transform_indices = @transform_3, window_bounds = array<i64: 1, 64>}, {pipeline_mode = #tpu.pipeline_mode<synchronous>, transform_indices = @transform_4, window_bounds = array<i64: 32, 64>}, {pipeline_mode = #tpu.pipeline_mode<synchronous>, transform_indices = @transform_5, window_bounds = array<i64: 1, 64>}, {transform_indices = @transform_6, window_bounds = array<i64: 1, 4, 64, 16>}, {transform_indices = @transform_7, window_bounds = array<i64: 1, 4, 64, 16>}, {transform_indices = @transform_8, window_bounds = array<i64: 1, 4, 64, 16>}, {transform_indices = @transform_9, window_bounds = array<i64: 1, 4, 16, 64>}, {transform_indices = @transform_10, window_bounds = array<i64: 1, 4, 1, 16>}, {transform_indices = @transform_11, window_bounds = array<i64: 1, 4, 1, 16>}, {transform_indices = @transform_12, window_bounds = array<i64: 1, 4, 1, 16>}, {transform_indices = @transform_13, window_bounds = array<i64: 1, 1, 64>}, {transform_indices = @transform_14, window_bounds = array<i64: 1, 1, 64>}, {transform_indices = @transform_15, window_bounds = array<i64: 1, 1, 64>}, {transform_indices = @transform_16, window_bounds = array<i64: 1, 64, 256>}, {transform_indices = @transform_17, window_bounds = array<i64: 1, 1, 256>}, {transform_indices = @transform_18, window_bounds = array<i64: 1, 256, 64>}, {transform_indices = @transform_19, window_bounds = array<i64: 1, 1, 64>}, {transform_indices = @transform_20, window_bounds = array<i64: 1, 1, 64>}, {transform_indices = @transform_21, window_bounds = array<i64: 1, 1, 64>}, {transform_indices = @transform_22, window_bounds = array<i64: 1, 4, 64, 16>}, {transform_indices = @transform_23, window_bounds = array<i64: 1, 4, 64, 16>}, {transform_indices = @transform_24, window_bounds = array<i64: 1, 4, 64, 16>}, {transform_indices = @transform_25, window_bounds = array<i64: 1, 4, 16, 64>}, {transform_indices = @transform_26, window_bounds = array<i64: 1, 4, 1, 16>}, {transform_indices = @transform_27, window_bounds = array<i64: 1, 4, 1, 16>}, {transform_indices = @transform_28, window_bounds = array<i64: 1, 4, 1, 16>}, {transform_indices = @transform_29, window_bounds = array<i64: 1, 1, 64>}, {transform_indices = @transform_30, window_bounds = array<i64: 1, 1, 64>}, {transform_indices = @transform_31, window_bounds = array<i64: 1, 1, 64>}, {transform_indices = @transform_32, window_bounds = array<i64: 1, 64, 256>}, {transform_indices = @transform_33, window_bounds = array<i64: 1, 1, 256>}, {transform_indices = @transform_34, window_bounds = array<i64: 1, 256, 64>}, {transform_indices = @transform_35, window_bounds = array<i64: 1, 1, 64>}, {transform_indices = @transform_36, window_bounds = array<i64: 1, 1, 64>}, {transform_indices = @transform_37, window_bounds = array<i64: 1, 1, 64>}, {pipeline_mode = #tpu.pipeline_mode<synchronous>, transform_indices = @transform_38, window_bounds = array<i64: 1, 64>}, {pipeline_mode = #tpu.pipeline_mode<synchronous>, transform_indices = @transform_39, window_bounds = array<i64: 1, 64>}, {transform_indices = @transform_40, window_bounds = array<i64: 1, 4, 64>}, {transform_indices = @transform_41, window_bounds = array<i64: 1, 4, 64>}]} {
    %c0_i32 = arith.constant 0 : i32
    %0 = arith.cmpi eq, %arg1, %c0_i32 : i32
    %1 = arith.extui %0 : i1 to i32
    %c0_i32_0 = arith.constant 0 : i32
    %2 = arith.cmpi ne, %1, %c0_i32_0 : i32
    scf.if %2 {
      %c0_169 = arith.constant 0 : index
      %c0_170 = arith.constant 0 : index
      %c0_171 = arith.constant 0 : index
      %298 = vector.load %arg2[%c0_169, %c0_170, %c0_171] : memref<1x4x32xf32, #tpu.memory_space<vmem>>, vector<1x4x32xf32>
      %299 = vector.shape_cast %298 : vector<1x4x32xf32> to vector<4x32xf32>
      %c0_172 = arith.constant 0 : index
      %c0_173 = arith.constant 0 : index
      %300 = vector.load %arg4[%c0_172, %c0_173] : memref<32x64xbf16, #tpu.memory_space<vmem>>, vector<32x64xbf16>
      %301 = arith.truncf %299 : vector<4x32xf32> to vector<4x32xbf16>
      %cst_174 = arith.constant dense<0.000000e+00> : vector<4x64xf32>
      %302 = tpu.matmul %301, %300, %cst_174 {dimension_numbers = #tpu.dot_dimension_numbers<[1], [0], [0], [1], [0, 0, 1, 1], [], []>} : vector<4x32xbf16>, vector<32x64xbf16>, vector<4x64xf32> -> vector<4x64xf32>
      %c0_175 = arith.constant 0 : index
      %c0_176 = arith.constant 0 : index
      %303 = vector.load %arg5[%c0_175, %c0_176] : memref<1x64xf32, #tpu.memory_space<vmem>>, vector<1x64xf32>
      %304 = vector.broadcast %303 : vector<1x64xf32> to vector<4x64xf32>
      %305 = arith.addf %302, %304 : vector<4x64xf32>
      %c0_177 = arith.constant 0 : index
      %c0_178 = arith.constant 0 : index
      %c0_179 = arith.constant 0 : index
      %306 = vector.load %arg42[%c0_177, %c0_178, %c0_179] : memref<1x4x64xf32, #tpu.memory_space<vmem>>, vector<1x4x64xf32>
      %307 = vector.shape_cast %306 : vector<1x4x64xf32> to vector<4x64xf32>
      %308 = vector.shape_cast %305 : vector<4x64xf32> to vector<1x4x64xf32>
      tpu.vector_store %arg42[%c0_177, %c0_178, %c0_179], %308 {strides = array<i32>} : memref<1x4x64xf32, #tpu.memory_space<vmem>>, vector<1x4x64xf32>,
      %c0_180 = arith.constant 0 : index
      %c0_181 = arith.constant 0 : index
      %c0_182 = arith.constant 0 : index
      %309 = vector.load %arg3[%c0_180, %c0_181, %c0_182] : memref<1x4x32xf32, #tpu.memory_space<vmem>>, vector<1x4x32xf32>
      %310 = vector.shape_cast %309 : vector<1x4x32xf32> to vector<4x32xf32>
      %c0_183 = arith.constant 0 : index
      %c0_184 = arith.constant 0 : index
      %311 = vector.load %arg6[%c0_183, %c0_184] : memref<32x64xbf16, #tpu.memory_space<vmem>>, vector<32x64xbf16>
      %312 = arith.truncf %310 : vector<4x32xf32> to vector<4x32xbf16>
      %cst_185 = arith.constant dense<0.000000e+00> : vector<4x64xf32>
      %313 = tpu.matmul %312, %311, %cst_185 {dimension_numbers = #tpu.dot_dimension_numbers<[1], [0], [0], [1], [0, 0, 1, 1], [], []>} : vector<4x32xbf16>, vector<32x64xbf16>, vector<4x64xf32> -> vector<4x64xf32>
      %c0_186 = arith.constant 0 : index
      %c0_187 = arith.constant 0 : index
      %314 = vector.load %arg7[%c0_186, %c0_187] : memref<1x64xf32, #tpu.memory_space<vmem>>, vector<1x64xf32>
      %315 = vector.broadcast %314 : vector<1x64xf32> to vector<4x64xf32>
      %316 = arith.addf %313, %315 : vector<4x64xf32>
      %c0_188 = arith.constant 0 : index
      %c0_189 = arith.constant 0 : index
      %c0_190 = arith.constant 0 : index
      %317 = vector.load %arg43[%c0_188, %c0_189, %c0_190] : memref<1x4x64xf32, #tpu.memory_space<vmem>>, vector<1x4x64xf32>
      %318 = vector.shape_cast %317 : vector<1x4x64xf32> to vector<4x64xf32>
      %319 = vector.shape_cast %316 : vector<4x64xf32> to vector<1x4x64xf32>
      tpu.vector_store %arg43[%c0_188, %c0_189, %c0_190], %319 {strides = array<i32>} : memref<1x4x64xf32, #tpu.memory_space<vmem>>, vector<1x4x64xf32>,
    } else {
    }
    %c0 = arith.constant 0 : index
    %c0_1 = arith.constant 0 : index
    %c0_2 = arith.constant 0 : index
    %c0_3 = arith.constant 0 : index
    %3 = vector.load %arg8[%c0, %c0_1, %c0_2, %c0_3] : memref<1x4x64x16xbf16, #tpu.memory_space<vmem>>, vector<1x4x64x16xbf16>
    %4 = vector.shape_cast %3 : vector<1x4x64x16xbf16> to vector<4x64x16xbf16>
    %c0_4 = arith.constant 0 : index
    %c0_5 = arith.constant 0 : index
    %c0_6 = arith.constant 0 : index
    %c0_7 = arith.constant 0 : index
    %5 = vector.load %arg9[%c0_4, %c0_5, %c0_6, %c0_7] : memref<1x4x64x16xbf16, #tpu.memory_space<vmem>>, vector<1x4x64x16xbf16>
    %6 = vector.shape_cast %5 : vector<1x4x64x16xbf16> to vector<4x64x16xbf16>
    %c0_8 = arith.constant 0 : index
    %c0_9 = arith.constant 0 : index
    %c0_10 = arith.constant 0 : index
    %c0_11 = arith.constant 0 : index
    %7 = vector.load %arg10[%c0_8, %c0_9, %c0_10, %c0_11] : memref<1x4x64x16xbf16, #tpu.memory_space<vmem>>, vector<1x4x64x16xbf16>
    %8 = vector.shape_cast %7 : vector<1x4x64x16xbf16> to vector<4x64x16xbf16>
    %c0_12 = arith.constant 0 : index
    %c0_13 = arith.constant 0 : index
    %c0_14 = arith.constant 0 : index
    %c0_15 = arith.constant 0 : index
    %9 = vector.load %arg11[%c0_12, %c0_13, %c0_14, %c0_15] : memref<1x4x16x64xbf16, #tpu.memory_space<vmem>>, vector<1x4x16x64xbf16>
    %10 = vector.shape_cast %9 : vector<1x4x16x64xbf16> to vector<4x16x64xbf16>
    %c0_16 = arith.constant 0 : index
    %c0_17 = arith.constant 0 : index
    %c0_18 = arith.constant 0 : index
    %c0_19 = arith.constant 0 : index
    %11 = vector.load %arg12[%c0_16, %c0_17, %c0_18, %c0_19] : memref<1x4x1x16xf32, #tpu.memory_space<vmem>>, vector<1x4x1x16xf32>
    %12 = vector.shape_cast %11 : vector<1x4x1x16xf32> to vector<4x1x16xf32>
    %c0_20 = arith.constant 0 : index
    %c0_21 = arith.constant 0 : index
    %c0_22 = arith.constant 0 : index
    %c0_23 = arith.constant 0 : index
    %13 = vector.load %arg13[%c0_20, %c0_21, %c0_22, %c0_23] : memref<1x4x1x16xf32, #tpu.memory_space<vmem>>, vector<1x4x1x16xf32>
    %14 = vector.shape_cast %13 : vector<1x4x1x16xf32> to vector<4x1x16xf32>
    %c0_24 = arith.constant 0 : index
    %c0_25 = arith.constant 0 : index
    %c0_26 = arith.constant 0 : index
    %c0_27 = arith.constant 0 : index
    %15 = vector.load %arg14[%c0_24, %c0_25, %c0_26, %c0_27] : memref<1x4x1x16xf32, #tpu.memory_space<vmem>>, vector<1x4x1x16xf32>
    %16 = vector.shape_cast %15 : vector<1x4x1x16xf32> to vector<4x1x16xf32>
    %c0_28 = arith.constant 0 : index
    %c0_29 = arith.constant 0 : index
    %c0_30 = arith.constant 0 : index
    %17 = vector.load %arg15[%c0_28, %c0_29, %c0_30] : memref<1x1x64xf32, #tpu.memory_space<vmem>>, vector<1x1x64xf32>
    %18 = vector.shape_cast %17 : vector<1x1x64xf32> to vector<1x64xf32>
    %c0_31 = arith.constant 0 : index
    %c0_32 = arith.constant 0 : index
    %c0_33 = arith.constant 0 : index
    %19 = vector.load %arg16[%c0_31, %c0_32, %c0_33] : memref<1x1x64xf32, #tpu.memory_space<vmem>>, vector<1x1x64xf32>
    %20 = vector.shape_cast %19 : vector<1x1x64xf32> to vector<1x64xf32>
    %c0_34 = arith.constant 0 : index
    %c0_35 = arith.constant 0 : index
    %c0_36 = arith.constant 0 : index
    %21 = vector.load %arg17[%c0_34, %c0_35, %c0_36] : memref<1x1x64xf32, #tpu.memory_space<vmem>>, vector<1x1x64xf32>
    %22 = vector.shape_cast %21 : vector<1x1x64xf32> to vector<1x64xf32>
    %c0_37 = arith.constant 0 : index
    %c0_38 = arith.constant 0 : index
    %c0_39 = arith.constant 0 : index
    %23 = vector.load %arg18[%c0_37, %c0_38, %c0_39] : memref<1x64x256xbf16, #tpu.memory_space<vmem>>, vector<1x64x256xbf16>
    %24 = vector.shape_cast %23 : vector<1x64x256xbf16> to vector<64x256xbf16>
    %c0_40 = arith.constant 0 : index
    %c0_41 = arith.constant 0 : index
    %c0_42 = arith.constant 0 : index
    %25 = vector.load %arg19[%c0_40, %c0_41, %c0_42] : memref<1x1x256xf32, #tpu.memory_space<vmem>>, vector<1x1x256xf32>
    %26 = vector.shape_cast %25 : vector<1x1x256xf32> to vector<1x256xf32>
    %c0_43 = arith.constant 0 : index
    %c0_44 = arith.constant 0 : index
    %c0_45 = arith.constant 0 : index
    %27 = vector.load %arg20[%c0_43, %c0_44, %c0_45] : memref<1x256x64xbf16, #tpu.memory_space<vmem>>, vector<1x256x64xbf16>
    %28 = vector.shape_cast %27 : vector<1x256x64xbf16> to vector<256x64xbf16>
    %c0_46 = arith.constant 0 : index
    %c0_47 = arith.constant 0 : index
    %c0_48 = arith.constant 0 : index
    %29 = vector.load %arg21[%c0_46, %c0_47, %c0_48] : memref<1x1x64xf32, #tpu.memory_space<vmem>>, vector<1x1x64xf32>
    %30 = vector.shape_cast %29 : vector<1x1x64xf32> to vector<1x64xf32>
    %c0_49 = arith.constant 0 : index
    %c0_50 = arith.constant 0 : index
    %c0_51 = arith.constant 0 : index
    %31 = vector.load %arg22[%c0_49, %c0_50, %c0_51] : memref<1x1x64xf32, #tpu.memory_space<vmem>>, vector<1x1x64xf32>
    %32 = vector.shape_cast %31 : vector<1x1x64xf32> to vector<1x64xf32>
    %c0_52 = arith.constant 0 : index
    %c0_53 = arith.constant 0 : index
    %c0_54 = arith.constant 0 : index
    %33 = vector.load %arg23[%c0_52, %c0_53, %c0_54] : memref<1x1x64xf32, #tpu.memory_space<vmem>>, vector<1x1x64xf32>
    %34 = vector.shape_cast %33 : vector<1x1x64xf32> to vector<1x64xf32>
    %c0_55 = arith.constant 0 : index
    %c0_56 = arith.constant 0 : index
    %c0_57 = arith.constant 0 : index
    %c0_58 = arith.constant 0 : index
    %35 = vector.load %arg24[%c0_55, %c0_56, %c0_57, %c0_58] : memref<1x4x64x16xbf16, #tpu.memory_space<vmem>>, vector<1x4x64x16xbf16>
    %36 = vector.shape_cast %35 : vector<1x4x64x16xbf16> to vector<4x64x16xbf16>
    %c0_59 = arith.constant 0 : index
    %c0_60 = arith.constant 0 : index
    %c0_61 = arith.constant 0 : index
    %c0_62 = arith.constant 0 : index
    %37 = vector.load %arg25[%c0_59, %c0_60, %c0_61, %c0_62] : memref<1x4x64x16xbf16, #tpu.memory_space<vmem>>, vector<1x4x64x16xbf16>
    %38 = vector.shape_cast %37 : vector<1x4x64x16xbf16> to vector<4x64x16xbf16>
    %c0_63 = arith.constant 0 : index
    %c0_64 = arith.constant 0 : index
    %c0_65 = arith.constant 0 : index
    %c0_66 = arith.constant 0 : index
    %39 = vector.load %arg26[%c0_63, %c0_64, %c0_65, %c0_66] : memref<1x4x64x16xbf16, #tpu.memory_space<vmem>>, vector<1x4x64x16xbf16>
    %40 = vector.shape_cast %39 : vector<1x4x64x16xbf16> to vector<4x64x16xbf16>
    %c0_67 = arith.constant 0 : index
    %c0_68 = arith.constant 0 : index
    %c0_69 = arith.constant 0 : index
    %c0_70 = arith.constant 0 : index
    %41 = vector.load %arg27[%c0_67, %c0_68, %c0_69, %c0_70] : memref<1x4x16x64xbf16, #tpu.memory_space<vmem>>, vector<1x4x16x64xbf16>
    %42 = vector.shape_cast %41 : vector<1x4x16x64xbf16> to vector<4x16x64xbf16>
    %c0_71 = arith.constant 0 : index
    %c0_72 = arith.constant 0 : index
    %c0_73 = arith.constant 0 : index
    %c0_74 = arith.constant 0 : index
    %43 = vector.load %arg28[%c0_71, %c0_72, %c0_73, %c0_74] : memref<1x4x1x16xf32, #tpu.memory_space<vmem>>, vector<1x4x1x16xf32>
    %44 = vector.shape_cast %43 : vector<1x4x1x16xf32> to vector<4x1x16xf32>
    %c0_75 = arith.constant 0 : index
    %c0_76 = arith.constant 0 : index
    %c0_77 = arith.constant 0 : index
    %c0_78 = arith.constant 0 : index
    %45 = vector.load %arg29[%c0_75, %c0_76, %c0_77, %c0_78] : memref<1x4x1x16xf32, #tpu.memory_space<vmem>>, vector<1x4x1x16xf32>
    %46 = vector.shape_cast %45 : vector<1x4x1x16xf32> to vector<4x1x16xf32>
    %c0_79 = arith.constant 0 : index
    %c0_80 = arith.constant 0 : index
    %c0_81 = arith.constant 0 : index
    %c0_82 = arith.constant 0 : index
    %47 = vector.load %arg30[%c0_79, %c0_80, %c0_81, %c0_82] : memref<1x4x1x16xf32, #tpu.memory_space<vmem>>, vector<1x4x1x16xf32>
    %48 = vector.shape_cast %47 : vector<1x4x1x16xf32> to vector<4x1x16xf32>
    %c0_83 = arith.constant 0 : index
    %c0_84 = arith.constant 0 : index
    %c0_85 = arith.constant 0 : index
    %49 = vector.load %arg31[%c0_83, %c0_84, %c0_85] : memref<1x1x64xf32, #tpu.memory_space<vmem>>, vector<1x1x64xf32>
    %50 = vector.shape_cast %49 : vector<1x1x64xf32> to vector<1x64xf32>
    %c0_86 = arith.constant 0 : index
    %c0_87 = arith.constant 0 : index
    %c0_88 = arith.constant 0 : index
    %51 = vector.load %arg32[%c0_86, %c0_87, %c0_88] : memref<1x1x64xf32, #tpu.memory_space<vmem>>, vector<1x1x64xf32>
    %52 = vector.shape_cast %51 : vector<1x1x64xf32> to vector<1x64xf32>
    %c0_89 = arith.constant 0 : index
    %c0_90 = arith.constant 0 : index
    %c0_91 = arith.constant 0 : index
    %53 = vector.load %arg33[%c0_89, %c0_90, %c0_91] : memref<1x1x64xf32, #tpu.memory_space<vmem>>, vector<1x1x64xf32>
    %54 = vector.shape_cast %53 : vector<1x1x64xf32> to vector<1x64xf32>
    %c0_92 = arith.constant 0 : index
    %c0_93 = arith.constant 0 : index
    %c0_94 = arith.constant 0 : index
    %55 = vector.load %arg34[%c0_92, %c0_93, %c0_94] : memref<1x64x256xbf16, #tpu.memory_space<vmem>>, vector<1x64x256xbf16>
    %56 = vector.shape_cast %55 : vector<1x64x256xbf16> to vector<64x256xbf16>
    %c0_95 = arith.constant 0 : index
    %c0_96 = arith.constant 0 : index
    %c0_97 = arith.constant 0 : index
    %57 = vector.load %arg35[%c0_95, %c0_96, %c0_97] : memref<1x1x256xf32, #tpu.memory_space<vmem>>, vector<1x1x256xf32>
    %58 = vector.shape_cast %57 : vector<1x1x256xf32> to vector<1x256xf32>
    %c0_98 = arith.constant 0 : index
    %c0_99 = arith.constant 0 : index
    %c0_100 = arith.constant 0 : index
    %59 = vector.load %arg36[%c0_98, %c0_99, %c0_100] : memref<1x256x64xbf16, #tpu.memory_space<vmem>>, vector<1x256x64xbf16>
    %60 = vector.shape_cast %59 : vector<1x256x64xbf16> to vector<256x64xbf16>
    %c0_101 = arith.constant 0 : index
    %c0_102 = arith.constant 0 : index
    %c0_103 = arith.constant 0 : index
    %61 = vector.load %arg37[%c0_101, %c0_102, %c0_103] : memref<1x1x64xf32, #tpu.memory_space<vmem>>, vector<1x1x64xf32>
    %62 = vector.shape_cast %61 : vector<1x1x64xf32> to vector<1x64xf32>
    %c0_104 = arith.constant 0 : index
    %c0_105 = arith.constant 0 : index
    %c0_106 = arith.constant 0 : index
    %63 = vector.load %arg38[%c0_104, %c0_105, %c0_106] : memref<1x1x64xf32, #tpu.memory_space<vmem>>, vector<1x1x64xf32>
    %64 = vector.shape_cast %63 : vector<1x1x64xf32> to vector<1x64xf32>
    %c0_107 = arith.constant 0 : index
    %c0_108 = arith.constant 0 : index
    %c0_109 = arith.constant 0 : index
    %65 = vector.load %arg39[%c0_107, %c0_108, %c0_109] : memref<1x1x64xf32, #tpu.memory_space<vmem>>, vector<1x1x64xf32>
    %66 = vector.shape_cast %65 : vector<1x1x64xf32> to vector<1x64xf32>
    %c0_110 = arith.constant 0 : index
    %c0_111 = arith.constant 0 : index
    %c0_112 = arith.constant 0 : index
    %67 = vector.load %arg42[%c0_110, %c0_111, %c0_112] : memref<1x4x64xf32, #tpu.memory_space<vmem>>, vector<1x4x64xf32>
    %68 = vector.shape_cast %67 : vector<1x4x64xf32> to vector<4x64xf32>
    %c0_113 = arith.constant 0 : index
    %c0_114 = arith.constant 0 : index
    %c0_115 = arith.constant 0 : index
    %69 = vector.load %arg43[%c0_113, %c0_114, %c0_115] : memref<1x4x64xf32, #tpu.memory_space<vmem>>, vector<1x4x64xf32>
    %70 = vector.shape_cast %69 : vector<1x4x64xf32> to vector<4x64xf32>
    %71 = vector.shape_cast %68 : vector<4x64xf32> to vector<1x4x64xf32>
    %72 = vector.shape_cast %71 : vector<1x4x64xf32> to vector<1x4x64xf32>
    %73 = vector.broadcast %72 : vector<1x4x64xf32> to vector<4x4x64xf32>
    %74 = vector.shape_cast %70 : vector<4x64xf32> to vector<1x4x64xf32>
    %75 = vector.shape_cast %74 : vector<1x4x64xf32> to vector<1x4x64xf32>
    %76 = vector.broadcast %75 : vector<1x4x64xf32> to vector<4x4x64xf32>
    %77 = arith.truncf %73 : vector<4x4x64xf32> to vector<4x4x64xbf16>
    %cst = arith.constant dense<0.000000e+00> : vector<4x4x16xf32>
    %78 = tpu.matmul %77, %4, %cst {dimension_numbers = #tpu.dot_dimension_numbers<[2], [1], [1], [2], [0, 0, 0, 1, 1, 2], [0], [0]>} : vector<4x4x64xbf16>, vector<4x64x16xbf16>, vector<4x4x16xf32> -> vector<4x4x16xf32>
    %79 = vector.broadcast %12 : vector<4x1x16xf32> to vector<4x4x16xf32>
    %80 = arith.addf %78, %79 : vector<4x4x16xf32>
    %81 = arith.truncf %76 : vector<4x4x64xf32> to vector<4x4x64xbf16>
    %cst_116 = arith.constant dense<0.000000e+00> : vector<4x4x16xf32>
    %82 = tpu.matmul %81, %6, %cst_116 {dimension_numbers = #tpu.dot_dimension_numbers<[2], [1], [1], [2], [0, 0, 0, 1, 1, 2], [0], [0]>} : vector<4x4x64xbf16>, vector<4x64x16xbf16>, vector<4x4x16xf32> -> vector<4x4x16xf32>
    %83 = vector.broadcast %14 : vector<4x1x16xf32> to vector<4x4x16xf32>
    %84 = arith.addf %82, %83 : vector<4x4x16xf32>
    %85 = arith.truncf %76 : vector<4x4x64xf32> to vector<4x4x64xbf16>
    %cst_117 = arith.constant dense<0.000000e+00> : vector<4x4x16xf32>
    %86 = tpu.matmul %85, %8, %cst_117 {dimension_numbers = #tpu.dot_dimension_numbers<[2], [1], [1], [2], [0, 0, 0, 1, 1, 2], [0], [0]>} : vector<4x4x64xbf16>, vector<4x64x16xbf16>, vector<4x4x16xf32> -> vector<4x4x16xf32>
    %87 = vector.broadcast %16 : vector<4x1x16xf32> to vector<4x4x16xf32>
    %88 = arith.addf %86, %87 : vector<4x4x16xf32>
    %cst_118 = arith.constant 2.500000e-01 : f32
    %89 = vector.broadcast %cst_118 : f32 to vector<4x4x16xf32>
    %90 = arith.mulf %80, %89 : vector<4x4x16xf32>
    %91 = arith.truncf %90 : vector<4x4x16xf32> to vector<4x4x16xbf16>
    %92 = arith.truncf %84 : vector<4x4x16xf32> to vector<4x4x16xbf16>
    %cst_119 = arith.constant dense<0.000000e+00> : vector<4x4x4xf32>
    %93 = tpu.matmul %91, %92, %cst_119 {dimension_numbers = #tpu.dot_dimension_numbers<[2], [2], [1], [1], [0, 0, 0, 1, 1, 1], [0], [0]>} : vector<4x4x16xbf16>, vector<4x4x16xbf16>, vector<4x4x4xf32> -> vector<4x4x4xf32>
    %cst_120 = arith.constant dense<0xFF800000> : vector<4x4xf32>
    %94 = vector.multi_reduction <maximumf>, %93, %cst_120 [2] : vector<4x4x4xf32> to vector<4x4xf32>
    %95 = vector.shape_cast %94 : vector<4x4xf32> to vector<4x4x1xf32>
    %96 = vector.broadcast %95 : vector<4x4x1xf32> to vector<4x4x4xf32>
    %97 = arith.subf %93, %96 : vector<4x4x4xf32>
    %98 = math.exp %97 : vector<4x4x4xf32>
    %cst_121 = arith.constant dense<0.000000e+00> : vector<4x4xf32>
    %99 = vector.multi_reduction <add>, %98, %cst_121 [2] : vector<4x4x4xf32> to vector<4x4xf32>
    %100 = vector.shape_cast %99 : vector<4x4xf32> to vector<4x4x1xf32>
    %101 = tpu.reciprocal %100 {approx = true} : vector<4x4x1xf32> -> vector<4x4x1xf32>
    %102 = vector.broadcast %101 : vector<4x4x1xf32> to vector<4x4x4xf32>
    %103 = arith.mulf %98, %102 : vector<4x4x4xf32>
    %104 = arith.truncf %103 : vector<4x4x4xf32> to vector<4x4x4xbf16>
    %105 = arith.truncf %88 : vector<4x4x16xf32> to vector<4x4x16xbf16>
    %cst_122 = arith.constant dense<0.000000e+00> : vector<4x4x16xf32>
    %106 = tpu.matmul %104, %105, %cst_122 {dimension_numbers = #tpu.dot_dimension_numbers<[2], [1], [1], [2], [0, 0, 0, 1, 1, 2], [0], [0]>} : vector<4x4x4xbf16>, vector<4x4x16xbf16>, vector<4x4x16xf32> -> vector<4x4x16xf32>
    %107 = arith.truncf %106 : vector<4x4x16xf32> to vector<4x4x16xbf16>
    %cst_123 = arith.constant dense<0.000000e+00> : vector<4x4x64xf32>
    %108 = tpu.matmul %107, %10, %cst_123 {dimension_numbers = #tpu.dot_dimension_numbers<[2], [1], [1], [2], [0, 0, 0, 1, 1, 2], [0], [0]>} : vector<4x4x16xbf16>, vector<4x16x64xbf16>, vector<4x4x64xf32> -> vector<4x4x64xf32>
    %109 = vector.extract_strided_slice %108 {offsets = [0, 0, 0], sizes = [1, 4, 64], strides = [1, 1, 1]} : vector<4x4x64xf32> to vector<1x4x64xf32>
    %110 = vector.shape_cast %109 : vector<1x4x64xf32> to vector<4x64xf32>
    %111 = vector.extract_strided_slice %108 {offsets = [1, 0, 0], sizes = [1, 4, 64], strides = [1, 1, 1]} : vector<4x4x64xf32> to vector<1x4x64xf32>
    %112 = vector.shape_cast %111 : vector<1x4x64xf32> to vector<4x64xf32>
    %113 = arith.addf %110, %112 : vector<4x64xf32>
    %114 = vector.extract_strided_slice %108 {offsets = [2, 0, 0], sizes = [1, 4, 64], strides = [1, 1, 1]} : vector<4x4x64xf32> to vector<1x4x64xf32>
    %115 = vector.shape_cast %114 : vector<1x4x64xf32> to vector<4x64xf32>
    %116 = arith.addf %113, %115 : vector<4x64xf32>
    %117 = vector.extract_strided_slice %108 {offsets = [3, 0, 0], sizes = [1, 4, 64], strides = [1, 1, 1]} : vector<4x4x64xf32> to vector<1x4x64xf32>
    %118 = vector.shape_cast %117 : vector<1x4x64xf32> to vector<4x64xf32>
    %119 = arith.addf %116, %118 : vector<4x64xf32>
    %120 = vector.broadcast %18 : vector<1x64xf32> to vector<4x64xf32>
    %121 = arith.addf %119, %120 : vector<4x64xf32>
    %122 = arith.addf %68, %121 : vector<4x64xf32>
    %cst_124 = arith.constant dense<0.000000e+00> : vector<4xf32>
    %123 = vector.multi_reduction <add>, %122, %cst_124 [1] : vector<4x64xf32> to vector<4xf32>
    %124 = vector.shape_cast %123 : vector<4xf32> to vector<4x1xf32>
    %cst_125 = arith.constant 6.400000e+01 : f32
    %125 = vector.broadcast %cst_125 : f32 to vector<4x1xf32>
    %126 = arith.divf %124, %125 : vector<4x1xf32>
    %127 = vector.broadcast %126 : vector<4x1xf32> to vector<4x64xf32>
    %128 = arith.subf %122, %127 : vector<4x64xf32>
    %129 = arith.mulf %128, %128 : vector<4x64xf32>
    %cst_126 = arith.constant dense<0.000000e+00> : vector<4xf32>
    %130 = vector.multi_reduction <add>, %129, %cst_126 [1] : vector<4x64xf32> to vector<4xf32>
    %131 = vector.shape_cast %130 : vector<4xf32> to vector<4x1xf32>
    %cst_127 = arith.constant 6.400000e+01 : f32
    %132 = vector.broadcast %cst_127 : f32 to vector<4x1xf32>
    %133 = arith.divf %131, %132 : vector<4x1xf32>
    %cst_128 = arith.constant 9.99999974E-6 : f32
    %134 = vector.broadcast %cst_128 : f32 to vector<4x1xf32>
    %135 = arith.addf %133, %134 : vector<4x1xf32>
    %136 = math.rsqrt %135 : vector<4x1xf32>
    %137 = vector.broadcast %136 : vector<4x1xf32> to vector<4x64xf32>
    %138 = arith.mulf %128, %137 : vector<4x64xf32>
    %139 = vector.broadcast %20 : vector<1x64xf32> to vector<4x64xf32>
    %140 = arith.mulf %138, %139 : vector<4x64xf32>
    %141 = vector.broadcast %22 : vector<1x64xf32> to vector<4x64xf32>
    %142 = arith.addf %140, %141 : vector<4x64xf32>
    %143 = arith.truncf %142 : vector<4x64xf32> to vector<4x64xbf16>
    %cst_129 = arith.constant dense<0.000000e+00> : vector<4x256xf32>
    %144 = tpu.matmul %143, %24, %cst_129 {dimension_numbers = #tpu.dot_dimension_numbers<[1], [0], [0], [1], [0, 0, 1, 1], [], []>} : vector<4x64xbf16>, vector<64x256xbf16>, vector<4x256xf32> -> vector<4x256xf32>
    %145 = vector.broadcast %26 : vector<1x256xf32> to vector<4x256xf32>
    %146 = arith.addf %144, %145 : vector<4x256xf32>
    %cst_130 = arith.constant 5.000000e-01 : f32
    %147 = vector.broadcast %cst_130 : f32 to vector<4x256xf32>
    %148 = arith.mulf %147, %146 : vector<4x256xf32>
    %cst_131 = arith.constant 0.707106769 : f32
    %149 = vector.broadcast %cst_131 : f32 to vector<4x256xf32>
    %150 = arith.mulf %146, %149 : vector<4x256xf32>
    %151 = math.erf %150 : vector<4x256xf32>
    %cst_132 = arith.constant 1.000000e+00 : f32
    %152 = vector.broadcast %cst_132 : f32 to vector<4x256xf32>
    %153 = arith.addf %152, %151 : vector<4x256xf32>
    %154 = arith.mulf %148, %153 : vector<4x256xf32>
    %155 = arith.truncf %154 : vector<4x256xf32> to vector<4x256xbf16>
    %cst_133 = arith.constant dense<0.000000e+00> : vector<4x64xf32>
    %156 = tpu.matmul %155, %28, %cst_133 {dimension_numbers = #tpu.dot_dimension_numbers<[1], [0], [0], [1], [0, 0, 1, 1], [], []>} : vector<4x256xbf16>, vector<256x64xbf16>, vector<4x64xf32> -> vector<4x64xf32>
    %157 = vector.broadcast %30 : vector<1x64xf32> to vector<4x64xf32>
    %158 = arith.addf %156, %157 : vector<4x64xf32>
    %159 = arith.addf %142, %158 : vector<4x64xf32>
    %cst_134 = arith.constant dense<0.000000e+00> : vector<4xf32>
    %160 = vector.multi_reduction <add>, %159, %cst_134 [1] : vector<4x64xf32> to vector<4xf32>
    %161 = vector.shape_cast %160 : vector<4xf32> to vector<4x1xf32>
    %cst_135 = arith.constant 6.400000e+01 : f32
    %162 = vector.broadcast %cst_135 : f32 to vector<4x1xf32>
    %163 = arith.divf %161, %162 : vector<4x1xf32>
    %164 = vector.broadcast %163 : vector<4x1xf32> to vector<4x64xf32>
    %165 = arith.subf %159, %164 : vector<4x64xf32>
    %166 = arith.mulf %165, %165 : vector<4x64xf32>
    %cst_136 = arith.constant dense<0.000000e+00> : vector<4xf32>
    %167 = vector.multi_reduction <add>, %166, %cst_136 [1] : vector<4x64xf32> to vector<4xf32>
    %168 = vector.shape_cast %167 : vector<4xf32> to vector<4x1xf32>
    %cst_137 = arith.constant 6.400000e+01 : f32
    %169 = vector.broadcast %cst_137 : f32 to vector<4x1xf32>
    %170 = arith.divf %168, %169 : vector<4x1xf32>
    %cst_138 = arith.constant 9.99999974E-6 : f32
    %171 = vector.broadcast %cst_138 : f32 to vector<4x1xf32>
    %172 = arith.addf %170, %171 : vector<4x1xf32>
    %173 = math.rsqrt %172 : vector<4x1xf32>
    %174 = vector.broadcast %173 : vector<4x1xf32> to vector<4x64xf32>
    %175 = arith.mulf %165, %174 : vector<4x64xf32>
    %176 = vector.broadcast %32 : vector<1x64xf32> to vector<4x64xf32>
    %177 = arith.mulf %175, %176 : vector<4x64xf32>
    %178 = vector.broadcast %34 : vector<1x64xf32> to vector<4x64xf32>
    %179 = arith.addf %177, %178 : vector<4x64xf32>
    %180 = vector.shape_cast %70 : vector<4x64xf32> to vector<1x4x64xf32>
    %181 = vector.shape_cast %180 : vector<1x4x64xf32> to vector<1x4x64xf32>
    %182 = vector.broadcast %181 : vector<1x4x64xf32> to vector<4x4x64xf32>
    %183 = vector.shape_cast %179 : vector<4x64xf32> to vector<1x4x64xf32>
    %184 = vector.shape_cast %183 : vector<1x4x64xf32> to vector<1x4x64xf32>
    %185 = vector.broadcast %184 : vector<1x4x64xf32> to vector<4x4x64xf32>
    %186 = arith.truncf %182 : vector<4x4x64xf32> to vector<4x4x64xbf16>
    %cst_139 = arith.constant dense<0.000000e+00> : vector<4x4x16xf32>
    %187 = tpu.matmul %186, %36, %cst_139 {dimension_numbers = #tpu.dot_dimension_numbers<[2], [1], [1], [2], [0, 0, 0, 1, 1, 2], [0], [0]>} : vector<4x4x64xbf16>, vector<4x64x16xbf16>, vector<4x4x16xf32> -> vector<4x4x16xf32>
    %188 = vector.broadcast %44 : vector<4x1x16xf32> to vector<4x4x16xf32>
    %189 = arith.addf %187, %188 : vector<4x4x16xf32>
    %190 = arith.truncf %185 : vector<4x4x64xf32> to vector<4x4x64xbf16>
    %cst_140 = arith.constant dense<0.000000e+00> : vector<4x4x16xf32>
    %191 = tpu.matmul %190, %38, %cst_140 {dimension_numbers = #tpu.dot_dimension_numbers<[2], [1], [1], [2], [0, 0, 0, 1, 1, 2], [0], [0]>} : vector<4x4x64xbf16>, vector<4x64x16xbf16>, vector<4x4x16xf32> -> vector<4x4x16xf32>
    %192 = vector.broadcast %46 : vector<4x1x16xf32> to vector<4x4x16xf32>
    %193 = arith.addf %191, %192 : vector<4x4x16xf32>
    %194 = arith.truncf %185 : vector<4x4x64xf32> to vector<4x4x64xbf16>
    %cst_141 = arith.constant dense<0.000000e+00> : vector<4x4x16xf32>
    %195 = tpu.matmul %194, %40, %cst_141 {dimension_numbers = #tpu.dot_dimension_numbers<[2], [1], [1], [2], [0, 0, 0, 1, 1, 2], [0], [0]>} : vector<4x4x64xbf16>, vector<4x64x16xbf16>, vector<4x4x16xf32> -> vector<4x4x16xf32>
    %196 = vector.broadcast %48 : vector<4x1x16xf32> to vector<4x4x16xf32>
    %197 = arith.addf %195, %196 : vector<4x4x16xf32>
    %cst_142 = arith.constant 2.500000e-01 : f32
    %198 = vector.broadcast %cst_142 : f32 to vector<4x4x16xf32>
    %199 = arith.mulf %189, %198 : vector<4x4x16xf32>
    %200 = arith.truncf %199 : vector<4x4x16xf32> to vector<4x4x16xbf16>
    %201 = arith.truncf %193 : vector<4x4x16xf32> to vector<4x4x16xbf16>
    %cst_143 = arith.constant dense<0.000000e+00> : vector<4x4x4xf32>
    %202 = tpu.matmul %200, %201, %cst_143 {dimension_numbers = #tpu.dot_dimension_numbers<[2], [2], [1], [1], [0, 0, 0, 1, 1, 1], [0], [0]>} : vector<4x4x16xbf16>, vector<4x4x16xbf16>, vector<4x4x4xf32> -> vector<4x4x4xf32>
    %cst_144 = arith.constant dense<0xFF800000> : vector<4x4xf32>
    %203 = vector.multi_reduction <maximumf>, %202, %cst_144 [2] : vector<4x4x4xf32> to vector<4x4xf32>
    %204 = vector.shape_cast %203 : vector<4x4xf32> to vector<4x4x1xf32>
    %205 = vector.broadcast %204 : vector<4x4x1xf32> to vector<4x4x4xf32>
    %206 = arith.subf %202, %205 : vector<4x4x4xf32>
    %207 = math.exp %206 : vector<4x4x4xf32>
    %cst_145 = arith.constant dense<0.000000e+00> : vector<4x4xf32>
    %208 = vector.multi_reduction <add>, %207, %cst_145 [2] : vector<4x4x4xf32> to vector<4x4xf32>
    %209 = vector.shape_cast %208 : vector<4x4xf32> to vector<4x4x1xf32>
    %210 = tpu.reciprocal %209 {approx = true} : vector<4x4x1xf32> -> vector<4x4x1xf32>
    %211 = vector.broadcast %210 : vector<4x4x1xf32> to vector<4x4x4xf32>
    %212 = arith.mulf %207, %211 : vector<4x4x4xf32>
    %213 = arith.truncf %212 : vector<4x4x4xf32> to vector<4x4x4xbf16>
    %214 = arith.truncf %197 : vector<4x4x16xf32> to vector<4x4x16xbf16>
    %cst_146 = arith.constant dense<0.000000e+00> : vector<4x4x16xf32>
    %215 = tpu.matmul %213, %214, %cst_146 {dimension_numbers = #tpu.dot_dimension_numbers<[2], [1], [1], [2], [0, 0, 0, 1, 1, 2], [0], [0]>} : vector<4x4x4xbf16>, vector<4x4x16xbf16>, vector<4x4x16xf32> -> vector<4x4x16xf32>
    %216 = arith.truncf %215 : vector<4x4x16xf32> to vector<4x4x16xbf16>
    %cst_147 = arith.constant dense<0.000000e+00> : vector<4x4x64xf32>
    %217 = tpu.matmul %216, %42, %cst_147 {dimension_numbers = #tpu.dot_dimension_numbers<[2], [1], [1], [2], [0, 0, 0, 1, 1, 2], [0], [0]>} : vector<4x4x16xbf16>, vector<4x16x64xbf16>, vector<4x4x64xf32> -> vector<4x4x64xf32>
    %218 = vector.extract_strided_slice %217 {offsets = [0, 0, 0], sizes = [1, 4, 64], strides = [1, 1, 1]} : vector<4x4x64xf32> to vector<1x4x64xf32>
    %219 = vector.shape_cast %218 : vector<1x4x64xf32> to vector<4x64xf32>
    %220 = vector.extract_strided_slice %217 {offsets = [1, 0, 0], sizes = [1, 4, 64], strides = [1, 1, 1]} : vector<4x4x64xf32> to vector<1x4x64xf32>
    %221 = vector.shape_cast %220 : vector<1x4x64xf32> to vector<4x64xf32>
    %222 = arith.addf %219, %221 : vector<4x64xf32>
    %223 = vector.extract_strided_slice %217 {offsets = [2, 0, 0], sizes = [1, 4, 64], strides = [1, 1, 1]} : vector<4x4x64xf32> to vector<1x4x64xf32>
    %224 = vector.shape_cast %223 : vector<1x4x64xf32> to vector<4x64xf32>
    %225 = arith.addf %222, %224 : vector<4x64xf32>
    %226 = vector.extract_strided_slice %217 {offsets = [3, 0, 0], sizes = [1, 4, 64], strides = [1, 1, 1]} : vector<4x4x64xf32> to vector<1x4x64xf32>
    %227 = vector.shape_cast %226 : vector<1x4x64xf32> to vector<4x64xf32>
    %228 = arith.addf %225, %227 : vector<4x64xf32>
    %229 = vector.broadcast %50 : vector<1x64xf32> to vector<4x64xf32>
    %230 = arith.addf %228, %229 : vector<4x64xf32>
    %231 = arith.addf %70, %230 : vector<4x64xf32>
    %cst_148 = arith.constant dense<0.000000e+00> : vector<4xf32>
    %232 = vector.multi_reduction <add>, %231, %cst_148 [1] : vector<4x64xf32> to vector<4xf32>
    %233 = vector.shape_cast %232 : vector<4xf32> to vector<4x1xf32>
    %cst_149 = arith.constant 6.400000e+01 : f32
    %234 = vector.broadcast %cst_149 : f32 to vector<4x1xf32>
    %235 = arith.divf %233, %234 : vector<4x1xf32>
    %236 = vector.broadcast %235 : vector<4x1xf32> to vector<4x64xf32>
    %237 = arith.subf %231, %236 : vector<4x64xf32>
    %238 = arith.mulf %237, %237 : vector<4x64xf32>
    %cst_150 = arith.constant dense<0.000000e+00> : vector<4xf32>
    %239 = vector.multi_reduction <add>, %238, %cst_150 [1] : vector<4x64xf32> to vector<4xf32>
    %240 = vector.shape_cast %239 : vector<4xf32> to vector<4x1xf32>
    %cst_151 = arith.constant 6.400000e+01 : f32
    %241 = vector.broadcast %cst_151 : f32 to vector<4x1xf32>
    %242 = arith.divf %240, %241 : vector<4x1xf32>
    %cst_152 = arith.constant 9.99999974E-6 : f32
    %243 = vector.broadcast %cst_152 : f32 to vector<4x1xf32>
    %244 = arith.addf %242, %243 : vector<4x1xf32>
    %245 = math.rsqrt %244 : vector<4x1xf32>
    %246 = vector.broadcast %245 : vector<4x1xf32> to vector<4x64xf32>
    %247 = arith.mulf %237, %246 : vector<4x64xf32>
    %248 = vector.broadcast %52 : vector<1x64xf32> to vector<4x64xf32>
    %249 = arith.mulf %247, %248 : vector<4x64xf32>
    %250 = vector.broadcast %54 : vector<1x64xf32> to vector<4x64xf32>
    %251 = arith.addf %249, %250 : vector<4x64xf32>
    %252 = arith.truncf %251 : vector<4x64xf32> to vector<4x64xbf16>
    %cst_153 = arith.constant dense<0.000000e+00> : vector<4x256xf32>
    %253 = tpu.matmul %252, %56, %cst_153 {dimension_numbers = #tpu.dot_dimension_numbers<[1], [0], [0], [1], [0, 0, 1, 1], [], []>} : vector<4x64xbf16>, vector<64x256xbf16>, vector<4x256xf32> -> vector<4x256xf32>
    %254 = vector.broadcast %58 : vector<1x256xf32> to vector<4x256xf32>
    %255 = arith.addf %253, %254 : vector<4x256xf32>
    %cst_154 = arith.constant 5.000000e-01 : f32
    %256 = vector.broadcast %cst_154 : f32 to vector<4x256xf32>
    %257 = arith.mulf %256, %255 : vector<4x256xf32>
    %cst_155 = arith.constant 0.707106769 : f32
    %258 = vector.broadcast %cst_155 : f32 to vector<4x256xf32>
    %259 = arith.mulf %255, %258 : vector<4x256xf32>
    %260 = math.erf %259 : vector<4x256xf32>
    %cst_156 = arith.constant 1.000000e+00 : f32
    %261 = vector.broadcast %cst_156 : f32 to vector<4x256xf32>
    %262 = arith.addf %261, %260 : vector<4x256xf32>
    %263 = arith.mulf %257, %262 : vector<4x256xf32>
    %264 = arith.truncf %263 : vector<4x256xf32> to vector<4x256xbf16>
    %cst_157 = arith.constant dense<0.000000e+00> : vector<4x64xf32>
    %265 = tpu.matmul %264, %60, %cst_157 {dimension_numbers = #tpu.dot_dimension_numbers<[1], [0], [0], [1], [0, 0, 1, 1], [], []>} : vector<4x256xbf16>, vector<256x64xbf16>, vector<4x64xf32> -> vector<4x64xf32>
    %266 = vector.broadcast %62 : vector<1x64xf32> to vector<4x64xf32>
    %267 = arith.addf %265, %266 : vector<4x64xf32>
    %268 = arith.addf %251, %267 : vector<4x64xf32>
    %cst_158 = arith.constant dense<0.000000e+00> : vector<4xf32>
    %269 = vector.multi_reduction <add>, %268, %cst_158 [1] : vector<4x64xf32> to vector<4xf32>
    %270 = vector.shape_cast %269 : vector<4xf32> to vector<4x1xf32>
    %cst_159 = arith.constant 6.400000e+01 : f32
    %271 = vector.broadcast %cst_159 : f32 to vector<4x1xf32>
    %272 = arith.divf %270, %271 : vector<4x1xf32>
    %273 = vector.broadcast %272 : vector<4x1xf32> to vector<4x64xf32>
    %274 = arith.subf %268, %273 : vector<4x64xf32>
    %275 = arith.mulf %274, %274 : vector<4x64xf32>
    %cst_160 = arith.constant dense<0.000000e+00> : vector<4xf32>
    %276 = vector.multi_reduction <add>, %275, %cst_160 [1] : vector<4x64xf32> to vector<4xf32>
    %277 = vector.shape_cast %276 : vector<4xf32> to vector<4x1xf32>
    %cst_161 = arith.constant 6.400000e+01 : f32
    %278 = vector.broadcast %cst_161 : f32 to vector<4x1xf32>
    %279 = arith.divf %277, %278 : vector<4x1xf32>
    %cst_162 = arith.constant 9.99999974E-6 : f32
    %280 = vector.broadcast %cst_162 : f32 to vector<4x1xf32>
    %281 = arith.addf %279, %280 : vector<4x1xf32>
    %282 = math.rsqrt %281 : vector<4x1xf32>
    %283 = vector.broadcast %282 : vector<4x1xf32> to vector<4x64xf32>
    %284 = arith.mulf %274, %283 : vector<4x64xf32>
    %285 = vector.broadcast %64 : vector<1x64xf32> to vector<4x64xf32>
    %286 = arith.mulf %284, %285 : vector<4x64xf32>
    %287 = vector.broadcast %66 : vector<1x64xf32> to vector<4x64xf32>
    %288 = arith.addf %286, %287 : vector<4x64xf32>
    %c0_163 = arith.constant 0 : index
    %c0_164 = arith.constant 0 : index
    %c0_165 = arith.constant 0 : index
    %289 = vector.load %arg43[%c0_163, %c0_164, %c0_165] : memref<1x4x64xf32, #tpu.memory_space<vmem>>, vector<1x4x64xf32>
    %290 = vector.shape_cast %289 : vector<1x4x64xf32> to vector<4x64xf32>
    %291 = vector.shape_cast %288 : vector<4x64xf32> to vector<1x4x64xf32>
    tpu.vector_store %arg43[%c0_163, %c0_164, %c0_165], %291 {strides = array<i32>} : memref<1x4x64xf32, #tpu.memory_space<vmem>>, vector<1x4x64xf32>,
    %c1_i32 = arith.constant 1 : i32
    %292 = arith.cmpi slt, %arg1, %c1_i32 : i32
    %293 = arith.extui %292 : i1 to i32
    %c0_i32_166 = arith.constant 0 : i32
    %294 = arith.cmpi ne, %293, %c0_i32_166 : i32
    scf.if %294 {
      %c0_169 = arith.constant 0 : index
      %c0_170 = arith.constant 0 : index
      %c0_171 = arith.constant 0 : index
      %298 = vector.load %arg42[%c0_169, %c0_170, %c0_171] : memref<1x4x64xf32, #tpu.memory_space<vmem>>, vector<1x4x64xf32>
      %299 = vector.shape_cast %298 : vector<1x4x64xf32> to vector<4x64xf32>
      %300 = vector.shape_cast %179 : vector<4x64xf32> to vector<1x4x64xf32>
      tpu.vector_store %arg42[%c0_169, %c0_170, %c0_171], %300 {strides = array<i32>} : memref<1x4x64xf32, #tpu.memory_space<vmem>>, vector<1x4x64xf32>,
    } else {
    }
    %c1_i32_167 = arith.constant 1 : i32
    %295 = arith.cmpi eq, %arg1, %c1_i32_167 : i32
    %296 = arith.extui %295 : i1 to i32
    %c0_i32_168 = arith.constant 0 : i32
    %297 = arith.cmpi ne, %296, %c0_i32_168 : i32
    scf.if %297 {
      %c0_169 = arith.constant 0 : index
      %c0_170 = arith.constant 0 : index
      %298 = vector.load %arg40[%c0_169, %c0_170] : memref<1x64xf32, #tpu.memory_space<vmem>>, vector<1x64xf32>
      %c0_171 = arith.constant 0 : index
      %c0_172 = arith.constant 0 : index
      %299 = vector.load %arg41[%c0_171, %c0_172] : memref<1x64xf32, #tpu.memory_space<vmem>>, vector<1x64xf32>
      %cst_173 = arith.constant dense<0.000000e+00> : vector<4xf32>
      %300 = vector.multi_reduction <add>, %179, %cst_173 [1] : vector<4x64xf32> to vector<4xf32>
      %301 = vector.shape_cast %300 : vector<4xf32> to vector<4x1xf32>
      %cst_174 = arith.constant 6.400000e+01 : f32
      %302 = vector.broadcast %cst_174 : f32 to vector<4x1xf32>
      %303 = arith.divf %301, %302 : vector<4x1xf32>
      %304 = vector.broadcast %303 : vector<4x1xf32> to vector<4x64xf32>
      %305 = arith.subf %179, %304 : vector<4x64xf32>
      %306 = arith.mulf %305, %305 : vector<4x64xf32>
      %cst_175 = arith.constant dense<0.000000e+00> : vector<4xf32>
      %307 = vector.multi_reduction <add>, %306, %cst_175 [1] : vector<4x64xf32> to vector<4xf32>
      %308 = vector.shape_cast %307 : vector<4xf32> to vector<4x1xf32>
      %cst_176 = arith.constant 6.400000e+01 : f32
      %309 = vector.broadcast %cst_176 : f32 to vector<4x1xf32>
      %310 = arith.divf %308, %309 : vector<4x1xf32>
      %cst_177 = arith.constant 9.99999974E-6 : f32
      %311 = vector.broadcast %cst_177 : f32 to vector<4x1xf32>
      %312 = arith.addf %310, %311 : vector<4x1xf32>
      %313 = math.rsqrt %312 : vector<4x1xf32>
      %314 = vector.broadcast %313 : vector<4x1xf32> to vector<4x64xf32>
      %315 = arith.mulf %305, %314 : vector<4x64xf32>
      %316 = vector.broadcast %298 : vector<1x64xf32> to vector<4x64xf32>
      %317 = arith.mulf %315, %316 : vector<4x64xf32>
      %318 = vector.broadcast %299 : vector<1x64xf32> to vector<4x64xf32>
      %319 = arith.addf %317, %318 : vector<4x64xf32>
      %c0_178 = arith.constant 0 : index
      %c0_179 = arith.constant 0 : index
      %c0_180 = arith.constant 0 : index
      %320 = vector.load %arg42[%c0_178, %c0_179, %c0_180] : memref<1x4x64xf32, #tpu.memory_space<vmem>>, vector<1x4x64xf32>
      %321 = vector.shape_cast %320 : vector<1x4x64xf32> to vector<4x64xf32>
      %322 = vector.shape_cast %319 : vector<4x64xf32> to vector<1x4x64xf32>
      tpu.vector_store %arg42[%c0_178, %c0_179, %c0_180], %322 {strides = array<i32>} : memref<1x4x64xf32, #tpu.memory_space<vmem>>, vector<1x4x64xf32>,
    } else {
    }
    return
  }
  func.func @transform_0(%arg0: i32, %arg1: i32) -> (i32, i32, i32) {
    %c0_i32 = arith.constant 0 : i32
    %c0_i32_0 = arith.constant 0 : i32
    %c0_i32_1 = arith.constant 0 : i32
    return %arg0, %c0_i32, %c0_i32_0 : i32, i32, i32
  }
  func.func @transform_1(%arg0: i32, %arg1: i32) -> (i32, i32, i32) {
    %c0_i32 = arith.constant 0 : i32
    %c0_i32_0 = arith.constant 0 : i32
    %c0_i32_1 = arith.constant 0 : i32
    return %arg0, %c0_i32, %c0_i32_0 : i32, i32, i32
  }
  func.func @transform_2(%arg0: i32, %arg1: i32) -> (i32, i32) {
    %c0_i32 = arith.constant 0 : i32
    %c0_i32_0 = arith.constant 0 : i32
    %c0_i32_1 = arith.constant 0 : i32
    return %c0_i32, %c0_i32_0 : i32, i32
  }
  func.func @transform_3(%arg0: i32, %arg1: i32) -> (i32, i32) {
    %c0_i32 = arith.constant 0 : i32
    %c0_i32_0 = arith.constant 0 : i32
    %c0_i32_1 = arith.constant 0 : i32
    return %c0_i32, %c0_i32_0 : i32, i32
  }
  func.func @transform_4(%arg0: i32, %arg1: i32) -> (i32, i32) {
    %c0_i32 = arith.constant 0 : i32
    %c0_i32_0 = arith.constant 0 : i32
    %c0_i32_1 = arith.constant 0 : i32
    return %c0_i32, %c0_i32_0 : i32, i32
  }
  func.func @transform_5(%arg0: i32, %arg1: i32) -> (i32, i32) {
    %c0_i32 = arith.constant 0 : i32
    %c0_i32_0 = arith.constant 0 : i32
    %c0_i32_1 = arith.constant 0 : i32
    return %c0_i32, %c0_i32_0 : i32, i32
  }
  func.func @transform_6(%arg0: i32, %arg1: i32) -> (i32, i32, i32, i32) {
    %c0_i32 = arith.constant 0 : i32
    %c0_i32_0 = arith.constant 0 : i32
    %c0_i32_1 = arith.constant 0 : i32
    %c0_i32_2 = arith.constant 0 : i32
    return %arg1, %c0_i32, %c0_i32_0, %c0_i32_1 : i32, i32, i32, i32
  }
  func.func @transform_7(%arg0: i32, %arg1: i32) -> (i32, i32, i32, i32) {
    %c0_i32 = arith.constant 0 : i32
    %c0_i32_0 = arith.constant 0 : i32
    %c0_i32_1 = arith.constant 0 : i32
    %c0_i32_2 = arith.constant 0 : i32
    return %arg1, %c0_i32, %c0_i32_0, %c0_i32_1 : i32, i32, i32, i32
  }
  func.func @transform_8(%arg0: i32, %arg1: i32) -> (i32, i32, i32, i32) {
    %c0_i32 = arith.constant 0 : i32
    %c0_i32_0 = arith.constant 0 : i32
    %c0_i32_1 = arith.constant 0 : i32
    %c0_i32_2 = arith.constant 0 : i32
    return %arg1, %c0_i32, %c0_i32_0, %c0_i32_1 : i32, i32, i32, i32
  }
  func.func @transform_9(%arg0: i32, %arg1: i32) -> (i32, i32, i32, i32) {
    %c0_i32 = arith.constant 0 : i32
    %c0_i32_0 = arith.constant 0 : i32
    %c0_i32_1 = arith.constant 0 : i32
    %c0_i32_2 = arith.constant 0 : i32
    return %arg1, %c0_i32, %c0_i32_0, %c0_i32_1 : i32, i32, i32, i32
  }
  func.func @transform_10(%arg0: i32, %arg1: i32) -> (i32, i32, i32, i32) {
    %c0_i32 = arith.constant 0 : i32
    %c0_i32_0 = arith.constant 0 : i32
    %c0_i32_1 = arith.constant 0 : i32
    %c0_i32_2 = arith.constant 0 : i32
    return %arg1, %c0_i32, %c0_i32_0, %c0_i32_1 : i32, i32, i32, i32
  }
  func.func @transform_11(%arg0: i32, %arg1: i32) -> (i32, i32, i32, i32) {
    %c0_i32 = arith.constant 0 : i32
    %c0_i32_0 = arith.constant 0 : i32
    %c0_i32_1 = arith.constant 0 : i32
    %c0_i32_2 = arith.constant 0 : i32
    return %arg1, %c0_i32, %c0_i32_0, %c0_i32_1 : i32, i32, i32, i32
  }
  func.func @transform_12(%arg0: i32, %arg1: i32) -> (i32, i32, i32, i32) {
    %c0_i32 = arith.constant 0 : i32
    %c0_i32_0 = arith.constant 0 : i32
    %c0_i32_1 = arith.constant 0 : i32
    %c0_i32_2 = arith.constant 0 : i32
    return %arg1, %c0_i32, %c0_i32_0, %c0_i32_1 : i32, i32, i32, i32
  }
  func.func @transform_13(%arg0: i32, %arg1: i32) -> (i32, i32, i32) {
    %c0_i32 = arith.constant 0 : i32
    %c0_i32_0 = arith.constant 0 : i32
    %c0_i32_1 = arith.constant 0 : i32
    return %arg1, %c0_i32, %c0_i32_0 : i32, i32, i32
  }
  func.func @transform_14(%arg0: i32, %arg1: i32) -> (i32, i32, i32) {
    %c0_i32 = arith.constant 0 : i32
    %c0_i32_0 = arith.constant 0 : i32
    %c0_i32_1 = arith.constant 0 : i32
    return %arg1, %c0_i32, %c0_i32_0 : i32, i32, i32
  }
  func.func @transform_15(%arg0: i32, %arg1: i32) -> (i32, i32, i32) {
    %c0_i32 = arith.constant 0 : i32
    %c0_i32_0 = arith.constant 0 : i32
    %c0_i32_1 = arith.constant 0 : i32
    return %arg1, %c0_i32, %c0_i32_0 : i32, i32, i32
  }
  func.func @transform_16(%arg0: i32, %arg1: i32) -> (i32, i32, i32) {
    %c0_i32 = arith.constant 0 : i32
    %c0_i32_0 = arith.constant 0 : i32
    %c0_i32_1 = arith.constant 0 : i32
    return %arg1, %c0_i32, %c0_i32_0 : i32, i32, i32
  }
  func.func @transform_17(%arg0: i32, %arg1: i32) -> (i32, i32, i32) {
    %c0_i32 = arith.constant 0 : i32
    %c0_i32_0 = arith.constant 0 : i32
    %c0_i32_1 = arith.constant 0 : i32
    return %arg1, %c0_i32, %c0_i32_0 : i32, i32, i32
  }
  func.func @transform_18(%arg0: i32, %arg1: i32) -> (i32, i32, i32) {
    %c0_i32 = arith.constant 0 : i32
    %c0_i32_0 = arith.constant 0 : i32
    %c0_i32_1 = arith.constant 0 : i32
    return %arg1, %c0_i32, %c0_i32_0 : i32, i32, i32
  }
  func.func @transform_19(%arg0: i32, %arg1: i32) -> (i32, i32, i32) {
    %c0_i32 = arith.constant 0 : i32
    %c0_i32_0 = arith.constant 0 : i32
    %c0_i32_1 = arith.constant 0 : i32
    return %arg1, %c0_i32, %c0_i32_0 : i32, i32, i32
  }
  func.func @transform_20(%arg0: i32, %arg1: i32) -> (i32, i32, i32) {
    %c0_i32 = arith.constant 0 : i32
    %c0_i32_0 = arith.constant 0 : i32
    %c0_i32_1 = arith.constant 0 : i32
    return %arg1, %c0_i32, %c0_i32_0 : i32, i32, i32
  }
  func.func @transform_21(%arg0: i32, %arg1: i32) -> (i32, i32, i32) {
    %c0_i32 = arith.constant 0 : i32
    %c0_i32_0 = arith.constant 0 : i32
    %c0_i32_1 = arith.constant 0 : i32
    return %arg1, %c0_i32, %c0_i32_0 : i32, i32, i32
  }
  func.func @transform_22(%arg0: i32, %arg1: i32) -> (i32, i32, i32, i32) {
    %c0_i32 = arith.constant 0 : i32
    %c0_i32_0 = arith.constant 0 : i32
    %c0_i32_1 = arith.constant 0 : i32
    %c0_i32_2 = arith.constant 0 : i32
    return %arg1, %c0_i32, %c0_i32_0, %c0_i32_1 : i32, i32, i32, i32
  }
  func.func @transform_23(%arg0: i32, %arg1: i32) -> (i32, i32, i32, i32) {
    %c0_i32 = arith.constant 0 : i32
    %c0_i32_0 = arith.constant 0 : i32
    %c0_i32_1 = arith.constant 0 : i32
    %c0_i32_2 = arith.constant 0 : i32
    return %arg1, %c0_i32, %c0_i32_0, %c0_i32_1 : i32, i32, i32, i32
  }
  func.func @transform_24(%arg0: i32, %arg1: i32) -> (i32, i32, i32, i32) {
    %c0_i32 = arith.constant 0 : i32
    %c0_i32_0 = arith.constant 0 : i32
    %c0_i32_1 = arith.constant 0 : i32
    %c0_i32_2 = arith.constant 0 : i32
    return %arg1, %c0_i32, %c0_i32_0, %c0_i32_1 : i32, i32, i32, i32
  }
  func.func @transform_25(%arg0: i32, %arg1: i32) -> (i32, i32, i32, i32) {
    %c0_i32 = arith.constant 0 : i32
    %c0_i32_0 = arith.constant 0 : i32
    %c0_i32_1 = arith.constant 0 : i32
    %c0_i32_2 = arith.constant 0 : i32
    return %arg1, %c0_i32, %c0_i32_0, %c0_i32_1 : i32, i32, i32, i32
  }
  func.func @transform_26(%arg0: i32, %arg1: i32) -> (i32, i32, i32, i32) {
    %c0_i32 = arith.constant 0 : i32
    %c0_i32_0 = arith.constant 0 : i32
    %c0_i32_1 = arith.constant 0 : i32
    %c0_i32_2 = arith.constant 0 : i32
    return %arg1, %c0_i32, %c0_i32_0, %c0_i32_1 : i32, i32, i32, i32
  }
  func.func @transform_27(%arg0: i32, %arg1: i32) -> (i32, i32, i32, i32) {
    %c0_i32 = arith.constant 0 : i32
    %c0_i32_0 = arith.constant 0 : i32
    %c0_i32_1 = arith.constant 0 : i32
    %c0_i32_2 = arith.constant 0 : i32
    return %arg1, %c0_i32, %c0_i32_0, %c0_i32_1 : i32, i32, i32, i32
  }
  func.func @transform_28(%arg0: i32, %arg1: i32) -> (i32, i32, i32, i32) {
    %c0_i32 = arith.constant 0 : i32
    %c0_i32_0 = arith.constant 0 : i32
    %c0_i32_1 = arith.constant 0 : i32
    %c0_i32_2 = arith.constant 0 : i32
    return %arg1, %c0_i32, %c0_i32_0, %c0_i32_1 : i32, i32, i32, i32
  }
  func.func @transform_29(%arg0: i32, %arg1: i32) -> (i32, i32, i32) {
    %c0_i32 = arith.constant 0 : i32
    %c0_i32_0 = arith.constant 0 : i32
    %c0_i32_1 = arith.constant 0 : i32
    return %arg1, %c0_i32, %c0_i32_0 : i32, i32, i32
  }
  func.func @transform_30(%arg0: i32, %arg1: i32) -> (i32, i32, i32) {
    %c0_i32 = arith.constant 0 : i32
    %c0_i32_0 = arith.constant 0 : i32
    %c0_i32_1 = arith.constant 0 : i32
    return %arg1, %c0_i32, %c0_i32_0 : i32, i32, i32
  }
  func.func @transform_31(%arg0: i32, %arg1: i32) -> (i32, i32, i32) {
    %c0_i32 = arith.constant 0 : i32
    %c0_i32_0 = arith.constant 0 : i32
    %c0_i32_1 = arith.constant 0 : i32
    return %arg1, %c0_i32, %c0_i32_0 : i32, i32, i32
  }
  func.func @transform_32(%arg0: i32, %arg1: i32) -> (i32, i32, i32) {
    %c0_i32 = arith.constant 0 : i32
    %c0_i32_0 = arith.constant 0 : i32
    %c0_i32_1 = arith.constant 0 : i32
    return %arg1, %c0_i32, %c0_i32_0 : i32, i32, i32
  }
  func.func @transform_33(%arg0: i32, %arg1: i32) -> (i32, i32, i32) {
    %c0_i32 = arith.constant 0 : i32
    %c0_i32_0 = arith.constant 0 : i32
    %c0_i32_1 = arith.constant 0 : i32
    return %arg1, %c0_i32, %c0_i32_0 : i32, i32, i32
  }
  func.func @transform_34(%arg0: i32, %arg1: i32) -> (i32, i32, i32) {
    %c0_i32 = arith.constant 0 : i32
    %c0_i32_0 = arith.constant 0 : i32
    %c0_i32_1 = arith.constant 0 : i32
    return %arg1, %c0_i32, %c0_i32_0 : i32, i32, i32
  }
  func.func @transform_35(%arg0: i32, %arg1: i32) -> (i32, i32, i32) {
    %c0_i32 = arith.constant 0 : i32
    %c0_i32_0 = arith.constant 0 : i32
    %c0_i32_1 = arith.constant 0 : i32
    return %arg1, %c0_i32, %c0_i32_0 : i32, i32, i32
  }
  func.func @transform_36(%arg0: i32, %arg1: i32) -> (i32, i32, i32) {
    %c0_i32 = arith.constant 0 : i32
    %c0_i32_0 = arith.constant 0 : i32
    %c0_i32_1 = arith.constant 0 : i32
    return %arg1, %c0_i32, %c0_i32_0 : i32, i32, i32
  }
  func.func @transform_37(%arg0: i32, %arg1: i32) -> (i32, i32, i32) {
    %c0_i32 = arith.constant 0 : i32
    %c0_i32_0 = arith.constant 0 : i32
    %c0_i32_1 = arith.constant 0 : i32
    return %arg1, %c0_i32, %c0_i32_0 : i32, i32, i32
  }
  func.func @transform_38(%arg0: i32, %arg1: i32) -> (i32, i32) {
    %c0_i32 = arith.constant 0 : i32
    %c0_i32_0 = arith.constant 0 : i32
    %c0_i32_1 = arith.constant 0 : i32
    return %c0_i32, %c0_i32_0 : i32, i32
  }
  func.func @transform_39(%arg0: i32, %arg1: i32) -> (i32, i32) {
    %c0_i32 = arith.constant 0 : i32
    %c0_i32_0 = arith.constant 0 : i32
    %c0_i32_1 = arith.constant 0 : i32
    return %c0_i32, %c0_i32_0 : i32, i32
  }
  func.func @transform_40(%arg0: i32, %arg1: i32) -> (i32, i32, i32) {
    %c0_i32 = arith.constant 0 : i32
    %c0_i32_0 = arith.constant 0 : i32
    %c0_i32_1 = arith.constant 0 : i32
    return %arg0, %c0_i32, %c0_i32_0 : i32, i32, i32
  }
  func.func @transform_41(%arg0: i32, %arg1: i32) -> (i32, i32, i32) {
    %c0_i32 = arith.constant 0 : i32
    %c0_i32_0 = arith.constant 0 : i32
    %c0_i32_1 = arith.constant 0 : i32
    return %arg0, %c0_i32, %c0_i32_0 : i32, i32, i32
  }
}

module attributes {stable_mosaic.version = 11 : i64} {
  func.func @_linear_kernel(%arg0: i32, %arg1: memref<2x16xf32, #tpu.memory_space<vmem>>, %arg2: memref<16x64xbf16, #tpu.memory_space<vmem>>, %arg3: memref<1x64xf32, #tpu.memory_space<vmem>>, %arg4: memref<2x64xf32, #tpu.memory_space<vmem>>) attributes {dimension_semantics = [#tpu.dimension_semantics<arbitrary>], iteration_bounds = array<i64: 1>, scalar_prefetch = 0 : i64, scratch_operands = 0 : i64, tpu.core_type = #tpu.core_type<tc>, window_params = [{pipeline_mode = #tpu.pipeline_mode<synchronous>, transform_indices = @transform_0, window_bounds = array<i64: 2, 16>}, {pipeline_mode = #tpu.pipeline_mode<synchronous>, transform_indices = @transform_1, window_bounds = array<i64: 16, 64>}, {pipeline_mode = #tpu.pipeline_mode<synchronous>, transform_indices = @transform_2, window_bounds = array<i64: 1, 64>}, {pipeline_mode = #tpu.pipeline_mode<synchronous>, transform_indices = @transform_3, window_bounds = array<i64: 2, 64>}]} {
    %c0 = arith.constant 0 : index
    %c0_0 = arith.constant 0 : index
    %0 = vector.load %arg1[%c0, %c0_0] : memref<2x16xf32, #tpu.memory_space<vmem>>, vector<2x16xf32>
    %c0_1 = arith.constant 0 : index
    %c0_2 = arith.constant 0 : index
    %1 = vector.load %arg2[%c0_1, %c0_2] : memref<16x64xbf16, #tpu.memory_space<vmem>>, vector<16x64xbf16>
    %2 = arith.truncf %0 : vector<2x16xf32> to vector<2x16xbf16>
    %cst = arith.constant dense<0.000000e+00> : vector<2x64xf32>
    %3 = tpu.matmul %2, %1, %cst {dimension_numbers = #tpu.dot_dimension_numbers<[1], [0], [0], [1], [0, 0, 1, 1], [], []>} : vector<2x16xbf16>, vector<16x64xbf16>, vector<2x64xf32> -> vector<2x64xf32>
    %c0_3 = arith.constant 0 : index
    %c0_4 = arith.constant 0 : index
    %4 = vector.load %arg3[%c0_3, %c0_4] : memref<1x64xf32, #tpu.memory_space<vmem>>, vector<1x64xf32>
    %5 = vector.broadcast %4 : vector<1x64xf32> to vector<2x64xf32>
    %6 = arith.addf %3, %5 : vector<2x64xf32>
    %c0_5 = arith.constant 0 : index
    %c0_6 = arith.constant 0 : index
    %7 = vector.load %arg4[%c0_5, %c0_6] : memref<2x64xf32, #tpu.memory_space<vmem>>, vector<2x64xf32>
    tpu.vector_store %arg4[%c0_5, %c0_6], %6 {strides = array<i32>} : memref<2x64xf32, #tpu.memory_space<vmem>>, vector<2x64xf32>,
    return
  }
  func.func @transform_0(%arg0: i32) -> (i32, i32) {
    %c0_i32 = arith.constant 0 : i32
    %c0_i32_0 = arith.constant 0 : i32
    %c0_i32_1 = arith.constant 0 : i32
    return %c0_i32, %c0_i32_0 : i32, i32
  }
  func.func @transform_1(%arg0: i32) -> (i32, i32) {
    %c0_i32 = arith.constant 0 : i32
    %c0_i32_0 = arith.constant 0 : i32
    %c0_i32_1 = arith.constant 0 : i32
    return %c0_i32, %c0_i32_0 : i32, i32
  }
  func.func @transform_2(%arg0: i32) -> (i32, i32) {
    %c0_i32 = arith.constant 0 : i32
    %c0_i32_0 = arith.constant 0 : i32
    %c0_i32_1 = arith.constant 0 : i32
    return %c0_i32, %c0_i32_0 : i32, i32
  }
  func.func @transform_3(%arg0: i32) -> (i32, i32) {
    %c0_i32 = arith.constant 0 : i32
    %c0_i32_0 = arith.constant 0 : i32
    %c0_i32_1 = arith.constant 0 : i32
    return %c0_i32, %c0_i32_0 : i32, i32
  }
}

module attributes {stable_mosaic.version = 11 : i64} {
  func.func @_encoder_stack_kernel(%arg0: i32, %arg1: i32, %arg2: memref<1x5x64xf32, #tpu.memory_space<vmem>>, %arg3: memref<1x4x64x16xbf16, #tpu.memory_space<vmem>>, %arg4: memref<1x4x64x16xbf16, #tpu.memory_space<vmem>>, %arg5: memref<1x4x64x16xbf16, #tpu.memory_space<vmem>>, %arg6: memref<1x4x16x64xbf16, #tpu.memory_space<vmem>>, %arg7: memref<1x4x1x16xf32, #tpu.memory_space<vmem>>, %arg8: memref<1x4x1x16xf32, #tpu.memory_space<vmem>>, %arg9: memref<1x4x1x16xf32, #tpu.memory_space<vmem>>, %arg10: memref<1x1x64xf32, #tpu.memory_space<vmem>>, %arg11: memref<1x1x64xf32, #tpu.memory_space<vmem>>, %arg12: memref<1x1x64xf32, #tpu.memory_space<vmem>>, %arg13: memref<1x64x256xbf16, #tpu.memory_space<vmem>>, %arg14: memref<1x1x256xf32, #tpu.memory_space<vmem>>, %arg15: memref<1x256x64xbf16, #tpu.memory_space<vmem>>, %arg16: memref<1x1x64xf32, #tpu.memory_space<vmem>>, %arg17: memref<1x1x64xf32, #tpu.memory_space<vmem>>, %arg18: memref<1x1x64xf32, #tpu.memory_space<vmem>>, %arg19: memref<1x64xf32, #tpu.memory_space<vmem>>, %arg20: memref<1x64xf32, #tpu.memory_space<vmem>>, %arg21: memref<1x5x64xf32, #tpu.memory_space<vmem>>) attributes {dimension_semantics = [#tpu.dimension_semantics<parallel>, #tpu.dimension_semantics<arbitrary>], iteration_bounds = array<i64: 2, 2>, scalar_prefetch = 0 : i64, scratch_operands = 0 : i64, tpu.core_type = #tpu.core_type<tc>, window_params = [{transform_indices = @transform_0, window_bounds = array<i64: 1, 5, 64>}, {transform_indices = @transform_1, window_bounds = array<i64: 1, 4, 64, 16>}, {transform_indices = @transform_2, window_bounds = array<i64: 1, 4, 64, 16>}, {transform_indices = @transform_3, window_bounds = array<i64: 1, 4, 64, 16>}, {transform_indices = @transform_4, window_bounds = array<i64: 1, 4, 16, 64>}, {transform_indices = @transform_5, window_bounds = array<i64: 1, 4, 1, 16>}, {transform_indices = @transform_6, window_bounds = array<i64: 1, 4, 1, 16>}, {transform_indices = @transform_7, window_bounds = array<i64: 1, 4, 1, 16>}, {transform_indices = @transform_8, window_bounds = array<i64: 1, 1, 64>}, {transform_indices = @transform_9, window_bounds = array<i64: 1, 1, 64>}, {transform_indices = @transform_10, window_bounds = array<i64: 1, 1, 64>}, {transform_indices = @transform_11, window_bounds = array<i64: 1, 64, 256>}, {transform_indices = @transform_12, window_bounds = array<i64: 1, 1, 256>}, {transform_indices = @transform_13, window_bounds = array<i64: 1, 256, 64>}, {transform_indices = @transform_14, window_bounds = array<i64: 1, 1, 64>}, {transform_indices = @transform_15, window_bounds = array<i64: 1, 1, 64>}, {transform_indices = @transform_16, window_bounds = array<i64: 1, 1, 64>}, {pipeline_mode = #tpu.pipeline_mode<synchronous>, transform_indices = @transform_17, window_bounds = array<i64: 1, 64>}, {pipeline_mode = #tpu.pipeline_mode<synchronous>, transform_indices = @transform_18, window_bounds = array<i64: 1, 64>}, {transform_indices = @transform_19, window_bounds = array<i64: 1, 5, 64>}]} {
    %c0_i32 = arith.constant 0 : i32
    %0 = arith.cmpi eq, %arg1, %c0_i32 : i32
    %1 = arith.extui %0 : i1 to i32
    %c0_i32_0 = arith.constant 0 : i32
    %2 = arith.cmpi ne, %1, %c0_i32_0 : i32
    scf.if %2 {
      %c0_84 = arith.constant 0 : index
      %c0_85 = arith.constant 0 : index
      %c0_86 = arith.constant 0 : index
      %152 = vector.load %arg2[%c0_84, %c0_85, %c0_86] : memref<1x5x64xf32, #tpu.memory_space<vmem>>, vector<1x5x64xf32>
      %c0_87 = arith.constant 0 : index
      %c0_88 = arith.constant 0 : index
      %c0_89 = arith.constant 0 : index
      %153 = vector.load %arg21[%c0_87, %c0_88, %c0_89] : memref<1x5x64xf32, #tpu.memory_space<vmem>>, vector<1x5x64xf32>
      tpu.vector_store %arg21[%c0_87, %c0_88, %c0_89], %152 {strides = array<i32>} : memref<1x5x64xf32, #tpu.memory_space<vmem>>, vector<1x5x64xf32>,
    } else {
    }
    %c0 = arith.constant 0 : index
    %c0_1 = arith.constant 0 : index
    %c0_2 = arith.constant 0 : index
    %c0_3 = arith.constant 0 : index
    %3 = vector.load %arg3[%c0, %c0_1, %c0_2, %c0_3] : memref<1x4x64x16xbf16, #tpu.memory_space<vmem>>, vector<1x4x64x16xbf16>
    %4 = vector.shape_cast %3 : vector<1x4x64x16xbf16> to vector<4x64x16xbf16>
    %c0_4 = arith.constant 0 : index
    %c0_5 = arith.constant 0 : index
    %c0_6 = arith.constant 0 : index
    %c0_7 = arith.constant 0 : index
    %5 = vector.load %arg4[%c0_4, %c0_5, %c0_6, %c0_7] : memref<1x4x64x16xbf16, #tpu.memory_space<vmem>>, vector<1x4x64x16xbf16>
    %6 = vector.shape_cast %5 : vector<1x4x64x16xbf16> to vector<4x64x16xbf16>
    %c0_8 = arith.constant 0 : index
    %c0_9 = arith.constant 0 : index
    %c0_10 = arith.constant 0 : index
    %c0_11 = arith.constant 0 : index
    %7 = vector.load %arg5[%c0_8, %c0_9, %c0_10, %c0_11] : memref<1x4x64x16xbf16, #tpu.memory_space<vmem>>, vector<1x4x64x16xbf16>
    %8 = vector.shape_cast %7 : vector<1x4x64x16xbf16> to vector<4x64x16xbf16>
    %c0_12 = arith.constant 0 : index
    %c0_13 = arith.constant 0 : index
    %c0_14 = arith.constant 0 : index
    %c0_15 = arith.constant 0 : index
    %9 = vector.load %arg6[%c0_12, %c0_13, %c0_14, %c0_15] : memref<1x4x16x64xbf16, #tpu.memory_space<vmem>>, vector<1x4x16x64xbf16>
    %10 = vector.shape_cast %9 : vector<1x4x16x64xbf16> to vector<4x16x64xbf16>
    %c0_16 = arith.constant 0 : index
    %c0_17 = arith.constant 0 : index
    %c0_18 = arith.constant 0 : index
    %c0_19 = arith.constant 0 : index
    %11 = vector.load %arg7[%c0_16, %c0_17, %c0_18, %c0_19] : memref<1x4x1x16xf32, #tpu.memory_space<vmem>>, vector<1x4x1x16xf32>
    %12 = vector.shape_cast %11 : vector<1x4x1x16xf32> to vector<4x1x16xf32>
    %c0_20 = arith.constant 0 : index
    %c0_21 = arith.constant 0 : index
    %c0_22 = arith.constant 0 : index
    %c0_23 = arith.constant 0 : index
    %13 = vector.load %arg8[%c0_20, %c0_21, %c0_22, %c0_23] : memref<1x4x1x16xf32, #tpu.memory_space<vmem>>, vector<1x4x1x16xf32>
    %14 = vector.shape_cast %13 : vector<1x4x1x16xf32> to vector<4x1x16xf32>
    %c0_24 = arith.constant 0 : index
    %c0_25 = arith.constant 0 : index
    %c0_26 = arith.constant 0 : index
    %c0_27 = arith.constant 0 : index
    %15 = vector.load %arg9[%c0_24, %c0_25, %c0_26, %c0_27] : memref<1x4x1x16xf32, #tpu.memory_space<vmem>>, vector<1x4x1x16xf32>
    %16 = vector.shape_cast %15 : vector<1x4x1x16xf32> to vector<4x1x16xf32>
    %c0_28 = arith.constant 0 : index
    %c0_29 = arith.constant 0 : index
    %c0_30 = arith.constant 0 : index
    %17 = vector.load %arg10[%c0_28, %c0_29, %c0_30] : memref<1x1x64xf32, #tpu.memory_space<vmem>>, vector<1x1x64xf32>
    %18 = vector.shape_cast %17 : vector<1x1x64xf32> to vector<1x64xf32>
    %c0_31 = arith.constant 0 : index
    %c0_32 = arith.constant 0 : index
    %c0_33 = arith.constant 0 : index
    %19 = vector.load %arg11[%c0_31, %c0_32, %c0_33] : memref<1x1x64xf32, #tpu.memory_space<vmem>>, vector<1x1x64xf32>
    %20 = vector.shape_cast %19 : vector<1x1x64xf32> to vector<1x64xf32>
    %c0_34 = arith.constant 0 : index
    %c0_35 = arith.constant 0 : index
    %c0_36 = arith.constant 0 : index
    %21 = vector.load %arg12[%c0_34, %c0_35, %c0_36] : memref<1x1x64xf32, #tpu.memory_space<vmem>>, vector<1x1x64xf32>
    %22 = vector.shape_cast %21 : vector<1x1x64xf32> to vector<1x64xf32>
    %c0_37 = arith.constant 0 : index
    %c0_38 = arith.constant 0 : index
    %c0_39 = arith.constant 0 : index
    %23 = vector.load %arg13[%c0_37, %c0_38, %c0_39] : memref<1x64x256xbf16, #tpu.memory_space<vmem>>, vector<1x64x256xbf16>
    %24 = vector.shape_cast %23 : vector<1x64x256xbf16> to vector<64x256xbf16>
    %c0_40 = arith.constant 0 : index
    %c0_41 = arith.constant 0 : index
    %c0_42 = arith.constant 0 : index
    %25 = vector.load %arg14[%c0_40, %c0_41, %c0_42] : memref<1x1x256xf32, #tpu.memory_space<vmem>>, vector<1x1x256xf32>
    %26 = vector.shape_cast %25 : vector<1x1x256xf32> to vector<1x256xf32>
    %c0_43 = arith.constant 0 : index
    %c0_44 = arith.constant 0 : index
    %c0_45 = arith.constant 0 : index
    %27 = vector.load %arg15[%c0_43, %c0_44, %c0_45] : memref<1x256x64xbf16, #tpu.memory_space<vmem>>, vector<1x256x64xbf16>
    %28 = vector.shape_cast %27 : vector<1x256x64xbf16> to vector<256x64xbf16>
    %c0_46 = arith.constant 0 : index
    %c0_47 = arith.constant 0 : index
    %c0_48 = arith.constant 0 : index
    %29 = vector.load %arg16[%c0_46, %c0_47, %c0_48] : memref<1x1x64xf32, #tpu.memory_space<vmem>>, vector<1x1x64xf32>
    %30 = vector.shape_cast %29 : vector<1x1x64xf32> to vector<1x64xf32>
    %c0_49 = arith.constant 0 : index
    %c0_50 = arith.constant 0 : index
    %c0_51 = arith.constant 0 : index
    %31 = vector.load %arg17[%c0_49, %c0_50, %c0_51] : memref<1x1x64xf32, #tpu.memory_space<vmem>>, vector<1x1x64xf32>
    %32 = vector.shape_cast %31 : vector<1x1x64xf32> to vector<1x64xf32>
    %c0_52 = arith.constant 0 : index
    %c0_53 = arith.constant 0 : index
    %c0_54 = arith.constant 0 : index
    %33 = vector.load %arg18[%c0_52, %c0_53, %c0_54] : memref<1x1x64xf32, #tpu.memory_space<vmem>>, vector<1x1x64xf32>
    %34 = vector.shape_cast %33 : vector<1x1x64xf32> to vector<1x64xf32>
    %c0_55 = arith.constant 0 : index
    %c0_56 = arith.constant 0 : index
    %c0_57 = arith.constant 0 : index
    %35 = vector.load %arg21[%c0_55, %c0_56, %c0_57] : memref<1x5x64xf32, #tpu.memory_space<vmem>>, vector<1x5x64xf32>
    %36 = vector.shape_cast %35 : vector<1x5x64xf32> to vector<5x64xf32>
    %37 = vector.shape_cast %36 : vector<5x64xf32> to vector<1x5x64xf32>
    %38 = vector.shape_cast %37 : vector<1x5x64xf32> to vector<1x5x64xf32>
    %39 = vector.broadcast %38 : vector<1x5x64xf32> to vector<4x5x64xf32>
    %40 = vector.shape_cast %36 : vector<5x64xf32> to vector<1x5x64xf32>
    %41 = vector.shape_cast %40 : vector<1x5x64xf32> to vector<1x5x64xf32>
    %42 = vector.broadcast %41 : vector<1x5x64xf32> to vector<4x5x64xf32>
    %43 = arith.truncf %39 : vector<4x5x64xf32> to vector<4x5x64xbf16>
    %cst = arith.constant dense<0.000000e+00> : vector<4x5x16xf32>
    %44 = tpu.matmul %43, %4, %cst {dimension_numbers = #tpu.dot_dimension_numbers<[2], [1], [1], [2], [0, 0, 0, 1, 1, 2], [0], [0]>} : vector<4x5x64xbf16>, vector<4x64x16xbf16>, vector<4x5x16xf32> -> vector<4x5x16xf32>
    %45 = vector.broadcast %12 : vector<4x1x16xf32> to vector<4x5x16xf32>
    %46 = arith.addf %44, %45 : vector<4x5x16xf32>
    %47 = arith.truncf %42 : vector<4x5x64xf32> to vector<4x5x64xbf16>
    %cst_58 = arith.constant dense<0.000000e+00> : vector<4x5x16xf32>
    %48 = tpu.matmul %47, %6, %cst_58 {dimension_numbers = #tpu.dot_dimension_numbers<[2], [1], [1], [2], [0, 0, 0, 1, 1, 2], [0], [0]>} : vector<4x5x64xbf16>, vector<4x64x16xbf16>, vector<4x5x16xf32> -> vector<4x5x16xf32>
    %49 = vector.broadcast %14 : vector<4x1x16xf32> to vector<4x5x16xf32>
    %50 = arith.addf %48, %49 : vector<4x5x16xf32>
    %51 = arith.truncf %42 : vector<4x5x64xf32> to vector<4x5x64xbf16>
    %cst_59 = arith.constant dense<0.000000e+00> : vector<4x5x16xf32>
    %52 = tpu.matmul %51, %8, %cst_59 {dimension_numbers = #tpu.dot_dimension_numbers<[2], [1], [1], [2], [0, 0, 0, 1, 1, 2], [0], [0]>} : vector<4x5x64xbf16>, vector<4x64x16xbf16>, vector<4x5x16xf32> -> vector<4x5x16xf32>
    %53 = vector.broadcast %16 : vector<4x1x16xf32> to vector<4x5x16xf32>
    %54 = arith.addf %52, %53 : vector<4x5x16xf32>
    %cst_60 = arith.constant 2.500000e-01 : f32
    %55 = vector.broadcast %cst_60 : f32 to vector<4x5x16xf32>
    %56 = arith.mulf %46, %55 : vector<4x5x16xf32>
    %57 = arith.truncf %56 : vector<4x5x16xf32> to vector<4x5x16xbf16>
    %58 = arith.truncf %50 : vector<4x5x16xf32> to vector<4x5x16xbf16>
    %cst_61 = arith.constant dense<0.000000e+00> : vector<4x5x5xf32>
    %59 = tpu.matmul %57, %58, %cst_61 {dimension_numbers = #tpu.dot_dimension_numbers<[2], [2], [1], [1], [0, 0, 0, 1, 1, 1], [0], [0]>} : vector<4x5x16xbf16>, vector<4x5x16xbf16>, vector<4x5x5xf32> -> vector<4x5x5xf32>
    %cst_62 = arith.constant dense<0xFF800000> : vector<4x5xf32>
    %60 = vector.multi_reduction <maximumf>, %59, %cst_62 [2] : vector<4x5x5xf32> to vector<4x5xf32>
    %61 = vector.shape_cast %60 : vector<4x5xf32> to vector<4x5x1xf32>
    %62 = vector.broadcast %61 : vector<4x5x1xf32> to vector<4x5x5xf32>
    %63 = arith.subf %59, %62 : vector<4x5x5xf32>
    %64 = math.exp %63 : vector<4x5x5xf32>
    %cst_63 = arith.constant dense<0.000000e+00> : vector<4x5xf32>
    %65 = vector.multi_reduction <add>, %64, %cst_63 [2] : vector<4x5x5xf32> to vector<4x5xf32>
    %66 = vector.shape_cast %65 : vector<4x5xf32> to vector<4x5x1xf32>
    %67 = tpu.reciprocal %66 {approx = true} : vector<4x5x1xf32> -> vector<4x5x1xf32>
    %68 = vector.broadcast %67 : vector<4x5x1xf32> to vector<4x5x5xf32>
    %69 = arith.mulf %64, %68 : vector<4x5x5xf32>
    %70 = arith.truncf %69 : vector<4x5x5xf32> to vector<4x5x5xbf16>
    %71 = arith.truncf %54 : vector<4x5x16xf32> to vector<4x5x16xbf16>
    %cst_64 = arith.constant dense<0.000000e+00> : vector<4x5x16xf32>
    %72 = tpu.matmul %70, %71, %cst_64 {dimension_numbers = #tpu.dot_dimension_numbers<[2], [1], [1], [2], [0, 0, 0, 1, 1, 2], [0], [0]>} : vector<4x5x5xbf16>, vector<4x5x16xbf16>, vector<4x5x16xf32> -> vector<4x5x16xf32>
    %73 = arith.truncf %72 : vector<4x5x16xf32> to vector<4x5x16xbf16>
    %cst_65 = arith.constant dense<0.000000e+00> : vector<4x5x64xf32>
    %74 = tpu.matmul %73, %10, %cst_65 {dimension_numbers = #tpu.dot_dimension_numbers<[2], [1], [1], [2], [0, 0, 0, 1, 1, 2], [0], [0]>} : vector<4x5x16xbf16>, vector<4x16x64xbf16>, vector<4x5x64xf32> -> vector<4x5x64xf32>
    %75 = vector.extract_strided_slice %74 {offsets = [0, 0, 0], sizes = [1, 5, 64], strides = [1, 1, 1]} : vector<4x5x64xf32> to vector<1x5x64xf32>
    %76 = vector.shape_cast %75 : vector<1x5x64xf32> to vector<5x64xf32>
    %77 = vector.extract_strided_slice %74 {offsets = [1, 0, 0], sizes = [1, 5, 64], strides = [1, 1, 1]} : vector<4x5x64xf32> to vector<1x5x64xf32>
    %78 = vector.shape_cast %77 : vector<1x5x64xf32> to vector<5x64xf32>
    %79 = arith.addf %76, %78 : vector<5x64xf32>
    %80 = vector.extract_strided_slice %74 {offsets = [2, 0, 0], sizes = [1, 5, 64], strides = [1, 1, 1]} : vector<4x5x64xf32> to vector<1x5x64xf32>
    %81 = vector.shape_cast %80 : vector<1x5x64xf32> to vector<5x64xf32>
    %82 = arith.addf %79, %81 : vector<5x64xf32>
    %83 = vector.extract_strided_slice %74 {offsets = [3, 0, 0], sizes = [1, 5, 64], strides = [1, 1, 1]} : vector<4x5x64xf32> to vector<1x5x64xf32>
    %84 = vector.shape_cast %83 : vector<1x5x64xf32> to vector<5x64xf32>
    %85 = arith.addf %82, %84 : vector<5x64xf32>
    %86 = vector.broadcast %18 : vector<1x64xf32> to vector<5x64xf32>
    %87 = arith.addf %85, %86 : vector<5x64xf32>
    %88 = arith.addf %36, %87 : vector<5x64xf32>
    %cst_66 = arith.constant dense<0.000000e+00> : vector<5xf32>
    %89 = vector.multi_reduction <add>, %88, %cst_66 [1] : vector<5x64xf32> to vector<5xf32>
    %90 = vector.shape_cast %89 : vector<5xf32> to vector<5x1xf32>
    %cst_67 = arith.constant 6.400000e+01 : f32
    %91 = vector.broadcast %cst_67 : f32 to vector<5x1xf32>
    %92 = arith.divf %90, %91 : vector<5x1xf32>
    %93 = vector.broadcast %92 : vector<5x1xf32> to vector<5x64xf32>
    %94 = arith.subf %88, %93 : vector<5x64xf32>
    %95 = arith.mulf %94, %94 : vector<5x64xf32>
    %cst_68 = arith.constant dense<0.000000e+00> : vector<5xf32>
    %96 = vector.multi_reduction <add>, %95, %cst_68 [1] : vector<5x64xf32> to vector<5xf32>
    %97 = vector.shape_cast %96 : vector<5xf32> to vector<5x1xf32>
    %cst_69 = arith.constant 6.400000e+01 : f32
    %98 = vector.broadcast %cst_69 : f32 to vector<5x1xf32>
    %99 = arith.divf %97, %98 : vector<5x1xf32>
    %cst_70 = arith.constant 9.99999974E-6 : f32
    %100 = vector.broadcast %cst_70 : f32 to vector<5x1xf32>
    %101 = arith.addf %99, %100 : vector<5x1xf32>
    %102 = math.rsqrt %101 : vector<5x1xf32>
    %103 = vector.broadcast %102 : vector<5x1xf32> to vector<5x64xf32>
    %104 = arith.mulf %94, %103 : vector<5x64xf32>
    %105 = vector.broadcast %20 : vector<1x64xf32> to vector<5x64xf32>
    %106 = arith.mulf %104, %105 : vector<5x64xf32>
    %107 = vector.broadcast %22 : vector<1x64xf32> to vector<5x64xf32>
    %108 = arith.addf %106, %107 : vector<5x64xf32>
    %109 = arith.truncf %108 : vector<5x64xf32> to vector<5x64xbf16>
    %cst_71 = arith.constant dense<0.000000e+00> : vector<5x256xf32>
    %110 = tpu.matmul %109, %24, %cst_71 {dimension_numbers = #tpu.dot_dimension_numbers<[1], [0], [0], [1], [0, 0, 1, 1], [], []>} : vector<5x64xbf16>, vector<64x256xbf16>, vector<5x256xf32> -> vector<5x256xf32>
    %111 = vector.broadcast %26 : vector<1x256xf32> to vector<5x256xf32>
    %112 = arith.addf %110, %111 : vector<5x256xf32>
    %cst_72 = arith.constant 5.000000e-01 : f32
    %113 = vector.broadcast %cst_72 : f32 to vector<5x256xf32>
    %114 = arith.mulf %113, %112 : vector<5x256xf32>
    %cst_73 = arith.constant 0.707106769 : f32
    %115 = vector.broadcast %cst_73 : f32 to vector<5x256xf32>
    %116 = arith.mulf %112, %115 : vector<5x256xf32>
    %117 = math.erf %116 : vector<5x256xf32>
    %cst_74 = arith.constant 1.000000e+00 : f32
    %118 = vector.broadcast %cst_74 : f32 to vector<5x256xf32>
    %119 = arith.addf %118, %117 : vector<5x256xf32>
    %120 = arith.mulf %114, %119 : vector<5x256xf32>
    %121 = arith.truncf %120 : vector<5x256xf32> to vector<5x256xbf16>
    %cst_75 = arith.constant dense<0.000000e+00> : vector<5x64xf32>
    %122 = tpu.matmul %121, %28, %cst_75 {dimension_numbers = #tpu.dot_dimension_numbers<[1], [0], [0], [1], [0, 0, 1, 1], [], []>} : vector<5x256xbf16>, vector<256x64xbf16>, vector<5x64xf32> -> vector<5x64xf32>
    %123 = vector.broadcast %30 : vector<1x64xf32> to vector<5x64xf32>
    %124 = arith.addf %122, %123 : vector<5x64xf32>
    %125 = arith.addf %108, %124 : vector<5x64xf32>
    %cst_76 = arith.constant dense<0.000000e+00> : vector<5xf32>
    %126 = vector.multi_reduction <add>, %125, %cst_76 [1] : vector<5x64xf32> to vector<5xf32>
    %127 = vector.shape_cast %126 : vector<5xf32> to vector<5x1xf32>
    %cst_77 = arith.constant 6.400000e+01 : f32
    %128 = vector.broadcast %cst_77 : f32 to vector<5x1xf32>
    %129 = arith.divf %127, %128 : vector<5x1xf32>
    %130 = vector.broadcast %129 : vector<5x1xf32> to vector<5x64xf32>
    %131 = arith.subf %125, %130 : vector<5x64xf32>
    %132 = arith.mulf %131, %131 : vector<5x64xf32>
    %cst_78 = arith.constant dense<0.000000e+00> : vector<5xf32>
    %133 = vector.multi_reduction <add>, %132, %cst_78 [1] : vector<5x64xf32> to vector<5xf32>
    %134 = vector.shape_cast %133 : vector<5xf32> to vector<5x1xf32>
    %cst_79 = arith.constant 6.400000e+01 : f32
    %135 = vector.broadcast %cst_79 : f32 to vector<5x1xf32>
    %136 = arith.divf %134, %135 : vector<5x1xf32>
    %cst_80 = arith.constant 9.99999974E-6 : f32
    %137 = vector.broadcast %cst_80 : f32 to vector<5x1xf32>
    %138 = arith.addf %136, %137 : vector<5x1xf32>
    %139 = math.rsqrt %138 : vector<5x1xf32>
    %140 = vector.broadcast %139 : vector<5x1xf32> to vector<5x64xf32>
    %141 = arith.mulf %131, %140 : vector<5x64xf32>
    %142 = vector.broadcast %32 : vector<1x64xf32> to vector<5x64xf32>
    %143 = arith.mulf %141, %142 : vector<5x64xf32>
    %144 = vector.broadcast %34 : vector<1x64xf32> to vector<5x64xf32>
    %145 = arith.addf %143, %144 : vector<5x64xf32>
    %c1_i32 = arith.constant 1 : i32
    %146 = arith.cmpi slt, %arg1, %c1_i32 : i32
    %147 = arith.extui %146 : i1 to i32
    %c0_i32_81 = arith.constant 0 : i32
    %148 = arith.cmpi ne, %147, %c0_i32_81 : i32
    scf.if %148 {
      %c0_84 = arith.constant 0 : index
      %c0_85 = arith.constant 0 : index
      %c0_86 = arith.constant 0 : index
      %152 = vector.load %arg21[%c0_84, %c0_85, %c0_86] : memref<1x5x64xf32, #tpu.memory_space<vmem>>, vector<1x5x64xf32>
      %153 = vector.shape_cast %152 : vector<1x5x64xf32> to vector<5x64xf32>
      %154 = vector.shape_cast %145 : vector<5x64xf32> to vector<1x5x64xf32>
      tpu.vector_store %arg21[%c0_84, %c0_85, %c0_86], %154 {strides = array<i32>} : memref<1x5x64xf32, #tpu.memory_space<vmem>>, vector<1x5x64xf32>,
    } else {
    }
    %c1_i32_82 = arith.constant 1 : i32
    %149 = arith.cmpi eq, %arg1, %c1_i32_82 : i32
    %150 = arith.extui %149 : i1 to i32
    %c0_i32_83 = arith.constant 0 : i32
    %151 = arith.cmpi ne, %150, %c0_i32_83 : i32
    scf.if %151 {
      %c0_84 = arith.constant 0 : index
      %c0_85 = arith.constant 0 : index
      %152 = vector.load %arg19[%c0_84, %c0_85] : memref<1x64xf32, #tpu.memory_space<vmem>>, vector<1x64xf32>
      %c0_86 = arith.constant 0 : index
      %c0_87 = arith.constant 0 : index
      %153 = vector.load %arg20[%c0_86, %c0_87] : memref<1x64xf32, #tpu.memory_space<vmem>>, vector<1x64xf32>
      %cst_88 = arith.constant dense<0.000000e+00> : vector<5xf32>
      %154 = vector.multi_reduction <add>, %145, %cst_88 [1] : vector<5x64xf32> to vector<5xf32>
      %155 = vector.shape_cast %154 : vector<5xf32> to vector<5x1xf32>
      %cst_89 = arith.constant 6.400000e+01 : f32
      %156 = vector.broadcast %cst_89 : f32 to vector<5x1xf32>
      %157 = arith.divf %155, %156 : vector<5x1xf32>
      %158 = vector.broadcast %157 : vector<5x1xf32> to vector<5x64xf32>
      %159 = arith.subf %145, %158 : vector<5x64xf32>
      %160 = arith.mulf %159, %159 : vector<5x64xf32>
      %cst_90 = arith.constant dense<0.000000e+00> : vector<5xf32>
      %161 = vector.multi_reduction <add>, %160, %cst_90 [1] : vector<5x64xf32> to vector<5xf32>
      %162 = vector.shape_cast %161 : vector<5xf32> to vector<5x1xf32>
      %cst_91 = arith.constant 6.400000e+01 : f32
      %163 = vector.broadcast %cst_91 : f32 to vector<5x1xf32>
      %164 = arith.divf %162, %163 : vector<5x1xf32>
      %cst_92 = arith.constant 9.99999974E-6 : f32
      %165 = vector.broadcast %cst_92 : f32 to vector<5x1xf32>
      %166 = arith.addf %164, %165 : vector<5x1xf32>
      %167 = math.rsqrt %166 : vector<5x1xf32>
      %168 = vector.broadcast %167 : vector<5x1xf32> to vector<5x64xf32>
      %169 = arith.mulf %159, %168 : vector<5x64xf32>
      %170 = vector.broadcast %152 : vector<1x64xf32> to vector<5x64xf32>
      %171 = arith.mulf %169, %170 : vector<5x64xf32>
      %172 = vector.broadcast %153 : vector<1x64xf32> to vector<5x64xf32>
      %173 = arith.addf %171, %172 : vector<5x64xf32>
      %c0_93 = arith.constant 0 : index
      %c0_94 = arith.constant 0 : index
      %c0_95 = arith.constant 0 : index
      %174 = vector.load %arg21[%c0_93, %c0_94, %c0_95] : memref<1x5x64xf32, #tpu.memory_space<vmem>>, vector<1x5x64xf32>
      %175 = vector.shape_cast %174 : vector<1x5x64xf32> to vector<5x64xf32>
      %176 = vector.shape_cast %173 : vector<5x64xf32> to vector<1x5x64xf32>
      tpu.vector_store %arg21[%c0_93, %c0_94, %c0_95], %176 {strides = array<i32>} : memref<1x5x64xf32, #tpu.memory_space<vmem>>, vector<1x5x64xf32>,
    } else {
    }
    return
  }
  func.func @transform_0(%arg0: i32, %arg1: i32) -> (i32, i32, i32) {
    %c0_i32 = arith.constant 0 : i32
    %c0_i32_0 = arith.constant 0 : i32
    %c0_i32_1 = arith.constant 0 : i32
    return %arg0, %c0_i32, %c0_i32_0 : i32, i32, i32
  }
  func.func @transform_1(%arg0: i32, %arg1: i32) -> (i32, i32, i32, i32) {
    %c0_i32 = arith.constant 0 : i32
    %c0_i32_0 = arith.constant 0 : i32
    %c0_i32_1 = arith.constant 0 : i32
    %c0_i32_2 = arith.constant 0 : i32
    return %arg1, %c0_i32, %c0_i32_0, %c0_i32_1 : i32, i32, i32, i32
  }
  func.func @transform_2(%arg0: i32, %arg1: i32) -> (i32, i32, i32, i32) {
    %c0_i32 = arith.constant 0 : i32
    %c0_i32_0 = arith.constant 0 : i32
    %c0_i32_1 = arith.constant 0 : i32
    %c0_i32_2 = arith.constant 0 : i32
    return %arg1, %c0_i32, %c0_i32_0, %c0_i32_1 : i32, i32, i32, i32
  }
  func.func @transform_3(%arg0: i32, %arg1: i32) -> (i32, i32, i32, i32) {
    %c0_i32 = arith.constant 0 : i32
    %c0_i32_0 = arith.constant 0 : i32
    %c0_i32_1 = arith.constant 0 : i32
    %c0_i32_2 = arith.constant 0 : i32
    return %arg1, %c0_i32, %c0_i32_0, %c0_i32_1 : i32, i32, i32, i32
  }
  func.func @transform_4(%arg0: i32, %arg1: i32) -> (i32, i32, i32, i32) {
    %c0_i32 = arith.constant 0 : i32
    %c0_i32_0 = arith.constant 0 : i32
    %c0_i32_1 = arith.constant 0 : i32
    %c0_i32_2 = arith.constant 0 : i32
    return %arg1, %c0_i32, %c0_i32_0, %c0_i32_1 : i32, i32, i32, i32
  }
  func.func @transform_5(%arg0: i32, %arg1: i32) -> (i32, i32, i32, i32) {
    %c0_i32 = arith.constant 0 : i32
    %c0_i32_0 = arith.constant 0 : i32
    %c0_i32_1 = arith.constant 0 : i32
    %c0_i32_2 = arith.constant 0 : i32
    return %arg1, %c0_i32, %c0_i32_0, %c0_i32_1 : i32, i32, i32, i32
  }
  func.func @transform_6(%arg0: i32, %arg1: i32) -> (i32, i32, i32, i32) {
    %c0_i32 = arith.constant 0 : i32
    %c0_i32_0 = arith.constant 0 : i32
    %c0_i32_1 = arith.constant 0 : i32
    %c0_i32_2 = arith.constant 0 : i32
    return %arg1, %c0_i32, %c0_i32_0, %c0_i32_1 : i32, i32, i32, i32
  }
  func.func @transform_7(%arg0: i32, %arg1: i32) -> (i32, i32, i32, i32) {
    %c0_i32 = arith.constant 0 : i32
    %c0_i32_0 = arith.constant 0 : i32
    %c0_i32_1 = arith.constant 0 : i32
    %c0_i32_2 = arith.constant 0 : i32
    return %arg1, %c0_i32, %c0_i32_0, %c0_i32_1 : i32, i32, i32, i32
  }
  func.func @transform_8(%arg0: i32, %arg1: i32) -> (i32, i32, i32) {
    %c0_i32 = arith.constant 0 : i32
    %c0_i32_0 = arith.constant 0 : i32
    %c0_i32_1 = arith.constant 0 : i32
    return %arg1, %c0_i32, %c0_i32_0 : i32, i32, i32
  }
  func.func @transform_9(%arg0: i32, %arg1: i32) -> (i32, i32, i32) {
    %c0_i32 = arith.constant 0 : i32
    %c0_i32_0 = arith.constant 0 : i32
    %c0_i32_1 = arith.constant 0 : i32
    return %arg1, %c0_i32, %c0_i32_0 : i32, i32, i32
  }
  func.func @transform_10(%arg0: i32, %arg1: i32) -> (i32, i32, i32) {
    %c0_i32 = arith.constant 0 : i32
    %c0_i32_0 = arith.constant 0 : i32
    %c0_i32_1 = arith.constant 0 : i32
    return %arg1, %c0_i32, %c0_i32_0 : i32, i32, i32
  }
  func.func @transform_11(%arg0: i32, %arg1: i32) -> (i32, i32, i32) {
    %c0_i32 = arith.constant 0 : i32
    %c0_i32_0 = arith.constant 0 : i32
    %c0_i32_1 = arith.constant 0 : i32
    return %arg1, %c0_i32, %c0_i32_0 : i32, i32, i32
  }
  func.func @transform_12(%arg0: i32, %arg1: i32) -> (i32, i32, i32) {
    %c0_i32 = arith.constant 0 : i32
    %c0_i32_0 = arith.constant 0 : i32
    %c0_i32_1 = arith.constant 0 : i32
    return %arg1, %c0_i32, %c0_i32_0 : i32, i32, i32
  }
  func.func @transform_13(%arg0: i32, %arg1: i32) -> (i32, i32, i32) {
    %c0_i32 = arith.constant 0 : i32
    %c0_i32_0 = arith.constant 0 : i32
    %c0_i32_1 = arith.constant 0 : i32
    return %arg1, %c0_i32, %c0_i32_0 : i32, i32, i32
  }
  func.func @transform_14(%arg0: i32, %arg1: i32) -> (i32, i32, i32) {
    %c0_i32 = arith.constant 0 : i32
    %c0_i32_0 = arith.constant 0 : i32
    %c0_i32_1 = arith.constant 0 : i32
    return %arg1, %c0_i32, %c0_i32_0 : i32, i32, i32
  }
  func.func @transform_15(%arg0: i32, %arg1: i32) -> (i32, i32, i32) {
    %c0_i32 = arith.constant 0 : i32
    %c0_i32_0 = arith.constant 0 : i32
    %c0_i32_1 = arith.constant 0 : i32
    return %arg1, %c0_i32, %c0_i32_0 : i32, i32, i32
  }
  func.func @transform_16(%arg0: i32, %arg1: i32) -> (i32, i32, i32) {
    %c0_i32 = arith.constant 0 : i32
    %c0_i32_0 = arith.constant 0 : i32
    %c0_i32_1 = arith.constant 0 : i32
    return %arg1, %c0_i32, %c0_i32_0 : i32, i32, i32
  }
  func.func @transform_17(%arg0: i32, %arg1: i32) -> (i32, i32) {
    %c0_i32 = arith.constant 0 : i32
    %c0_i32_0 = arith.constant 0 : i32
    %c0_i32_1 = arith.constant 0 : i32
    return %c0_i32, %c0_i32_0 : i32, i32
  }
  func.func @transform_18(%arg0: i32, %arg1: i32) -> (i32, i32) {
    %c0_i32 = arith.constant 0 : i32
    %c0_i32_0 = arith.constant 0 : i32
    %c0_i32_1 = arith.constant 0 : i32
    return %c0_i32, %c0_i32_0 : i32, i32
  }
  func.func @transform_19(%arg0: i32, %arg1: i32) -> (i32, i32, i32) {
    %c0_i32 = arith.constant 0 : i32
    %c0_i32_0 = arith.constant 0 : i32
    %c0_i32_1 = arith.constant 0 : i32
    return %arg0, %c0_i32, %c0_i32_0 : i32, i32, i32
  }
}

module attributes {stable_mosaic.version = 11 : i64} {
  func.func @_encoder_stack_kernel(%arg0: i32, %arg1: i32, %arg2: memref<1x2x64xf32, #tpu.memory_space<vmem>>, %arg3: memref<1x4x64x16xbf16, #tpu.memory_space<vmem>>, %arg4: memref<1x4x64x16xbf16, #tpu.memory_space<vmem>>, %arg5: memref<1x4x64x16xbf16, #tpu.memory_space<vmem>>, %arg6: memref<1x4x16x64xbf16, #tpu.memory_space<vmem>>, %arg7: memref<1x4x1x16xf32, #tpu.memory_space<vmem>>, %arg8: memref<1x4x1x16xf32, #tpu.memory_space<vmem>>, %arg9: memref<1x4x1x16xf32, #tpu.memory_space<vmem>>, %arg10: memref<1x1x64xf32, #tpu.memory_space<vmem>>, %arg11: memref<1x1x64xf32, #tpu.memory_space<vmem>>, %arg12: memref<1x1x64xf32, #tpu.memory_space<vmem>>, %arg13: memref<1x64x256xbf16, #tpu.memory_space<vmem>>, %arg14: memref<1x1x256xf32, #tpu.memory_space<vmem>>, %arg15: memref<1x256x64xbf16, #tpu.memory_space<vmem>>, %arg16: memref<1x1x64xf32, #tpu.memory_space<vmem>>, %arg17: memref<1x1x64xf32, #tpu.memory_space<vmem>>, %arg18: memref<1x1x64xf32, #tpu.memory_space<vmem>>, %arg19: memref<1x64xf32, #tpu.memory_space<vmem>>, %arg20: memref<1x64xf32, #tpu.memory_space<vmem>>, %arg21: memref<1x2x64xf32, #tpu.memory_space<vmem>>) attributes {dimension_semantics = [#tpu.dimension_semantics<parallel>, #tpu.dimension_semantics<arbitrary>], iteration_bounds = array<i64: 2, 2>, scalar_prefetch = 0 : i64, scratch_operands = 0 : i64, tpu.core_type = #tpu.core_type<tc>, window_params = [{transform_indices = @transform_0, window_bounds = array<i64: 1, 2, 64>}, {transform_indices = @transform_1, window_bounds = array<i64: 1, 4, 64, 16>}, {transform_indices = @transform_2, window_bounds = array<i64: 1, 4, 64, 16>}, {transform_indices = @transform_3, window_bounds = array<i64: 1, 4, 64, 16>}, {transform_indices = @transform_4, window_bounds = array<i64: 1, 4, 16, 64>}, {transform_indices = @transform_5, window_bounds = array<i64: 1, 4, 1, 16>}, {transform_indices = @transform_6, window_bounds = array<i64: 1, 4, 1, 16>}, {transform_indices = @transform_7, window_bounds = array<i64: 1, 4, 1, 16>}, {transform_indices = @transform_8, window_bounds = array<i64: 1, 1, 64>}, {transform_indices = @transform_9, window_bounds = array<i64: 1, 1, 64>}, {transform_indices = @transform_10, window_bounds = array<i64: 1, 1, 64>}, {transform_indices = @transform_11, window_bounds = array<i64: 1, 64, 256>}, {transform_indices = @transform_12, window_bounds = array<i64: 1, 1, 256>}, {transform_indices = @transform_13, window_bounds = array<i64: 1, 256, 64>}, {transform_indices = @transform_14, window_bounds = array<i64: 1, 1, 64>}, {transform_indices = @transform_15, window_bounds = array<i64: 1, 1, 64>}, {transform_indices = @transform_16, window_bounds = array<i64: 1, 1, 64>}, {pipeline_mode = #tpu.pipeline_mode<synchronous>, transform_indices = @transform_17, window_bounds = array<i64: 1, 64>}, {pipeline_mode = #tpu.pipeline_mode<synchronous>, transform_indices = @transform_18, window_bounds = array<i64: 1, 64>}, {transform_indices = @transform_19, window_bounds = array<i64: 1, 2, 64>}]} {
    %c0_i32 = arith.constant 0 : i32
    %0 = arith.cmpi eq, %arg1, %c0_i32 : i32
    %1 = arith.extui %0 : i1 to i32
    %c0_i32_0 = arith.constant 0 : i32
    %2 = arith.cmpi ne, %1, %c0_i32_0 : i32
    scf.if %2 {
      %c0_84 = arith.constant 0 : index
      %c0_85 = arith.constant 0 : index
      %c0_86 = arith.constant 0 : index
      %152 = vector.load %arg2[%c0_84, %c0_85, %c0_86] : memref<1x2x64xf32, #tpu.memory_space<vmem>>, vector<1x2x64xf32>
      %c0_87 = arith.constant 0 : index
      %c0_88 = arith.constant 0 : index
      %c0_89 = arith.constant 0 : index
      %153 = vector.load %arg21[%c0_87, %c0_88, %c0_89] : memref<1x2x64xf32, #tpu.memory_space<vmem>>, vector<1x2x64xf32>
      tpu.vector_store %arg21[%c0_87, %c0_88, %c0_89], %152 {strides = array<i32>} : memref<1x2x64xf32, #tpu.memory_space<vmem>>, vector<1x2x64xf32>,
    } else {
    }
    %c0 = arith.constant 0 : index
    %c0_1 = arith.constant 0 : index
    %c0_2 = arith.constant 0 : index
    %c0_3 = arith.constant 0 : index
    %3 = vector.load %arg3[%c0, %c0_1, %c0_2, %c0_3] : memref<1x4x64x16xbf16, #tpu.memory_space<vmem>>, vector<1x4x64x16xbf16>
    %4 = vector.shape_cast %3 : vector<1x4x64x16xbf16> to vector<4x64x16xbf16>
    %c0_4 = arith.constant 0 : index
    %c0_5 = arith.constant 0 : index
    %c0_6 = arith.constant 0 : index
    %c0_7 = arith.constant 0 : index
    %5 = vector.load %arg4[%c0_4, %c0_5, %c0_6, %c0_7] : memref<1x4x64x16xbf16, #tpu.memory_space<vmem>>, vector<1x4x64x16xbf16>
    %6 = vector.shape_cast %5 : vector<1x4x64x16xbf16> to vector<4x64x16xbf16>
    %c0_8 = arith.constant 0 : index
    %c0_9 = arith.constant 0 : index
    %c0_10 = arith.constant 0 : index
    %c0_11 = arith.constant 0 : index
    %7 = vector.load %arg5[%c0_8, %c0_9, %c0_10, %c0_11] : memref<1x4x64x16xbf16, #tpu.memory_space<vmem>>, vector<1x4x64x16xbf16>
    %8 = vector.shape_cast %7 : vector<1x4x64x16xbf16> to vector<4x64x16xbf16>
    %c0_12 = arith.constant 0 : index
    %c0_13 = arith.constant 0 : index
    %c0_14 = arith.constant 0 : index
    %c0_15 = arith.constant 0 : index
    %9 = vector.load %arg6[%c0_12, %c0_13, %c0_14, %c0_15] : memref<1x4x16x64xbf16, #tpu.memory_space<vmem>>, vector<1x4x16x64xbf16>
    %10 = vector.shape_cast %9 : vector<1x4x16x64xbf16> to vector<4x16x64xbf16>
    %c0_16 = arith.constant 0 : index
    %c0_17 = arith.constant 0 : index
    %c0_18 = arith.constant 0 : index
    %c0_19 = arith.constant 0 : index
    %11 = vector.load %arg7[%c0_16, %c0_17, %c0_18, %c0_19] : memref<1x4x1x16xf32, #tpu.memory_space<vmem>>, vector<1x4x1x16xf32>
    %12 = vector.shape_cast %11 : vector<1x4x1x16xf32> to vector<4x1x16xf32>
    %c0_20 = arith.constant 0 : index
    %c0_21 = arith.constant 0 : index
    %c0_22 = arith.constant 0 : index
    %c0_23 = arith.constant 0 : index
    %13 = vector.load %arg8[%c0_20, %c0_21, %c0_22, %c0_23] : memref<1x4x1x16xf32, #tpu.memory_space<vmem>>, vector<1x4x1x16xf32>
    %14 = vector.shape_cast %13 : vector<1x4x1x16xf32> to vector<4x1x16xf32>
    %c0_24 = arith.constant 0 : index
    %c0_25 = arith.constant 0 : index
    %c0_26 = arith.constant 0 : index
    %c0_27 = arith.constant 0 : index
    %15 = vector.load %arg9[%c0_24, %c0_25, %c0_26, %c0_27] : memref<1x4x1x16xf32, #tpu.memory_space<vmem>>, vector<1x4x1x16xf32>
    %16 = vector.shape_cast %15 : vector<1x4x1x16xf32> to vector<4x1x16xf32>
    %c0_28 = arith.constant 0 : index
    %c0_29 = arith.constant 0 : index
    %c0_30 = arith.constant 0 : index
    %17 = vector.load %arg10[%c0_28, %c0_29, %c0_30] : memref<1x1x64xf32, #tpu.memory_space<vmem>>, vector<1x1x64xf32>
    %18 = vector.shape_cast %17 : vector<1x1x64xf32> to vector<1x64xf32>
    %c0_31 = arith.constant 0 : index
    %c0_32 = arith.constant 0 : index
    %c0_33 = arith.constant 0 : index
    %19 = vector.load %arg11[%c0_31, %c0_32, %c0_33] : memref<1x1x64xf32, #tpu.memory_space<vmem>>, vector<1x1x64xf32>
    %20 = vector.shape_cast %19 : vector<1x1x64xf32> to vector<1x64xf32>
    %c0_34 = arith.constant 0 : index
    %c0_35 = arith.constant 0 : index
    %c0_36 = arith.constant 0 : index
    %21 = vector.load %arg12[%c0_34, %c0_35, %c0_36] : memref<1x1x64xf32, #tpu.memory_space<vmem>>, vector<1x1x64xf32>
    %22 = vector.shape_cast %21 : vector<1x1x64xf32> to vector<1x64xf32>
    %c0_37 = arith.constant 0 : index
    %c0_38 = arith.constant 0 : index
    %c0_39 = arith.constant 0 : index
    %23 = vector.load %arg13[%c0_37, %c0_38, %c0_39] : memref<1x64x256xbf16, #tpu.memory_space<vmem>>, vector<1x64x256xbf16>
    %24 = vector.shape_cast %23 : vector<1x64x256xbf16> to vector<64x256xbf16>
    %c0_40 = arith.constant 0 : index
    %c0_41 = arith.constant 0 : index
    %c0_42 = arith.constant 0 : index
    %25 = vector.load %arg14[%c0_40, %c0_41, %c0_42] : memref<1x1x256xf32, #tpu.memory_space<vmem>>, vector<1x1x256xf32>
    %26 = vector.shape_cast %25 : vector<1x1x256xf32> to vector<1x256xf32>
    %c0_43 = arith.constant 0 : index
    %c0_44 = arith.constant 0 : index
    %c0_45 = arith.constant 0 : index
    %27 = vector.load %arg15[%c0_43, %c0_44, %c0_45] : memref<1x256x64xbf16, #tpu.memory_space<vmem>>, vector<1x256x64xbf16>
    %28 = vector.shape_cast %27 : vector<1x256x64xbf16> to vector<256x64xbf16>
    %c0_46 = arith.constant 0 : index
    %c0_47 = arith.constant 0 : index
    %c0_48 = arith.constant 0 : index
    %29 = vector.load %arg16[%c0_46, %c0_47, %c0_48] : memref<1x1x64xf32, #tpu.memory_space<vmem>>, vector<1x1x64xf32>
    %30 = vector.shape_cast %29 : vector<1x1x64xf32> to vector<1x64xf32>
    %c0_49 = arith.constant 0 : index
    %c0_50 = arith.constant 0 : index
    %c0_51 = arith.constant 0 : index
    %31 = vector.load %arg17[%c0_49, %c0_50, %c0_51] : memref<1x1x64xf32, #tpu.memory_space<vmem>>, vector<1x1x64xf32>
    %32 = vector.shape_cast %31 : vector<1x1x64xf32> to vector<1x64xf32>
    %c0_52 = arith.constant 0 : index
    %c0_53 = arith.constant 0 : index
    %c0_54 = arith.constant 0 : index
    %33 = vector.load %arg18[%c0_52, %c0_53, %c0_54] : memref<1x1x64xf32, #tpu.memory_space<vmem>>, vector<1x1x64xf32>
    %34 = vector.shape_cast %33 : vector<1x1x64xf32> to vector<1x64xf32>
    %c0_55 = arith.constant 0 : index
    %c0_56 = arith.constant 0 : index
    %c0_57 = arith.constant 0 : index
    %35 = vector.load %arg21[%c0_55, %c0_56, %c0_57] : memref<1x2x64xf32, #tpu.memory_space<vmem>>, vector<1x2x64xf32>
    %36 = vector.shape_cast %35 : vector<1x2x64xf32> to vector<2x64xf32>
    %37 = vector.shape_cast %36 : vector<2x64xf32> to vector<1x2x64xf32>
    %38 = vector.shape_cast %37 : vector<1x2x64xf32> to vector<1x2x64xf32>
    %39 = vector.broadcast %38 : vector<1x2x64xf32> to vector<4x2x64xf32>
    %40 = vector.shape_cast %36 : vector<2x64xf32> to vector<1x2x64xf32>
    %41 = vector.shape_cast %40 : vector<1x2x64xf32> to vector<1x2x64xf32>
    %42 = vector.broadcast %41 : vector<1x2x64xf32> to vector<4x2x64xf32>
    %43 = arith.truncf %39 : vector<4x2x64xf32> to vector<4x2x64xbf16>
    %cst = arith.constant dense<0.000000e+00> : vector<4x2x16xf32>
    %44 = tpu.matmul %43, %4, %cst {dimension_numbers = #tpu.dot_dimension_numbers<[2], [1], [1], [2], [0, 0, 0, 1, 1, 2], [0], [0]>} : vector<4x2x64xbf16>, vector<4x64x16xbf16>, vector<4x2x16xf32> -> vector<4x2x16xf32>
    %45 = vector.broadcast %12 : vector<4x1x16xf32> to vector<4x2x16xf32>
    %46 = arith.addf %44, %45 : vector<4x2x16xf32>
    %47 = arith.truncf %42 : vector<4x2x64xf32> to vector<4x2x64xbf16>
    %cst_58 = arith.constant dense<0.000000e+00> : vector<4x2x16xf32>
    %48 = tpu.matmul %47, %6, %cst_58 {dimension_numbers = #tpu.dot_dimension_numbers<[2], [1], [1], [2], [0, 0, 0, 1, 1, 2], [0], [0]>} : vector<4x2x64xbf16>, vector<4x64x16xbf16>, vector<4x2x16xf32> -> vector<4x2x16xf32>
    %49 = vector.broadcast %14 : vector<4x1x16xf32> to vector<4x2x16xf32>
    %50 = arith.addf %48, %49 : vector<4x2x16xf32>
    %51 = arith.truncf %42 : vector<4x2x64xf32> to vector<4x2x64xbf16>
    %cst_59 = arith.constant dense<0.000000e+00> : vector<4x2x16xf32>
    %52 = tpu.matmul %51, %8, %cst_59 {dimension_numbers = #tpu.dot_dimension_numbers<[2], [1], [1], [2], [0, 0, 0, 1, 1, 2], [0], [0]>} : vector<4x2x64xbf16>, vector<4x64x16xbf16>, vector<4x2x16xf32> -> vector<4x2x16xf32>
    %53 = vector.broadcast %16 : vector<4x1x16xf32> to vector<4x2x16xf32>
    %54 = arith.addf %52, %53 : vector<4x2x16xf32>
    %cst_60 = arith.constant 2.500000e-01 : f32
    %55 = vector.broadcast %cst_60 : f32 to vector<4x2x16xf32>
    %56 = arith.mulf %46, %55 : vector<4x2x16xf32>
    %57 = arith.truncf %56 : vector<4x2x16xf32> to vector<4x2x16xbf16>
    %58 = arith.truncf %50 : vector<4x2x16xf32> to vector<4x2x16xbf16>
    %cst_61 = arith.constant dense<0.000000e+00> : vector<4x2x2xf32>
    %59 = tpu.matmul %57, %58, %cst_61 {dimension_numbers = #tpu.dot_dimension_numbers<[2], [2], [1], [1], [0, 0, 0, 1, 1, 1], [0], [0]>} : vector<4x2x16xbf16>, vector<4x2x16xbf16>, vector<4x2x2xf32> -> vector<4x2x2xf32>
    %cst_62 = arith.constant dense<0xFF800000> : vector<4x2xf32>
    %60 = vector.multi_reduction <maximumf>, %59, %cst_62 [2] : vector<4x2x2xf32> to vector<4x2xf32>
    %61 = vector.shape_cast %60 : vector<4x2xf32> to vector<4x2x1xf32>
    %62 = vector.broadcast %61 : vector<4x2x1xf32> to vector<4x2x2xf32>
    %63 = arith.subf %59, %62 : vector<4x2x2xf32>
    %64 = math.exp %63 : vector<4x2x2xf32>
    %cst_63 = arith.constant dense<0.000000e+00> : vector<4x2xf32>
    %65 = vector.multi_reduction <add>, %64, %cst_63 [2] : vector<4x2x2xf32> to vector<4x2xf32>
    %66 = vector.shape_cast %65 : vector<4x2xf32> to vector<4x2x1xf32>
    %67 = tpu.reciprocal %66 {approx = true} : vector<4x2x1xf32> -> vector<4x2x1xf32>
    %68 = vector.broadcast %67 : vector<4x2x1xf32> to vector<4x2x2xf32>
    %69 = arith.mulf %64, %68 : vector<4x2x2xf32>
    %70 = arith.truncf %69 : vector<4x2x2xf32> to vector<4x2x2xbf16>
    %71 = arith.truncf %54 : vector<4x2x16xf32> to vector<4x2x16xbf16>
    %cst_64 = arith.constant dense<0.000000e+00> : vector<4x2x16xf32>
    %72 = tpu.matmul %70, %71, %cst_64 {dimension_numbers = #tpu.dot_dimension_numbers<[2], [1], [1], [2], [0, 0, 0, 1, 1, 2], [0], [0]>} : vector<4x2x2xbf16>, vector<4x2x16xbf16>, vector<4x2x16xf32> -> vector<4x2x16xf32>
    %73 = arith.truncf %72 : vector<4x2x16xf32> to vector<4x2x16xbf16>
    %cst_65 = arith.constant dense<0.000000e+00> : vector<4x2x64xf32>
    %74 = tpu.matmul %73, %10, %cst_65 {dimension_numbers = #tpu.dot_dimension_numbers<[2], [1], [1], [2], [0, 0, 0, 1, 1, 2], [0], [0]>} : vector<4x2x16xbf16>, vector<4x16x64xbf16>, vector<4x2x64xf32> -> vector<4x2x64xf32>
    %75 = vector.extract_strided_slice %74 {offsets = [0, 0, 0], sizes = [1, 2, 64], strides = [1, 1, 1]} : vector<4x2x64xf32> to vector<1x2x64xf32>
    %76 = vector.shape_cast %75 : vector<1x2x64xf32> to vector<2x64xf32>
    %77 = vector.extract_strided_slice %74 {offsets = [1, 0, 0], sizes = [1, 2, 64], strides = [1, 1, 1]} : vector<4x2x64xf32> to vector<1x2x64xf32>
    %78 = vector.shape_cast %77 : vector<1x2x64xf32> to vector<2x64xf32>
    %79 = arith.addf %76, %78 : vector<2x64xf32>
    %80 = vector.extract_strided_slice %74 {offsets = [2, 0, 0], sizes = [1, 2, 64], strides = [1, 1, 1]} : vector<4x2x64xf32> to vector<1x2x64xf32>
    %81 = vector.shape_cast %80 : vector<1x2x64xf32> to vector<2x64xf32>
    %82 = arith.addf %79, %81 : vector<2x64xf32>
    %83 = vector.extract_strided_slice %74 {offsets = [3, 0, 0], sizes = [1, 2, 64], strides = [1, 1, 1]} : vector<4x2x64xf32> to vector<1x2x64xf32>
    %84 = vector.shape_cast %83 : vector<1x2x64xf32> to vector<2x64xf32>
    %85 = arith.addf %82, %84 : vector<2x64xf32>
    %86 = vector.broadcast %18 : vector<1x64xf32> to vector<2x64xf32>
    %87 = arith.addf %85, %86 : vector<2x64xf32>
    %88 = arith.addf %36, %87 : vector<2x64xf32>
    %cst_66 = arith.constant dense<0.000000e+00> : vector<2xf32>
    %89 = vector.multi_reduction <add>, %88, %cst_66 [1] : vector<2x64xf32> to vector<2xf32>
    %90 = vector.shape_cast %89 : vector<2xf32> to vector<2x1xf32>
    %cst_67 = arith.constant 6.400000e+01 : f32
    %91 = vector.broadcast %cst_67 : f32 to vector<2x1xf32>
    %92 = arith.divf %90, %91 : vector<2x1xf32>
    %93 = vector.broadcast %92 : vector<2x1xf32> to vector<2x64xf32>
    %94 = arith.subf %88, %93 : vector<2x64xf32>
    %95 = arith.mulf %94, %94 : vector<2x64xf32>
    %cst_68 = arith.constant dense<0.000000e+00> : vector<2xf32>
    %96 = vector.multi_reduction <add>, %95, %cst_68 [1] : vector<2x64xf32> to vector<2xf32>
    %97 = vector.shape_cast %96 : vector<2xf32> to vector<2x1xf32>
    %cst_69 = arith.constant 6.400000e+01 : f32
    %98 = vector.broadcast %cst_69 : f32 to vector<2x1xf32>
    %99 = arith.divf %97, %98 : vector<2x1xf32>
    %cst_70 = arith.constant 9.99999974E-6 : f32
    %100 = vector.broadcast %cst_70 : f32 to vector<2x1xf32>
    %101 = arith.addf %99, %100 : vector<2x1xf32>
    %102 = math.rsqrt %101 : vector<2x1xf32>
    %103 = vector.broadcast %102 : vector<2x1xf32> to vector<2x64xf32>
    %104 = arith.mulf %94, %103 : vector<2x64xf32>
    %105 = vector.broadcast %20 : vector<1x64xf32> to vector<2x64xf32>
    %106 = arith.mulf %104, %105 : vector<2x64xf32>
    %107 = vector.broadcast %22 : vector<1x64xf32> to vector<2x64xf32>
    %108 = arith.addf %106, %107 : vector<2x64xf32>
    %109 = arith.truncf %108 : vector<2x64xf32> to vector<2x64xbf16>
    %cst_71 = arith.constant dense<0.000000e+00> : vector<2x256xf32>
    %110 = tpu.matmul %109, %24, %cst_71 {dimension_numbers = #tpu.dot_dimension_numbers<[1], [0], [0], [1], [0, 0, 1, 1], [], []>} : vector<2x64xbf16>, vector<64x256xbf16>, vector<2x256xf32> -> vector<2x256xf32>
    %111 = vector.broadcast %26 : vector<1x256xf32> to vector<2x256xf32>
    %112 = arith.addf %110, %111 : vector<2x256xf32>
    %cst_72 = arith.constant 5.000000e-01 : f32
    %113 = vector.broadcast %cst_72 : f32 to vector<2x256xf32>
    %114 = arith.mulf %113, %112 : vector<2x256xf32>
    %cst_73 = arith.constant 0.707106769 : f32
    %115 = vector.broadcast %cst_73 : f32 to vector<2x256xf32>
    %116 = arith.mulf %112, %115 : vector<2x256xf32>
    %117 = math.erf %116 : vector<2x256xf32>
    %cst_74 = arith.constant 1.000000e+00 : f32
    %118 = vector.broadcast %cst_74 : f32 to vector<2x256xf32>
    %119 = arith.addf %118, %117 : vector<2x256xf32>
    %120 = arith.mulf %114, %119 : vector<2x256xf32>
    %121 = arith.truncf %120 : vector<2x256xf32> to vector<2x256xbf16>
    %cst_75 = arith.constant dense<0.000000e+00> : vector<2x64xf32>
    %122 = tpu.matmul %121, %28, %cst_75 {dimension_numbers = #tpu.dot_dimension_numbers<[1], [0], [0], [1], [0, 0, 1, 1], [], []>} : vector<2x256xbf16>, vector<256x64xbf16>, vector<2x64xf32> -> vector<2x64xf32>
    %123 = vector.broadcast %30 : vector<1x64xf32> to vector<2x64xf32>
    %124 = arith.addf %122, %123 : vector<2x64xf32>
    %125 = arith.addf %108, %124 : vector<2x64xf32>
    %cst_76 = arith.constant dense<0.000000e+00> : vector<2xf32>
    %126 = vector.multi_reduction <add>, %125, %cst_76 [1] : vector<2x64xf32> to vector<2xf32>
    %127 = vector.shape_cast %126 : vector<2xf32> to vector<2x1xf32>
    %cst_77 = arith.constant 6.400000e+01 : f32
    %128 = vector.broadcast %cst_77 : f32 to vector<2x1xf32>
    %129 = arith.divf %127, %128 : vector<2x1xf32>
    %130 = vector.broadcast %129 : vector<2x1xf32> to vector<2x64xf32>
    %131 = arith.subf %125, %130 : vector<2x64xf32>
    %132 = arith.mulf %131, %131 : vector<2x64xf32>
    %cst_78 = arith.constant dense<0.000000e+00> : vector<2xf32>
    %133 = vector.multi_reduction <add>, %132, %cst_78 [1] : vector<2x64xf32> to vector<2xf32>
    %134 = vector.shape_cast %133 : vector<2xf32> to vector<2x1xf32>
    %cst_79 = arith.constant 6.400000e+01 : f32
    %135 = vector.broadcast %cst_79 : f32 to vector<2x1xf32>
    %136 = arith.divf %134, %135 : vector<2x1xf32>
    %cst_80 = arith.constant 9.99999974E-6 : f32
    %137 = vector.broadcast %cst_80 : f32 to vector<2x1xf32>
    %138 = arith.addf %136, %137 : vector<2x1xf32>
    %139 = math.rsqrt %138 : vector<2x1xf32>
    %140 = vector.broadcast %139 : vector<2x1xf32> to vector<2x64xf32>
    %141 = arith.mulf %131, %140 : vector<2x64xf32>
    %142 = vector.broadcast %32 : vector<1x64xf32> to vector<2x64xf32>
    %143 = arith.mulf %141, %142 : vector<2x64xf32>
    %144 = vector.broadcast %34 : vector<1x64xf32> to vector<2x64xf32>
    %145 = arith.addf %143, %144 : vector<2x64xf32>
    %c1_i32 = arith.constant 1 : i32
    %146 = arith.cmpi slt, %arg1, %c1_i32 : i32
    %147 = arith.extui %146 : i1 to i32
    %c0_i32_81 = arith.constant 0 : i32
    %148 = arith.cmpi ne, %147, %c0_i32_81 : i32
    scf.if %148 {
      %c0_84 = arith.constant 0 : index
      %c0_85 = arith.constant 0 : index
      %c0_86 = arith.constant 0 : index
      %152 = vector.load %arg21[%c0_84, %c0_85, %c0_86] : memref<1x2x64xf32, #tpu.memory_space<vmem>>, vector<1x2x64xf32>
      %153 = vector.shape_cast %152 : vector<1x2x64xf32> to vector<2x64xf32>
      %154 = vector.shape_cast %145 : vector<2x64xf32> to vector<1x2x64xf32>
      tpu.vector_store %arg21[%c0_84, %c0_85, %c0_86], %154 {strides = array<i32>} : memref<1x2x64xf32, #tpu.memory_space<vmem>>, vector<1x2x64xf32>,
    } else {
    }
    %c1_i32_82 = arith.constant 1 : i32
    %149 = arith.cmpi eq, %arg1, %c1_i32_82 : i32
    %150 = arith.extui %149 : i1 to i32
    %c0_i32_83 = arith.constant 0 : i32
    %151 = arith.cmpi ne, %150, %c0_i32_83 : i32
    scf.if %151 {
      %c0_84 = arith.constant 0 : index
      %c0_85 = arith.constant 0 : index
      %152 = vector.load %arg19[%c0_84, %c0_85] : memref<1x64xf32, #tpu.memory_space<vmem>>, vector<1x64xf32>
      %c0_86 = arith.constant 0 : index
      %c0_87 = arith.constant 0 : index
      %153 = vector.load %arg20[%c0_86, %c0_87] : memref<1x64xf32, #tpu.memory_space<vmem>>, vector<1x64xf32>
      %cst_88 = arith.constant dense<0.000000e+00> : vector<2xf32>
      %154 = vector.multi_reduction <add>, %145, %cst_88 [1] : vector<2x64xf32> to vector<2xf32>
      %155 = vector.shape_cast %154 : vector<2xf32> to vector<2x1xf32>
      %cst_89 = arith.constant 6.400000e+01 : f32
      %156 = vector.broadcast %cst_89 : f32 to vector<2x1xf32>
      %157 = arith.divf %155, %156 : vector<2x1xf32>
      %158 = vector.broadcast %157 : vector<2x1xf32> to vector<2x64xf32>
      %159 = arith.subf %145, %158 : vector<2x64xf32>
      %160 = arith.mulf %159, %159 : vector<2x64xf32>
      %cst_90 = arith.constant dense<0.000000e+00> : vector<2xf32>
      %161 = vector.multi_reduction <add>, %160, %cst_90 [1] : vector<2x64xf32> to vector<2xf32>
      %162 = vector.shape_cast %161 : vector<2xf32> to vector<2x1xf32>
      %cst_91 = arith.constant 6.400000e+01 : f32
      %163 = vector.broadcast %cst_91 : f32 to vector<2x1xf32>
      %164 = arith.divf %162, %163 : vector<2x1xf32>
      %cst_92 = arith.constant 9.99999974E-6 : f32
      %165 = vector.broadcast %cst_92 : f32 to vector<2x1xf32>
      %166 = arith.addf %164, %165 : vector<2x1xf32>
      %167 = math.rsqrt %166 : vector<2x1xf32>
      %168 = vector.broadcast %167 : vector<2x1xf32> to vector<2x64xf32>
      %169 = arith.mulf %159, %168 : vector<2x64xf32>
      %170 = vector.broadcast %152 : vector<1x64xf32> to vector<2x64xf32>
      %171 = arith.mulf %169, %170 : vector<2x64xf32>
      %172 = vector.broadcast %153 : vector<1x64xf32> to vector<2x64xf32>
      %173 = arith.addf %171, %172 : vector<2x64xf32>
      %c0_93 = arith.constant 0 : index
      %c0_94 = arith.constant 0 : index
      %c0_95 = arith.constant 0 : index
      %174 = vector.load %arg21[%c0_93, %c0_94, %c0_95] : memref<1x2x64xf32, #tpu.memory_space<vmem>>, vector<1x2x64xf32>
      %175 = vector.shape_cast %174 : vector<1x2x64xf32> to vector<2x64xf32>
      %176 = vector.shape_cast %173 : vector<2x64xf32> to vector<1x2x64xf32>
      tpu.vector_store %arg21[%c0_93, %c0_94, %c0_95], %176 {strides = array<i32>} : memref<1x2x64xf32, #tpu.memory_space<vmem>>, vector<1x2x64xf32>,
    } else {
    }
    return
  }
  func.func @transform_0(%arg0: i32, %arg1: i32) -> (i32, i32, i32) {
    %c0_i32 = arith.constant 0 : i32
    %c0_i32_0 = arith.constant 0 : i32
    %c0_i32_1 = arith.constant 0 : i32
    return %arg0, %c0_i32, %c0_i32_0 : i32, i32, i32
  }
  func.func @transform_1(%arg0: i32, %arg1: i32) -> (i32, i32, i32, i32) {
    %c0_i32 = arith.constant 0 : i32
    %c0_i32_0 = arith.constant 0 : i32
    %c0_i32_1 = arith.constant 0 : i32
    %c0_i32_2 = arith.constant 0 : i32
    return %arg1, %c0_i32, %c0_i32_0, %c0_i32_1 : i32, i32, i32, i32
  }
  func.func @transform_2(%arg0: i32, %arg1: i32) -> (i32, i32, i32, i32) {
    %c0_i32 = arith.constant 0 : i32
    %c0_i32_0 = arith.constant 0 : i32
    %c0_i32_1 = arith.constant 0 : i32
    %c0_i32_2 = arith.constant 0 : i32
    return %arg1, %c0_i32, %c0_i32_0, %c0_i32_1 : i32, i32, i32, i32
  }
  func.func @transform_3(%arg0: i32, %arg1: i32) -> (i32, i32, i32, i32) {
    %c0_i32 = arith.constant 0 : i32
    %c0_i32_0 = arith.constant 0 : i32
    %c0_i32_1 = arith.constant 0 : i32
    %c0_i32_2 = arith.constant 0 : i32
    return %arg1, %c0_i32, %c0_i32_0, %c0_i32_1 : i32, i32, i32, i32
  }
  func.func @transform_4(%arg0: i32, %arg1: i32) -> (i32, i32, i32, i32) {
    %c0_i32 = arith.constant 0 : i32
    %c0_i32_0 = arith.constant 0 : i32
    %c0_i32_1 = arith.constant 0 : i32
    %c0_i32_2 = arith.constant 0 : i32
    return %arg1, %c0_i32, %c0_i32_0, %c0_i32_1 : i32, i32, i32, i32
  }
  func.func @transform_5(%arg0: i32, %arg1: i32) -> (i32, i32, i32, i32) {
    %c0_i32 = arith.constant 0 : i32
    %c0_i32_0 = arith.constant 0 : i32
    %c0_i32_1 = arith.constant 0 : i32
    %c0_i32_2 = arith.constant 0 : i32
    return %arg1, %c0_i32, %c0_i32_0, %c0_i32_1 : i32, i32, i32, i32
  }
  func.func @transform_6(%arg0: i32, %arg1: i32) -> (i32, i32, i32, i32) {
    %c0_i32 = arith.constant 0 : i32
    %c0_i32_0 = arith.constant 0 : i32
    %c0_i32_1 = arith.constant 0 : i32
    %c0_i32_2 = arith.constant 0 : i32
    return %arg1, %c0_i32, %c0_i32_0, %c0_i32_1 : i32, i32, i32, i32
  }
  func.func @transform_7(%arg0: i32, %arg1: i32) -> (i32, i32, i32, i32) {
    %c0_i32 = arith.constant 0 : i32
    %c0_i32_0 = arith.constant 0 : i32
    %c0_i32_1 = arith.constant 0 : i32
    %c0_i32_2 = arith.constant 0 : i32
    return %arg1, %c0_i32, %c0_i32_0, %c0_i32_1 : i32, i32, i32, i32
  }
  func.func @transform_8(%arg0: i32, %arg1: i32) -> (i32, i32, i32) {
    %c0_i32 = arith.constant 0 : i32
    %c0_i32_0 = arith.constant 0 : i32
    %c0_i32_1 = arith.constant 0 : i32
    return %arg1, %c0_i32, %c0_i32_0 : i32, i32, i32
  }
  func.func @transform_9(%arg0: i32, %arg1: i32) -> (i32, i32, i32) {
    %c0_i32 = arith.constant 0 : i32
    %c0_i32_0 = arith.constant 0 : i32
    %c0_i32_1 = arith.constant 0 : i32
    return %arg1, %c0_i32, %c0_i32_0 : i32, i32, i32
  }
  func.func @transform_10(%arg0: i32, %arg1: i32) -> (i32, i32, i32) {
    %c0_i32 = arith.constant 0 : i32
    %c0_i32_0 = arith.constant 0 : i32
    %c0_i32_1 = arith.constant 0 : i32
    return %arg1, %c0_i32, %c0_i32_0 : i32, i32, i32
  }
  func.func @transform_11(%arg0: i32, %arg1: i32) -> (i32, i32, i32) {
    %c0_i32 = arith.constant 0 : i32
    %c0_i32_0 = arith.constant 0 : i32
    %c0_i32_1 = arith.constant 0 : i32
    return %arg1, %c0_i32, %c0_i32_0 : i32, i32, i32
  }
  func.func @transform_12(%arg0: i32, %arg1: i32) -> (i32, i32, i32) {
    %c0_i32 = arith.constant 0 : i32
    %c0_i32_0 = arith.constant 0 : i32
    %c0_i32_1 = arith.constant 0 : i32
    return %arg1, %c0_i32, %c0_i32_0 : i32, i32, i32
  }
  func.func @transform_13(%arg0: i32, %arg1: i32) -> (i32, i32, i32) {
    %c0_i32 = arith.constant 0 : i32
    %c0_i32_0 = arith.constant 0 : i32
    %c0_i32_1 = arith.constant 0 : i32
    return %arg1, %c0_i32, %c0_i32_0 : i32, i32, i32
  }
  func.func @transform_14(%arg0: i32, %arg1: i32) -> (i32, i32, i32) {
    %c0_i32 = arith.constant 0 : i32
    %c0_i32_0 = arith.constant 0 : i32
    %c0_i32_1 = arith.constant 0 : i32
    return %arg1, %c0_i32, %c0_i32_0 : i32, i32, i32
  }
  func.func @transform_15(%arg0: i32, %arg1: i32) -> (i32, i32, i32) {
    %c0_i32 = arith.constant 0 : i32
    %c0_i32_0 = arith.constant 0 : i32
    %c0_i32_1 = arith.constant 0 : i32
    return %arg1, %c0_i32, %c0_i32_0 : i32, i32, i32
  }
  func.func @transform_16(%arg0: i32, %arg1: i32) -> (i32, i32, i32) {
    %c0_i32 = arith.constant 0 : i32
    %c0_i32_0 = arith.constant 0 : i32
    %c0_i32_1 = arith.constant 0 : i32
    return %arg1, %c0_i32, %c0_i32_0 : i32, i32, i32
  }
  func.func @transform_17(%arg0: i32, %arg1: i32) -> (i32, i32) {
    %c0_i32 = arith.constant 0 : i32
    %c0_i32_0 = arith.constant 0 : i32
    %c0_i32_1 = arith.constant 0 : i32
    return %c0_i32, %c0_i32_0 : i32, i32
  }
  func.func @transform_18(%arg0: i32, %arg1: i32) -> (i32, i32) {
    %c0_i32 = arith.constant 0 : i32
    %c0_i32_0 = arith.constant 0 : i32
    %c0_i32_1 = arith.constant 0 : i32
    return %c0_i32, %c0_i32_0 : i32, i32
  }
  func.func @transform_19(%arg0: i32, %arg1: i32) -> (i32, i32, i32) {
    %c0_i32 = arith.constant 0 : i32
    %c0_i32_0 = arith.constant 0 : i32
    %c0_i32_1 = arith.constant 0 : i32
    return %arg0, %c0_i32, %c0_i32_0 : i32, i32, i32
  }
}

module attributes {stable_mosaic.version = 11 : i64} {
  func.func @_enhance_block_kernel(%arg0: i32, %arg1: memref<1x1x64xf32, #tpu.memory_space<vmem>>, %arg2: memref<1x1x64xf32, #tpu.memory_space<vmem>>, %arg3: memref<64x32xbf16, #tpu.memory_space<vmem>>, %arg4: memref<1x32xf32, #tpu.memory_space<vmem>>, %arg5: memref<32x64xbf16, #tpu.memory_space<vmem>>, %arg6: memref<1x64xf32, #tpu.memory_space<vmem>>, %arg7: memref<4x64x16xbf16, #tpu.memory_space<vmem>>, %arg8: memref<4x64x16xbf16, #tpu.memory_space<vmem>>, %arg9: memref<4x64x16xbf16, #tpu.memory_space<vmem>>, %arg10: memref<4x16x64xbf16, #tpu.memory_space<vmem>>, %arg11: memref<4x1x16xf32, #tpu.memory_space<vmem>>, %arg12: memref<4x1x16xf32, #tpu.memory_space<vmem>>, %arg13: memref<4x1x16xf32, #tpu.memory_space<vmem>>, %arg14: memref<1x64xf32, #tpu.memory_space<vmem>>, %arg15: memref<4x64x16xbf16, #tpu.memory_space<vmem>>, %arg16: memref<4x64x16xbf16, #tpu.memory_space<vmem>>, %arg17: memref<4x64x16xbf16, #tpu.memory_space<vmem>>, %arg18: memref<4x16x64xbf16, #tpu.memory_space<vmem>>, %arg19: memref<4x1x16xf32, #tpu.memory_space<vmem>>, %arg20: memref<4x1x16xf32, #tpu.memory_space<vmem>>, %arg21: memref<4x1x16xf32, #tpu.memory_space<vmem>>, %arg22: memref<1x64xf32, #tpu.memory_space<vmem>>, %arg23: memref<64x64xbf16, #tpu.memory_space<vmem>>, %arg24: memref<64x64xbf16, #tpu.memory_space<vmem>>, %arg25: memref<1x64xf32, #tpu.memory_space<vmem>>, %arg26: memref<64x64xbf16, #tpu.memory_space<vmem>>, %arg27: memref<1x64xf32, #tpu.memory_space<vmem>>, %arg28: memref<64x64xbf16, #tpu.memory_space<vmem>>, %arg29: memref<1x64xf32, #tpu.memory_space<vmem>>, %arg30: memref<1x64xf32, #tpu.memory_space<vmem>>, %arg31: memref<1x64xf32, #tpu.memory_space<vmem>>, %arg32: memref<1x1x64xf32, #tpu.memory_space<vmem>>) attributes {dimension_semantics = [#tpu.dimension_semantics<parallel>], iteration_bounds = array<i64: 2>, scalar_prefetch = 0 : i64, scratch_operands = 0 : i64, tpu.core_type = #tpu.core_type<tc>, window_params = [{transform_indices = @transform_0, window_bounds = array<i64: 1, 1, 64>}, {transform_indices = @transform_1, window_bounds = array<i64: 1, 1, 64>}, {pipeline_mode = #tpu.pipeline_mode<synchronous>, transform_indices = @transform_2, window_bounds = array<i64: 64, 32>}, {pipeline_mode = #tpu.pipeline_mode<synchronous>, transform_indices = @transform_3, window_bounds = array<i64: 1, 32>}, {pipeline_mode = #tpu.pipeline_mode<synchronous>, transform_indices = @transform_4, window_bounds = array<i64: 32, 64>}, {pipeline_mode = #tpu.pipeline_mode<synchronous>, transform_indices = @transform_5, window_bounds = array<i64: 1, 64>}, {pipeline_mode = #tpu.pipeline_mode<synchronous>, transform_indices = @transform_6, window_bounds = array<i64: 4, 64, 16>}, {pipeline_mode = #tpu.pipeline_mode<synchronous>, transform_indices = @transform_7, window_bounds = array<i64: 4, 64, 16>}, {pipeline_mode = #tpu.pipeline_mode<synchronous>, transform_indices = @transform_8, window_bounds = array<i64: 4, 64, 16>}, {pipeline_mode = #tpu.pipeline_mode<synchronous>, transform_indices = @transform_9, window_bounds = array<i64: 4, 16, 64>}, {pipeline_mode = #tpu.pipeline_mode<synchronous>, transform_indices = @transform_10, window_bounds = array<i64: 4, 1, 16>}, {pipeline_mode = #tpu.pipeline_mode<synchronous>, transform_indices = @transform_11, window_bounds = array<i64: 4, 1, 16>}, {pipeline_mode = #tpu.pipeline_mode<synchronous>, transform_indices = @transform_12, window_bounds = array<i64: 4, 1, 16>}, {pipeline_mode = #tpu.pipeline_mode<synchronous>, transform_indices = @transform_13, window_bounds = array<i64: 1, 64>}, {pipeline_mode = #tpu.pipeline_mode<synchronous>, transform_indices = @transform_14, window_bounds = array<i64: 4, 64, 16>}, {pipeline_mode = #tpu.pipeline_mode<synchronous>, transform_indices = @transform_15, window_bounds = array<i64: 4, 64, 16>}, {pipeline_mode = #tpu.pipeline_mode<synchronous>, transform_indices = @transform_16, window_bounds = array<i64: 4, 64, 16>}, {pipeline_mode = #tpu.pipeline_mode<synchronous>, transform_indices = @transform_17, window_bounds = array<i64: 4, 16, 64>}, {pipeline_mode = #tpu.pipeline_mode<synchronous>, transform_indices = @transform_18, window_bounds = array<i64: 4, 1, 16>}, {pipeline_mode = #tpu.pipeline_mode<synchronous>, transform_indices = @transform_19, window_bounds = array<i64: 4, 1, 16>}, {pipeline_mode = #tpu.pipeline_mode<synchronous>, transform_indices = @transform_20, window_bounds = array<i64: 4, 1, 16>}, {pipeline_mode = #tpu.pipeline_mode<synchronous>, transform_indices = @transform_21, window_bounds = array<i64: 1, 64>}, {pipeline_mode = #tpu.pipeline_mode<synchronous>, transform_indices = @transform_22, window_bounds = array<i64: 64, 64>}, {pipeline_mode = #tpu.pipeline_mode<synchronous>, transform_indices = @transform_23, window_bounds = array<i64: 64, 64>}, {pipeline_mode = #tpu.pipeline_mode<synchronous>, transform_indices = @transform_24, window_bounds = array<i64: 1, 64>}, {pipeline_mode = #tpu.pipeline_mode<synchronous>, transform_indices = @transform_25, window_bounds = array<i64: 64, 64>}, {pipeline_mode = #tpu.pipeline_mode<synchronous>, transform_indices = @transform_26, window_bounds = array<i64: 1, 64>}, {pipeline_mode = #tpu.pipeline_mode<synchronous>, transform_indices = @transform_27, window_bounds = array<i64: 64, 64>}, {pipeline_mode = #tpu.pipeline_mode<synchronous>, transform_indices = @transform_28, window_bounds = array<i64: 1, 64>}, {pipeline_mode = #tpu.pipeline_mode<synchronous>, transform_indices = @transform_29, window_bounds = array<i64: 1, 64>}, {pipeline_mode = #tpu.pipeline_mode<synchronous>, transform_indices = @transform_30, window_bounds = array<i64: 1, 64>}, {transform_indices = @transform_31, window_bounds = array<i64: 1, 1, 64>}]} {
    %c0 = arith.constant 0 : index
    %c0_0 = arith.constant 0 : index
    %c0_1 = arith.constant 0 : index
    %0 = vector.load %arg1[%c0, %c0_0, %c0_1] : memref<1x1x64xf32, #tpu.memory_space<vmem>>, vector<1x1x64xf32>
    %1 = vector.shape_cast %0 : vector<1x1x64xf32> to vector<1x64xf32>
    %c0_2 = arith.constant 0 : index
    %c0_3 = arith.constant 0 : index
    %c0_4 = arith.constant 0 : index
    %2 = vector.load %arg2[%c0_2, %c0_3, %c0_4] : memref<1x1x64xf32, #tpu.memory_space<vmem>>, vector<1x1x64xf32>
    %3 = vector.shape_cast %2 : vector<1x1x64xf32> to vector<1x64xf32>
    %c0_5 = arith.constant 0 : index
    %c0_6 = arith.constant 0 : index
    %4 = vector.load %arg3[%c0_5, %c0_6] : memref<64x32xbf16, #tpu.memory_space<vmem>>, vector<64x32xbf16>
    %5 = arith.truncf %3 : vector<1x64xf32> to vector<1x64xbf16>
    %cst = arith.constant dense<0.000000e+00> : vector<1x32xf32>
    %6 = tpu.matmul %5, %4, %cst {dimension_numbers = #tpu.dot_dimension_numbers<[1], [0], [0], [1], [0, 0, 1, 1], [], []>} : vector<1x64xbf16>, vector<64x32xbf16>, vector<1x32xf32> -> vector<1x32xf32>
    %c0_7 = arith.constant 0 : index
    %c0_8 = arith.constant 0 : index
    %7 = vector.load %arg4[%c0_7, %c0_8] : memref<1x32xf32, #tpu.memory_space<vmem>>, vector<1x32xf32>
    %8 = arith.addf %6, %7 : vector<1x32xf32>
    %cst_9 = arith.constant 5.000000e-01 : f32
    %9 = vector.broadcast %cst_9 : f32 to vector<1x32xf32>
    %10 = arith.mulf %9, %8 : vector<1x32xf32>
    %cst_10 = arith.constant 0.707106769 : f32
    %11 = vector.broadcast %cst_10 : f32 to vector<1x32xf32>
    %12 = arith.mulf %8, %11 : vector<1x32xf32>
    %13 = math.erf %12 : vector<1x32xf32>
    %cst_11 = arith.constant 1.000000e+00 : f32
    %14 = vector.broadcast %cst_11 : f32 to vector<1x32xf32>
    %15 = arith.addf %14, %13 : vector<1x32xf32>
    %16 = arith.mulf %10, %15 : vector<1x32xf32>
    %c0_12 = arith.constant 0 : index
    %c0_13 = arith.constant 0 : index
    %17 = vector.load %arg5[%c0_12, %c0_13] : memref<32x64xbf16, #tpu.memory_space<vmem>>, vector<32x64xbf16>
    %18 = arith.truncf %16 : vector<1x32xf32> to vector<1x32xbf16>
    %cst_14 = arith.constant dense<0.000000e+00> : vector<1x64xf32>
    %19 = tpu.matmul %18, %17, %cst_14 {dimension_numbers = #tpu.dot_dimension_numbers<[1], [0], [0], [1], [0, 0, 1, 1], [], []>} : vector<1x32xbf16>, vector<32x64xbf16>, vector<1x64xf32> -> vector<1x64xf32>
    %c0_15 = arith.constant 0 : index
    %c0_16 = arith.constant 0 : index
    %20 = vector.load %arg6[%c0_15, %c0_16] : memref<1x64xf32, #tpu.memory_space<vmem>>, vector<1x64xf32>
    %21 = arith.addf %19, %20 : vector<1x64xf32>
    %c0_17 = arith.constant 0 : index
    %c0_18 = arith.constant 0 : index
    %c0_19 = arith.constant 0 : index
    %22 = vector.load %arg7[%c0_17, %c0_18, %c0_19] : memref<4x64x16xbf16, #tpu.memory_space<vmem>>, vector<4x64x16xbf16>
    %c0_20 = arith.constant 0 : index
    %c0_21 = arith.constant 0 : index
    %c0_22 = arith.constant 0 : index
    %23 = vector.load %arg8[%c0_20, %c0_21, %c0_22] : memref<4x64x16xbf16, #tpu.memory_space<vmem>>, vector<4x64x16xbf16>
    %c0_23 = arith.constant 0 : index
    %c0_24 = arith.constant 0 : index
    %c0_25 = arith.constant 0 : index
    %24 = vector.load %arg9[%c0_23, %c0_24, %c0_25] : memref<4x64x16xbf16, #tpu.memory_space<vmem>>, vector<4x64x16xbf16>
    %c0_26 = arith.constant 0 : index
    %c0_27 = arith.constant 0 : index
    %c0_28 = arith.constant 0 : index
    %25 = vector.load %arg10[%c0_26, %c0_27, %c0_28] : memref<4x16x64xbf16, #tpu.memory_space<vmem>>, vector<4x16x64xbf16>
    %c0_29 = arith.constant 0 : index
    %c0_30 = arith.constant 0 : index
    %c0_31 = arith.constant 0 : index
    %26 = vector.load %arg11[%c0_29, %c0_30, %c0_31] : memref<4x1x16xf32, #tpu.memory_space<vmem>>, vector<4x1x16xf32>
    %c0_32 = arith.constant 0 : index
    %c0_33 = arith.constant 0 : index
    %c0_34 = arith.constant 0 : index
    %27 = vector.load %arg12[%c0_32, %c0_33, %c0_34] : memref<4x1x16xf32, #tpu.memory_space<vmem>>, vector<4x1x16xf32>
    %c0_35 = arith.constant 0 : index
    %c0_36 = arith.constant 0 : index
    %c0_37 = arith.constant 0 : index
    %28 = vector.load %arg13[%c0_35, %c0_36, %c0_37] : memref<4x1x16xf32, #tpu.memory_space<vmem>>, vector<4x1x16xf32>
    %c0_38 = arith.constant 0 : index
    %c0_39 = arith.constant 0 : index
    %29 = vector.load %arg14[%c0_38, %c0_39] : memref<1x64xf32, #tpu.memory_space<vmem>>, vector<1x64xf32>
    %c0_40 = arith.constant 0 : index
    %c0_41 = arith.constant 0 : index
    %c0_42 = arith.constant 0 : index
    %30 = vector.load %arg15[%c0_40, %c0_41, %c0_42] : memref<4x64x16xbf16, #tpu.memory_space<vmem>>, vector<4x64x16xbf16>
    %c0_43 = arith.constant 0 : index
    %c0_44 = arith.constant 0 : index
    %c0_45 = arith.constant 0 : index
    %31 = vector.load %arg16[%c0_43, %c0_44, %c0_45] : memref<4x64x16xbf16, #tpu.memory_space<vmem>>, vector<4x64x16xbf16>
    %c0_46 = arith.constant 0 : index
    %c0_47 = arith.constant 0 : index
    %c0_48 = arith.constant 0 : index
    %32 = vector.load %arg17[%c0_46, %c0_47, %c0_48] : memref<4x64x16xbf16, #tpu.memory_space<vmem>>, vector<4x64x16xbf16>
    %c0_49 = arith.constant 0 : index
    %c0_50 = arith.constant 0 : index
    %c0_51 = arith.constant 0 : index
    %33 = vector.load %arg18[%c0_49, %c0_50, %c0_51] : memref<4x16x64xbf16, #tpu.memory_space<vmem>>, vector<4x16x64xbf16>
    %c0_52 = arith.constant 0 : index
    %c0_53 = arith.constant 0 : index
    %c0_54 = arith.constant 0 : index
    %34 = vector.load %arg19[%c0_52, %c0_53, %c0_54] : memref<4x1x16xf32, #tpu.memory_space<vmem>>, vector<4x1x16xf32>
    %c0_55 = arith.constant 0 : index
    %c0_56 = arith.constant 0 : index
    %c0_57 = arith.constant 0 : index
    %35 = vector.load %arg20[%c0_55, %c0_56, %c0_57] : memref<4x1x16xf32, #tpu.memory_space<vmem>>, vector<4x1x16xf32>
    %c0_58 = arith.constant 0 : index
    %c0_59 = arith.constant 0 : index
    %c0_60 = arith.constant 0 : index
    %36 = vector.load %arg21[%c0_58, %c0_59, %c0_60] : memref<4x1x16xf32, #tpu.memory_space<vmem>>, vector<4x1x16xf32>
    %c0_61 = arith.constant 0 : index
    %c0_62 = arith.constant 0 : index
    %37 = vector.load %arg22[%c0_61, %c0_62] : memref<1x64xf32, #tpu.memory_space<vmem>>, vector<1x64xf32>
    %38 = vector.shape_cast %1 : vector<1x64xf32> to vector<1x1x64xf32>
    %39 = vector.shape_cast %38 : vector<1x1x64xf32> to vector<1x1x64xf32>
    %40 = vector.broadcast %39 : vector<1x1x64xf32> to vector<4x1x64xf32>
    %41 = vector.shape_cast %21 : vector<1x64xf32> to vector<1x1x64xf32>
    %42 = vector.shape_cast %41 : vector<1x1x64xf32> to vector<1x1x64xf32>
    %43 = vector.broadcast %42 : vector<1x1x64xf32> to vector<4x1x64xf32>
    %44 = arith.truncf %40 : vector<4x1x64xf32> to vector<4x1x64xbf16>
    %cst_63 = arith.constant dense<0.000000e+00> : vector<4x1x16xf32>
    %45 = tpu.matmul %44, %22, %cst_63 {dimension_numbers = #tpu.dot_dimension_numbers<[2], [1], [1], [2], [0, 0, 0, 1, 1, 2], [0], [0]>} : vector<4x1x64xbf16>, vector<4x64x16xbf16>, vector<4x1x16xf32> -> vector<4x1x16xf32>
    %46 = arith.addf %45, %26 : vector<4x1x16xf32>
    %47 = arith.truncf %43 : vector<4x1x64xf32> to vector<4x1x64xbf16>
    %cst_64 = arith.constant dense<0.000000e+00> : vector<4x1x16xf32>
    %48 = tpu.matmul %47, %23, %cst_64 {dimension_numbers = #tpu.dot_dimension_numbers<[2], [1], [1], [2], [0, 0, 0, 1, 1, 2], [0], [0]>} : vector<4x1x64xbf16>, vector<4x64x16xbf16>, vector<4x1x16xf32> -> vector<4x1x16xf32>
    %49 = arith.addf %48, %27 : vector<4x1x16xf32>
    %50 = arith.truncf %43 : vector<4x1x64xf32> to vector<4x1x64xbf16>
    %cst_65 = arith.constant dense<0.000000e+00> : vector<4x1x16xf32>
    %51 = tpu.matmul %50, %24, %cst_65 {dimension_numbers = #tpu.dot_dimension_numbers<[2], [1], [1], [2], [0, 0, 0, 1, 1, 2], [0], [0]>} : vector<4x1x64xbf16>, vector<4x64x16xbf16>, vector<4x1x16xf32> -> vector<4x1x16xf32>
    %52 = arith.addf %51, %28 : vector<4x1x16xf32>
    %cst_66 = arith.constant 2.500000e-01 : f32
    %53 = vector.broadcast %cst_66 : f32 to vector<4x1x16xf32>
    %54 = arith.mulf %46, %53 : vector<4x1x16xf32>
    %55 = arith.truncf %54 : vector<4x1x16xf32> to vector<4x1x16xbf16>
    %56 = arith.truncf %49 : vector<4x1x16xf32> to vector<4x1x16xbf16>
    %cst_67 = arith.constant dense<0.000000e+00> : vector<4x1x1xf32>
    %57 = tpu.matmul %55, %56, %cst_67 {dimension_numbers = #tpu.dot_dimension_numbers<[2], [2], [1], [1], [0, 0, 0, 1, 1, 1], [0], [0]>} : vector<4x1x16xbf16>, vector<4x1x16xbf16>, vector<4x1x1xf32> -> vector<4x1x1xf32>
    %cst_68 = arith.constant dense<0xFF800000> : vector<4x1xf32>
    %58 = vector.multi_reduction <maximumf>, %57, %cst_68 [2] : vector<4x1x1xf32> to vector<4x1xf32>
    %59 = vector.shape_cast %58 : vector<4x1xf32> to vector<4x1x1xf32>
    %60 = arith.subf %57, %59 : vector<4x1x1xf32>
    %61 = math.exp %60 : vector<4x1x1xf32>
    %cst_69 = arith.constant dense<0.000000e+00> : vector<4x1xf32>
    %62 = vector.multi_reduction <add>, %61, %cst_69 [2] : vector<4x1x1xf32> to vector<4x1xf32>
    %63 = vector.shape_cast %62 : vector<4x1xf32> to vector<4x1x1xf32>
    %64 = tpu.reciprocal %63 {approx = true} : vector<4x1x1xf32> -> vector<4x1x1xf32>
    %65 = arith.mulf %61, %64 : vector<4x1x1xf32>
    %66 = arith.truncf %65 : vector<4x1x1xf32> to vector<4x1x1xbf16>
    %67 = arith.truncf %52 : vector<4x1x16xf32> to vector<4x1x16xbf16>
    %cst_70 = arith.constant dense<0.000000e+00> : vector<4x1x16xf32>
    %68 = tpu.matmul %66, %67, %cst_70 {dimension_numbers = #tpu.dot_dimension_numbers<[2], [1], [1], [2], [0, 0, 0, 1, 1, 2], [0], [0]>} : vector<4x1x1xbf16>, vector<4x1x16xbf16>, vector<4x1x16xf32> -> vector<4x1x16xf32>
    %69 = arith.truncf %68 : vector<4x1x16xf32> to vector<4x1x16xbf16>
    %cst_71 = arith.constant dense<0.000000e+00> : vector<4x1x64xf32>
    %70 = tpu.matmul %69, %25, %cst_71 {dimension_numbers = #tpu.dot_dimension_numbers<[2], [1], [1], [2], [0, 0, 0, 1, 1, 2], [0], [0]>} : vector<4x1x16xbf16>, vector<4x16x64xbf16>, vector<4x1x64xf32> -> vector<4x1x64xf32>
    %71 = vector.extract_strided_slice %70 {offsets = [0, 0, 0], sizes = [1, 1, 64], strides = [1, 1, 1]} : vector<4x1x64xf32> to vector<1x1x64xf32>
    %72 = vector.shape_cast %71 : vector<1x1x64xf32> to vector<1x64xf32>
    %73 = vector.extract_strided_slice %70 {offsets = [1, 0, 0], sizes = [1, 1, 64], strides = [1, 1, 1]} : vector<4x1x64xf32> to vector<1x1x64xf32>
    %74 = vector.shape_cast %73 : vector<1x1x64xf32> to vector<1x64xf32>
    %75 = arith.addf %72, %74 : vector<1x64xf32>
    %76 = vector.extract_strided_slice %70 {offsets = [2, 0, 0], sizes = [1, 1, 64], strides = [1, 1, 1]} : vector<4x1x64xf32> to vector<1x1x64xf32>
    %77 = vector.shape_cast %76 : vector<1x1x64xf32> to vector<1x64xf32>
    %78 = arith.addf %75, %77 : vector<1x64xf32>
    %79 = vector.extract_strided_slice %70 {offsets = [3, 0, 0], sizes = [1, 1, 64], strides = [1, 1, 1]} : vector<4x1x64xf32> to vector<1x1x64xf32>
    %80 = vector.shape_cast %79 : vector<1x1x64xf32> to vector<1x64xf32>
    %81 = arith.addf %78, %80 : vector<1x64xf32>
    %82 = arith.addf %81, %29 : vector<1x64xf32>
    %83 = vector.shape_cast %21 : vector<1x64xf32> to vector<1x1x64xf32>
    %84 = vector.shape_cast %83 : vector<1x1x64xf32> to vector<1x1x64xf32>
    %85 = vector.broadcast %84 : vector<1x1x64xf32> to vector<4x1x64xf32>
    %86 = vector.shape_cast %1 : vector<1x64xf32> to vector<1x1x64xf32>
    %87 = vector.shape_cast %86 : vector<1x1x64xf32> to vector<1x1x64xf32>
    %88 = vector.broadcast %87 : vector<1x1x64xf32> to vector<4x1x64xf32>
    %89 = arith.truncf %85 : vector<4x1x64xf32> to vector<4x1x64xbf16>
    %cst_72 = arith.constant dense<0.000000e+00> : vector<4x1x16xf32>
    %90 = tpu.matmul %89, %30, %cst_72 {dimension_numbers = #tpu.dot_dimension_numbers<[2], [1], [1], [2], [0, 0, 0, 1, 1, 2], [0], [0]>} : vector<4x1x64xbf16>, vector<4x64x16xbf16>, vector<4x1x16xf32> -> vector<4x1x16xf32>
    %91 = arith.addf %90, %34 : vector<4x1x16xf32>
    %92 = arith.truncf %88 : vector<4x1x64xf32> to vector<4x1x64xbf16>
    %cst_73 = arith.constant dense<0.000000e+00> : vector<4x1x16xf32>
    %93 = tpu.matmul %92, %31, %cst_73 {dimension_numbers = #tpu.dot_dimension_numbers<[2], [1], [1], [2], [0, 0, 0, 1, 1, 2], [0], [0]>} : vector<4x1x64xbf16>, vector<4x64x16xbf16>, vector<4x1x16xf32> -> vector<4x1x16xf32>
    %94 = arith.addf %93, %35 : vector<4x1x16xf32>
    %95 = arith.truncf %88 : vector<4x1x64xf32> to vector<4x1x64xbf16>
    %cst_74 = arith.constant dense<0.000000e+00> : vector<4x1x16xf32>
    %96 = tpu.matmul %95, %32, %cst_74 {dimension_numbers = #tpu.dot_dimension_numbers<[2], [1], [1], [2], [0, 0, 0, 1, 1, 2], [0], [0]>} : vector<4x1x64xbf16>, vector<4x64x16xbf16>, vector<4x1x16xf32> -> vector<4x1x16xf32>
    %97 = arith.addf %96, %36 : vector<4x1x16xf32>
    %cst_75 = arith.constant 2.500000e-01 : f32
    %98 = vector.broadcast %cst_75 : f32 to vector<4x1x16xf32>
    %99 = arith.mulf %91, %98 : vector<4x1x16xf32>
    %100 = arith.truncf %99 : vector<4x1x16xf32> to vector<4x1x16xbf16>
    %101 = arith.truncf %94 : vector<4x1x16xf32> to vector<4x1x16xbf16>
    %cst_76 = arith.constant dense<0.000000e+00> : vector<4x1x1xf32>
    %102 = tpu.matmul %100, %101, %cst_76 {dimension_numbers = #tpu.dot_dimension_numbers<[2], [2], [1], [1], [0, 0, 0, 1, 1, 1], [0], [0]>} : vector<4x1x16xbf16>, vector<4x1x16xbf16>, vector<4x1x1xf32> -> vector<4x1x1xf32>
    %cst_77 = arith.constant dense<0xFF800000> : vector<4x1xf32>
    %103 = vector.multi_reduction <maximumf>, %102, %cst_77 [2] : vector<4x1x1xf32> to vector<4x1xf32>
    %104 = vector.shape_cast %103 : vector<4x1xf32> to vector<4x1x1xf32>
    %105 = arith.subf %102, %104 : vector<4x1x1xf32>
    %106 = math.exp %105 : vector<4x1x1xf32>
    %cst_78 = arith.constant dense<0.000000e+00> : vector<4x1xf32>
    %107 = vector.multi_reduction <add>, %106, %cst_78 [2] : vector<4x1x1xf32> to vector<4x1xf32>
    %108 = vector.shape_cast %107 : vector<4x1xf32> to vector<4x1x1xf32>
    %109 = tpu.reciprocal %108 {approx = true} : vector<4x1x1xf32> -> vector<4x1x1xf32>
    %110 = arith.mulf %106, %109 : vector<4x1x1xf32>
    %111 = arith.truncf %110 : vector<4x1x1xf32> to vector<4x1x1xbf16>
    %112 = arith.truncf %97 : vector<4x1x16xf32> to vector<4x1x16xbf16>
    %cst_79 = arith.constant dense<0.000000e+00> : vector<4x1x16xf32>
    %113 = tpu.matmul %111, %112, %cst_79 {dimension_numbers = #tpu.dot_dimension_numbers<[2], [1], [1], [2], [0, 0, 0, 1, 1, 2], [0], [0]>} : vector<4x1x1xbf16>, vector<4x1x16xbf16>, vector<4x1x16xf32> -> vector<4x1x16xf32>
    %114 = arith.truncf %113 : vector<4x1x16xf32> to vector<4x1x16xbf16>
    %cst_80 = arith.constant dense<0.000000e+00> : vector<4x1x64xf32>
    %115 = tpu.matmul %114, %33, %cst_80 {dimension_numbers = #tpu.dot_dimension_numbers<[2], [1], [1], [2], [0, 0, 0, 1, 1, 2], [0], [0]>} : vector<4x1x16xbf16>, vector<4x16x64xbf16>, vector<4x1x64xf32> -> vector<4x1x64xf32>
    %116 = vector.extract_strided_slice %115 {offsets = [0, 0, 0], sizes = [1, 1, 64], strides = [1, 1, 1]} : vector<4x1x64xf32> to vector<1x1x64xf32>
    %117 = vector.shape_cast %116 : vector<1x1x64xf32> to vector<1x64xf32>
    %118 = vector.extract_strided_slice %115 {offsets = [1, 0, 0], sizes = [1, 1, 64], strides = [1, 1, 1]} : vector<4x1x64xf32> to vector<1x1x64xf32>
    %119 = vector.shape_cast %118 : vector<1x1x64xf32> to vector<1x64xf32>
    %120 = arith.addf %117, %119 : vector<1x64xf32>
    %121 = vector.extract_strided_slice %115 {offsets = [2, 0, 0], sizes = [1, 1, 64], strides = [1, 1, 1]} : vector<4x1x64xf32> to vector<1x1x64xf32>
    %122 = vector.shape_cast %121 : vector<1x1x64xf32> to vector<1x64xf32>
    %123 = arith.addf %120, %122 : vector<1x64xf32>
    %124 = vector.extract_strided_slice %115 {offsets = [3, 0, 0], sizes = [1, 1, 64], strides = [1, 1, 1]} : vector<4x1x64xf32> to vector<1x1x64xf32>
    %125 = vector.shape_cast %124 : vector<1x1x64xf32> to vector<1x64xf32>
    %126 = arith.addf %123, %125 : vector<1x64xf32>
    %127 = arith.addf %126, %37 : vector<1x64xf32>
    %c0_81 = arith.constant 0 : index
    %c0_82 = arith.constant 0 : index
    %128 = vector.load %arg23[%c0_81, %c0_82] : memref<64x64xbf16, #tpu.memory_space<vmem>>, vector<64x64xbf16>
    %129 = arith.truncf %82 : vector<1x64xf32> to vector<1x64xbf16>
    %cst_83 = arith.constant dense<0.000000e+00> : vector<1x64xf32>
    %130 = tpu.matmul %129, %128, %cst_83 {dimension_numbers = #tpu.dot_dimension_numbers<[1], [0], [0], [1], [0, 0, 1, 1], [], []>} : vector<1x64xbf16>, vector<64x64xbf16>, vector<1x64xf32> -> vector<1x64xf32>
    %c0_84 = arith.constant 0 : index
    %c0_85 = arith.constant 0 : index
    %131 = vector.load %arg24[%c0_84, %c0_85] : memref<64x64xbf16, #tpu.memory_space<vmem>>, vector<64x64xbf16>
    %132 = arith.truncf %127 : vector<1x64xf32> to vector<1x64xbf16>
    %cst_86 = arith.constant dense<0.000000e+00> : vector<1x64xf32>
    %133 = tpu.matmul %132, %131, %cst_86 {dimension_numbers = #tpu.dot_dimension_numbers<[1], [0], [0], [1], [0, 0, 1, 1], [], []>} : vector<1x64xbf16>, vector<64x64xbf16>, vector<1x64xf32> -> vector<1x64xf32>
    %134 = arith.addf %130, %133 : vector<1x64xf32>
    %c0_87 = arith.constant 0 : index
    %c0_88 = arith.constant 0 : index
    %135 = vector.load %arg25[%c0_87, %c0_88] : memref<1x64xf32, #tpu.memory_space<vmem>>, vector<1x64xf32>
    %136 = arith.addf %134, %135 : vector<1x64xf32>
    %137 = arith.negf %136 : vector<1x64xf32>
    %138 = math.exp %137 : vector<1x64xf32>
    %cst_89 = arith.constant 1.000000e+00 : f32
    %139 = vector.broadcast %cst_89 : f32 to vector<1x64xf32>
    %140 = arith.addf %139, %138 : vector<1x64xf32>
    %141 = arith.divf %139, %140 : vector<1x64xf32>
    %142 = arith.mulf %141, %127 : vector<1x64xf32>
    %143 = arith.addf %1, %142 : vector<1x64xf32>
    %c0_90 = arith.constant 0 : index
    %c0_91 = arith.constant 0 : index
    %144 = vector.load %arg26[%c0_90, %c0_91] : memref<64x64xbf16, #tpu.memory_space<vmem>>, vector<64x64xbf16>
    %145 = arith.truncf %143 : vector<1x64xf32> to vector<1x64xbf16>
    %cst_92 = arith.constant dense<0.000000e+00> : vector<1x64xf32>
    %146 = tpu.matmul %145, %144, %cst_92 {dimension_numbers = #tpu.dot_dimension_numbers<[1], [0], [0], [1], [0, 0, 1, 1], [], []>} : vector<1x64xbf16>, vector<64x64xbf16>, vector<1x64xf32> -> vector<1x64xf32>
    %c0_93 = arith.constant 0 : index
    %c0_94 = arith.constant 0 : index
    %147 = vector.load %arg27[%c0_93, %c0_94] : memref<1x64xf32, #tpu.memory_space<vmem>>, vector<1x64xf32>
    %148 = arith.addf %146, %147 : vector<1x64xf32>
    %c0_95 = arith.constant 0 : index
    %c0_96 = arith.constant 0 : index
    %149 = vector.load %arg28[%c0_95, %c0_96] : memref<64x64xbf16, #tpu.memory_space<vmem>>, vector<64x64xbf16>
    %150 = arith.truncf %143 : vector<1x64xf32> to vector<1x64xbf16>
    %cst_97 = arith.constant dense<0.000000e+00> : vector<1x64xf32>
    %151 = tpu.matmul %150, %149, %cst_97 {dimension_numbers = #tpu.dot_dimension_numbers<[1], [0], [0], [1], [0, 0, 1, 1], [], []>} : vector<1x64xbf16>, vector<64x64xbf16>, vector<1x64xf32> -> vector<1x64xf32>
    %c0_98 = arith.constant 0 : index
    %c0_99 = arith.constant 0 : index
    %152 = vector.load %arg29[%c0_98, %c0_99] : memref<1x64xf32, #tpu.memory_space<vmem>>, vector<1x64xf32>
    %153 = arith.addf %151, %152 : vector<1x64xf32>
    %154 = arith.negf %153 : vector<1x64xf32>
    %155 = math.exp %154 : vector<1x64xf32>
    %cst_100 = arith.constant 1.000000e+00 : f32
    %156 = vector.broadcast %cst_100 : f32 to vector<1x64xf32>
    %157 = arith.addf %156, %155 : vector<1x64xf32>
    %158 = arith.divf %156, %157 : vector<1x64xf32>
    %159 = arith.mulf %148, %158 : vector<1x64xf32>
    %c0_101 = arith.constant 0 : index
    %c0_102 = arith.constant 0 : index
    %160 = vector.load %arg30[%c0_101, %c0_102] : memref<1x64xf32, #tpu.memory_space<vmem>>, vector<1x64xf32>
    %c0_103 = arith.constant 0 : index
    %c0_104 = arith.constant 0 : index
    %161 = vector.load %arg31[%c0_103, %c0_104] : memref<1x64xf32, #tpu.memory_space<vmem>>, vector<1x64xf32>
    %cst_105 = arith.constant dense<0.000000e+00> : vector<1xf32>
    %162 = vector.multi_reduction <add>, %159, %cst_105 [1] : vector<1x64xf32> to vector<1xf32>
    %163 = vector.shape_cast %162 : vector<1xf32> to vector<1x1xf32>
    %cst_106 = arith.constant 6.400000e+01 : f32
    %164 = vector.broadcast %cst_106 : f32 to vector<1x1xf32>
    %165 = arith.divf %163, %164 : vector<1x1xf32>
    %166 = vector.broadcast %165 : vector<1x1xf32> to vector<1x64xf32>
    %167 = arith.subf %159, %166 : vector<1x64xf32>
    %168 = arith.mulf %167, %167 : vector<1x64xf32>
    %cst_107 = arith.constant dense<0.000000e+00> : vector<1xf32>
    %169 = vector.multi_reduction <add>, %168, %cst_107 [1] : vector<1x64xf32> to vector<1xf32>
    %170 = vector.shape_cast %169 : vector<1xf32> to vector<1x1xf32>
    %cst_108 = arith.constant 6.400000e+01 : f32
    %171 = vector.broadcast %cst_108 : f32 to vector<1x1xf32>
    %172 = arith.divf %170, %171 : vector<1x1xf32>
    %cst_109 = arith.constant 9.99999974E-6 : f32
    %173 = vector.broadcast %cst_109 : f32 to vector<1x1xf32>
    %174 = arith.addf %172, %173 : vector<1x1xf32>
    %175 = math.rsqrt %174 : vector<1x1xf32>
    %176 = vector.broadcast %175 : vector<1x1xf32> to vector<1x64xf32>
    %177 = arith.mulf %167, %176 : vector<1x64xf32>
    %178 = arith.mulf %177, %160 : vector<1x64xf32>
    %179 = arith.addf %178, %161 : vector<1x64xf32>
    %c0_110 = arith.constant 0 : index
    %c0_111 = arith.constant 0 : index
    %c0_112 = arith.constant 0 : index
    %180 = vector.load %arg32[%c0_110, %c0_111, %c0_112] : memref<1x1x64xf32, #tpu.memory_space<vmem>>, vector<1x1x64xf32>
    %181 = vector.shape_cast %180 : vector<1x1x64xf32> to vector<1x64xf32>
    %182 = vector.shape_cast %179 : vector<1x64xf32> to vector<1x1x64xf32>
    tpu.vector_store %arg32[%c0_110, %c0_111, %c0_112], %182 {strides = array<i32>} : memref<1x1x64xf32, #tpu.memory_space<vmem>>, vector<1x1x64xf32>,
    return
  }
  func.func @transform_0(%arg0: i32) -> (i32, i32, i32) {
    %c0_i32 = arith.constant 0 : i32
    %c0_i32_0 = arith.constant 0 : i32
    %c0_i32_1 = arith.constant 0 : i32
    return %arg0, %c0_i32, %c0_i32_0 : i32, i32, i32
  }
  func.func @transform_1(%arg0: i32) -> (i32, i32, i32) {
    %c0_i32 = arith.constant 0 : i32
    %c0_i32_0 = arith.constant 0 : i32
    %c0_i32_1 = arith.constant 0 : i32
    return %arg0, %c0_i32, %c0_i32_0 : i32, i32, i32
  }
  func.func @transform_2(%arg0: i32) -> (i32, i32) {
    %c0_i32 = arith.constant 0 : i32
    %c0_i32_0 = arith.constant 0 : i32
    %c0_i32_1 = arith.constant 0 : i32
    return %c0_i32, %c0_i32_0 : i32, i32
  }
  func.func @transform_3(%arg0: i32) -> (i32, i32) {
    %c0_i32 = arith.constant 0 : i32
    %c0_i32_0 = arith.constant 0 : i32
    %c0_i32_1 = arith.constant 0 : i32
    return %c0_i32, %c0_i32_0 : i32, i32
  }
  func.func @transform_4(%arg0: i32) -> (i32, i32) {
    %c0_i32 = arith.constant 0 : i32
    %c0_i32_0 = arith.constant 0 : i32
    %c0_i32_1 = arith.constant 0 : i32
    return %c0_i32, %c0_i32_0 : i32, i32
  }
  func.func @transform_5(%arg0: i32) -> (i32, i32) {
    %c0_i32 = arith.constant 0 : i32
    %c0_i32_0 = arith.constant 0 : i32
    %c0_i32_1 = arith.constant 0 : i32
    return %c0_i32, %c0_i32_0 : i32, i32
  }
  func.func @transform_6(%arg0: i32) -> (i32, i32, i32) {
    %c0_i32 = arith.constant 0 : i32
    %c0_i32_0 = arith.constant 0 : i32
    %c0_i32_1 = arith.constant 0 : i32
    %c0_i32_2 = arith.constant 0 : i32
    return %c0_i32, %c0_i32_0, %c0_i32_1 : i32, i32, i32
  }
  func.func @transform_7(%arg0: i32) -> (i32, i32, i32) {
    %c0_i32 = arith.constant 0 : i32
    %c0_i32_0 = arith.constant 0 : i32
    %c0_i32_1 = arith.constant 0 : i32
    %c0_i32_2 = arith.constant 0 : i32
    return %c0_i32, %c0_i32_0, %c0_i32_1 : i32, i32, i32
  }
  func.func @transform_8(%arg0: i32) -> (i32, i32, i32) {
    %c0_i32 = arith.constant 0 : i32
    %c0_i32_0 = arith.constant 0 : i32
    %c0_i32_1 = arith.constant 0 : i32
    %c0_i32_2 = arith.constant 0 : i32
    return %c0_i32, %c0_i32_0, %c0_i32_1 : i32, i32, i32
  }
  func.func @transform_9(%arg0: i32) -> (i32, i32, i32) {
    %c0_i32 = arith.constant 0 : i32
    %c0_i32_0 = arith.constant 0 : i32
    %c0_i32_1 = arith.constant 0 : i32
    %c0_i32_2 = arith.constant 0 : i32
    return %c0_i32, %c0_i32_0, %c0_i32_1 : i32, i32, i32
  }
  func.func @transform_10(%arg0: i32) -> (i32, i32, i32) {
    %c0_i32 = arith.constant 0 : i32
    %c0_i32_0 = arith.constant 0 : i32
    %c0_i32_1 = arith.constant 0 : i32
    %c0_i32_2 = arith.constant 0 : i32
    return %c0_i32, %c0_i32_0, %c0_i32_1 : i32, i32, i32
  }
  func.func @transform_11(%arg0: i32) -> (i32, i32, i32) {
    %c0_i32 = arith.constant 0 : i32
    %c0_i32_0 = arith.constant 0 : i32
    %c0_i32_1 = arith.constant 0 : i32
    %c0_i32_2 = arith.constant 0 : i32
    return %c0_i32, %c0_i32_0, %c0_i32_1 : i32, i32, i32
  }
  func.func @transform_12(%arg0: i32) -> (i32, i32, i32) {
    %c0_i32 = arith.constant 0 : i32
    %c0_i32_0 = arith.constant 0 : i32
    %c0_i32_1 = arith.constant 0 : i32
    %c0_i32_2 = arith.constant 0 : i32
    return %c0_i32, %c0_i32_0, %c0_i32_1 : i32, i32, i32
  }
  func.func @transform_13(%arg0: i32) -> (i32, i32) {
    %c0_i32 = arith.constant 0 : i32
    %c0_i32_0 = arith.constant 0 : i32
    %c0_i32_1 = arith.constant 0 : i32
    return %c0_i32, %c0_i32_0 : i32, i32
  }
  func.func @transform_14(%arg0: i32) -> (i32, i32, i32) {
    %c0_i32 = arith.constant 0 : i32
    %c0_i32_0 = arith.constant 0 : i32
    %c0_i32_1 = arith.constant 0 : i32
    %c0_i32_2 = arith.constant 0 : i32
    return %c0_i32, %c0_i32_0, %c0_i32_1 : i32, i32, i32
  }
  func.func @transform_15(%arg0: i32) -> (i32, i32, i32) {
    %c0_i32 = arith.constant 0 : i32
    %c0_i32_0 = arith.constant 0 : i32
    %c0_i32_1 = arith.constant 0 : i32
    %c0_i32_2 = arith.constant 0 : i32
    return %c0_i32, %c0_i32_0, %c0_i32_1 : i32, i32, i32
  }
  func.func @transform_16(%arg0: i32) -> (i32, i32, i32) {
    %c0_i32 = arith.constant 0 : i32
    %c0_i32_0 = arith.constant 0 : i32
    %c0_i32_1 = arith.constant 0 : i32
    %c0_i32_2 = arith.constant 0 : i32
    return %c0_i32, %c0_i32_0, %c0_i32_1 : i32, i32, i32
  }
  func.func @transform_17(%arg0: i32) -> (i32, i32, i32) {
    %c0_i32 = arith.constant 0 : i32
    %c0_i32_0 = arith.constant 0 : i32
    %c0_i32_1 = arith.constant 0 : i32
    %c0_i32_2 = arith.constant 0 : i32
    return %c0_i32, %c0_i32_0, %c0_i32_1 : i32, i32, i32
  }
  func.func @transform_18(%arg0: i32) -> (i32, i32, i32) {
    %c0_i32 = arith.constant 0 : i32
    %c0_i32_0 = arith.constant 0 : i32
    %c0_i32_1 = arith.constant 0 : i32
    %c0_i32_2 = arith.constant 0 : i32
    return %c0_i32, %c0_i32_0, %c0_i32_1 : i32, i32, i32
  }
  func.func @transform_19(%arg0: i32) -> (i32, i32, i32) {
    %c0_i32 = arith.constant 0 : i32
    %c0_i32_0 = arith.constant 0 : i32
    %c0_i32_1 = arith.constant 0 : i32
    %c0_i32_2 = arith.constant 0 : i32
    return %c0_i32, %c0_i32_0, %c0_i32_1 : i32, i32, i32
  }
  func.func @transform_20(%arg0: i32) -> (i32, i32, i32) {
    %c0_i32 = arith.constant 0 : i32
    %c0_i32_0 = arith.constant 0 : i32
    %c0_i32_1 = arith.constant 0 : i32
    %c0_i32_2 = arith.constant 0 : i32
    return %c0_i32, %c0_i32_0, %c0_i32_1 : i32, i32, i32
  }
  func.func @transform_21(%arg0: i32) -> (i32, i32) {
    %c0_i32 = arith.constant 0 : i32
    %c0_i32_0 = arith.constant 0 : i32
    %c0_i32_1 = arith.constant 0 : i32
    return %c0_i32, %c0_i32_0 : i32, i32
  }
  func.func @transform_22(%arg0: i32) -> (i32, i32) {
    %c0_i32 = arith.constant 0 : i32
    %c0_i32_0 = arith.constant 0 : i32
    %c0_i32_1 = arith.constant 0 : i32
    return %c0_i32, %c0_i32_0 : i32, i32
  }
  func.func @transform_23(%arg0: i32) -> (i32, i32) {
    %c0_i32 = arith.constant 0 : i32
    %c0_i32_0 = arith.constant 0 : i32
    %c0_i32_1 = arith.constant 0 : i32
    return %c0_i32, %c0_i32_0 : i32, i32
  }
  func.func @transform_24(%arg0: i32) -> (i32, i32) {
    %c0_i32 = arith.constant 0 : i32
    %c0_i32_0 = arith.constant 0 : i32
    %c0_i32_1 = arith.constant 0 : i32
    return %c0_i32, %c0_i32_0 : i32, i32
  }
  func.func @transform_25(%arg0: i32) -> (i32, i32) {
    %c0_i32 = arith.constant 0 : i32
    %c0_i32_0 = arith.constant 0 : i32
    %c0_i32_1 = arith.constant 0 : i32
    return %c0_i32, %c0_i32_0 : i32, i32
  }
  func.func @transform_26(%arg0: i32) -> (i32, i32) {
    %c0_i32 = arith.constant 0 : i32
    %c0_i32_0 = arith.constant 0 : i32
    %c0_i32_1 = arith.constant 0 : i32
    return %c0_i32, %c0_i32_0 : i32, i32
  }
  func.func @transform_27(%arg0: i32) -> (i32, i32) {
    %c0_i32 = arith.constant 0 : i32
    %c0_i32_0 = arith.constant 0 : i32
    %c0_i32_1 = arith.constant 0 : i32
    return %c0_i32, %c0_i32_0 : i32, i32
  }
  func.func @transform_28(%arg0: i32) -> (i32, i32) {
    %c0_i32 = arith.constant 0 : i32
    %c0_i32_0 = arith.constant 0 : i32
    %c0_i32_1 = arith.constant 0 : i32
    return %c0_i32, %c0_i32_0 : i32, i32
  }
  func.func @transform_29(%arg0: i32) -> (i32, i32) {
    %c0_i32 = arith.constant 0 : i32
    %c0_i32_0 = arith.constant 0 : i32
    %c0_i32_1 = arith.constant 0 : i32
    return %c0_i32, %c0_i32_0 : i32, i32
  }
  func.func @transform_30(%arg0: i32) -> (i32, i32) {
    %c0_i32 = arith.constant 0 : i32
    %c0_i32_0 = arith.constant 0 : i32
    %c0_i32_1 = arith.constant 0 : i32
    return %c0_i32, %c0_i32_0 : i32, i32
  }
  func.func @transform_31(%arg0: i32) -> (i32, i32, i32) {
    %c0_i32 = arith.constant 0 : i32
    %c0_i32_0 = arith.constant 0 : i32
    %c0_i32_1 = arith.constant 0 : i32
    return %arg0, %c0_i32, %c0_i32_0 : i32, i32, i32
  }
}

module attributes {stable_mosaic.version = 11 : i64} {
  func.func @_classifier_kernel(%arg0: i32, %arg1: memref<2x64xf32, #tpu.memory_space<vmem>>, %arg2: memref<64x32xbf16, #tpu.memory_space<vmem>>, %arg3: memref<1x32xf32, #tpu.memory_space<vmem>>, %arg4: memref<1x32xf32, #tpu.memory_space<vmem>>, %arg5: memref<1x32xf32, #tpu.memory_space<vmem>>, %arg6: memref<32x4xbf16, #tpu.memory_space<vmem>>, %arg7: memref<1x4xf32, #tpu.memory_space<vmem>>, %arg8: memref<2x4xf32, #tpu.memory_space<vmem>>) attributes {dimension_semantics = [#tpu.dimension_semantics<arbitrary>], iteration_bounds = array<i64: 1>, scalar_prefetch = 0 : i64, scratch_operands = 0 : i64, tpu.core_type = #tpu.core_type<tc>, window_params = [{pipeline_mode = #tpu.pipeline_mode<synchronous>, transform_indices = @transform_0, window_bounds = array<i64: 2, 64>}, {pipeline_mode = #tpu.pipeline_mode<synchronous>, transform_indices = @transform_1, window_bounds = array<i64: 64, 32>}, {pipeline_mode = #tpu.pipeline_mode<synchronous>, transform_indices = @transform_2, window_bounds = array<i64: 1, 32>}, {pipeline_mode = #tpu.pipeline_mode<synchronous>, transform_indices = @transform_3, window_bounds = array<i64: 1, 32>}, {pipeline_mode = #tpu.pipeline_mode<synchronous>, transform_indices = @transform_4, window_bounds = array<i64: 1, 32>}, {pipeline_mode = #tpu.pipeline_mode<synchronous>, transform_indices = @transform_5, window_bounds = array<i64: 32, 4>}, {pipeline_mode = #tpu.pipeline_mode<synchronous>, transform_indices = @transform_6, window_bounds = array<i64: 1, 4>}, {pipeline_mode = #tpu.pipeline_mode<synchronous>, transform_indices = @transform_7, window_bounds = array<i64: 2, 4>}]} {
    %c0 = arith.constant 0 : index
    %c0_0 = arith.constant 0 : index
    %0 = vector.load %arg1[%c0, %c0_0] : memref<2x64xf32, #tpu.memory_space<vmem>>, vector<2x64xf32>
    %c0_1 = arith.constant 0 : index
    %c0_2 = arith.constant 0 : index
    %1 = vector.load %arg2[%c0_1, %c0_2] : memref<64x32xbf16, #tpu.memory_space<vmem>>, vector<64x32xbf16>
    %2 = arith.truncf %0 : vector<2x64xf32> to vector<2x64xbf16>
    %cst = arith.constant dense<0.000000e+00> : vector<2x32xf32>
    %3 = tpu.matmul %2, %1, %cst {dimension_numbers = #tpu.dot_dimension_numbers<[1], [0], [0], [1], [0, 0, 1, 1], [], []>} : vector<2x64xbf16>, vector<64x32xbf16>, vector<2x32xf32> -> vector<2x32xf32>
    %c0_3 = arith.constant 0 : index
    %c0_4 = arith.constant 0 : index
    %4 = vector.load %arg3[%c0_3, %c0_4] : memref<1x32xf32, #tpu.memory_space<vmem>>, vector<1x32xf32>
    %5 = vector.broadcast %4 : vector<1x32xf32> to vector<2x32xf32>
    %6 = arith.addf %3, %5 : vector<2x32xf32>
    %c0_5 = arith.constant 0 : index
    %c0_6 = arith.constant 0 : index
    %7 = vector.load %arg4[%c0_5, %c0_6] : memref<1x32xf32, #tpu.memory_space<vmem>>, vector<1x32xf32>
    %c0_7 = arith.constant 0 : index
    %c0_8 = arith.constant 0 : index
    %8 = vector.load %arg5[%c0_7, %c0_8] : memref<1x32xf32, #tpu.memory_space<vmem>>, vector<1x32xf32>
    %cst_9 = arith.constant dense<0.000000e+00> : vector<2xf32>
    %9 = vector.multi_reduction <add>, %6, %cst_9 [1] : vector<2x32xf32> to vector<2xf32>
    %10 = vector.shape_cast %9 : vector<2xf32> to vector<2x1xf32>
    %cst_10 = arith.constant 3.200000e+01 : f32
    %11 = vector.broadcast %cst_10 : f32 to vector<2x1xf32>
    %12 = arith.divf %10, %11 : vector<2x1xf32>
    %13 = vector.broadcast %12 : vector<2x1xf32> to vector<2x32xf32>
    %14 = arith.subf %6, %13 : vector<2x32xf32>
    %15 = arith.mulf %14, %14 : vector<2x32xf32>
    %cst_11 = arith.constant dense<0.000000e+00> : vector<2xf32>
    %16 = vector.multi_reduction <add>, %15, %cst_11 [1] : vector<2x32xf32> to vector<2xf32>
    %17 = vector.shape_cast %16 : vector<2xf32> to vector<2x1xf32>
    %cst_12 = arith.constant 3.200000e+01 : f32
    %18 = vector.broadcast %cst_12 : f32 to vector<2x1xf32>
    %19 = arith.divf %17, %18 : vector<2x1xf32>
    %cst_13 = arith.constant 9.99999974E-6 : f32
    %20 = vector.broadcast %cst_13 : f32 to vector<2x1xf32>
    %21 = arith.addf %19, %20 : vector<2x1xf32>
    %22 = math.rsqrt %21 : vector<2x1xf32>
    %23 = vector.broadcast %22 : vector<2x1xf32> to vector<2x32xf32>
    %24 = arith.mulf %14, %23 : vector<2x32xf32>
    %25 = vector.broadcast %7 : vector<1x32xf32> to vector<2x32xf32>
    %26 = arith.mulf %24, %25 : vector<2x32xf32>
    %27 = vector.broadcast %8 : vector<1x32xf32> to vector<2x32xf32>
    %28 = arith.addf %26, %27 : vector<2x32xf32>
    %cst_14 = arith.constant 5.000000e-01 : f32
    %29 = vector.broadcast %cst_14 : f32 to vector<2x32xf32>
    %30 = arith.mulf %29, %28 : vector<2x32xf32>
    %cst_15 = arith.constant 0.707106769 : f32
    %31 = vector.broadcast %cst_15 : f32 to vector<2x32xf32>
    %32 = arith.mulf %28, %31 : vector<2x32xf32>
    %33 = math.erf %32 : vector<2x32xf32>
    %cst_16 = arith.constant 1.000000e+00 : f32
    %34 = vector.broadcast %cst_16 : f32 to vector<2x32xf32>
    %35 = arith.addf %34, %33 : vector<2x32xf32>
    %36 = arith.mulf %30, %35 : vector<2x32xf32>
    %c0_17 = arith.constant 0 : index
    %c0_18 = arith.constant 0 : index
    %37 = vector.load %arg6[%c0_17, %c0_18] : memref<32x4xbf16, #tpu.memory_space<vmem>>, vector<32x4xbf16>
    %38 = arith.truncf %36 : vector<2x32xf32> to vector<2x32xbf16>
    %cst_19 = arith.constant dense<0.000000e+00> : vector<2x4xf32>
    %39 = tpu.matmul %38, %37, %cst_19 {dimension_numbers = #tpu.dot_dimension_numbers<[1], [0], [0], [1], [0, 0, 1, 1], [], []>} : vector<2x32xbf16>, vector<32x4xbf16>, vector<2x4xf32> -> vector<2x4xf32>
    %c0_20 = arith.constant 0 : index
    %c0_21 = arith.constant 0 : index
    %40 = vector.load %arg7[%c0_20, %c0_21] : memref<1x4xf32, #tpu.memory_space<vmem>>, vector<1x4xf32>
    %41 = vector.broadcast %40 : vector<1x4xf32> to vector<2x4xf32>
    %42 = arith.addf %39, %41 : vector<2x4xf32>
    %c0_22 = arith.constant 0 : index
    %c0_23 = arith.constant 0 : index
    %43 = vector.load %arg8[%c0_22, %c0_23] : memref<2x4xf32, #tpu.memory_space<vmem>>, vector<2x4xf32>
    tpu.vector_store %arg8[%c0_22, %c0_23], %42 {strides = array<i32>} : memref<2x4xf32, #tpu.memory_space<vmem>>, vector<2x4xf32>,
    return
  }
  func.func @transform_0(%arg0: i32) -> (i32, i32) {
    %c0_i32 = arith.constant 0 : i32
    %c0_i32_0 = arith.constant 0 : i32
    %c0_i32_1 = arith.constant 0 : i32
    return %c0_i32, %c0_i32_0 : i32, i32
  }
  func.func @transform_1(%arg0: i32) -> (i32, i32) {
    %c0_i32 = arith.constant 0 : i32
    %c0_i32_0 = arith.constant 0 : i32
    %c0_i32_1 = arith.constant 0 : i32
    return %c0_i32, %c0_i32_0 : i32, i32
  }
  func.func @transform_2(%arg0: i32) -> (i32, i32) {
    %c0_i32 = arith.constant 0 : i32
    %c0_i32_0 = arith.constant 0 : i32
    %c0_i32_1 = arith.constant 0 : i32
    return %c0_i32, %c0_i32_0 : i32, i32
  }
  func.func @transform_3(%arg0: i32) -> (i32, i32) {
    %c0_i32 = arith.constant 0 : i32
    %c0_i32_0 = arith.constant 0 : i32
    %c0_i32_1 = arith.constant 0 : i32
    return %c0_i32, %c0_i32_0 : i32, i32
  }
  func.func @transform_4(%arg0: i32) -> (i32, i32) {
    %c0_i32 = arith.constant 0 : i32
    %c0_i32_0 = arith.constant 0 : i32
    %c0_i32_1 = arith.constant 0 : i32
    return %c0_i32, %c0_i32_0 : i32, i32
  }
  func.func @transform_5(%arg0: i32) -> (i32, i32) {
    %c0_i32 = arith.constant 0 : i32
    %c0_i32_0 = arith.constant 0 : i32
    %c0_i32_1 = arith.constant 0 : i32
    return %c0_i32, %c0_i32_0 : i32, i32
  }
  func.func @transform_6(%arg0: i32) -> (i32, i32) {
    %c0_i32 = arith.constant 0 : i32
    %c0_i32_0 = arith.constant 0 : i32
    %c0_i32_1 = arith.constant 0 : i32
    return %c0_i32, %c0_i32_0 : i32, i32
  }
  func.func @transform_7(%arg0: i32) -> (i32, i32) {
    %c0_i32 = arith.constant 0 : i32
    %c0_i32_0 = arith.constant 0 : i32
    %c0_i32_1 = arith.constant 0 : i32
    return %c0_i32, %c0_i32_0 : i32, i32
  }
}

</mosaic_0001>

<bundles_post_ra>
// kernel: camft_forward.9
= control target key start
LH: loop header
LB: loop body
LE: loop exit
PB: predicated region body
PF: predicated region fallthrough
CT: control target
= control target key end

     0   :  { %v96_v0 = vmov 0.0   ;;  %vm97_vm0 = vmmov 0   ;;  %vm32_vm1 = vcmask 130048   ;;  %vm76_vm2 = vcmask 517120   ;;  %s130_s1 = inlined_call_operand.vmem [shape: bf16[16,64], index: 1, kind: input, shape index: {}]   ;;  %s131_s0 = inlined_call_operand.vmem [shape: f32[2,16], index: 0, kind: input, shape index: {}]   ;;  %s132_s2 = inlined_call_operand.vmem [shape: f32[1,64], index: 2, kind: input, shape index: {}]   ;;  %s133_s3 = inlined_call_operand.vmem [shape: f32[2,64], index: 3, kind: output, shape index: {}]  }
   0x1   :  { %87 = vmatprep.subr.bf16.mxu0 %v96_v0  ;;  %v95_v1 = vld [vmem:[%s130_s1] sm:$0xff]   ;;  %89 = vmatprep.mubr.msk.bf16.mxu0 %vm97_vm0, %v96_v0 }
   0x2   :  { %v15_v2 = vld [vmem:[%s131_s0] sm:$0x3]  ;;  %88 = vmatpush3.bf16.msra.mxu0 %v95_v1 }
   0x3   :  { %v18_v3 = vpack.c.bf16 %v15_v2, %v15_v2  ;;  %v82_v4 = vld [vmem:[%s132_s2] ss:$0 sm:$0xff] }
   0x5   :  { %90 = vmatmul.mubr.msk.bf16.vlgmr.msra.gmra.mxu0 %vm32_vm1, %v18_v3 }
  0xc5   :  { %v70_v5 = vpop.f32.mrf.mxu0 }
  0xc6   :  { %v71_v6 = vadd.f32 %v82_v4, %v70_v5 }
  0xc7   :  { %v91_v7 = vpop.f32.mrf.mxu0 }
  0xc8   :  { %77 = vst.msk [vmem:[%s133_s3] sm:$0x3] %vm76_vm2, %v71_v6 }
  0xc9   :  { %v73_v8 = vpop.f32.mrf.mxu0 }
  0xcb   :  { %v92_v9 = vpop.f32.mrf.mxu0 }

// kernel: camft_forward.8
= control target key start
LH: loop header
LB: loop body
LE: loop exit
PB: predicated region body
PF: predicated region fallthrough
CT: control target
= control target key end

     0   :  { %s3907_s30 = smov 0   ;;  %s3909_s20 = smov 0   ;;  %s4354_s0 = inlined_call_operand.vmem [shape: f32[2,5,64], index: 0, kind: input, shape index: {}]   ;;  %s4355_s1 = inlined_call_operand.vmem [shape: bf16[2,4,64,16], index: 1, kind: input, shape index: {}]   ;;  %s4356_s2 = inlined_call_operand.vmem [shape: bf16[2,4,64,16], index: 2, kind: input, shape index: {}]   ;;  %s4357_s3 = inlined_call_operand.vmem [shape: bf16[2,4,64,16], index: 3, kind: input, shape index: {}]   ;;  %s4358_s4 = inlined_call_operand.vmem [shape: bf16[2,4,16,64], index: 4, kind: input, shape index: {}]   ;;  %s4359_s5 = inlined_call_operand.vmem [shape: f32[2,4,1,16], index: 5, kind: input, shape index: {}]   ;;  %s4360_s6 = inlined_call_operand.vmem [shape: f32[2,4,1,16], index: 6, kind: input, shape index: {}]   ;;  %s4361_s7 = inlined_call_operand.vmem [shape: f32[2,4,1,16], index: 7, kind: input, shape index: {}]   ;;  %s4362_s8 = inlined_call_operand.vmem [shape: f32[2,1,64], index: 8, kind: input, shape index: {}]   ;;  %s4363_s9 = inlined_call_operand.vmem [shape: f32[2,1,64], index: 9, kind: input, shape index: {}]   ;;  %s4364_s10 = inlined_call_operand.vmem [shape: f32[2,1,64], index: 10, kind: input, shape index: {}]   ;;  %s4365_s11 = inlined_call_operand.vmem [shape: bf16[2,64,256], index: 11, kind: input, shape index: {}]   ;;  %s4366_s12 = inlined_call_operand.vmem [shape: f32[2,1,256], index: 12, kind: input, shape index: {}]   ;;  %s4367_s13 = inlined_call_operand.vmem [shape: bf16[2,256,64], index: 13, kind: input, shape index: {}]   ;;  %s4368_s14 = inlined_call_operand.vmem [shape: f32[2,1,64], index: 14, kind: input, shape index: {}]   ;;  %s4369_s15 = inlined_call_operand.vmem [shape: f32[2,1,64], index: 15, kind: input, shape index: {}]   ;;  %s4370_s16 = inlined_call_operand.vmem [shape: f32[2,1,64], index: 16, kind: input, shape index: {}]   ;;  %s4371_s17 = inlined_call_operand.vmem [shape: f32[1,64], index: 17, kind: input, shape index: {}]   ;;  %s4372_s18 = inlined_call_operand.vmem [shape: f32[1,64], index: 18, kind: input, shape index: {}]   ;;  %s4373_s19 = inlined_call_operand.vmem [shape: f32[2,5,64], index: 19, kind: output, shape index: {}]  }
   0x1   :  { %4383 = sst [smem:[#allocation13_spill]] %s4354_s0  ;;  %s3905_s0 = smov 0  }
   0x2   :  { %4384 = sst [smem:[#allocation14_spill]] %s4355_s1  ;;  %s3911_s21 = smov 0  }
   0x3   :  { %4385 = sst [smem:[#allocation15_spill]] %s4356_s2  ;;  %s3913_s1 = smov 0  }
   0x4   :  { %4386 = sst [smem:[#allocation16_spill]] %s4357_s3 }
   0x5   :  { %4387 = sst [smem:[#allocation17_spill]] %s4358_s4 }
   0x6   :  { %4388 = sst [smem:[#allocation18_spill]] %s4359_s5 }
   0x7   :  { %4389 = sst [smem:[#allocation19_spill]] %s4360_s6 }
   0x8   :  { %4390 = sst [smem:[#allocation20_spill]] %s4361_s7 }
   0x9   :  { %4391 = sst [smem:[#allocation21_spill]] %s4365_s11 }
   0xa   :  { %4392 = sst [smem:[#allocation22_spill]] %s4366_s12 }
   0xb   :  { %4393 = sst [smem:[#allocation23_spill]] %s4370_s16 }
   0xc   :  { %4394 = sst [smem:[#allocation24_spill]] %s4371_s17 }
   0xd   :  { %4395 = sst [smem:[#allocation25_spill]] %s4372_s18 }
   0xe   :  { %4396 = sst [smem:[#allocation26_spill]] %s4373_s19 }
   0xf LB: > { %4397 = sst [smem:[#allocation2_spill]] %s3783_s0  ;;  %s38_s22 = sadd.s32 1, %s3791_s20  ;;  %s3799_s1 = sphi %s3913_s1, %s29_s1   ;;  %s3795_s21 = sphi %s3911_s21, %s4438_s21   ;;  %s3791_s20 = sphi %s3909_s20, %s4437_s20   ;;  %s3787_s30 = sphi %s3907_s30, %s4436_s30   ;;  %s3783_s0 = sphi %s3905_s0, %s4435_s0  }
  0x10   : > { %4398 = sst [smem:[#allocation3_spill]] %s3791_s20  ;;  %s41_s2 = sadd.s32 1, %s3795_s21 }
  0x11   : > { %4399 = sst [smem:[#allocation4_spill]] %s3795_s21  ;;  %p39_p0 = scmp.ge.s32.totalorder %s38_s22, 2 }
  0x12   : > { %4400 = sst [smem:[#allocation5_spill]] %s3799_s1  ;;  %p3137_p1 = scmp.ge.s32.totalorder %s3799_s1, 1 }
  0x13   : > { %p692_p2 = scmp.lt.s32.totalorder %s3799_s1, 5  ;;  %s4440_s22 = smov (%p39_p0, %s38_s22), 0 }
  0x14   : > { %4401 = sst [smem:[#allocation6_spill]] %s4440_s22  ;;  %s4442_s2 = smov (!%p39_p0, %s41_s2), %s3795_s21 }
  0x15   : > { %p693_p3 = pnand %p3137_p1, %p692_p2  ;;  %p43_p4 = scmp.ge.s32.totalorder %s4442_s2, 2 }
  0x17   : > { %s4444_s2 = smov (%p43_p4, %s4442_s2), 0  ;;  %696 = sbr.rel (%p693_p3) target bundleno = 2606 (0xa2e), region = 96 }
  0x18   : > { %4402 = sst [smem:[#allocation7_spill]] %s4444_s2 }
  0x1c   : > { %p810_p5 = scmp.lt.s32.totalorder %s3787_s30, 1  ;;  %p814_p6 = scmp.lt.s32.totalorder %s3783_s0, 1 }
  0x1d   : > { %s4403_s26 = sld [smem:[#allocation13_spill]] }
  0x1e   : > { %s4446_s30 = smov (!%p810_p5, %s3787_s30), 1  ;;  %s4404_s22 = sld [smem:[#allocation14_spill]] }
  0x1f   : > { %s3939_s23 = scalar_select %p814_p6, %s3783_s0, 1 }
  0x20   : > { %s3138_s24 = sshll.u32 %s4446_s30, 3  ;;  %s4406_s18 = sld [smem:[#allocation15_spill]] }
  0x21   : > { %s3282_s28 = sshll.u32 %s3939_s23, 7  ;;  %s4407_s16 = sld [smem:[#allocation16_spill]] }
  0x22   : > { %s3285_s25 = sshll.u32 %s3939_s23, 5  ;;  %s4409_s4 = sld [smem:[#allocation17_spill]] }
  0x23   : > { %s813_s27 = scalar_lea.vmem %s4403_s26, %s3138_s24  ;;  %s4411_s5 = sld [smem:[#allocation18_spill]] }
  0x24   : > { %s3948_s21 = scalar_lea.vmem %s4404_s22, %s3282_s28  ;;  %s3147_s22 = sshll.u32 %s3939_s23, 2 }
  0x25   : > { %4405 = sst [smem:[#allocation8_spill]] %s3948_s21  ;;  %s3286_s20 = sshll.u32 %s3939_s23, 6 }
  0x26   : > { %s3953_s17 = scalar_lea.vmem %s4406_s18, %s3282_s28  ;;  %s4413_s6 = sld [smem:[#allocation19_spill]] }
  0x27   : > { %s3958_s30 = scalar_lea.vmem %s4407_s16, %s3282_s28  ;;  %s4415_s7 = sld [smem:[#allocation20_spill]] }
  0x28   : > { %4408 = sst [smem:[#allocation9_spill]] %s3958_s30  ;;  %s3964_s2 = scalar_lea.vmem %s4409_s4, %s3285_s25 }
  0x29   : > { %4410 = sst [smem:[#allocation10_spill]] %s3964_s2  ;;  %s3970_s18 = scalar_lea.vmem %s4411_s5, %s3147_s22 }
  0x2a   : > { %4412 = sst [smem:[#allocation11_spill]] %s3970_s18  ;;  %s3152_s1 = sshll.u32 %s3939_s23, 1 }
  0x2b   : > { %s4416_s11 = sld [smem:[#allocation21_spill]]  ;;  %s4009_s4 = scalar_lea.vmem %s4367_s13, %s3282_s28 }
  0x2c   : > { %s3975_s19 = scalar_lea.vmem %s4413_s6, %s3147_s22  ;;  %s4417_s12 = sld [smem:[#allocation22_spill]] }
  0x2d   : > { %4414 = sst [smem:[#allocation12_spill]] %s3975_s19  ;;  %s3980_s30 = scalar_lea.vmem %s4415_s7, %s3147_s22 }
  0x2e   : > { %s871_s29 = scalar_lea.vmem %s4368_s14, %s3939_s23  ;;  %s874_s6 = scalar_lea.vmem %s4369_s15, %s3939_s23 }
  0x2f   : > { %s4418_s7 = sld [smem:[#allocation23_spill]] }
  0x30   : > { %s4419_s0 = sld [smem:[#allocation26_spill]] }
  0x31   : > { %s3999_s16 = scalar_lea.vmem %s4416_s11, %s3286_s20  ;;  %s4420_s25 = sld [smem:[#allocation2_spill]] }
  0x32   : > { %s4004_s3 = scalar_lea.vmem %s4417_s12, %s3152_s1 }
  0x35   : > { %s877_s11 = scalar_lea.vmem %s4418_s7, %s3939_s23 }
  0x36   : > { %s4026_s12 = scalar_lea.vmem %s4419_s0, %s3138_s24 }
  0x37   : > { %p3156_p7 = scmp.ne.s32.totalorder %s4420_s25, 0 }
  0x39   : > { %886 = sbr.rel (%p3156_p7) target bundleno = 64 (0x40), region = 100 }
  0x3e   : > { %v887_v0 = vld [vmem:[%s813_s27] sm:$0x1f]  ;;  %vm888_vm0 = vcmask 520192  }
  0x3f   : > { %889 = vst.msk [vmem:[%s4026_s12] sm:$0x1f] %vm888_vm0, %v887_v0 }
  0x40 PF: > { %s4421_s28 = sld [smem:[#allocation8_spill]]  ;;  %v3801_v2 = vmov 0.0   ;;  %vm3802_vm1 = vmmov 0   ;;  %vm1103_vm2 = vcmask 523264   ;;  %v3670_v20 = vld [vmem:[%s3953_s17 + $0x18] sm:$0xff]   ;;  %v3672_v22 = vld [vmem:[%s3953_s17 + $0x10] sm:$0xff]   ;;  %s4426_s21 = scalar_lea.vmem %s4362_s8, %s3939_s23 }
  0x41   : > { %3394 = vmatprep.subr.bf16.mxu0 %v3801_v2  ;;  %3406 = vmatprep.subr.bf16.mxu1 %v3801_v2  ;;  %v3671_v21 = vld [vmem:[%s3953_s17 + $0x38] sm:$0xff]   ;;  %v3673_v23 = vld [vmem:[%s3953_s17 + $0x30] sm:$0xff]   ;;  %v3674_v24 = vld [vmem:[%s3953_s17 + $0x8] sm:$0xff]   ;;  %s4422_s7 = sld [smem:[#allocation9_spill]]  ;;  %vm1911_vm3 = vcmask 130048   ;;  %vm2153_vm4 = vcmask 1041408   ;;  %s4427_s2 = scalar_lea.vmem %s4363_s9, %s3939_s23 }
  0x42   : > { %3402 = vmatprep.mubr.msk.bf16.mxu0 %vm3802_vm1, %v3801_v2  ;;  %3414 = vmatprep.mubr.msk.bf16.mxu1 %vm3802_vm1, %v3801_v2  ;;  %v3675_v25 = vld [vmem:[%s3953_s17 + $0x28] sm:$0xff]   ;;  %v3676_v26 = vld [vmem:[%s3953_s17] sm:$0xff]   ;;  %v3678_v28 = vld [vmem:[%s3953_s17 + $0x58] sm:$0xff]   ;;  %s4424_s24 = sld [smem:[#allocation11_spill]]  ;;  %vm2154_vm5 = vcmask 1042432   ;;  %vm2096_vm6 = vcmask 36864   ;;  %s4428_s20 = scalar_lea.vmem %s4364_s10, %s3939_s23 }
  0x43   : > { %v3677_v27 = vld [vmem:[%s3953_s17 + $0x20] sm:$0xff]   ;;  %v3679_v29 = vld [vmem:[%s3953_s17 + $0x78] sm:$0xff]   ;;  %v3680_v30 = vld [vmem:[%s3953_s17 + $0x50] sm:$0xff]   ;;  %vm2149_vm7 = vcmask 39936   ;;  %s4425_s27 = sld [smem:[#allocation10_spill]]  ;;  %vm2549_vm8 = vcmask 520192  }
  0x44   : > { %v3681_v31 = vld [vmem:[%s3953_s17 + $0x70] sm:$0xff]   ;;  %v3682_v32 = vld [vmem:[%s3953_s17 + $0x48] sm:$0xff]   ;;  %v3684_v34 = vld [vmem:[%s3953_s17 + $0x40] sm:$0xff]  }
  0x45   : > { %v3683_v33 = vld [vmem:[%s3953_s17 + $0x68] sm:$0xff]   ;;  %v3685_v35 = vld [vmem:[%s3953_s17 + $0x60] sm:$0xff]   ;;  %s4423_s17 = sld [smem:[#allocation12_spill]] }
  0x46   : > { %v3654_v1 = vld [vmem:[%s4421_s28 + $0x18] sm:$0xff]   ;;  %v3656_v4 = vld [vmem:[%s4421_s28 + $0x10] sm:$0xff]   ;;  %v3658_v6 = vld [vmem:[%s4421_s28 + $0x8] sm:$0xff]  }
  0x47   : > { %v3655_v3 = vld [vmem:[%s4421_s28 + $0x38] sm:$0xff]   ;;  %3395 = vmatpush3.bf16.msra.mxu0 %v3654_v1  ;;  %v3657_v5 = vld [vmem:[%s4421_s28 + $0x30] sm:$0xff]   ;;  %v3659_v7 = vld [vmem:[%s4421_s28 + $0x28] sm:$0xff]  }
  0x48   : > { %3407 = vmatpush3.bf16.msra.mxu1 %v3655_v3  ;;  %3396 = vmatprep.subr.bf16.mxu0 %v3801_v2  ;;  %v3660_v8 = vld [vmem:[%s4421_s28] sm:$0xff]   ;;  %v3662_v12 = vld [vmem:[%s4421_s28 + $0x58] sm:$0xff]   ;;  %v3664_v14 = vld [vmem:[%s4421_s28 + $0x50] sm:$0xff]  }
  0x49   : > { %3408 = vmatprep.subr.bf16.mxu1 %v3801_v2  ;;  %v1053_v9 = vld [vmem:[%s4026_s12] sm:$0x1f]  ;;  %v3663_v13 = vld [vmem:[%s4421_s28 + $0x78] sm:$0xff]   ;;  %v3665_v15 = vld [vmem:[%s4421_s28 + $0x70] sm:$0xff]  }
  0x4a   : > { %v3661_v10 = vld [vmem:[%s4421_s28 + $0x20] sm:$0xff]   ;;  %v4051_v11 = vpack.c.bf16 %v1053_v9, %v1053_v9  ;;  %v3666_v16 = vld [vmem:[%s4421_s28 + $0x48] sm:$0xff]   ;;  %v3686_v36 = vld [vmem:[%s4422_s7 + $0x18] sm:$0xff]  }
  0x4b   : > { %3397 = vmatpush3.bf16.msra.mxu0 %v3656_v4  ;;  %v3667_v17 = vld [vmem:[%s4421_s28 + $0x68] sm:$0xff]   ;;  %v3668_v18 = vld [vmem:[%s4421_s28 + $0x40] sm:$0xff]   ;;  %v3687_v37 = vld [vmem:[%s4422_s7 + $0x10] sm:$0xff]  }
  0x4c   : > { %3409 = vmatpush3.bf16.msra.mxu1 %v3657_v5  ;;  %3398 = vmatprep.subr.bf16.mxu0 %v3801_v2  ;;  %v3669_v19 = vld [vmem:[%s4421_s28 + $0x60] sm:$0xff]   ;;  %v3688_v38 = vld [vmem:[%s4422_s7 + $0x8] sm:$0xff]   ;;  %v3690_v40 = vld [vmem:[%s4422_s7 + $0x58] sm:$0xff]   ;;  %s4430_s28 = sld [smem:[#allocation2_spill]] }
  0x4d   : > { %3410 = vmatprep.subr.bf16.mxu1 %v3801_v2  ;;  %v3689_v39 = vld [vmem:[%s4422_s7] sm:$0xff]   ;;  %v3691_v41 = vld [vmem:[%s4422_s7 + $0x38] sm:$0xff]   ;;  %v3692_v42 = vld [vmem:[%s4422_s7 + $0x50] sm:$0xff]  }
  0x4e   : > { %v3693_v43 = vld [vmem:[%s4422_s7 + $0x30] sm:$0xff]   ;;  %v3694_v44 = vld [vmem:[%s4422_s7 + $0x48] sm:$0xff]   ;;  %v3696_v46 = vld [vmem:[%s4422_s7 + $0x40] sm:$0xff]  }
  0x4f   : > { %3399 = vmatpush3.bf16.msra.mxu0 %v3658_v6  ;;  %v3695_v45 = vld [vmem:[%s4422_s7 + $0x28] sm:$0xff]   ;;  %v3697_v47 = vld [vmem:[%s4422_s7 + $0x20] sm:$0xff]   ;;  %v3698_v48 = vld [vmem:[%s4422_s7 + $0x78] sm:$0xff]  }
  0x50   : > { %3411 = vmatpush3.bf16.msra.mxu1 %v3659_v7  ;;  %3400 = vmatprep.subr.bf16.mxu0 %v3801_v2  ;;  %v3699_v49 = vld [vmem:[%s4422_s7 + $0x70] sm:$0xff]   ;;  %v3700_v50 = vld [vmem:[%s4422_s7 + $0x68] sm:$0xff]   ;;  %v3701_v51 = vld [vmem:[%s4422_s7 + $0x60] sm:$0xff]  }
  0x51   : > { %3412 = vmatprep.subr.bf16.mxu1 %v3801_v2  ;;  %v3181_v5 = vld [vmem:[%s4423_s17] ss:$0 sm:$0xff] }
  0x52   : > { %v3157_v6 = vld [vmem:[%s4424_s24] ss:$0 sm:$0xff]  ;;  %p3276_p8 = scmp.ge.s32.totalorder %s4430_s28, 1 }
  0x53   : > { %3401 = vmatpush3.bf16.msra.mxu0 %v3660_v8 }
  0x54   : > { %3413 = vmatpush3.bf16.msra.mxu1 %v3661_v10  ;;  %3418 = vmatprep.subr.bf16.mxu0 %v3801_v2  ;;  %v3182_v10 = vld [vmem:[%s4423_s17 + $0x1] ss:$0 sm:$0xff] }
  0x55   : > { %3430 = vmatprep.subr.bf16.mxu1 %v3801_v2 }
  0x56   : > { %3403 = vmatmul.mubr.msk.bf16.vlgmr.msra.gmra.mxu0 %vm1103_vm2, %v4051_v11 }
  0x57   : > { %3415 = vmatmul.mubr.msk.bf16.vlgmr.msra.gmra.mxu1 %vm1103_vm2, %v4051_v11  ;;  %3419 = vmatpush3.bf16.msra.mxu0 %v3662_v12 }
  0x58   : > { %3431 = vmatpush3.bf16.msra.mxu1 %v3663_v13  ;;  %3420 = vmatprep.subr.bf16.mxu0 %v3801_v2 }
  0x59   : > { %3432 = vmatprep.subr.bf16.mxu1 %v3801_v2  ;;  %3426 = vmatprep.mubr.msk.bf16.mxu0 %vm3802_vm1, %v3801_v2 }
  0x5a   : > { %3438 = vmatprep.mubr.msk.bf16.mxu1 %vm3802_vm1, %v3801_v2 }
  0x5b   : > { %3421 = vmatpush3.bf16.msra.mxu0 %v3664_v14 }
  0x5c   : > { %3433 = vmatpush3.bf16.msra.mxu1 %v3665_v15  ;;  %3422 = vmatprep.subr.bf16.mxu0 %v3801_v2 }
  0x5d   : > { %3434 = vmatprep.subr.bf16.mxu1 %v3801_v2 }
  0x5f   : > { %3423 = vmatpush3.bf16.msra.mxu0 %v3666_v16 }
  0x60   : > { %3435 = vmatpush3.bf16.msra.mxu1 %v3667_v17  ;;  %3424 = vmatprep.subr.bf16.mxu0 %v3801_v2 }
  0x61   : > { %3436 = vmatprep.subr.bf16.mxu1 %v3801_v2 }
  0x63   : > { %3425 = vmatpush3.bf16.msra.mxu0 %v3668_v18 }
  0x64   : > { %3437 = vmatpush3.bf16.msra.mxu1 %v3669_v19  ;;  %3442 = vmatprep.subr.bf16.mxu0 %v3801_v2 }
  0x65   : > { %3454 = vmatprep.subr.bf16.mxu1 %v3801_v2 }
  0x66   : > { %3427 = vmatmul.mubr.msk.bf16.vlgmr.msra.gmra.mxu0 %vm1103_vm2, %v4051_v11 }
  0x67   : > { %3439 = vmatmul.mubr.msk.bf16.vlgmr.msra.gmra.mxu1 %vm1103_vm2, %v4051_v11  ;;  %3443 = vmatpush3.bf16.msra.mxu0 %v3670_v20 }
  0x68   : > { %3455 = vmatpush3.bf16.msra.mxu1 %v3671_v21  ;;  %3444 = vmatprep.subr.bf16.mxu0 %v3801_v2 }
  0x69   : > { %3456 = vmatprep.subr.bf16.mxu1 %v3801_v2  ;;  %3450 = vmatprep.mubr.msk.bf16.mxu0 %vm3802_vm1, %v3801_v2 }
  0x6a   : > { %3462 = vmatprep.mubr.msk.bf16.mxu1 %vm3802_vm1, %v3801_v2 }
  0x6b   : > { %3445 = vmatpush3.bf16.msra.mxu0 %v3672_v22  ;;  %v3158_v22 = vld [vmem:[%s4424_s24 + $0x1] ss:$0 sm:$0xff] }
  0x6c   : > { %3457 = vmatpush3.bf16.msra.mxu1 %v3673_v23  ;;  %3446 = vmatprep.subr.bf16.mxu0 %v3801_v2 }
  0x6d   : > { %3458 = vmatprep.subr.bf16.mxu1 %v3801_v2 }
  0x6f   : > { %3447 = vmatpush3.bf16.msra.mxu0 %v3674_v24 }
  0x70   : > { %3459 = vmatpush3.bf16.msra.mxu1 %v3675_v25  ;;  %3448 = vmatprep.subr.bf16.mxu0 %v3801_v2 }
  0x71   : > { %3460 = vmatprep.subr.bf16.mxu1 %v3801_v2 }
  0x73   : > { %3449 = vmatpush3.bf16.msra.mxu0 %v3676_v26 }
  0x74   : > { %3461 = vmatpush3.bf16.msra.mxu1 %v3677_v27  ;;  %3466 = vmatprep.subr.bf16.mxu0 %v3801_v2  ;;  %v3183_v27 = vld [vmem:[%s4423_s17 + $0x2] ss:$0 sm:$0xff] }
  0x75   : > { %3478 = vmatprep.subr.bf16.mxu1 %v3801_v2 }
  0x76   : > { %3451 = vmatmul.mubr.msk.bf16.vlgmr.msra.gmra.mxu0 %vm1103_vm2, %v4051_v11 }
  0x77   : > { %3463 = vmatmul.mubr.msk.bf16.vlgmr.msra.gmra.mxu1 %vm1103_vm2, %v4051_v11  ;;  %3467 = vmatpush3.bf16.msra.mxu0 %v3678_v28 }
  0x78   : > { %3479 = vmatpush3.bf16.msra.mxu1 %v3679_v29  ;;  %3468 = vmatprep.subr.bf16.mxu0 %v3801_v2  ;;  %v3184_v29 = vld [vmem:[%s4423_s17 + $0x3] ss:$0 sm:$0xff] }
  0x79   : > { %3480 = vmatprep.subr.bf16.mxu1 %v3801_v2  ;;  %3474 = vmatprep.mubr.msk.bf16.mxu0 %vm3802_vm1, %v3801_v2 }
  0x7a   : > { %3486 = vmatprep.mubr.msk.bf16.mxu1 %vm3802_vm1, %v3801_v2 }
  0x7b   : > { %3469 = vmatpush3.bf16.msra.mxu0 %v3680_v30  ;;  %v3159_v30 = vld [vmem:[%s4424_s24 + $0x2] ss:$0 sm:$0xff] }
  0x7c   : > { %3481 = vmatpush3.bf16.msra.mxu1 %v3681_v31  ;;  %3470 = vmatprep.subr.bf16.mxu0 %v3801_v2 }
  0x7d   : > { %3482 = vmatprep.subr.bf16.mxu1 %v3801_v2 }
  0x7f   : > { %3471 = vmatpush3.bf16.msra.mxu0 %v3682_v32  ;;  %v3160_v32 = vld [vmem:[%s4424_s24 + $0x3] ss:$0 sm:$0xff] }
  0x80   : > { %3483 = vmatpush3.bf16.msra.mxu1 %v3683_v33  ;;  %3472 = vmatprep.subr.bf16.mxu0 %v3801_v2 }
  0x81   : > { %3484 = vmatprep.subr.bf16.mxu1 %v3801_v2 }
  0x83   : > { %3473 = vmatpush3.bf16.msra.mxu0 %v3684_v34 }
  0x84   : > { %3485 = vmatpush3.bf16.msra.mxu1 %v3685_v35  ;;  %3490 = vmatprep.subr.bf16.mxu0 %v3801_v2 }
  0x85   : > { %3502 = vmatprep.subr.bf16.mxu1 %v3801_v2 }
  0x86   : > { %3475 = vmatmul.mubr.msk.bf16.vlgmr.msra.gmra.mxu0 %vm1103_vm2, %v4051_v11 }
  0x87   : > { %3487 = vmatmul.mubr.msk.bf16.vlgmr.msra.gmra.mxu1 %vm1103_vm2, %v4051_v11  ;;  %3498 = vmatprep.mubr.msk.bf16.mxu0 %vm3802_vm1, %v3801_v2 }
  0x88   : > { %3510 = vmatprep.mubr.msk.bf16.mxu1 %vm3802_vm1, %v3801_v2  ;;  %3491 = vmatpush3.bf16.msra.mxu0 %v3686_v36 }
  0x89   : > { %3492 = vmatprep.subr.bf16.mxu0 %v3801_v2  ;;  %3503 = vmatpush3.bf16.msra.mxu1 %v3691_v41 }
  0x8a   : > { %3504 = vmatprep.subr.bf16.mxu1 %v3801_v2 }
  0x8c   : > { %3493 = vmatpush3.bf16.msra.mxu0 %v3687_v37 }
  0x8d   : > { %3494 = vmatprep.subr.bf16.mxu0 %v3801_v2  ;;  %3505 = vmatpush3.bf16.msra.mxu1 %v3693_v43 }
  0x8e   : > { %3506 = vmatprep.subr.bf16.mxu1 %v3801_v2 }
  0x90   : > { %3495 = vmatpush3.bf16.msra.mxu0 %v3688_v38 }
  0x91   : > { %3496 = vmatprep.subr.bf16.mxu0 %v3801_v2  ;;  %3507 = vmatpush3.bf16.msra.mxu1 %v3695_v45 }
  0x92   : > { %3508 = vmatprep.subr.bf16.mxu1 %v3801_v2 }
  0x94   : > { %3497 = vmatpush3.bf16.msra.mxu0 %v3689_v39 }
  0x95   : > { %3514 = vmatprep.subr.bf16.mxu0 %v3801_v2  ;;  %3509 = vmatpush3.bf16.msra.mxu1 %v3697_v47 }
  0x96   : > { %3526 = vmatprep.subr.bf16.mxu1 %v3801_v2 }
  0x97   : > { %3499 = vmatmul.mubr.msk.bf16.vlgmr.msra.gmra.mxu0 %vm1103_vm2, %v4051_v11 }
  0x98   : > { %3515 = vmatpush3.bf16.msra.mxu0 %v3690_v40  ;;  %3522 = vmatprep.mubr.msk.bf16.mxu0 %vm3802_vm1, %v3801_v2 }
  0x99   : > { %3516 = vmatprep.subr.bf16.mxu0 %v3801_v2  ;;  %3511 = vmatmul.mubr.msk.bf16.vlgmr.msra.gmra.mxu1 %vm1103_vm2, %v4051_v11 }
  0x9a   : > { %3527 = vmatpush3.bf16.msra.mxu1 %v3698_v48  ;;  %3534 = vmatprep.mubr.msk.bf16.mxu1 %vm3802_vm1, %v3801_v2 }
  0x9b   : > { %3528 = vmatprep.subr.bf16.mxu1 %v3801_v2 }
  0x9c   : > { %3517 = vmatpush3.bf16.msra.mxu0 %v3692_v42 }
  0x9d   : > { %3518 = vmatprep.subr.bf16.mxu0 %v3801_v2 }
  0x9e   : > { %3529 = vmatpush3.bf16.msra.mxu1 %v3699_v49 }
  0x9f   : > { %3530 = vmatprep.subr.bf16.mxu1 %v3801_v2 }
  0xa0   : > { %3519 = vmatpush3.bf16.msra.mxu0 %v3694_v44 }
  0xa1   : > { %3520 = vmatprep.subr.bf16.mxu0 %v3801_v2 }
  0xa2   : > { %3531 = vmatpush3.bf16.msra.mxu1 %v3700_v50 }
  0xa3   : > { %3532 = vmatprep.subr.bf16.mxu1 %v3801_v2 }
  0xa4   : > { %3521 = vmatpush3.bf16.msra.mxu0 %v3696_v46 }
  0xa5   : > { %3538 = vmatprep.subr.bf16.mxu0 %v3801_v2 }
  0xa6   : > { %3533 = vmatpush3.bf16.msra.mxu1 %v3701_v51 }
  0xa7   : > { %3523 = vmatmul.mubr.msk.bf16.vlgmr.msra.gmra.mxu0 %vm1103_vm2, %v4051_v11  ;;  %3556 = vmatprep.subr.bf16.mxu1 %v3801_v2 }
  0xa8   : > { %3540 = vmatprep.mubr.msk.bf16.mxu0 %vm3802_vm1, %v3801_v2 }
  0xa9   : > { %3535 = vmatmul.mubr.msk.bf16.vlgmr.msra.gmra.mxu1 %vm1103_vm2, %v4051_v11 }
  0xaa   : > { %3558 = vmatprep.mubr.msk.bf16.mxu1 %vm3802_vm1, %v3801_v2 }
 0x116   : > { %v1141_v52 = vpop.f32.mrf.mxu0 }
 0x117   : > { %v1205_v53 = vpop.f32.mrf.mxu1  ;;  %v1142_v12 = vadd.f32 %v3157_v6, %v1141_v52 }
 0x118   : > { %v3404_v54 = vpop.f32.mrf.mxu0  ;;  %v1206_v25 = vadd.f32 %v3158_v22, %v1205_v53  ;;  %v3205_v53 = vld [vmem:[%s3980_s30] ss:$0 sm:$0xff] }
 0x119   : > { %v3416_v55 = vpop.f32.mrf.mxu1  ;;  %v1899_v20 = vmul.f32 0.25, %v1142_v12  ;;  %v3803_v54 = vmov 65535  }
 0x11a   : > { %v1144_v56 = vpop.f32.mrf.mxu0  ;;  %v1900_v28 = vmul.f32 0.25, %v1206_v25  ;;  %v2155_v55 = vsel %vm2153_vm4, 4294967295, %v3803_v54 }
 0x11b   : > { %v1208_v57 = vpop.f32.mrf.mxu1  ;;  %v1903_v24 = vpack.c.bf16 %v1899_v20, %v1899_v20 }
 0x11c   : > { %v3405_v58 = vpop.f32.mrf.mxu0  ;;  %v1904_v37 = vpack.c.bf16 %v1900_v28, %v1900_v28 }
 0x11d   : > { %v3417_v59 = vpop.f32.mrf.mxu1  ;;  %v2156_v58 = vsel %vm2154_vm5, %v2155_v55, 0 }
 0x126   : > { %v1269_v60 = vpop.f32.mrf.mxu0 }
 0x127   : > { %v1333_v61 = vpop.f32.mrf.mxu1  ;;  %v1270_v38 = vadd.f32 %v3159_v30, %v1269_v60 }
 0x128   : > { %v3428_v62 = vpop.f32.mrf.mxu0  ;;  %v1334_v41 = vadd.f32 %v3160_v32, %v1333_v61 }
 0x129   : > { %v3440_v63 = vpop.f32.mrf.mxu1  ;;  %v1901_v48 = vmul.f32 0.25, %v1270_v38 }
 0x12a   : > { %v1272_v0 = vpop.f32.mrf.mxu0  ;;  %v1902_v50 = vmul.f32 0.25, %v1334_v41 }
 0x12b   : > { %v1336_v1 = vpop.f32.mrf.mxu1  ;;  %v1905_v51 = vpack.c.bf16 %v1901_v48, %v1901_v48  ;;  %v3207_v0 = vld [vmem:[%s3980_s30 + $0x2] ss:$0 sm:$0xff] }
 0x12c   : > { %v3429_v3 = vpop.f32.mrf.mxu0  ;;  %v1906_v52 = vpack.c.bf16 %v1902_v50, %v1902_v50 }
 0x12d   : > { %v3441_v4 = vpop.f32.mrf.mxu1 }
 0x136   : > { %v1421_v7 = vpop.f32.mrf.mxu0 }
 0x137   : > { %v1422_v8 = vadd.f32 %v3181_v5, %v1421_v7  ;;  %v1485_v9 = vpop.f32.mrf.mxu1  ;;  %v3206_v5 = vld [vmem:[%s3980_s30 + $0x1] ss:$0 sm:$0xff] }
 0x138   : > { %v3452_v11 = vpop.f32.mrf.mxu0  ;;  %v1486_v17 = vadd.f32 %v3182_v10, %v1485_v9 }
 0x139   : > { %v1907_v13 = vpack.c.bf16 %v1422_v8, %v1422_v8  ;;  %v3464_v14 = vpop.f32.mrf.mxu1 }
 0x13a   : > { %v1424_v15 = vpop.f32.mrf.mxu0  ;;  %v1908_v23 = vpack.c.bf16 %v1486_v17, %v1486_v17  ;;  %v3208_v17 = vld [vmem:[%s3980_s30 + $0x3] ss:$0 sm:$0xff] }
 0x13b   : > { %v1916_v16 = vsel %vm1911_vm3, %v1907_v13, 0  ;;  %v1488_v18 = vpop.f32.mrf.mxu1 }
 0x13c   : > { %v3453_v19 = vpop.f32.mrf.mxu0  ;;  %3539 = vmatpush3.bf16.xpose.msra.mxu0 %v1916_v16  ;;  %v1962_v26 = vsel %vm1911_vm3, %v1908_v23, 0 }
 0x13d   : > { %v3465_v21 = vpop.f32.mrf.mxu1  ;;  %3544 = vmatprep.subr.bf16.mxu0 %v3801_v2 }
 0x143   : > { %3541 = vmatmul.mubr.msk.bf16.vlgmr.msra.gmra.mxu0 %vm1911_vm3, %v1903_v24 }
 0x144   : > { %3545 = vmatpush3.bf16.xpose.msra.mxu0 %v1962_v26  ;;  %3546 = vmatprep.mubr.msk.bf16.mxu0 %vm3802_vm1, %v3801_v2 }
 0x145   : > { %3550 = vmatprep.subr.bf16.mxu0 %v3801_v2 }
 0x146   : > { %v1549_v31 = vpop.f32.mrf.mxu0 }
 0x147   : > { %v1550_v33 = vadd.f32 %v3183_v27, %v1549_v31  ;;  %v1613_v34 = vpop.f32.mrf.mxu1 }
 0x148   : > { %v1614_v35 = vadd.f32 %v3184_v29, %v1613_v34  ;;  %v3476_v36 = vpop.f32.mrf.mxu0 }
 0x149   : > { %v1909_v39 = vpack.c.bf16 %v1550_v33, %v1550_v33  ;;  %v3488_v40 = vpop.f32.mrf.mxu1 }
 0x14a   : > { %v1910_v42 = vpack.c.bf16 %v1614_v35, %v1614_v35  ;;  %v1552_v43 = vpop.f32.mrf.mxu0 }
 0x14b   : > { %v2008_v44 = vsel %vm1911_vm3, %v1909_v39, 0  ;;  %v1616_v45 = vpop.f32.mrf.mxu1  ;;  %3547 = vmatmul.mubr.msk.bf16.vlgmr.msra.gmra.mxu0 %vm1911_vm3, %v1904_v37 }
 0x14c   : > { %v2054_v46 = vsel %vm1911_vm3, %v1910_v42, 0  ;;  %v3477_v47 = vpop.f32.mrf.mxu0  ;;  %3551 = vmatpush3.bf16.xpose.msra.mxu0 %v2008_v44  ;;  %3552 = vmatprep.mubr.msk.bf16.mxu0 %vm3802_vm1, %v3801_v2 }
 0x14d   : > { %v3489_v49 = vpop.f32.mrf.mxu1  ;;  %3557 = vmatpush3.bf16.xpose.msra.mxu1 %v2054_v46  ;;  %3562 = vmatprep.subr.bf16.mxu0 %v3801_v2 }
 0x14e   : > { %3568 = vmatprep.subr.bf16.mxu1 %v3801_v2 }
 0x153   : > { %3553 = vmatmul.mubr.msk.bf16.vlgmr.msra.gmra.mxu0 %vm1911_vm3, %v1905_v51 }
 0x154   : > { %3559 = vmatmul.mubr.msk.bf16.vlgmr.msra.gmra.mxu1 %vm1911_vm3, %v1906_v52  ;;  %3564 = vmatprep.mubr.msk.bf16.mxu0 %vm3802_vm1, %v3801_v2 }
 0x155   : > { %3570 = vmatprep.mubr.msk.bf16.mxu1 %vm3802_vm1, %v3801_v2 }
 0x157   : > { %v1701_v56 = vpop.f32.mrf.mxu0 }
 0x158   : > { %v1702_v57 = vadd.f32 %v3205_v53, %v1701_v56 }
 0x159   : > { %v3500_v59 = vpop.f32.mrf.mxu0  ;;  %v1765_v7 = vpop.f32.mrf.mxu1 }
 0x15a   : > { %v2145_v60 = vpack.c.bf16 %v1702_v57, %v1702_v57  ;;  %v1766_v10 = vadd.f32 %v3206_v5, %v1765_v7 }
 0x15b   : > { %v1704_v61 = vpop.f32.mrf.mxu0  ;;  %v3512_v11 = vpop.f32.mrf.mxu1 }
 0x15c   : > { %v2158_v62 = vand.u32 %v2156_v58, %v2145_v60  ;;  %v2146_v13 = vpack.c.bf16 %v1766_v10, %v1766_v10 }
 0x15d   : > { %v3501_v63 = vpop.f32.mrf.mxu0  ;;  %v1768_v14 = vpop.f32.mrf.mxu1 }
 0x15e   : > { %3563 = vmatpush3.bf16.msra.mxu0 %v2158_v62  ;;  %v2204_v15 = vand.u32 %v2156_v58, %v2146_v13 }
 0x15f   : > { %3574 = vmatprep.subr.bf16.mxu0 %v3801_v2  ;;  %v3513_v16 = vpop.f32.mrf.mxu1 }
 0x160   : > { %3569 = vmatpush3.bf16.msra.mxu1 %v2204_v15 }
 0x161   : > { %3580 = vmatprep.subr.bf16.mxu1 %v3801_v2 }
 0x167   : > { %v1829_v1 = vpop.f32.mrf.mxu0 }
 0x168   : > { %v1830_v3 = vadd.f32 %v3207_v0, %v1829_v1 }
 0x169   : > { %v3524_v4 = vpop.f32.mrf.mxu0  ;;  %v1893_v18 = vpop.f32.mrf.mxu1 }
 0x16a   : > { %v2147_v6 = vpack.c.bf16 %v1830_v3, %v1830_v3  ;;  %v1894_v19 = vadd.f32 %v3208_v17, %v1893_v18  ;;  %v3702_v18 = vld [vmem:[%s4425_s27] sm:$0xff]  }
 0x16b   : > { %v1832_v8 = vpop.f32.mrf.mxu0  ;;  %v3536_v20 = vpop.f32.mrf.mxu1 }
 0x16c   : > { %v4215_v9 = vand.u32 %v2156_v58, %v2147_v6  ;;  %v2148_v21 = vpack.c.bf16 %v1894_v19, %v1894_v19  ;;  %v3703_v19 = vld [vmem:[%s4425_s27 + $0x8] sm:$0xff]  }
 0x16d   : > { %v3525_v12 = vpop.f32.mrf.mxu0  ;;  %v1896_v22 = vpop.f32.mrf.mxu1 }
 0x16e   : > { %v4219_v23 = vand.u32 %v2156_v58, %v2148_v21  ;;  %v3704_v21 = vld [vmem:[%s4425_s27 + $0x10] sm:$0xff]  }
 0x16f   : > { %v3537_v24 = vpop.f32.mrf.mxu1 }
 0x203   : > { %v1952_v25 = vpop.f32.mrf.mxu0 }
 0x204   : > { %v2097_v26 = vsel %vm2096_vm6, %v1952_v25, -inf }
 0x205   : > { %2098 = vmax.xlane.f32.xlu0 %v2097_v26  ;;  %v3542_v27 = vpop.f32.mrf.mxu0 }
 0x206   : > { %v3705_v27 = vld [vmem:[%s4425_s27 + $0x18] sm:$0xff]  }
 0x207   : > { %v1955_v28 = vpop.f32.mrf.mxu0 }
 0x209   : > { %v3543_v29 = vpop.f32.mrf.mxu0 }
 0x20b   : > { %v1998_v30 = vpop.f32.mrf.mxu0 }
 0x20c   : > { %v2100_v31 = vsel %vm2096_vm6, %v1998_v30, -inf }
 0x20d   : > { %2101 = vmax.xlane.f32.xlu0 %v2100_v31  ;;  %v3548_v32 = vpop.f32.mrf.mxu0 }
 0x20f   : > { %v2001_v33 = vpop.f32.mrf.mxu0 }
 0x211   : > { %v3549_v34 = vpop.f32.mrf.mxu0 }
 0x213   : > { %v2044_v35 = vpop.f32.mrf.mxu0 }
 0x214   : > { %v2090_v36 = vpop.f32.mrf.mxu1  ;;  %v2103_v37 = vsel %vm2096_vm6, %v2044_v35, -inf }
 0x215   : > { %2104 = vmax.xlane.f32.xlu1 %v2103_v37  ;;  %v3554_v38 = vpop.f32.mrf.mxu0  ;;  %v2106_v42 = vsel %vm2096_vm6, %v2090_v36, -inf }
 0x216   : > { %v3560_v39 = vpop.f32.mrf.mxu1 }
 0x217   : > { %v2047_v40 = vpop.f32.mrf.mxu0 }
 0x218   : > { %v2093_v41 = vpop.f32.mrf.mxu1 }
 0x219   : > { %2107 = vmax.xlane.f32.xlu1 %v2106_v42  ;;  %v3555_v43 = vpop.f32.mrf.mxu0 }
 0x21a   : > { %v3561_v44 = vpop.f32.mrf.mxu1 }
 0x28e   : > { %v2099_v45 = vpop.xlane.xlu0 %2098 }
 0x28f   : > { %v2109_v46 = vsub.f32 %v1952_v25, %v2099_v45 }
 0x291   : > { %v2113_v47 = vmul.f32 1.442695, %v2109_v46 }
 0x293   : > { %3734 = vpow2.f32 %v2113_v47 }
 0x296   : > { %v2102_v48 = vpop.xlane.xlu0 %2101 }
 0x297   : > { %v2110_v49 = vsub.f32 %v1998_v30, %v2102_v48 }
 0x299   : > { %v2115_v50 = vmul.f32 1.442695, %v2110_v49 }
 0x29b   : > { %3736 = vpow2.f32 %v2115_v50 }
 0x29e   : > { %v2105_v51 = vpop.xlane.xlu1 %2104 }
 0x29f   : > { %v2111_v52 = vsub.f32 %v2044_v35, %v2105_v51 }
 0x2a0   : > { %v3735_v53 = vpop.eup %3734 }
 0x2a1   : > { %v2117_v54 = vmul.f32 1.442695, %v2111_v52  ;;  %v2121_v55 = vsel %vm2096_vm6, %v3735_v53, 0.0 }
 0x2a2   : > { %2122 = vadd.xlane.f32.xlu0 %v2121_v55  ;;  %v2108_v56 = vpop.xlane.xlu1 %2107 }
 0x2a3   : > { %3738 = vpow2.f32 %v2117_v54  ;;  %v2112_v57 = vsub.f32 %v2090_v36, %v2108_v56  ;;  %v3245_v54 = vld [vmem:[%s4426_s21] ss:$0 sm:$0xff] }
 0x2a5   : > { %v2119_v58 = vmul.f32 1.442695, %v2112_v57 }
 0x2a7   : > { %3740 = vpow2.f32 %v2119_v58 }
 0x2a8   : > { %v3737_v59 = vpop.eup %3736 }
 0x2a9   : > { %v2124_v60 = vsel %vm2096_vm6, %v3737_v59, 0.0 }
 0x2aa   : > { %2125 = vadd.xlane.f32.xlu1 %v2124_v60 }
 0x2b0   : > { %v3739_v61 = vpop.eup %3738 }
 0x2b1   : > { %v2127_v62 = vsel %vm2096_vm6, %v3739_v61, 0.0 }
 0x2b2   : > { %2128 = vadd.xlane.f32.xlu0 %v2127_v62 }
 0x2b4   : > { %v3741_v63 = vpop.eup %3740 }
 0x2b5   : > { %v2130_v0 = vsel %vm2096_vm6, %v3741_v63, 0.0 }
 0x2b6   : > { %2131 = vadd.xlane.f32.xlu1 %v2130_v0 }
 0x32b   : > { %v2123_v1 = vpop.xlane.xlu0 %2122 }
 0x32c   : > { %3742 = vrcp.f32 %v2123_v1 }
 0x333   : > { %v2126_v3 = vpop.xlane.xlu1 %2125 }
 0x334   : > { %3744 = vrcp.f32 %v2126_v3 }
 0x339   : > { %v3743_v4 = vpop.eup %3742 }
 0x33a   : > { %v2137_v5 = vmul.f32 %v3743_v4, %v3735_v53 }
 0x33b   : > { %v2129_v6 = vpop.xlane.xlu0 %2128 }
 0x33c   : > { %3746 = vrcp.f32 %v2129_v6  ;;  %v2141_v7 = vpack.c.bf16 %v2137_v5, %v2137_v5 }
 0x33e   : > { %3565 = vmatmul.mubr.msk.bf16.vlgmr.msra.gmra.mxu0 %vm2149_vm7, %v2141_v7  ;;  %v3708_v7 = vld [vmem:[%s3999_s16 + $0x34] ss:$8 sps:$4 sm:$0xff]  }
 0x33f   : > { %3575 = vmatpush3.bf16.msra.mxu0 %v4215_v9  ;;  %v2132_v8 = vpop.xlane.xlu1 %2131  ;;  %3576 = vmatprep.mubr.msk.bf16.mxu0 %vm3802_vm1, %v3801_v2 }
 0x340   : > { %3748 = vrcp.f32 %v2132_v8  ;;  %3586 = vmatprep.subr.bf16.mxu0 %v3801_v2  ;;  %v3706_v8 = vld [vmem:[%s3999_s16 + $0x30] ss:$8 sps:$4 sm:$0xff]  }
 0x341   : > { %v3745_v10 = vpop.eup %3744 }
 0x342   : > { %v2138_v11 = vmul.f32 %v3745_v10, %v3737_v59  ;;  %v3711_v10 = vld [vmem:[%s3999_s16 + $0x24] ss:$8 sps:$4 sm:$0xff]  }
 0x344   : > { %v2142_v12 = vpack.c.bf16 %v2138_v11, %v2138_v11  ;;  %v3709_v11 = vld [vmem:[%s3999_s16 + $0x20] ss:$8 sps:$4 sm:$0xff]  }
 0x346   : > { %3571 = vmatmul.mubr.msk.bf16.vlgmr.msra.gmra.mxu1 %vm2149_vm7, %v2142_v12  ;;  %v3714_v12 = vld [vmem:[%s3999_s16 + $0x14] ss:$8 sps:$4 sm:$0xff]  }
 0x347   : > { %3581 = vmatpush3.bf16.msra.mxu1 %v4219_v23  ;;  %3582 = vmatprep.mubr.msk.bf16.mxu1 %vm3802_vm1, %v3801_v2 }
 0x348   : > { %3592 = vmatprep.subr.bf16.mxu1 %v3801_v2 }
 0x349   : > { %v3747_v9 = vpop.eup %3746 }
 0x34a   : > { %v2139_v13 = vmul.f32 %v3747_v9, %v3739_v61  ;;  %v3758_v61 = vld [vmem:[%s4026_s12] sm:$0x1f]  ;;  %v3712_v9 = vld [vmem:[%s3999_s16 + $0x10] ss:$8 sps:$4 sm:$0xff]  }
 0x34c   : > { %v2143_v14 = vpack.c.bf16 %v2139_v13, %v2139_v13  ;;  %v3717_v13 = vld [vmem:[%s3999_s16 + $0x4] ss:$8 sps:$4 sm:$0xff]  }
 0x34d   : > { %v3749_v15 = vpop.eup %3748 }
 0x34e   : > { %3577 = vmatmul.mubr.msk.bf16.vlgmr.msra.gmra.mxu0 %vm2149_vm7, %v2143_v14  ;;  %v2140_v16 = vmul.f32 %v3749_v15, %v3741_v63  ;;  %v3715_v14 = vld [vmem:[%s3999_s16] ss:$8 sps:$4 sm:$0xff]   ;;  %v3804_v15 = vmov 0  }
 0x34f   : > { %3588 = vmatprep.mubr.msk.bf16.mxu0 %vm3802_vm1, %v3801_v2  ;;  %3587 = vmatpush3.bf16.msra.mxu0 %v3702_v18 }
 0x350   : > { %v2144_v17 = vpack.c.bf16 %v2140_v16, %v2140_v16  ;;  %3598 = vmatprep.subr.bf16.mxu0 %v3801_v2  ;;  %v3718_v16 = vld [vmem:[%s4009_s4 + $0x78] sm:$0xff]  }
 0x352   : > { %3583 = vmatmul.mubr.msk.bf16.vlgmr.msra.gmra.mxu1 %vm2149_vm7, %v2144_v17  ;;  %v3719_v17 = vld [vmem:[%s4009_s4 + $0x38] sm:$0xff]  }
 0x353   : > { %3594 = vmatprep.mubr.msk.bf16.mxu1 %vm3802_vm1, %v3801_v2  ;;  %3593 = vmatpush3.bf16.msra.mxu1 %v3703_v19 }
 0x354   : > { %3604 = vmatprep.subr.bf16.mxu1 %v3801_v2 }
 0x3fe   : > { %v2194_v20 = vpop.f32.mrf.mxu0 }
 0x3ff   : > { %v2338_v22 = vpack.c.bf16 %v2194_v20, %v2194_v20 }
 0x400   : > { %v3566_v23 = vpop.f32.mrf.mxu0 }
 0x401   : > { %3589 = vmatmul.mubr.msk.bf16.vlgmr.msra.gmra.mxu0 %vm1911_vm3, %v2338_v22  ;;  %v3246_v22 = vld [vmem:[%s4427_s2] ss:$0 sm:$0xff] }
 0x402   : > { %v2197_v24 = vpop.f32.mrf.mxu0  ;;  %3599 = vmatpush3.bf16.msra.mxu0 %v3704_v21  ;;  %3600 = vmatprep.mubr.msk.bf16.mxu0 %vm3802_vm1, %v3801_v2 }
 0x403   : > { %2641 = vmatprep.subr.bf16.mxu0 %v3708_v7  ;;  %v3247_v24 = vld [vmem:[%s4428_s20] ss:$0 sm:$0xff] }
 0x404   : > { %v3567_v25 = vpop.f32.mrf.mxu0 }
 0x406   : > { %v2240_v26 = vpop.f32.mrf.mxu1 }
 0x407   : > { %v2339_v28 = vpack.c.bf16 %v2240_v26, %v2240_v26 }
 0x408   : > { %v3572_v29 = vpop.f32.mrf.mxu1 }
 0x409   : > { %3595 = vmatmul.mubr.msk.bf16.vlgmr.msra.gmra.mxu1 %vm1911_vm3, %v2339_v28  ;;  %v3720_v28 = vld [vmem:[%s4009_s4 + $0x70] sm:$0xff]  }
 0x40a   : > { %v2243_v30 = vpop.f32.mrf.mxu1  ;;  %3605 = vmatpush3.bf16.msra.mxu1 %v3705_v27  ;;  %3606 = vmatprep.mubr.msk.bf16.mxu1 %vm3802_vm1, %v3801_v2  ;;  %v3721_v29 = vld [vmem:[%s4009_s4 + $0x30] sm:$0xff]  }
 0x40b   : > { %3372 = vmatprep.subr.bf16.mxu1 %v3718_v16  ;;  %v3722_v30 = vld [vmem:[%s4009_s4 + $0x68] sm:$0xff]  }
 0x40c   : > { %v3573_v31 = vpop.f32.mrf.mxu1 }
 0x40d   : > { %v3723_v31 = vld [vmem:[%s4009_s4 + $0x28] sm:$0xff]  }
 0x40e   : > { %v2286_v32 = vpop.f32.mrf.mxu0 }
 0x40f   : > { %v2340_v33 = vpack.c.bf16 %v2286_v32, %v2286_v32  ;;  %v3724_v32 = vld [vmem:[%s4009_s4 + $0x60] sm:$0xff]  }
 0x410   : > { %v3578_v34 = vpop.f32.mrf.mxu0 }
 0x411   : > { %3601 = vmatmul.mubr.msk.bf16.vlgmr.msra.gmra.mxu0 %vm1911_vm3, %v2340_v33  ;;  %v3725_v33 = vld [vmem:[%s4009_s4 + $0x20] sm:$0xff]   ;;  %v3726_v34 = vld [vmem:[%s4009_s4 + $0x58] sm:$0xff]  }
 0x412   : > { %v2289_v35 = vpop.f32.mrf.mxu0  ;;  %v2332_v36 = vpop.f32.mrf.mxu1  ;;  %2642 = vmatpush1.bf16.msra.mxu0 %v3706_v8  ;;  %2665 = vmatprep.mubr.bf16.mxu0 %v3804_v15 }
 0x413   : > { %v2341_v37 = vpack.c.bf16 %v2332_v36, %v2332_v36  ;;  %2643 = vmatprep.subr.bf16.mxu0 %v3711_v10  ;;  %v3727_v35 = vld [vmem:[%s4009_s4 + $0x18] sm:$0xff]   ;;  %v3728_v36 = vld [vmem:[%s4009_s4 + $0x50] sm:$0xff]  }
 0x414   : > { %v3579_v38 = vpop.f32.mrf.mxu0  ;;  %v3584_v39 = vpop.f32.mrf.mxu1 }
 0x415   : > { %3607 = vmatmul.mubr.msk.bf16.vlgmr.msra.gmra.mxu1 %vm1911_vm3, %v2341_v37  ;;  %v3729_v37 = vld [vmem:[%s4009_s4 + $0x10] sm:$0xff]   ;;  %v3730_v38 = vld [vmem:[%s4009_s4 + $0x48] sm:$0xff]  }
 0x416   : > { %v2335_v40 = vpop.f32.mrf.mxu1  ;;  %2644 = vmatpush1.bf16.msra.mxu0 %v3709_v11  ;;  %3373 = vmatpush3.bf16.msra.mxu1 %v3719_v17  ;;  %v3731_v39 = vld [vmem:[%s4009_s4 + $0x8] sm:$0xff]  }
 0x417   : > { %2645 = vmatprep.subr.bf16.mxu0 %v3714_v12  ;;  %3374 = vmatprep.subr.bf16.mxu1 %v3720_v28  ;;  %v3732_v40 = vld [vmem:[%s4009_s4 + $0x40] sm:$0xff]  }
 0x418   : > { %v3585_v41 = vpop.f32.mrf.mxu1 }
 0x419   : > { %v3733_v41 = vld [vmem:[%s4009_s4] sm:$0xff]  }
 0x41a   : > { %2646 = vmatpush1.bf16.msra.mxu0 %v3712_v9  ;;  %3375 = vmatpush3.bf16.msra.mxu1 %v3721_v29 }
 0x41b   : > { %2647 = vmatprep.subr.bf16.mxu0 %v3717_v13  ;;  %3376 = vmatprep.subr.bf16.mxu1 %v3722_v30 }
 0x41e   : > { %2648 = vmatpush1.bf16.msra.mxu0 %v3715_v14  ;;  %3377 = vmatpush3.bf16.msra.mxu1 %v3723_v31 }
 0x41f   : > { %3378 = vmatprep.subr.bf16.mxu1 %v3724_v32 }
 0x422   : > { %3379 = vmatpush3.bf16.msra.mxu1 %v3725_v33 }
 0x423   : > { %3380 = vmatprep.subr.bf16.mxu1 %v3726_v34 }
 0x426   : > { %3381 = vmatpush3.bf16.msra.mxu1 %v3727_v35 }
 0x427   : > { %3382 = vmatprep.subr.bf16.mxu1 %v3728_v36 }
 0x42a   : > { %3383 = vmatpush3.bf16.msra.mxu1 %v3729_v37 }
 0x42b   : > { %3384 = vmatprep.subr.bf16.mxu1 %v3730_v38 }
 0x42e   : > { %3385 = vmatpush3.bf16.msra.mxu1 %v3731_v39 }
 0x42f   : > { %3386 = vmatprep.subr.bf16.mxu1 %v3732_v40 }
 0x432   : > { %3387 = vmatpush3.bf16.msra.mxu1 %v3733_v41 }
 0x4c1   : > { %v2385_v42 = vpop.f32.mrf.mxu0 }
 0x4c3   : > { %v3590_v43 = vpop.f32.mrf.mxu0 }
 0x4c5   : > { %v2388_v44 = vpop.f32.mrf.mxu0 }
 0x4c7   : > { %v3591_v2 = vpop.f32.mrf.mxu0 }
 0x4c8   : > { %v1017_v2 = vld [vmem:[%s4004_s3] sm:$0x3] }
 0x4c9   : > { %v2434_v45 = vpop.f32.mrf.mxu1 }
 0x4ca   : > { %v2538_v50 = vadd.f32 %v2434_v45, %v2385_v42  ;;  %v2580_v42 = vlaneseq }
 0x4cb   : > { %v3596_v46 = vpop.f32.mrf.mxu1 }
 0x4cc   : > { %v2581_v43 = vshrl.u32 %v2580_v42, 7 }
 0x4cd   : > { %v2437_v47 = vpop.f32.mrf.mxu1 }
 0x4ce   : > { %v2582_v44 = vsub.s32 0, %v2581_v43  ;;  %v2586_v45 = vsub.s32 1, %v2581_v43 }
 0x4cf   : > { %v3597_v48 = vpop.f32.mrf.mxu1 }
 0x4d0   : > { %v2583_v46 = vrot.slane %v1017_v2, %v2582_v44  ;;  %v2587_v47 = vrot.slane %v1017_v2, %v2586_v45 }
 0x4d1   : > { %v2483_v49 = vpop.f32.mrf.mxu0 }
 0x4d2   : > { %v2539_v52 = vadd.f32 %v2538_v50, %v2483_v49 }
 0x4d3   : > { %v3602_v51 = vpop.f32.mrf.mxu0 }
 0x4d5   : > { %v2486_v53 = vpop.f32.mrf.mxu0  ;;  %v2532_v55 = vpop.f32.mrf.mxu1 }
 0x4d6   : > { %v2540_v56 = vadd.f32 %v2539_v52, %v2532_v55 }
 0x4d7   : > { %v3603_v57 = vpop.f32.mrf.mxu0  ;;  %v3608_v58 = vpop.f32.mrf.mxu1 }
 0x4d8   : > { %v2547_v59 = vadd.f32 %v3245_v54, %v2540_v56 }
 0x4d9   : > { %v2535_v60 = vpop.f32.mrf.mxu1 }
 0x4da   : > { %v2548_v62 = vadd.f32 %v3758_v61, %v2547_v59 }
 0x4db   : > { %v3609_v63 = vpop.f32.mrf.mxu1 }
 0x4dc   : > { %v2550_v0 = vsel %vm2549_vm8, %v2548_v62, 0.0 }
 0x4dd   : > { %2551 = vadd.xlane.f32.xlu0 %v2550_v0 }
 0x566   : > { %v2552_v1 = vpop.xlane.xlu0 %2551 }
 0x567   : > { %v2554_v3 = vmul.f32 0.015625, %v2552_v1 }
 0x569   : > { %v2555_v4 = vsub.f32 %v2548_v62, %v2554_v3 }
 0x56b   : > { %v2556_v5 = vmul.f32 %v2555_v4, %v2555_v4 }
 0x56d   : > { %v2557_v6 = vsel %vm2549_vm8, %v2556_v5, 0.0 }
 0x56e   : > { %2558 = vadd.xlane.f32.xlu1 %v2557_v6 }
 0x5f7   : > { %v2559_v18 = vpop.xlane.xlu1 %2558 }
 0x5f8   : > { %v2560_v19 = vmul.f32 0.015625, %v2559_v18 }
 0x5fa   : > { %v2561_v20 = vadd.f32 1e-05, %v2560_v19 }
 0x5fc   : > { %3750 = vrsqrt.f32 %v2561_v20 }
 0x609   : > { %v3751_v21 = vpop.eup %3750 }
 0x60a   : > { %v2563_v23 = vmul.f32 %v3751_v21, %v2555_v4  ;;  %v3257_v4 = vld [vmem:[%s871_s29] ss:$0 sm:$0xff] }
 0x60b   : > { %v3274_v21 = vld [vmem:[%s874_s6] ss:$0 sm:$0xff] }
 0x60c   : > { %v2570_v25 = vmul.f32 %v3246_v22, %v2563_v23  ;;  %v3275_v23 = vld [vmem:[%s877_s11] ss:$0 sm:$0xff] }
 0x60e   : > { %v4287_v26 = vadd.f32 %v3247_v24, %v2570_v25 }
 0x610   : > { %v2578_v27 = vpack.c.bf16 %v4287_v26, %v4287_v26 }
 0x612   : > { %3256 = vmatmul.mubr.msk.bf16.vlgmr.msra.gmra.mxu0 %vm1103_vm2, %v2578_v27 }
 0x6d2   : > { %v2667_v48 = vpop.f32.mrf.mxu0 }
 0x6d3   : > { %v2668_v49 = vadd.f32 %v2667_v48, %v2583_v46 }
 0x6d4   : > { %v2669_v50 = vpop.f32.mrf.mxu0 }
 0x6d5   : > { %v2676_v51 = vmul.f32 0.70710677, %v2668_v49  ;;  %v2670_v52 = vadd.f32 %v2669_v50, %v2587_v47  ;;  %v2674_v59 = vmul.f32 0.5, %v2668_v49 }
 0x6d6   : > { %v2671_v53 = vpop.f32.mrf.mxu0 }
 0x6d7   : > { %3752 = verf.f32 %v2676_v51  ;;  %v2677_v54 = vmul.f32 0.70710677, %v2670_v52  ;;  %v2675_v60 = vmul.f32 0.5, %v2670_v52 }
 0x6d8   : > { %v2672_v55 = vpop.f32.mrf.mxu0 }
 0x6d9   : > { %3754 = verf.f32 %v2677_v54 }
 0x6e4   : > { %v3753_v56 = vpop.eup %3752 }
 0x6e5   : > { %v2680_v57 = vadd.f32 1.0, %v3753_v56 }
 0x6e6   : > { %v3755_v58 = vpop.eup %3754 }
 0x6e7   : > { %v2681_v61 = vadd.f32 1.0, %v3755_v58  ;;  %v2682_v62 = vmul.f32 %v2680_v57, %v2674_v59 }
 0x6e9   : > { %v2683_v63 = vmul.f32 %v2681_v61, %v2675_v60  ;;  %v2684_v1 = vpack.c.bf16 %v2682_v62, %v2682_v62 }
 0x6eb   : > { %v2685_v0 = vpack.c.bf16 %v2683_v63, %v2683_v63 }
 0x6ed   : > { %2820 = vmatprep.mubr.bf16.mxu1 %v2685_v0 }
 0x6ee   : > { %2821 = vmatmul.mubr.bf16.vlgmr.msra.gmra.mxu1 %v2684_v1 }
 0x7ae   : > { %v3388_v3 = vpop.f32.mrf.mxu1 }
 0x7b0   : > { %v3389_v5 = vpop.f32.mrf.mxu1 }
 0x7b1   : > { %v3390_v6 = vadd.f32 %v3389_v5, %v3388_v3 }
 0x7b2   : > { %v3391_v7 = vpop.f32.mrf.mxu1 }
 0x7b3   : > { %v2823_v8 = vadd.f32 %v3390_v6, %v3257_v4 }
 0x7b4   : > { %v3392_v10 = vpop.f32.mrf.mxu1 }
 0x7b5   : > { %v2828_v11 = vadd.f32 %v2823_v8, %v4287_v26 }
 0x7b7   : > { %v2829_v12 = vsel %vm2549_vm8, %v2828_v11, 0.0 }
 0x7b8   : > { %2830 = vadd.xlane.f32.xlu0 %v2829_v12 }
 0x841   : > { %v2831_v9 = vpop.xlane.xlu0 %2830 }
 0x842   : > { %v2832_v13 = vmul.f32 0.015625, %v2831_v9 }
 0x844   : > { %v2833_v14 = vsub.f32 %v2828_v11, %v2832_v13 }
 0x846   : > { %v2834_v15 = vmul.f32 %v2833_v14, %v2833_v14 }
 0x848   : > { %v2835_v16 = vsel %vm2549_vm8, %v2834_v15, 0.0 }
 0x849   : > { %2836 = vadd.xlane.f32.xlu1 %v2835_v16 }
 0x8d2   : > { %v2837_v17 = vpop.xlane.xlu1 %2836 }
 0x8d3   : > { %v2838_v18 = vmul.f32 0.015625, %v2837_v17 }
 0x8d5   : > { %v2839_v19 = vadd.f32 1e-05, %v2838_v18 }
 0x8d7   : > { %3756 = vrsqrt.f32 %v2839_v19 }
 0x8e4   : > { %v3757_v20 = vpop.eup %3756 }
 0x8e5   : > { %v2841_v22 = vmul.f32 %v3757_v20, %v2833_v14  ;;  %2859 = sbr.rel (%p3276_p8) target bundleno = 2284 (0x8ec), region = 104 }
 0x8e7   : > { %v2848_v24 = vmul.f32 %v3274_v21, %v2841_v22 }
 0x8e9   : > { %v2855_v25 = vadd.f32 %v3275_v23, %v2848_v24 }
 0x8eb   : > { %2860 = vst.msk [vmem:[%s4026_s12] sm:$0x1f] %vm2549_vm8, %v2855_v25 }
 0x8ec PF: > { %s4431_s7 = sld [smem:[#allocation2_spill]] }
 0x8f2   : > { %p3277_p9 = scmp.ne.s32.totalorder %s4431_s7, 1 }
 0x8f3   : > { %s4432_s6 = sld [smem:[#allocation24_spill]] (!%p3277_p9) }
 0x8f4   : > { %2864 = sbr.rel (%p3277_p9) target bundleno = 2606 (0xa2e), region = 108  ;;  %s4433_s27 = sld [smem:[#allocation25_spill]] (!%p3277_p9) }
 0x8f9   : > { %v2867_v26 = vsel %vm2549_vm8, %v2855_v25, 0.0  ;;  %v3278_v36 = vld [vmem:[%s4432_s6] ss:$0 sm:$0xff] }
 0x8fa   : > { %2868 = vadd.xlane.f32.xlu0 %v2867_v26  ;;  %v3279_v38 = vld [vmem:[%s4433_s27] ss:$0 sm:$0xff] }
 0x983   : > { %v2869_v27 = vpop.xlane.xlu0 %2868 }
 0x984   : > { %v2870_v28 = vmul.f32 0.015625, %v2869_v27 }
 0x986   : > { %v2871_v29 = vsub.f32 %v2855_v25, %v2870_v28 }
 0x988   : > { %v2872_v30 = vmul.f32 %v2871_v29, %v2871_v29 }
 0x98a   : > { %v2873_v31 = vsel %vm2549_vm8, %v2872_v30, 0.0 }
 0x98b   : > { %2874 = vadd.xlane.f32.xlu0 %v2873_v31 }
 0xa14   : > { %v2875_v32 = vpop.xlane.xlu0 %2874 }
 0xa15   : > { %v2876_v33 = vmul.f32 0.015625, %v2875_v32 }
 0xa17   : > { %v2877_v34 = vadd.f32 1e-05, %v2876_v33 }
 0xa19   : > { %3759 = vrsqrt.f32 %v2877_v34 }
 0xa26   : > { %v3760_v35 = vpop.eup %3759 }
 0xa27   : > { %v2879_v37 = vmul.f32 %v3760_v35, %v2871_v29 }
 0xa29   : > { %v2886_v39 = vmul.f32 %v3278_v36, %v2879_v37 }
 0xa2b   : > { %v2893_v40 = vadd.f32 %v3279_v38, %v2886_v39 }
 0xa2d   : > { %2894 = vst.msk [vmem:[%s4026_s12] sm:$0x1f] %vm2549_vm8, %v2893_v40 }
 0xa2e PF: > { %s4434_s30 = sld [smem:[#allocation5_spill]] }
 0xa2f   : > { %s4435_s0 = sld [smem:[#allocation3_spill]] }
 0xa30   : > { %s4437_s20 = sld [smem:[#allocation6_spill]] }
 0xa31   : > { %s4438_s21 = sld [smem:[#allocation7_spill]] }
 0xa34   : > { %s29_s1 = sadd.s32 1, %s4434_s30   ;;  %s4436_s30 = sld [smem:[#allocation4_spill]] }
 0xa35   : > { %p26_p10 = scmp.ge.s32.totalorder %s29_s1, 6  }
 0xa37   :  { %28 = sbr.rel (!%p26_p10) target bundleno = 15 (0xf), region = 186 }

// kernel: camft_forward.10
= control target key start
LH: loop header
LB: loop body
LE: loop exit
PB: predicated region body
PF: predicated region fallthrough
CT: control target
= control target key end

     0   :  { %s3902_s30 = smov 0   ;;  %s3904_s20 = smov 0   ;;  %s4353_s0 = inlined_call_operand.vmem [shape: f32[2,2,64], index: 0, kind: input, shape index: {}]   ;;  %s4354_s1 = inlined_call_operand.vmem [shape: bf16[2,4,64,16], index: 1, kind: input, shape index: {}]   ;;  %s4355_s2 = inlined_call_operand.vmem [shape: bf16[2,4,64,16], index: 2, kind: input, shape index: {}]   ;;  %s4356_s3 = inlined_call_operand.vmem [shape: bf16[2,4,64,16], index: 3, kind: input, shape index: {}]   ;;  %s4357_s4 = inlined_call_operand.vmem [shape: bf16[2,4,16,64], index: 4, kind: input, shape index: {}]   ;;  %s4358_s5 = inlined_call_operand.vmem [shape: f32[2,4,1,16], index: 5, kind: input, shape index: {}]   ;;  %s4359_s6 = inlined_call_operand.vmem [shape: f32[2,4,1,16], index: 6, kind: input, shape index: {}]   ;;  %s4360_s7 = inlined_call_operand.vmem [shape: f32[2,4,1,16], index: 7, kind: input, shape index: {}]   ;;  %s4361_s8 = inlined_call_operand.vmem [shape: f32[2,1,64], index: 8, kind: input, shape index: {}]   ;;  %s4362_s9 = inlined_call_operand.vmem [shape: f32[2,1,64], index: 9, kind: input, shape index: {}]   ;;  %s4363_s10 = inlined_call_operand.vmem [shape: f32[2,1,64], index: 10, kind: input, shape index: {}]   ;;  %s4364_s11 = inlined_call_operand.vmem [shape: bf16[2,64,256], index: 11, kind: input, shape index: {}]   ;;  %s4365_s12 = inlined_call_operand.vmem [shape: f32[2,1,256], index: 12, kind: input, shape index: {}]   ;;  %s4366_s13 = inlined_call_operand.vmem [shape: bf16[2,256,64], index: 13, kind: input, shape index: {}]   ;;  %s4367_s14 = inlined_call_operand.vmem [shape: f32[2,1,64], index: 14, kind: input, shape index: {}]   ;;  %s4368_s15 = inlined_call_operand.vmem [shape: f32[2,1,64], index: 15, kind: input, shape index: {}]   ;;  %s4369_s16 = inlined_call_operand.vmem [shape: f32[2,1,64], index: 16, kind: input, shape index: {}]   ;;  %s4370_s17 = inlined_call_operand.vmem [shape: f32[1,64], index: 17, kind: input, shape index: {}]   ;;  %s4371_s18 = inlined_call_operand.vmem [shape: f32[1,64], index: 18, kind: input, shape index: {}]   ;;  %s4372_s19 = inlined_call_operand.vmem [shape: f32[2,2,64], index: 19, kind: output, shape index: {}]  }
   0x1   :  { %4382 = sst [smem:[#allocation13_spill]] %s4353_s0  ;;  %s3900_s0 = smov 0  }
   0x2   :  { %4383 = sst [smem:[#allocation14_spill]] %s4354_s1  ;;  %s3906_s21 = smov 0  }
   0x3   :  { %4384 = sst [smem:[#allocation15_spill]] %s4355_s2  ;;  %s3908_s1 = smov 0  }
   0x4   :  { %4385 = sst [smem:[#allocation16_spill]] %s4356_s3 }
   0x5   :  { %4386 = sst [smem:[#allocation17_spill]] %s4357_s4 }
   0x6   :  { %4387 = sst [smem:[#allocation18_spill]] %s4358_s5 }
   0x7   :  { %4388 = sst [smem:[#allocation19_spill]] %s4359_s6 }
   0x8   :  { %4389 = sst [smem:[#allocation20_spill]] %s4360_s7 }
   0x9   :  { %4390 = sst [smem:[#allocation21_spill]] %s4364_s11 }
   0xa   :  { %4391 = sst [smem:[#allocation22_spill]] %s4365_s12 }
   0xb   :  { %4392 = sst [smem:[#allocation23_spill]] %s4369_s16 }
   0xc   :  { %4393 = sst [smem:[#allocation24_spill]] %s4370_s17 }
   0xd   :  { %4394 = sst [smem:[#allocation25_spill]] %s4371_s18 }
   0xe   :  { %4395 = sst [smem:[#allocation26_spill]] %s4372_s19 }
   0xf LB: > { %4396 = sst [smem:[#allocation2_spill]] %s3779_s0  ;;  %s38_s22 = sadd.s32 1, %s3787_s20  ;;  %s3795_s1 = sphi %s3908_s1, %s29_s1   ;;  %s3791_s21 = sphi %s3906_s21, %s4437_s21   ;;  %s3787_s20 = sphi %s3904_s20, %s4436_s20   ;;  %s3783_s30 = sphi %s3902_s30, %s4435_s30   ;;  %s3779_s0 = sphi %s3900_s0, %s4434_s0  }
  0x10   : > { %4397 = sst [smem:[#allocation3_spill]] %s3787_s20  ;;  %s41_s2 = sadd.s32 1, %s3791_s21 }
  0x11   : > { %4398 = sst [smem:[#allocation4_spill]] %s3791_s21  ;;  %p39_p0 = scmp.ge.s32.totalorder %s38_s22, 2 }
  0x12   : > { %4399 = sst [smem:[#allocation5_spill]] %s3795_s1  ;;  %p3134_p1 = scmp.ge.s32.totalorder %s3795_s1, 1 }
  0x13   : > { %p692_p2 = scmp.lt.s32.totalorder %s3795_s1, 5  ;;  %s4439_s22 = smov (%p39_p0, %s38_s22), 0 }
  0x14   : > { %4400 = sst [smem:[#allocation6_spill]] %s4439_s22  ;;  %s4441_s2 = smov (!%p39_p0, %s41_s2), %s3791_s21 }
  0x15   : > { %p693_p3 = pnand %p3134_p1, %p692_p2  ;;  %p43_p4 = scmp.ge.s32.totalorder %s4441_s2, 2 }
  0x17   : > { %s4443_s2 = smov (%p43_p4, %s4441_s2), 0  ;;  %696 = sbr.rel (%p693_p3) target bundleno = 2606 (0xa2e), region = 96 }
  0x18   : > { %4401 = sst [smem:[#allocation7_spill]] %s4443_s2 }
  0x1c   : > { %p810_p5 = scmp.lt.s32.totalorder %s3783_s30, 1  ;;  %p814_p6 = scmp.lt.s32.totalorder %s3779_s0, 1 }
  0x1d   : > { %s4402_s26 = sld [smem:[#allocation13_spill]] }
  0x1e   : > { %s4445_s30 = smov (!%p810_p5, %s3783_s30), 1  ;;  %s4403_s22 = sld [smem:[#allocation14_spill]] }
  0x1f   : > { %s3934_s23 = scalar_select %p814_p6, %s3779_s0, 1 }
  0x20   : > { %s3135_s24 = sshll.u32 %s4445_s30, 1  ;;  %s4405_s18 = sld [smem:[#allocation15_spill]] }
  0x21   : > { %s3279_s28 = sshll.u32 %s3934_s23, 7  ;;  %s4406_s16 = sld [smem:[#allocation16_spill]] }
  0x22   : > { %s3282_s25 = sshll.u32 %s3934_s23, 5  ;;  %s4408_s4 = sld [smem:[#allocation17_spill]] }
  0x23   : > { %s813_s27 = scalar_lea.vmem %s4402_s26, %s3135_s24  ;;  %s4410_s5 = sld [smem:[#allocation18_spill]] }
  0x24   : > { %s3943_s21 = scalar_lea.vmem %s4403_s22, %s3279_s28  ;;  %s3144_s22 = sshll.u32 %s3934_s23, 2 }
  0x25   : > { %4404 = sst [smem:[#allocation8_spill]] %s3943_s21  ;;  %s3283_s20 = sshll.u32 %s3934_s23, 6 }
  0x26   : > { %s3948_s17 = scalar_lea.vmem %s4405_s18, %s3279_s28  ;;  %s4412_s6 = sld [smem:[#allocation19_spill]] }
  0x27   : > { %s3953_s30 = scalar_lea.vmem %s4406_s16, %s3279_s28  ;;  %s4414_s7 = sld [smem:[#allocation20_spill]] }
  0x28   : > { %4407 = sst [smem:[#allocation9_spill]] %s3953_s30  ;;  %s3959_s2 = scalar_lea.vmem %s4408_s4, %s3282_s25 }
  0x29   : > { %4409 = sst [smem:[#allocation10_spill]] %s3959_s2  ;;  %s3965_s18 = scalar_lea.vmem %s4410_s5, %s3144_s22 }
  0x2a   : > { %4411 = sst [smem:[#allocation11_spill]] %s3965_s18  ;;  %s3149_s1 = sshll.u32 %s3934_s23, 1 }
  0x2b   : > { %s4415_s11 = sld [smem:[#allocation21_spill]]  ;;  %s4004_s4 = scalar_lea.vmem %s4366_s13, %s3279_s28 }
  0x2c   : > { %s3970_s19 = scalar_lea.vmem %s4412_s6, %s3144_s22  ;;  %s4416_s12 = sld [smem:[#allocation22_spill]] }
  0x2d   : > { %4413 = sst [smem:[#allocation12_spill]] %s3970_s19  ;;  %s3975_s30 = scalar_lea.vmem %s4414_s7, %s3144_s22 }
  0x2e   : > { %s871_s29 = scalar_lea.vmem %s4367_s14, %s3934_s23  ;;  %s874_s6 = scalar_lea.vmem %s4368_s15, %s3934_s23 }
  0x2f   : > { %s4417_s7 = sld [smem:[#allocation23_spill]] }
  0x30   : > { %s4418_s0 = sld [smem:[#allocation26_spill]] }
  0x31   : > { %s3994_s16 = scalar_lea.vmem %s4415_s11, %s3283_s20  ;;  %s4419_s25 = sld [smem:[#allocation2_spill]] }
  0x32   : > { %s3999_s3 = scalar_lea.vmem %s4416_s12, %s3149_s1 }
  0x35   : > { %s877_s11 = scalar_lea.vmem %s4417_s7, %s3934_s23 }
  0x36   : > { %s4021_s12 = scalar_lea.vmem %s4418_s0, %s3135_s24 }
  0x37   : > { %p3153_p7 = scmp.ne.s32.totalorder %s4419_s25, 0 }
  0x39   : > { %886 = sbr.rel (%p3153_p7) target bundleno = 64 (0x40), region = 100 }
  0x3e   : > { %v887_v0 = vld [vmem:[%s813_s27] sm:$0x3]  ;;  %vm888_vm0 = vcmask 517120  }
  0x3f   : > { %889 = vst.msk [vmem:[%s4021_s12] sm:$0x3] %vm888_vm0, %v887_v0 }
  0x40 PF: > { %s4420_s28 = sld [smem:[#allocation8_spill]]  ;;  %v3797_v2 = vmov 0.0   ;;  %vm3798_vm1 = vmmov 0   ;;  %vm1103_vm2 = vcmask 523264   ;;  %v3666_v20 = vld [vmem:[%s3948_s17 + $0x18] sm:$0xff]   ;;  %v3668_v22 = vld [vmem:[%s3948_s17 + $0x10] sm:$0xff]   ;;  %s4425_s21 = scalar_lea.vmem %s4361_s8, %s3934_s23 }
  0x41   : > { %3391 = vmatprep.subr.bf16.mxu0 %v3797_v2  ;;  %3403 = vmatprep.subr.bf16.mxu1 %v3797_v2  ;;  %v3667_v21 = vld [vmem:[%s3948_s17 + $0x38] sm:$0xff]   ;;  %v3669_v23 = vld [vmem:[%s3948_s17 + $0x30] sm:$0xff]   ;;  %v3670_v24 = vld [vmem:[%s3948_s17 + $0x8] sm:$0xff]   ;;  %s4421_s7 = sld [smem:[#allocation9_spill]]  ;;  %vm1911_vm3 = vcmask 130048   ;;  %vm2153_vm4 = vcmask 1040384   ;;  %s4426_s2 = scalar_lea.vmem %s4362_s9, %s3934_s23 }
  0x42   : > { %3399 = vmatprep.mubr.msk.bf16.mxu0 %vm3798_vm1, %v3797_v2  ;;  %3411 = vmatprep.mubr.msk.bf16.mxu1 %vm3798_vm1, %v3797_v2  ;;  %v3671_v25 = vld [vmem:[%s3948_s17 + $0x28] sm:$0xff]   ;;  %v3672_v26 = vld [vmem:[%s3948_s17] sm:$0xff]   ;;  %v3674_v28 = vld [vmem:[%s3948_s17 + $0x58] sm:$0xff]   ;;  %s4423_s24 = sld [smem:[#allocation11_spill]]  ;;  %vm2096_vm5 = vcmask 9216   ;;  %vm2149_vm6 = vcmask 15360   ;;  %s4427_s20 = scalar_lea.vmem %s4363_s10, %s3934_s23 }
  0x43   : > { %v3673_v27 = vld [vmem:[%s3948_s17 + $0x20] sm:$0xff]   ;;  %v3675_v29 = vld [vmem:[%s3948_s17 + $0x78] sm:$0xff]   ;;  %v3676_v30 = vld [vmem:[%s3948_s17 + $0x50] sm:$0xff]   ;;  %s4424_s27 = sld [smem:[#allocation10_spill]]  ;;  %vm2546_vm7 = vcmask 517120  }
  0x44   : > { %v3677_v31 = vld [vmem:[%s3948_s17 + $0x70] sm:$0xff]   ;;  %v3678_v32 = vld [vmem:[%s3948_s17 + $0x48] sm:$0xff]   ;;  %v3680_v34 = vld [vmem:[%s3948_s17 + $0x40] sm:$0xff]  }
  0x45   : > { %v3679_v33 = vld [vmem:[%s3948_s17 + $0x68] sm:$0xff]   ;;  %v3681_v35 = vld [vmem:[%s3948_s17 + $0x60] sm:$0xff]   ;;  %s4422_s17 = sld [smem:[#allocation12_spill]] }
  0x46   : > { %v3650_v1 = vld [vmem:[%s4420_s28 + $0x18] sm:$0xff]   ;;  %v3652_v4 = vld [vmem:[%s4420_s28 + $0x10] sm:$0xff]   ;;  %v3654_v6 = vld [vmem:[%s4420_s28 + $0x8] sm:$0xff]  }
  0x47   : > { %v3651_v3 = vld [vmem:[%s4420_s28 + $0x38] sm:$0xff]   ;;  %3392 = vmatpush3.bf16.msra.mxu0 %v3650_v1  ;;  %v3653_v5 = vld [vmem:[%s4420_s28 + $0x30] sm:$0xff]   ;;  %v3655_v7 = vld [vmem:[%s4420_s28 + $0x28] sm:$0xff]  }
  0x48   : > { %3404 = vmatpush3.bf16.msra.mxu1 %v3651_v3  ;;  %3393 = vmatprep.subr.bf16.mxu0 %v3797_v2  ;;  %v3656_v8 = vld [vmem:[%s4420_s28] sm:$0xff]   ;;  %v3658_v12 = vld [vmem:[%s4420_s28 + $0x58] sm:$0xff]   ;;  %v3660_v14 = vld [vmem:[%s4420_s28 + $0x50] sm:$0xff]  }
  0x49   : > { %3405 = vmatprep.subr.bf16.mxu1 %v3797_v2  ;;  %v1053_v9 = vld [vmem:[%s4021_s12] sm:$0x3]  ;;  %v3659_v13 = vld [vmem:[%s4420_s28 + $0x78] sm:$0xff]   ;;  %v3661_v15 = vld [vmem:[%s4420_s28 + $0x70] sm:$0xff]  }
  0x4a   : > { %v3657_v10 = vld [vmem:[%s4420_s28 + $0x20] sm:$0xff]   ;;  %v4046_v11 = vpack.c.bf16 %v1053_v9, %v1053_v9  ;;  %v3662_v16 = vld [vmem:[%s4420_s28 + $0x48] sm:$0xff]   ;;  %v3682_v36 = vld [vmem:[%s4421_s7 + $0x18] sm:$0xff]  }
  0x4b   : > { %3394 = vmatpush3.bf16.msra.mxu0 %v3652_v4  ;;  %v3663_v17 = vld [vmem:[%s4420_s28 + $0x68] sm:$0xff]   ;;  %v3664_v18 = vld [vmem:[%s4420_s28 + $0x40] sm:$0xff]   ;;  %v3683_v37 = vld [vmem:[%s4421_s7 + $0x10] sm:$0xff]  }
  0x4c   : > { %3406 = vmatpush3.bf16.msra.mxu1 %v3653_v5  ;;  %3395 = vmatprep.subr.bf16.mxu0 %v3797_v2  ;;  %v3665_v19 = vld [vmem:[%s4420_s28 + $0x60] sm:$0xff]   ;;  %v3684_v38 = vld [vmem:[%s4421_s7 + $0x8] sm:$0xff]   ;;  %v3686_v40 = vld [vmem:[%s4421_s7 + $0x58] sm:$0xff]   ;;  %s4429_s28 = sld [smem:[#allocation2_spill]] }
  0x4d   : > { %3407 = vmatprep.subr.bf16.mxu1 %v3797_v2  ;;  %v3685_v39 = vld [vmem:[%s4421_s7] sm:$0xff]   ;;  %v3687_v41 = vld [vmem:[%s4421_s7 + $0x38] sm:$0xff]   ;;  %v3688_v42 = vld [vmem:[%s4421_s7 + $0x50] sm:$0xff]  }
  0x4e   : > { %v3689_v43 = vld [vmem:[%s4421_s7 + $0x30] sm:$0xff]   ;;  %v3690_v44 = vld [vmem:[%s4421_s7 + $0x48] sm:$0xff]   ;;  %v3692_v46 = vld [vmem:[%s4421_s7 + $0x40] sm:$0xff]  }
  0x4f   : > { %3396 = vmatpush3.bf16.msra.mxu0 %v3654_v6  ;;  %v3691_v45 = vld [vmem:[%s4421_s7 + $0x28] sm:$0xff]   ;;  %v3693_v47 = vld [vmem:[%s4421_s7 + $0x20] sm:$0xff]   ;;  %v3694_v48 = vld [vmem:[%s4421_s7 + $0x78] sm:$0xff]  }
  0x50   : > { %3408 = vmatpush3.bf16.msra.mxu1 %v3655_v7  ;;  %3397 = vmatprep.subr.bf16.mxu0 %v3797_v2  ;;  %v3695_v49 = vld [vmem:[%s4421_s7 + $0x70] sm:$0xff]   ;;  %v3696_v50 = vld [vmem:[%s4421_s7 + $0x68] sm:$0xff]   ;;  %v3697_v51 = vld [vmem:[%s4421_s7 + $0x60] sm:$0xff]  }
  0x51   : > { %3409 = vmatprep.subr.bf16.mxu1 %v3797_v2  ;;  %v3178_v5 = vld [vmem:[%s4422_s17] ss:$0 sm:$0xff] }
  0x52   : > { %v3154_v6 = vld [vmem:[%s4423_s24] ss:$0 sm:$0xff]  ;;  %p3273_p8 = scmp.ge.s32.totalorder %s4429_s28, 1 }
  0x53   : > { %3398 = vmatpush3.bf16.msra.mxu0 %v3656_v8 }
  0x54   : > { %3410 = vmatpush3.bf16.msra.mxu1 %v3657_v10  ;;  %3415 = vmatprep.subr.bf16.mxu0 %v3797_v2  ;;  %v3179_v10 = vld [vmem:[%s4422_s17 + $0x1] ss:$0 sm:$0xff] }
  0x55   : > { %3427 = vmatprep.subr.bf16.mxu1 %v3797_v2 }
  0x56   : > { %3400 = vmatmul.mubr.msk.bf16.vlgmr.msra.gmra.mxu0 %vm1103_vm2, %v4046_v11 }
  0x57   : > { %3412 = vmatmul.mubr.msk.bf16.vlgmr.msra.gmra.mxu1 %vm1103_vm2, %v4046_v11  ;;  %3416 = vmatpush3.bf16.msra.mxu0 %v3658_v12 }
  0x58   : > { %3428 = vmatpush3.bf16.msra.mxu1 %v3659_v13  ;;  %3417 = vmatprep.subr.bf16.mxu0 %v3797_v2 }
  0x59   : > { %3429 = vmatprep.subr.bf16.mxu1 %v3797_v2  ;;  %3423 = vmatprep.mubr.msk.bf16.mxu0 %vm3798_vm1, %v3797_v2 }
  0x5a   : > { %3435 = vmatprep.mubr.msk.bf16.mxu1 %vm3798_vm1, %v3797_v2 }
  0x5b   : > { %3418 = vmatpush3.bf16.msra.mxu0 %v3660_v14 }
  0x5c   : > { %3430 = vmatpush3.bf16.msra.mxu1 %v3661_v15  ;;  %3419 = vmatprep.subr.bf16.mxu0 %v3797_v2 }
  0x5d   : > { %3431 = vmatprep.subr.bf16.mxu1 %v3797_v2 }
  0x5f   : > { %3420 = vmatpush3.bf16.msra.mxu0 %v3662_v16 }
  0x60   : > { %3432 = vmatpush3.bf16.msra.mxu1 %v3663_v17  ;;  %3421 = vmatprep.subr.bf16.mxu0 %v3797_v2 }
  0x61   : > { %3433 = vmatprep.subr.bf16.mxu1 %v3797_v2 }
  0x63   : > { %3422 = vmatpush3.bf16.msra.mxu0 %v3664_v18 }
  0x64   : > { %3434 = vmatpush3.bf16.msra.mxu1 %v3665_v19  ;;  %3439 = vmatprep.subr.bf16.mxu0 %v3797_v2 }
  0x65   : > { %3451 = vmatprep.subr.bf16.mxu1 %v3797_v2 }
  0x66   : > { %3424 = vmatmul.mubr.msk.bf16.vlgmr.msra.gmra.mxu0 %vm1103_vm2, %v4046_v11 }
  0x67   : > { %3436 = vmatmul.mubr.msk.bf16.vlgmr.msra.gmra.mxu1 %vm1103_vm2, %v4046_v11  ;;  %3440 = vmatpush3.bf16.msra.mxu0 %v3666_v20 }
  0x68   : > { %3452 = vmatpush3.bf16.msra.mxu1 %v3667_v21  ;;  %3441 = vmatprep.subr.bf16.mxu0 %v3797_v2 }
  0x69   : > { %3453 = vmatprep.subr.bf16.mxu1 %v3797_v2  ;;  %3447 = vmatprep.mubr.msk.bf16.mxu0 %vm3798_vm1, %v3797_v2 }
  0x6a   : > { %3459 = vmatprep.mubr.msk.bf16.mxu1 %vm3798_vm1, %v3797_v2 }
  0x6b   : > { %3442 = vmatpush3.bf16.msra.mxu0 %v3668_v22  ;;  %v3155_v22 = vld [vmem:[%s4423_s24 + $0x1] ss:$0 sm:$0xff] }
  0x6c   : > { %3454 = vmatpush3.bf16.msra.mxu1 %v3669_v23  ;;  %3443 = vmatprep.subr.bf16.mxu0 %v3797_v2 }
  0x6d   : > { %3455 = vmatprep.subr.bf16.mxu1 %v3797_v2 }
  0x6f   : > { %3444 = vmatpush3.bf16.msra.mxu0 %v3670_v24 }
  0x70   : > { %3456 = vmatpush3.bf16.msra.mxu1 %v3671_v25  ;;  %3445 = vmatprep.subr.bf16.mxu0 %v3797_v2 }
  0x71   : > { %3457 = vmatprep.subr.bf16.mxu1 %v3797_v2 }
  0x73   : > { %3446 = vmatpush3.bf16.msra.mxu0 %v3672_v26 }
  0x74   : > { %3458 = vmatpush3.bf16.msra.mxu1 %v3673_v27  ;;  %3463 = vmatprep.subr.bf16.mxu0 %v3797_v2  ;;  %v3180_v27 = vld [vmem:[%s4422_s17 + $0x2] ss:$0 sm:$0xff] }
  0x75   : > { %3475 = vmatprep.subr.bf16.mxu1 %v3797_v2 }
  0x76   : > { %3448 = vmatmul.mubr.msk.bf16.vlgmr.msra.gmra.mxu0 %vm1103_vm2, %v4046_v11 }
  0x77   : > { %3460 = vmatmul.mubr.msk.bf16.vlgmr.msra.gmra.mxu1 %vm1103_vm2, %v4046_v11  ;;  %3464 = vmatpush3.bf16.msra.mxu0 %v3674_v28 }
  0x78   : > { %3476 = vmatpush3.bf16.msra.mxu1 %v3675_v29  ;;  %3465 = vmatprep.subr.bf16.mxu0 %v3797_v2  ;;  %v3181_v29 = vld [vmem:[%s4422_s17 + $0x3] ss:$0 sm:$0xff] }
  0x79   : > { %3477 = vmatprep.subr.bf16.mxu1 %v3797_v2  ;;  %3471 = vmatprep.mubr.msk.bf16.mxu0 %vm3798_vm1, %v3797_v2 }
  0x7a   : > { %3483 = vmatprep.mubr.msk.bf16.mxu1 %vm3798_vm1, %v3797_v2 }
  0x7b   : > { %3466 = vmatpush3.bf16.msra.mxu0 %v3676_v30  ;;  %v3156_v30 = vld [vmem:[%s4423_s24 + $0x2] ss:$0 sm:$0xff] }
  0x7c   : > { %3478 = vmatpush3.bf16.msra.mxu1 %v3677_v31  ;;  %3467 = vmatprep.subr.bf16.mxu0 %v3797_v2 }
  0x7d   : > { %3479 = vmatprep.subr.bf16.mxu1 %v3797_v2 }
  0x7f   : > { %3468 = vmatpush3.bf16.msra.mxu0 %v3678_v32  ;;  %v3157_v32 = vld [vmem:[%s4423_s24 + $0x3] ss:$0 sm:$0xff] }
  0x80   : > { %3480 = vmatpush3.bf16.msra.mxu1 %v3679_v33  ;;  %3469 = vmatprep.subr.bf16.mxu0 %v3797_v2 }
  0x81   : > { %3481 = vmatprep.subr.bf16.mxu1 %v3797_v2 }
  0x83   : > { %3470 = vmatpush3.bf16.msra.mxu0 %v3680_v34 }
  0x84   : > { %3482 = vmatpush3.bf16.msra.mxu1 %v3681_v35  ;;  %3487 = vmatprep.subr.bf16.mxu0 %v3797_v2 }
  0x85   : > { %3499 = vmatprep.subr.bf16.mxu1 %v3797_v2 }
  0x86   : > { %3472 = vmatmul.mubr.msk.bf16.vlgmr.msra.gmra.mxu0 %vm1103_vm2, %v4046_v11 }
  0x87   : > { %3484 = vmatmul.mubr.msk.bf16.vlgmr.msra.gmra.mxu1 %vm1103_vm2, %v4046_v11  ;;  %3495 = vmatprep.mubr.msk.bf16.mxu0 %vm3798_vm1, %v3797_v2 }
  0x88   : > { %3507 = vmatprep.mubr.msk.bf16.mxu1 %vm3798_vm1, %v3797_v2  ;;  %3488 = vmatpush3.bf16.msra.mxu0 %v3682_v36 }
  0x89   : > { %3489 = vmatprep.subr.bf16.mxu0 %v3797_v2  ;;  %3500 = vmatpush3.bf16.msra.mxu1 %v3687_v41 }
  0x8a   : > { %3501 = vmatprep.subr.bf16.mxu1 %v3797_v2 }
  0x8c   : > { %3490 = vmatpush3.bf16.msra.mxu0 %v3683_v37 }
  0x8d   : > { %3491 = vmatprep.subr.bf16.mxu0 %v3797_v2  ;;  %3502 = vmatpush3.bf16.msra.mxu1 %v3689_v43 }
  0x8e   : > { %3503 = vmatprep.subr.bf16.mxu1 %v3797_v2 }
  0x90   : > { %3492 = vmatpush3.bf16.msra.mxu0 %v3684_v38 }
  0x91   : > { %3493 = vmatprep.subr.bf16.mxu0 %v3797_v2  ;;  %3504 = vmatpush3.bf16.msra.mxu1 %v3691_v45 }
  0x92   : > { %3505 = vmatprep.subr.bf16.mxu1 %v3797_v2 }
  0x94   : > { %3494 = vmatpush3.bf16.msra.mxu0 %v3685_v39 }
  0x95   : > { %3511 = vmatprep.subr.bf16.mxu0 %v3797_v2  ;;  %3506 = vmatpush3.bf16.msra.mxu1 %v3693_v47 }
  0x96   : > { %3523 = vmatprep.subr.bf16.mxu1 %v3797_v2 }
  0x97   : > { %3496 = vmatmul.mubr.msk.bf16.vlgmr.msra.gmra.mxu0 %vm1103_vm2, %v4046_v11 }
  0x98   : > { %3512 = vmatpush3.bf16.msra.mxu0 %v3686_v40  ;;  %3519 = vmatprep.mubr.msk.bf16.mxu0 %vm3798_vm1, %v3797_v2 }
  0x99   : > { %3513 = vmatprep.subr.bf16.mxu0 %v3797_v2  ;;  %3508 = vmatmul.mubr.msk.bf16.vlgmr.msra.gmra.mxu1 %vm1103_vm2, %v4046_v11 }
  0x9a   : > { %3524 = vmatpush3.bf16.msra.mxu1 %v3694_v48  ;;  %3531 = vmatprep.mubr.msk.bf16.mxu1 %vm3798_vm1, %v3797_v2 }
  0x9b   : > { %3525 = vmatprep.subr.bf16.mxu1 %v3797_v2 }
  0x9c   : > { %3514 = vmatpush3.bf16.msra.mxu0 %v3688_v42 }
  0x9d   : > { %3515 = vmatprep.subr.bf16.mxu0 %v3797_v2 }
  0x9e   : > { %3526 = vmatpush3.bf16.msra.mxu1 %v3695_v49 }
  0x9f   : > { %3527 = vmatprep.subr.bf16.mxu1 %v3797_v2 }
  0xa0   : > { %3516 = vmatpush3.bf16.msra.mxu0 %v3690_v44 }
  0xa1   : > { %3517 = vmatprep.subr.bf16.mxu0 %v3797_v2 }
  0xa2   : > { %3528 = vmatpush3.bf16.msra.mxu1 %v3696_v50 }
  0xa3   : > { %3529 = vmatprep.subr.bf16.mxu1 %v3797_v2 }
  0xa4   : > { %3518 = vmatpush3.bf16.msra.mxu0 %v3692_v46 }
  0xa5   : > { %3535 = vmatprep.subr.bf16.mxu0 %v3797_v2 }
  0xa6   : > { %3530 = vmatpush3.bf16.msra.mxu1 %v3697_v51 }
  0xa7   : > { %3520 = vmatmul.mubr.msk.bf16.vlgmr.msra.gmra.mxu0 %vm1103_vm2, %v4046_v11  ;;  %3553 = vmatprep.subr.bf16.mxu1 %v3797_v2 }
  0xa8   : > { %3537 = vmatprep.mubr.msk.bf16.mxu0 %vm3798_vm1, %v3797_v2 }
  0xa9   : > { %3532 = vmatmul.mubr.msk.bf16.vlgmr.msra.gmra.mxu1 %vm1103_vm2, %v4046_v11 }
  0xaa   : > { %3555 = vmatprep.mubr.msk.bf16.mxu1 %vm3798_vm1, %v3797_v2 }
 0x116   : > { %v1141_v52 = vpop.f32.mrf.mxu0 }
 0x117   : > { %v1205_v53 = vpop.f32.mrf.mxu1  ;;  %v1142_v12 = vadd.f32 %v3154_v6, %v1141_v52 }
 0x118   : > { %v3401_v54 = vpop.f32.mrf.mxu0  ;;  %v1206_v25 = vadd.f32 %v3155_v22, %v1205_v53  ;;  %v3202_v53 = vld [vmem:[%s3975_s30] ss:$0 sm:$0xff] }
 0x119   : > { %v3413_v55 = vpop.f32.mrf.mxu1  ;;  %v1899_v20 = vmul.f32 0.25, %v1142_v12 }
 0x11a   : > { %v1144_v56 = vpop.f32.mrf.mxu0  ;;  %v1900_v28 = vmul.f32 0.25, %v1206_v25 }
 0x11b   : > { %v1208_v57 = vpop.f32.mrf.mxu1  ;;  %v1903_v24 = vpack.c.bf16 %v1899_v20, %v1899_v20 }
 0x11c   : > { %v3402_v58 = vpop.f32.mrf.mxu0  ;;  %v1904_v37 = vpack.c.bf16 %v1900_v28, %v1900_v28 }
 0x11d   : > { %v3414_v59 = vpop.f32.mrf.mxu1 }
 0x126   : > { %v1269_v60 = vpop.f32.mrf.mxu0 }
 0x127   : > { %v1333_v61 = vpop.f32.mrf.mxu1  ;;  %v1270_v38 = vadd.f32 %v3156_v30, %v1269_v60 }
 0x128   : > { %v3425_v62 = vpop.f32.mrf.mxu0  ;;  %v1334_v41 = vadd.f32 %v3157_v32, %v1333_v61  ;;  %v3204_v61 = vld [vmem:[%s3975_s30 + $0x2] ss:$0 sm:$0xff] }
 0x129   : > { %v3437_v63 = vpop.f32.mrf.mxu1  ;;  %v1901_v48 = vmul.f32 0.25, %v1270_v38 }
 0x12a   : > { %v1272_v0 = vpop.f32.mrf.mxu0  ;;  %v1902_v50 = vmul.f32 0.25, %v1334_v41 }
 0x12b   : > { %v1336_v1 = vpop.f32.mrf.mxu1  ;;  %v1905_v51 = vpack.c.bf16 %v1901_v48, %v1901_v48 }
 0x12c   : > { %v3426_v3 = vpop.f32.mrf.mxu0  ;;  %v1906_v52 = vpack.c.bf16 %v1902_v50, %v1902_v50  ;;  %v3203_v1 = vld [vmem:[%s3975_s30 + $0x1] ss:$0 sm:$0xff] }
 0x12d   : > { %v3438_v4 = vpop.f32.mrf.mxu1 }
 0x136   : > { %v1421_v7 = vpop.f32.mrf.mxu0 }
 0x137   : > { %v1422_v8 = vadd.f32 %v3178_v5, %v1421_v7  ;;  %v1485_v9 = vpop.f32.mrf.mxu1 }
 0x138   : > { %v3449_v11 = vpop.f32.mrf.mxu0  ;;  %v1486_v17 = vadd.f32 %v3179_v10, %v1485_v9 }
 0x139   : > { %v1907_v13 = vpack.c.bf16 %v1422_v8, %v1422_v8  ;;  %v3461_v14 = vpop.f32.mrf.mxu1 }
 0x13a   : > { %v1424_v15 = vpop.f32.mrf.mxu0  ;;  %v1908_v23 = vpack.c.bf16 %v1486_v17, %v1486_v17  ;;  %v3205_v14 = vld [vmem:[%s3975_s30 + $0x3] ss:$0 sm:$0xff] }
 0x13b   : > { %v1916_v16 = vsel %vm1911_vm3, %v1907_v13, 0  ;;  %v1488_v18 = vpop.f32.mrf.mxu1 }
 0x13c   : > { %v3450_v19 = vpop.f32.mrf.mxu0  ;;  %3536 = vmatpush3.bf16.xpose.msra.mxu0 %v1916_v16  ;;  %v1962_v26 = vsel %vm1911_vm3, %v1908_v23, 0 }
 0x13d   : > { %v3462_v21 = vpop.f32.mrf.mxu1  ;;  %3541 = vmatprep.subr.bf16.mxu0 %v3797_v2 }
 0x143   : > { %3538 = vmatmul.mubr.msk.bf16.vlgmr.msra.gmra.mxu0 %vm1911_vm3, %v1903_v24 }
 0x144   : > { %3542 = vmatpush3.bf16.xpose.msra.mxu0 %v1962_v26  ;;  %3543 = vmatprep.mubr.msk.bf16.mxu0 %vm3798_vm1, %v3797_v2 }
 0x145   : > { %3547 = vmatprep.subr.bf16.mxu0 %v3797_v2 }
 0x146   : > { %v1549_v31 = vpop.f32.mrf.mxu0 }
 0x147   : > { %v1550_v33 = vadd.f32 %v3180_v27, %v1549_v31  ;;  %v1613_v34 = vpop.f32.mrf.mxu1 }
 0x148   : > { %v1614_v35 = vadd.f32 %v3181_v29, %v1613_v34  ;;  %v3473_v36 = vpop.f32.mrf.mxu0 }
 0x149   : > { %v1909_v39 = vpack.c.bf16 %v1550_v33, %v1550_v33  ;;  %v3485_v40 = vpop.f32.mrf.mxu1 }
 0x14a   : > { %v1910_v42 = vpack.c.bf16 %v1614_v35, %v1614_v35  ;;  %v1552_v43 = vpop.f32.mrf.mxu0 }
 0x14b   : > { %v2008_v44 = vsel %vm1911_vm3, %v1909_v39, 0  ;;  %v1616_v45 = vpop.f32.mrf.mxu1  ;;  %3544 = vmatmul.mubr.msk.bf16.vlgmr.msra.gmra.mxu0 %vm1911_vm3, %v1904_v37 }
 0x14c   : > { %v2054_v46 = vsel %vm1911_vm3, %v1910_v42, 0  ;;  %v3474_v47 = vpop.f32.mrf.mxu0  ;;  %3548 = vmatpush3.bf16.xpose.msra.mxu0 %v2008_v44  ;;  %3549 = vmatprep.mubr.msk.bf16.mxu0 %vm3798_vm1, %v3797_v2 }
 0x14d   : > { %v3486_v49 = vpop.f32.mrf.mxu1  ;;  %3554 = vmatpush3.bf16.xpose.msra.mxu1 %v2054_v46  ;;  %3559 = vmatprep.subr.bf16.mxu0 %v3797_v2 }
 0x14e   : > { %3565 = vmatprep.subr.bf16.mxu1 %v3797_v2 }
 0x153   : > { %3550 = vmatmul.mubr.msk.bf16.vlgmr.msra.gmra.mxu0 %vm1911_vm3, %v1905_v51 }
 0x154   : > { %3556 = vmatmul.mubr.msk.bf16.vlgmr.msra.gmra.mxu1 %vm1911_vm3, %v1906_v52  ;;  %3561 = vmatprep.mubr.msk.bf16.mxu0 %vm3798_vm1, %v3797_v2 }
 0x155   : > { %3567 = vmatprep.mubr.msk.bf16.mxu1 %vm3798_vm1, %v3797_v2 }
 0x157   : > { %v1701_v54 = vpop.f32.mrf.mxu0 }
 0x158   : > { %v1702_v55 = vadd.f32 %v3202_v53, %v1701_v54 }
 0x159   : > { %v3497_v56 = vpop.f32.mrf.mxu0  ;;  %v1765_v4 = vpop.f32.mrf.mxu1 }
 0x15a   : > { %v2145_v57 = vpack.c.bf16 %v1702_v55, %v1702_v55  ;;  %v1766_v7 = vadd.f32 %v3203_v1, %v1765_v4 }
 0x15b   : > { %v1704_v58 = vpop.f32.mrf.mxu0  ;;  %v3509_v8 = vpop.f32.mrf.mxu1 }
 0x15c   : > { %v2155_v59 = vsel %vm2153_vm4, %v2145_v57, 0  ;;  %v2146_v10 = vpack.c.bf16 %v1766_v7, %v1766_v7 }
 0x15d   : > { %v3498_v60 = vpop.f32.mrf.mxu0  ;;  %3560 = vmatpush3.bf16.msra.mxu0 %v2155_v59  ;;  %v1768_v11 = vpop.f32.mrf.mxu1 }
 0x15e   : > { %3571 = vmatprep.subr.bf16.mxu0 %v3797_v2  ;;  %v2201_v12 = vsel %vm2153_vm4, %v2146_v10, 0 }
 0x15f   : > { %v3510_v13 = vpop.f32.mrf.mxu1  ;;  %3566 = vmatpush3.bf16.msra.mxu1 %v2201_v12 }
 0x160   : > { %3577 = vmatprep.subr.bf16.mxu1 %v3797_v2 }
 0x167   : > { %v1829_v62 = vpop.f32.mrf.mxu0 }
 0x168   : > { %v1830_v63 = vadd.f32 %v3204_v61, %v1829_v62 }
 0x169   : > { %v3521_v0 = vpop.f32.mrf.mxu0  ;;  %v1893_v15 = vpop.f32.mrf.mxu1 }
 0x16a   : > { %v2147_v3 = vpack.c.bf16 %v1830_v63, %v1830_v63  ;;  %v1894_v16 = vadd.f32 %v3205_v14, %v1893_v15  ;;  %v3698_v15 = vld [vmem:[%s4424_s27] sm:$0xff]  }
 0x16b   : > { %v1832_v5 = vpop.f32.mrf.mxu0  ;;  %v3533_v17 = vpop.f32.mrf.mxu1 }
 0x16c   : > { %v4212_v6 = vsel %vm2153_vm4, %v2147_v3, 0  ;;  %v2148_v18 = vpack.c.bf16 %v1894_v16, %v1894_v16  ;;  %v3699_v16 = vld [vmem:[%s4424_s27 + $0x8] sm:$0xff]  }
 0x16d   : > { %v3522_v9 = vpop.f32.mrf.mxu0  ;;  %v1896_v19 = vpop.f32.mrf.mxu1 }
 0x16e   : > { %v4218_v20 = vsel %vm2153_vm4, %v2148_v18, 0  ;;  %v3700_v18 = vld [vmem:[%s4424_s27 + $0x10] sm:$0xff]  }
 0x16f   : > { %v3534_v21 = vpop.f32.mrf.mxu1 }
 0x203   : > { %v1952_v22 = vpop.f32.mrf.mxu0 }
 0x204   : > { %v2097_v23 = vsel %vm2096_vm5, %v1952_v22, -inf }
 0x205   : > { %2098 = vmax.xlane.f32.xlu0 %v2097_v23  ;;  %v3539_v24 = vpop.f32.mrf.mxu0 }
 0x206   : > { %v3701_v24 = vld [vmem:[%s4424_s27 + $0x18] sm:$0xff]  }
 0x207   : > { %v1955_v25 = vpop.f32.mrf.mxu0 }
 0x209   : > { %v3540_v26 = vpop.f32.mrf.mxu0 }
 0x20b   : > { %v1998_v27 = vpop.f32.mrf.mxu0 }
 0x20c   : > { %v2100_v28 = vsel %vm2096_vm5, %v1998_v27, -inf }
 0x20d   : > { %2101 = vmax.xlane.f32.xlu0 %v2100_v28  ;;  %v3545_v29 = vpop.f32.mrf.mxu0 }
 0x20f   : > { %v2001_v30 = vpop.f32.mrf.mxu0 }
 0x211   : > { %v3546_v31 = vpop.f32.mrf.mxu0 }
 0x213   : > { %v2044_v32 = vpop.f32.mrf.mxu0 }
 0x214   : > { %v2090_v33 = vpop.f32.mrf.mxu1  ;;  %v2103_v34 = vsel %vm2096_vm5, %v2044_v32, -inf }
 0x215   : > { %2104 = vmax.xlane.f32.xlu1 %v2103_v34  ;;  %v3551_v35 = vpop.f32.mrf.mxu0  ;;  %v2106_v39 = vsel %vm2096_vm5, %v2090_v33, -inf }
 0x216   : > { %v3557_v36 = vpop.f32.mrf.mxu1 }
 0x217   : > { %v2047_v37 = vpop.f32.mrf.mxu0 }
 0x218   : > { %v2093_v38 = vpop.f32.mrf.mxu1 }
 0x219   : > { %2107 = vmax.xlane.f32.xlu1 %v2106_v39  ;;  %v3552_v40 = vpop.f32.mrf.mxu0 }
 0x21a   : > { %v3558_v41 = vpop.f32.mrf.mxu1 }
 0x28e   : > { %v2099_v42 = vpop.xlane.xlu0 %2098 }
 0x28f   : > { %v2109_v43 = vsub.f32 %v1952_v22, %v2099_v42 }
 0x291   : > { %v2113_v44 = vmul.f32 1.442695, %v2109_v43 }
 0x293   : > { %3730 = vpow2.f32 %v2113_v44 }
 0x296   : > { %v2102_v45 = vpop.xlane.xlu0 %2101 }
 0x297   : > { %v2110_v46 = vsub.f32 %v1998_v27, %v2102_v45 }
 0x299   : > { %v2115_v47 = vmul.f32 1.442695, %v2110_v46 }
 0x29b   : > { %3732 = vpow2.f32 %v2115_v47 }
 0x29e   : > { %v2105_v48 = vpop.xlane.xlu1 %2104 }
 0x29f   : > { %v2111_v49 = vsub.f32 %v2044_v32, %v2105_v48 }
 0x2a0   : > { %v3731_v50 = vpop.eup %3730 }
 0x2a1   : > { %v2117_v51 = vmul.f32 1.442695, %v2111_v49  ;;  %v2121_v52 = vsel %vm2096_vm5, %v3731_v50, 0.0 }
 0x2a2   : > { %2122 = vadd.xlane.f32.xlu0 %v2121_v52  ;;  %v2108_v53 = vpop.xlane.xlu1 %2107 }
 0x2a3   : > { %3734 = vpow2.f32 %v2117_v51  ;;  %v2112_v54 = vsub.f32 %v2090_v33, %v2108_v53  ;;  %v3242_v51 = vld [vmem:[%s4425_s21] ss:$0 sm:$0xff] }
 0x2a5   : > { %v2119_v55 = vmul.f32 1.442695, %v2112_v54 }
 0x2a7   : > { %3736 = vpow2.f32 %v2119_v55 }
 0x2a8   : > { %v3733_v56 = vpop.eup %3732 }
 0x2a9   : > { %v2124_v57 = vsel %vm2096_vm5, %v3733_v56, 0.0 }
 0x2aa   : > { %2125 = vadd.xlane.f32.xlu1 %v2124_v57 }
 0x2b0   : > { %v3735_v58 = vpop.eup %3734 }
 0x2b1   : > { %v2127_v59 = vsel %vm2096_vm5, %v3735_v58, 0.0 }
 0x2b2   : > { %2128 = vadd.xlane.f32.xlu0 %v2127_v59 }
 0x2b4   : > { %v3737_v60 = vpop.eup %3736 }
 0x2b5   : > { %v2130_v61 = vsel %vm2096_vm5, %v3737_v60, 0.0 }
 0x2b6   : > { %2131 = vadd.xlane.f32.xlu1 %v2130_v61 }
 0x32b   : > { %v2123_v62 = vpop.xlane.xlu0 %2122 }
 0x32c   : > { %3738 = vrcp.f32 %v2123_v62 }
 0x333   : > { %v2126_v63 = vpop.xlane.xlu1 %2125 }
 0x334   : > { %3740 = vrcp.f32 %v2126_v63 }
 0x339   : > { %v3739_v0 = vpop.eup %3738 }
 0x33a   : > { %v2137_v1 = vmul.f32 %v3739_v0, %v3731_v50 }
 0x33b   : > { %v2129_v3 = vpop.xlane.xlu0 %2128 }
 0x33c   : > { %3742 = vrcp.f32 %v2129_v3  ;;  %v2141_v4 = vpack.c.bf16 %v2137_v1, %v2137_v1 }
 0x33e   : > { %3562 = vmatmul.mubr.msk.bf16.vlgmr.msra.gmra.mxu0 %vm2149_vm6, %v2141_v4  ;;  %v3704_v4 = vld [vmem:[%s3994_s16 + $0x34] ss:$8 sps:$4 sm:$0xff]  }
 0x33f   : > { %3572 = vmatpush3.bf16.msra.mxu0 %v4212_v6  ;;  %v2132_v5 = vpop.xlane.xlu1 %2131  ;;  %3573 = vmatprep.mubr.msk.bf16.mxu0 %vm3798_vm1, %v3797_v2 }
 0x340   : > { %3744 = vrcp.f32 %v2132_v5  ;;  %3583 = vmatprep.subr.bf16.mxu0 %v3797_v2  ;;  %v3702_v5 = vld [vmem:[%s3994_s16 + $0x30] ss:$8 sps:$4 sm:$0xff]  }
 0x341   : > { %v3741_v7 = vpop.eup %3740 }
 0x342   : > { %v2138_v8 = vmul.f32 %v3741_v7, %v3733_v56  ;;  %v3707_v7 = vld [vmem:[%s3994_s16 + $0x24] ss:$8 sps:$4 sm:$0xff]  }
 0x344   : > { %v2142_v9 = vpack.c.bf16 %v2138_v8, %v2138_v8  ;;  %v3705_v8 = vld [vmem:[%s3994_s16 + $0x20] ss:$8 sps:$4 sm:$0xff]  }
 0x346   : > { %3568 = vmatmul.mubr.msk.bf16.vlgmr.msra.gmra.mxu1 %vm2149_vm6, %v2142_v9  ;;  %v3710_v9 = vld [vmem:[%s3994_s16 + $0x14] ss:$8 sps:$4 sm:$0xff]  }
 0x347   : > { %3578 = vmatpush3.bf16.msra.mxu1 %v4218_v20  ;;  %3579 = vmatprep.mubr.msk.bf16.mxu1 %vm3798_vm1, %v3797_v2 }
 0x348   : > { %3589 = vmatprep.subr.bf16.mxu1 %v3797_v2 }
 0x349   : > { %v3743_v6 = vpop.eup %3742 }
 0x34a   : > { %v2139_v10 = vmul.f32 %v3743_v6, %v3735_v58  ;;  %v3754_v58 = vld [vmem:[%s4021_s12] sm:$0x3]  ;;  %v3708_v6 = vld [vmem:[%s3994_s16 + $0x10] ss:$8 sps:$4 sm:$0xff]  }
 0x34c   : > { %v2143_v11 = vpack.c.bf16 %v2139_v10, %v2139_v10  ;;  %v3713_v10 = vld [vmem:[%s3994_s16 + $0x4] ss:$8 sps:$4 sm:$0xff]  }
 0x34d   : > { %v3745_v12 = vpop.eup %3744 }
 0x34e   : > { %3574 = vmatmul.mubr.msk.bf16.vlgmr.msra.gmra.mxu0 %vm2149_vm6, %v2143_v11  ;;  %v2140_v13 = vmul.f32 %v3745_v12, %v3737_v60  ;;  %v3711_v11 = vld [vmem:[%s3994_s16] ss:$8 sps:$4 sm:$0xff]   ;;  %v3799_v12 = vmov 0  }
 0x34f   : > { %3585 = vmatprep.mubr.msk.bf16.mxu0 %vm3798_vm1, %v3797_v2  ;;  %3584 = vmatpush3.bf16.msra.mxu0 %v3698_v15 }
 0x350   : > { %v2144_v14 = vpack.c.bf16 %v2140_v13, %v2140_v13  ;;  %3595 = vmatprep.subr.bf16.mxu0 %v3797_v2  ;;  %v3714_v13 = vld [vmem:[%s4004_s4 + $0x78] sm:$0xff]  }
 0x352   : > { %3580 = vmatmul.mubr.msk.bf16.vlgmr.msra.gmra.mxu1 %vm2149_vm6, %v2144_v14  ;;  %v3715_v14 = vld [vmem:[%s4004_s4 + $0x38] sm:$0xff]  }
 0x353   : > { %3591 = vmatprep.mubr.msk.bf16.mxu1 %vm3798_vm1, %v3797_v2  ;;  %3590 = vmatpush3.bf16.msra.mxu1 %v3699_v16 }
 0x354   : > { %3601 = vmatprep.subr.bf16.mxu1 %v3797_v2 }
 0x3fe   : > { %v2191_v17 = vpop.f32.mrf.mxu0 }
 0x3ff   : > { %v2335_v19 = vpack.c.bf16 %v2191_v17, %v2191_v17 }
 0x400   : > { %v3563_v20 = vpop.f32.mrf.mxu0 }
 0x401   : > { %3586 = vmatmul.mubr.msk.bf16.vlgmr.msra.gmra.mxu0 %vm1911_vm3, %v2335_v19  ;;  %v3243_v19 = vld [vmem:[%s4426_s2] ss:$0 sm:$0xff] }
 0x402   : > { %v2194_v21 = vpop.f32.mrf.mxu0  ;;  %3596 = vmatpush3.bf16.msra.mxu0 %v3700_v18  ;;  %3597 = vmatprep.mubr.msk.bf16.mxu0 %vm3798_vm1, %v3797_v2 }
 0x403   : > { %2638 = vmatprep.subr.bf16.mxu0 %v3704_v4  ;;  %v3244_v21 = vld [vmem:[%s4427_s20] ss:$0 sm:$0xff] }
 0x404   : > { %v3564_v22 = vpop.f32.mrf.mxu0 }
 0x406   : > { %v2237_v23 = vpop.f32.mrf.mxu1 }
 0x407   : > { %v2336_v25 = vpack.c.bf16 %v2237_v23, %v2237_v23 }
 0x408   : > { %v3569_v26 = vpop.f32.mrf.mxu1 }
 0x409   : > { %3592 = vmatmul.mubr.msk.bf16.vlgmr.msra.gmra.mxu1 %vm1911_vm3, %v2336_v25  ;;  %v3716_v25 = vld [vmem:[%s4004_s4 + $0x70] sm:$0xff]  }
 0x40a   : > { %v2240_v27 = vpop.f32.mrf.mxu1  ;;  %3602 = vmatpush3.bf16.msra.mxu1 %v3701_v24  ;;  %3603 = vmatprep.mubr.msk.bf16.mxu1 %vm3798_vm1, %v3797_v2  ;;  %v3717_v26 = vld [vmem:[%s4004_s4 + $0x30] sm:$0xff]  }
 0x40b   : > { %3369 = vmatprep.subr.bf16.mxu1 %v3714_v13  ;;  %v3718_v27 = vld [vmem:[%s4004_s4 + $0x68] sm:$0xff]  }
 0x40c   : > { %v3570_v28 = vpop.f32.mrf.mxu1 }
 0x40d   : > { %v3719_v28 = vld [vmem:[%s4004_s4 + $0x28] sm:$0xff]  }
 0x40e   : > { %v2283_v29 = vpop.f32.mrf.mxu0 }
 0x40f   : > { %v2337_v30 = vpack.c.bf16 %v2283_v29, %v2283_v29  ;;  %v3720_v29 = vld [vmem:[%s4004_s4 + $0x60] sm:$0xff]  }
 0x410   : > { %v3575_v31 = vpop.f32.mrf.mxu0 }
 0x411   : > { %3598 = vmatmul.mubr.msk.bf16.vlgmr.msra.gmra.mxu0 %vm1911_vm3, %v2337_v30  ;;  %v3721_v30 = vld [vmem:[%s4004_s4 + $0x20] sm:$0xff]   ;;  %v3722_v31 = vld [vmem:[%s4004_s4 + $0x58] sm:$0xff]  }
 0x412   : > { %v2286_v32 = vpop.f32.mrf.mxu0  ;;  %v2329_v33 = vpop.f32.mrf.mxu1  ;;  %2639 = vmatpush1.bf16.msra.mxu0 %v3702_v5  ;;  %2662 = vmatprep.mubr.bf16.mxu0 %v3799_v12 }
 0x413   : > { %v2338_v34 = vpack.c.bf16 %v2329_v33, %v2329_v33  ;;  %2640 = vmatprep.subr.bf16.mxu0 %v3707_v7  ;;  %v3723_v32 = vld [vmem:[%s4004_s4 + $0x18] sm:$0xff]   ;;  %v3724_v33 = vld [vmem:[%s4004_s4 + $0x50] sm:$0xff]  }
 0x414   : > { %v3576_v35 = vpop.f32.mrf.mxu0  ;;  %v3581_v36 = vpop.f32.mrf.mxu1 }
 0x415   : > { %3604 = vmatmul.mubr.msk.bf16.vlgmr.msra.gmra.mxu1 %vm1911_vm3, %v2338_v34  ;;  %v3725_v34 = vld [vmem:[%s4004_s4 + $0x10] sm:$0xff]   ;;  %v3726_v35 = vld [vmem:[%s4004_s4 + $0x48] sm:$0xff]  }
 0x416   : > { %v2332_v37 = vpop.f32.mrf.mxu1  ;;  %2641 = vmatpush1.bf16.msra.mxu0 %v3705_v8  ;;  %3370 = vmatpush3.bf16.msra.mxu1 %v3715_v14  ;;  %v3727_v36 = vld [vmem:[%s4004_s4 + $0x8] sm:$0xff]  }
 0x417   : > { %2642 = vmatprep.subr.bf16.mxu0 %v3710_v9  ;;  %3371 = vmatprep.subr.bf16.mxu1 %v3716_v25  ;;  %v3728_v37 = vld [vmem:[%s4004_s4 + $0x40] sm:$0xff]  }
 0x418   : > { %v3582_v38 = vpop.f32.mrf.mxu1 }
 0x419   : > { %v3729_v38 = vld [vmem:[%s4004_s4] sm:$0xff]  }
 0x41a   : > { %2643 = vmatpush1.bf16.msra.mxu0 %v3708_v6  ;;  %3372 = vmatpush3.bf16.msra.mxu1 %v3717_v26 }
 0x41b   : > { %2644 = vmatprep.subr.bf16.mxu0 %v3713_v10  ;;  %3373 = vmatprep.subr.bf16.mxu1 %v3718_v27 }
 0x41e   : > { %2645 = vmatpush1.bf16.msra.mxu0 %v3711_v11  ;;  %3374 = vmatpush3.bf16.msra.mxu1 %v3719_v28 }
 0x41f   : > { %3375 = vmatprep.subr.bf16.mxu1 %v3720_v29 }
 0x422   : > { %3376 = vmatpush3.bf16.msra.mxu1 %v3721_v30 }
 0x423   : > { %3377 = vmatprep.subr.bf16.mxu1 %v3722_v31 }
 0x426   : > { %3378 = vmatpush3.bf16.msra.mxu1 %v3723_v32 }
 0x427   : > { %3379 = vmatprep.subr.bf16.mxu1 %v3724_v33 }
 0x42a   : > { %3380 = vmatpush3.bf16.msra.mxu1 %v3725_v34 }
 0x42b   : > { %3381 = vmatprep.subr.bf16.mxu1 %v3726_v35 }
 0x42e   : > { %3382 = vmatpush3.bf16.msra.mxu1 %v3727_v36 }
 0x42f   : > { %3383 = vmatprep.subr.bf16.mxu1 %v3728_v37 }
 0x432   : > { %3384 = vmatpush3.bf16.msra.mxu1 %v3729_v38 }
 0x4c1   : > { %v2382_v39 = vpop.f32.mrf.mxu0 }
 0x4c3   : > { %v3587_v40 = vpop.f32.mrf.mxu0 }
 0x4c5   : > { %v2385_v41 = vpop.f32.mrf.mxu0 }
 0x4c7   : > { %v3588_v2 = vpop.f32.mrf.mxu0 }
 0x4c8   : > { %v1017_v2 = vld [vmem:[%s3999_s3] sm:$0x3] }
 0x4c9   : > { %v2431_v42 = vpop.f32.mrf.mxu1 }
 0x4ca   : > { %v2535_v47 = vadd.f32 %v2431_v42, %v2382_v39  ;;  %v2577_v39 = vlaneseq }
 0x4cb   : > { %v3593_v43 = vpop.f32.mrf.mxu1 }
 0x4cc   : > { %v2578_v40 = vshrl.u32 %v2577_v39, 7 }
 0x4cd   : > { %v2434_v44 = vpop.f32.mrf.mxu1 }
 0x4ce   : > { %v2579_v41 = vsub.s32 0, %v2578_v40  ;;  %v2583_v42 = vsub.s32 1, %v2578_v40 }
 0x4cf   : > { %v3594_v45 = vpop.f32.mrf.mxu1 }
 0x4d0   : > { %v2580_v43 = vrot.slane %v1017_v2, %v2579_v41  ;;  %v2584_v44 = vrot.slane %v1017_v2, %v2583_v42 }
 0x4d1   : > { %v2480_v46 = vpop.f32.mrf.mxu0 }
 0x4d2   : > { %v2536_v49 = vadd.f32 %v2535_v47, %v2480_v46 }
 0x4d3   : > { %v3599_v48 = vpop.f32.mrf.mxu0 }
 0x4d5   : > { %v2483_v50 = vpop.f32.mrf.mxu0  ;;  %v2529_v52 = vpop.f32.mrf.mxu1 }
 0x4d6   : > { %v2537_v53 = vadd.f32 %v2536_v49, %v2529_v52 }
 0x4d7   : > { %v3600_v54 = vpop.f32.mrf.mxu0  ;;  %v3605_v55 = vpop.f32.mrf.mxu1 }
 0x4d8   : > { %v2544_v56 = vadd.f32 %v3242_v51, %v2537_v53 }
 0x4d9   : > { %v2532_v57 = vpop.f32.mrf.mxu1 }
 0x4da   : > { %v2545_v59 = vadd.f32 %v3754_v58, %v2544_v56 }
 0x4db   : > { %v3606_v60 = vpop.f32.mrf.mxu1 }
 0x4dc   : > { %v2547_v61 = vsel %vm2546_vm7, %v2545_v59, 0.0 }
 0x4dd   : > { %2548 = vadd.xlane.f32.xlu0 %v2547_v61 }
 0x566   : > { %v2549_v62 = vpop.xlane.xlu0 %2548 }
 0x567   : > { %v2551_v63 = vmul.f32 0.015625, %v2549_v62 }
 0x569   : > { %v2552_v0 = vsub.f32 %v2545_v59, %v2551_v63 }
 0x56b   : > { %v2553_v1 = vmul.f32 %v2552_v0, %v2552_v0 }
 0x56d   : > { %v2554_v3 = vsel %vm2546_vm7, %v2553_v1, 0.0 }
 0x56e   : > { %2555 = vadd.xlane.f32.xlu1 %v2554_v3 }
 0x5f7   : > { %v2556_v15 = vpop.xlane.xlu1 %2555 }
 0x5f8   : > { %v2557_v16 = vmul.f32 0.015625, %v2556_v15 }
 0x5fa   : > { %v2558_v17 = vadd.f32 1e-05, %v2557_v16 }
 0x5fc   : > { %3746 = vrsqrt.f32 %v2558_v17 }
 0x609   : > { %v3747_v18 = vpop.eup %3746 }
 0x60a   : > { %v2560_v20 = vmul.f32 %v3747_v18, %v2552_v0  ;;  %v3254_v0 = vld [vmem:[%s871_s29] ss:$0 sm:$0xff] }
 0x60b   : > { %v3271_v18 = vld [vmem:[%s874_s6] ss:$0 sm:$0xff] }
 0x60c   : > { %v2567_v22 = vmul.f32 %v3243_v19, %v2560_v20  ;;  %v3272_v20 = vld [vmem:[%s877_s11] ss:$0 sm:$0xff] }
 0x60e   : > { %v4286_v23 = vadd.f32 %v3244_v21, %v2567_v22 }
 0x610   : > { %v2575_v24 = vpack.c.bf16 %v4286_v23, %v4286_v23 }
 0x612   : > { %3253 = vmatmul.mubr.msk.bf16.vlgmr.msra.gmra.mxu0 %vm1103_vm2, %v2575_v24 }
 0x6d2   : > { %v2664_v45 = vpop.f32.mrf.mxu0 }
 0x6d3   : > { %v2665_v46 = vadd.f32 %v2664_v45, %v2580_v43 }
 0x6d4   : > { %v2666_v47 = vpop.f32.mrf.mxu0 }
 0x6d5   : > { %v2673_v48 = vmul.f32 0.70710677, %v2665_v46  ;;  %v2667_v49 = vadd.f32 %v2666_v47, %v2584_v44  ;;  %v2671_v56 = vmul.f32 0.5, %v2665_v46 }
 0x6d6   : > { %v2668_v50 = vpop.f32.mrf.mxu0 }
 0x6d7   : > { %3748 = verf.f32 %v2673_v48  ;;  %v2674_v51 = vmul.f32 0.70710677, %v2667_v49  ;;  %v2672_v57 = vmul.f32 0.5, %v2667_v49 }
 0x6d8   : > { %v2669_v52 = vpop.f32.mrf.mxu0 }
 0x6d9   : > { %3750 = verf.f32 %v2674_v51 }
 0x6e4   : > { %v3749_v53 = vpop.eup %3748 }
 0x6e5   : > { %v2677_v54 = vadd.f32 1.0, %v3749_v53 }
 0x6e6   : > { %v3751_v55 = vpop.eup %3750 }
 0x6e7   : > { %v2678_v58 = vadd.f32 1.0, %v3751_v55  ;;  %v2679_v59 = vmul.f32 %v2677_v54, %v2671_v56 }
 0x6e9   : > { %v2680_v60 = vmul.f32 %v2678_v58, %v2672_v57  ;;  %v2681_v62 = vpack.c.bf16 %v2679_v59, %v2679_v59 }
 0x6eb   : > { %v2682_v61 = vpack.c.bf16 %v2680_v60, %v2680_v60 }
 0x6ed   : > { %2817 = vmatprep.mubr.bf16.mxu1 %v2682_v61 }
 0x6ee   : > { %2818 = vmatmul.mubr.bf16.vlgmr.msra.gmra.mxu1 %v2681_v62 }
 0x7ae   : > { %v3385_v63 = vpop.f32.mrf.mxu1 }
 0x7b0   : > { %v3386_v1 = vpop.f32.mrf.mxu1 }
 0x7b1   : > { %v3387_v3 = vadd.f32 %v3386_v1, %v3385_v63 }
 0x7b2   : > { %v3388_v4 = vpop.f32.mrf.mxu1 }
 0x7b3   : > { %v2820_v5 = vadd.f32 %v3387_v3, %v3254_v0 }
 0x7b4   : > { %v3389_v7 = vpop.f32.mrf.mxu1 }
 0x7b5   : > { %v2825_v8 = vadd.f32 %v2820_v5, %v4286_v23 }
 0x7b7   : > { %v2826_v9 = vsel %vm2546_vm7, %v2825_v8, 0.0 }
 0x7b8   : > { %2827 = vadd.xlane.f32.xlu0 %v2826_v9 }
 0x841   : > { %v2828_v6 = vpop.xlane.xlu0 %2827 }
 0x842   : > { %v2829_v10 = vmul.f32 0.015625, %v2828_v6 }
 0x844   : > { %v2830_v11 = vsub.f32 %v2825_v8, %v2829_v10 }
 0x846   : > { %v2831_v12 = vmul.f32 %v2830_v11, %v2830_v11 }
 0x848   : > { %v2832_v13 = vsel %vm2546_vm7, %v2831_v12, 0.0 }
 0x849   : > { %2833 = vadd.xlane.f32.xlu1 %v2832_v13 }
 0x8d2   : > { %v2834_v14 = vpop.xlane.xlu1 %2833 }
 0x8d3   : > { %v2835_v15 = vmul.f32 0.015625, %v2834_v14 }
 0x8d5   : > { %v2836_v16 = vadd.f32 1e-05, %v2835_v15 }
 0x8d7   : > { %3752 = vrsqrt.f32 %v2836_v16 }
 0x8e4   : > { %v3753_v17 = vpop.eup %3752 }
 0x8e5   : > { %v2838_v19 = vmul.f32 %v3753_v17, %v2830_v11  ;;  %2856 = sbr.rel (%p3273_p8) target bundleno = 2284 (0x8ec), region = 104 }
 0x8e7   : > { %v2845_v21 = vmul.f32 %v3271_v18, %v2838_v19 }
 0x8e9   : > { %v2852_v22 = vadd.f32 %v3272_v20, %v2845_v21 }
 0x8eb   : > { %2857 = vst.msk [vmem:[%s4021_s12] sm:$0x3] %vm2546_vm7, %v2852_v22 }
 0x8ec PF: > { %s4430_s7 = sld [smem:[#allocation2_spill]] }
 0x8f2   : > { %p3274_p9 = scmp.ne.s32.totalorder %s4430_s7, 1 }
 0x8f3   : > { %s4431_s6 = sld [smem:[#allocation24_spill]] (!%p3274_p9) }
 0x8f4   : > { %2861 = sbr.rel (%p3274_p9) target bundleno = 2606 (0xa2e), region = 108  ;;  %s4432_s27 = sld [smem:[#allocation25_spill]] (!%p3274_p9) }
 0x8f9   : > { %v2864_v23 = vsel %vm2546_vm7, %v2852_v22, 0.0  ;;  %v3275_v33 = vld [vmem:[%s4431_s6] ss:$0 sm:$0xff] }
 0x8fa   : > { %2865 = vadd.xlane.f32.xlu0 %v2864_v23  ;;  %v3276_v35 = vld [vmem:[%s4432_s27] ss:$0 sm:$0xff] }
 0x983   : > { %v2866_v24 = vpop.xlane.xlu0 %2865 }
 0x984   : > { %v2867_v25 = vmul.f32 0.015625, %v2866_v24 }
 0x986   : > { %v2868_v26 = vsub.f32 %v2852_v22, %v2867_v25 }
 0x988   : > { %v2869_v27 = vmul.f32 %v2868_v26, %v2868_v26 }
 0x98a   : > { %v2870_v28 = vsel %vm2546_vm7, %v2869_v27, 0.0 }
 0x98b   : > { %2871 = vadd.xlane.f32.xlu0 %v2870_v28 }
 0xa14   : > { %v2872_v29 = vpop.xlane.xlu0 %2871 }
 0xa15   : > { %v2873_v30 = vmul.f32 0.015625, %v2872_v29 }
 0xa17   : > { %v2874_v31 = vadd.f32 1e-05, %v2873_v30 }
 0xa19   : > { %3755 = vrsqrt.f32 %v2874_v31 }
 0xa26   : > { %v3756_v32 = vpop.eup %3755 }
 0xa27   : > { %v2876_v34 = vmul.f32 %v3756_v32, %v2868_v26 }
 0xa29   : > { %v2883_v36 = vmul.f32 %v3275_v33, %v2876_v34 }
 0xa2b   : > { %v2890_v37 = vadd.f32 %v3276_v35, %v2883_v36 }
 0xa2d   : > { %2891 = vst.msk [vmem:[%s4021_s12] sm:$0x3] %vm2546_vm7, %v2890_v37 }
 0xa2e PF: > { %s4433_s30 = sld [smem:[#allocation5_spill]] }
 0xa2f   : > { %s4434_s0 = sld [smem:[#allocation3_spill]] }
 0xa30   : > { %s4436_s20 = sld [smem:[#allocation6_spill]] }
 0xa31   : > { %s4437_s21 = sld [smem:[#allocation7_spill]] }
 0xa34   : > { %s29_s1 = sadd.s32 1, %s4433_s30   ;;  %s4435_s30 = sld [smem:[#allocation4_spill]] }
 0xa35   : > { %p26_p10 = scmp.ge.s32.totalorder %s29_s1, 6  }
 0xa37   :  { %28 = sbr.rel (!%p26_p10) target bundleno = 15 (0xf), region = 186 }

// kernel: camft_forward.7
= control target key start
LH: loop header
LB: loop body
LE: loop exit
PB: predicated region body
PF: predicated region fallthrough
CT: control target
= control target key end

     0   :  { %s7843_s6 = smov 1   ;;  %s7844_s10 = smov 2   ;;  %s8962_s0 = inlined_call_operand.smem [shape: u32[42], index: -1, kind: input, shape index: {}] }
   0x1   :  { %s7898_s5 = sld [smem:[%s8962_s0]]   ;;  %s7845_s14 = smov 3  }
   0x2   :  { %s7903_s9 = sld [smem:[%s8962_s0 + %s7843_s6]]   ;;  %s7846_s18 = smov 4  }
   0x3   :  { %s7908_s13 = sld [smem:[%s8962_s0 + %s7844_s10]]   ;;  %s7847_s22 = smov 5  }
   0x4   :  { %s7913_s17 = sld [smem:[%s8962_s0 + %s7845_s14]]   ;;  %s7848_s26 = smov 6  }
   0x5   :  { %s7918_s21 = sld [smem:[%s8962_s0 + %s7846_s18]]   ;;  %s7849_s30 = smov 7  }
   0x6   :  { %s7923_s25 = sld [smem:[%s8962_s0 + %s7847_s22]]   ;;  %s7850_s4 = smov 8  }
   0x7   :  { %8997 = sst [smem:[#allocation5_spill]] %s7898_s5  ;;  %s7851_s10 = smov 9  }
   0x8   :  { %8998 = sst [smem:[#allocation6_spill]] %s7903_s9  ;;  %s7852_s15 = smov 10  }
   0x9   :  { %8999 = sst [smem:[#allocation7_spill]] %s7908_s13  ;;  %s7853_s20 = smov 11  }
   0xa   :  { %9000 = sst [smem:[#allocation8_spill]] %s7913_s17  ;;  %s7855_s1 = smov 13  }
   0xb   :  { %9001 = sst [smem:[#allocation9_spill]] %s7918_s21  ;;  %s7856_s7 = smov 14  }
   0xc   :  { %9002 = sst [smem:[#allocation10_spill]] %s7923_s25  ;;  %s7858_s22 = smov 16  }
   0xd   :  { %s7928_s29 = sld [smem:[%s8962_s0 + %s7848_s26]]   ;;  %s7854_s26 = smov 12  }
   0xe   :  { %s7933_s3 = sld [smem:[%s8962_s0 + %s7849_s30]]   ;;  %s7859_s28 = smov 17  }
   0xf   :  { %s7938_s8 = sld [smem:[%s8962_s0 + %s7850_s4]]  }
  0x10   :  { %s7943_s14 = sld [smem:[%s8962_s0 + %s7851_s10]]  }
  0x11   :  { %s7948_s19 = sld [smem:[%s8962_s0 + %s7852_s15]]   ;;  %s7857_s15 = smov 15  }
  0x12   :  { %s7953_s24 = sld [smem:[%s8962_s0 + %s7853_s20]]  }
  0x13   :  { %9003 = sst [smem:[#allocation11_spill]] %s7928_s29 }
  0x14   :  { %9004 = sst [smem:[#allocation12_spill]] %s7933_s3 }
  0x15   :  { %9005 = sst [smem:[#allocation13_spill]] %s7938_s8 }
  0x16   :  { %9006 = sst [smem:[#allocation14_spill]] %s7943_s14 }
  0x17   :  { %9007 = sst [smem:[#allocation15_spill]] %s7948_s19 }
  0x18   :  { %9008 = sst [smem:[#allocation16_spill]] %s7953_s24 }
  0x19   :  { %s7958_s30 = sld [smem:[%s8962_s0 + %s7854_s26]]  }
  0x1a   :  { %s7963_s6 = sld [smem:[%s8962_s0 + %s7855_s1]]  }
  0x1b   :  { %s7968_s12 = sld [smem:[%s8962_s0 + %s7856_s7]]   ;;  %s7860_s7 = smov 18  }
  0x1c   :  { %s7973_s20 = sld [smem:[%s8962_s0 + %s7857_s15]]   ;;  %s7861_s15 = smov 19  }
  0x1d   :  { %s7978_s27 = sld [smem:[%s8962_s0 + %s7858_s22]]   ;;  %s7862_s22 = smov 20  }
  0x1e   :  { %s7983_s4 = sld [smem:[%s8962_s0 + %s7859_s28]]   ;;  %s7863_s28 = smov 21  }
  0x1f   :  { %9009 = sst [smem:[#allocation17_spill]] %s7958_s30 }
  0x20   :  { %9010 = sst [smem:[#allocation18_spill]] %s7963_s6 }
  0x21   :  { %9011 = sst [smem:[#allocation19_spill]] %s7968_s12 }
  0x22   :  { %9012 = sst [smem:[#allocation20_spill]] %s7973_s20 }
  0x23   :  { %9013 = sst [smem:[#allocation21_spill]] %s7978_s27 }
  0x24   :  { %9014 = sst [smem:[#allocation22_spill]] %s7983_s4 }
  0x25   :  { %s7988_s25 = sld [smem:[%s8962_s0 + %s7860_s7]]   ;;  %s7864_s7 = smov 22  }
  0x26   :  { %s7993_s17 = sld [smem:[%s8962_s0 + %s7861_s15]]   ;;  %s7865_s15 = smov 23  }
  0x27   :  { %s7998_s21 = sld [smem:[%s8962_s0 + %s7862_s22]]   ;;  %s7866_s22 = smov 24  }
  0x28   :  { %s8003_s13 = sld [smem:[%s8962_s0 + %s7863_s28]]   ;;  %s7867_s28 = smov 25  }
  0x2b   :  { %9015 = sst [smem:[#allocation23_spill]] %s7988_s25 }
  0x2c   :  { %9016 = sst [smem:[#allocation24_spill]] %s7993_s17 }
  0x2d   :  { %9017 = sst [smem:[#allocation25_spill]] %s7998_s21 }
  0x2e   :  { %9018 = sst [smem:[#allocation26_spill]] %s8003_s13 }
  0x2f   :  { %s8008_s25 = sld [smem:[%s8962_s0 + %s7864_s7]]   ;;  %s7868_s7 = smov 26  }
  0x30   :  { %s8013_s17 = sld [smem:[%s8962_s0 + %s7865_s15]]   ;;  %s7869_s15 = smov 27  }
  0x31   :  { %s8018_s21 = sld [smem:[%s8962_s0 + %s7866_s22]]   ;;  %s7870_s22 = smov 28  }
  0x32   :  { %s8023_s13 = sld [smem:[%s8962_s0 + %s7867_s28]]   ;;  %s7871_s28 = smov 29  }
  0x35   :  { %9019 = sst [smem:[#allocation27_spill]] %s8008_s25 }
  0x36   :  { %9020 = sst [smem:[#allocation28_spill]] %s8013_s17 }
  0x37   :  { %9021 = sst [smem:[#allocation29_spill]] %s8018_s21 }
  0x38   :  { %9022 = sst [smem:[#allocation30_spill]] %s8023_s13 }
  0x39   :  { %s8028_s25 = sld [smem:[%s8962_s0 + %s7868_s7]]   ;;  %s7872_s7 = smov 30  }
  0x3a   :  { %s8033_s17 = sld [smem:[%s8962_s0 + %s7869_s15]]   ;;  %s7873_s15 = smov 31  }
  0x3b   :  { %s8038_s21 = sld [smem:[%s8962_s0 + %s7870_s22]]   ;;  %s7874_s22 = smov 32  }
  0x3c   :  { %s8043_s13 = sld [smem:[%s8962_s0 + %s7871_s28]]   ;;  %s7875_s28 = smov 33  }
  0x3f   :  { %9023 = sst [smem:[#allocation31_spill]] %s8028_s25 }
  0x40   :  { %9024 = sst [smem:[#allocation32_spill]] %s8033_s17 }
  0x41   :  { %9025 = sst [smem:[#allocation33_spill]] %s8038_s21 }
  0x42   :  { %9026 = sst [smem:[#allocation34_spill]] %s8043_s13 }
  0x43   :  { %s8048_s25 = sld [smem:[%s8962_s0 + %s7872_s7]]   ;;  %s7876_s7 = smov 34  }
  0x44   :  { %s8053_s17 = sld [smem:[%s8962_s0 + %s7873_s15]]   ;;  %s7877_s15 = smov 35  }
  0x45   :  { %s8058_s21 = sld [smem:[%s8962_s0 + %s7874_s22]]   ;;  %s7878_s22 = smov 36  }
  0x46   :  { %s8063_s13 = sld [smem:[%s8962_s0 + %s7875_s28]]   ;;  %s7879_s28 = smov 37  }
  0x49   :  { %9027 = sst [smem:[#allocation35_spill]] %s8048_s25 }
  0x4a   :  { %9028 = sst [smem:[#allocation36_spill]] %s8053_s17 }
  0x4b   :  { %9029 = sst [smem:[#allocation37_spill]] %s8058_s21 }
  0x4c   :  { %9030 = sst [smem:[#allocation38_spill]] %s8063_s13 }
  0x4d   :  { %s8068_s25 = sld [smem:[%s8962_s0 + %s7876_s7]]   ;;  %s7880_s7 = smov 38  }
  0x4e   :  { %s8073_s17 = sld [smem:[%s8962_s0 + %s7877_s15]]   ;;  %s7881_s15 = smov 39  }
  0x4f   :  { %s8078_s21 = sld [smem:[%s8962_s0 + %s7878_s22]]   ;;  %s7882_s22 = smov 40  }
  0x50   :  { %s8083_s13 = sld [smem:[%s8962_s0 + %s7879_s28]]   ;;  %s7883_s28 = smov 41  }
  0x53   :  { %9031 = sst [smem:[#allocation39_spill]] %s8068_s25 }
  0x54   :  { %9032 = sst [smem:[#allocation40_spill]] %s8073_s17 }
  0x55   :  { %9033 = sst [smem:[#allocation41_spill]] %s8078_s21 }
  0x56   :  { %9034 = sst [smem:[#allocation42_spill]] %s8083_s13 }
  0x57   :  { %s8088_s25 = sld [smem:[%s8962_s0 + %s7880_s7]]  }
  0x58   :  { %s8093_s17 = sld [smem:[%s8962_s0 + %s7881_s15]]  }
  0x59   :  { %s8098_s21 = sld [smem:[%s8962_s0 + %s7882_s22]]  }
  0x5a   :  { %s8103_s13 = sld [smem:[%s8962_s0 + %s7883_s28]]  }
  0x5d   :  { %9035 = sst [smem:[#allocation43_spill]] %s8088_s25 }
  0x5e   :  { %9036 = sst [smem:[#allocation44_spill]] %s8093_s17 }
  0x5f   :  { %9037 = sst [smem:[#allocation45_spill]] %s8098_s21 }
  0x60   :  { %9038 = sst [smem:[#allocation46_spill]] %s8103_s13 }
  0x61   :  { %89 = vsyncpa [#allocation3], 0 }
  0x62   :  { %91 = vsyncpa [#allocation3 + $0x1], 0  ;;  %s8105_s7 = smov 0   ;;  %s8107_s10 = smov 0  }
  0x63   :  { %s8109_s11 = smov 0   ;;  %s8111_s15 = smov 0  }
  0x64   :  { %s8113_s16 = smov 0   ;;  %s8115_s18 = smov 0  }
  0x65   :  { %s8117_s22 = smov 0   ;;  %s8119_s23 = smov 0  }
  0x66 LB: > { %9039 = sst [smem:[#allocation47_spill]] %s7813_s7  ;;  %s6442_s0 = sadd.s32 4294967295, %s7841_s23   ;;  %s7841_s23 = sphi %s8119_s23, %s97_s23   ;;  %s7837_s22 = sphi %s8117_s22, %s9172_s22   ;;  %s7833_s18 = sphi %s8115_s18, %s9171_s18   ;;  %s7829_s16 = sphi %s8113_s16, %s9170_s16   ;;  %s7825_s15 = sphi %s8111_s15, %s9169_s15   ;;  %s7821_s11 = sphi %s8109_s11, %s9168_s11   ;;  %s7817_s10 = sphi %s8107_s10, %s9167_s10   ;;  %s7813_s7 = sphi %s8105_s7, %s9166_s7  }
  0x67   : > { %9040 = sst [smem:[#allocation48_spill]] %s7817_s10  ;;  %s6443_s26 = sadd.s32 4294967294, %s7841_s23  }
  0x68   : > { %9041 = sst [smem:[#allocation49_spill]] %s7821_s11  ;;  %s106_s28 = sadd.s32 1, %s7833_s18 }
  0x69   : > { %9042 = sst [smem:[#allocation50_spill]] %s7825_s15  ;;  %p107_p0 = scmp.ge.s32.totalorder %s106_s28, 2 }
  0x6a   : > { %9043 = sst [smem:[#allocation51_spill]] %s7829_s16  ;;  %s109_s1 = sadd.s32 1, %s7837_s22 }
  0x6b   : > { %9044 = sst [smem:[#allocation52_spill]] %s7833_s18  ;;  %p1162_p1 = scmp.ne.s32.totalorder %s7821_s11, %s7817_s10 }
  0x6c   : > { %9045 = sst [smem:[#allocation53_spill]] %s7837_s22  ;;  %p1163_p2 = scmp.eq.s32.totalorder %s6442_s0, 3 }
  0x6d   : > { %9046 = sst [smem:[#allocation54_spill]] %s7841_s23  ;;  %s9174_s28 = smov (%p107_p0, %s106_s28), 0 }
  0x6e   : > { %9047 = sst [smem:[#allocation55_spill]] %s9174_s28  ;;  %s9176_s1 = smov (!%p107_p0, %s109_s1), %s7837_s22 }
  0x6f   : > { %p8154_p3 = por %p1163_p2, %p1162_p1  ;;  %p1168_p4 = scmp.ne.s32.totalorder %s7817_s10, %s7813_s7 }
  0x70   : > { %p111_p5 = scmp.ge.s32.totalorder %s9176_s1, 2  ;;  %p1169_p6 = scmp.eq.s32.totalorder %s6443_s26, 3 }
  0x71   : > { %s9048_s2 = scalar_select %p8154_p3, 1, 0 }
  0x72   : > { %p6446_p7 = scmp.ge.s32.totalorder %s7841_s23, 1  ;;  %p1443_p8 = scmp.lt.s32.totalorder %s7841_s23, 5 }
  0x73   : > { %9049 = sst [smem:[#allocation56_spill]] %s9048_s2  ;;  %s9178_s1 = smov (%p111_p5, %s9176_s1), 0 }
  0x74   : > { %9050 = sst [smem:[#allocation57_spill]] %s9178_s1  ;;  %p8164_p9 = por %p1169_p6, %p1168_p4 }
  0x75   : > { %p1444_p10 = pnand %p6446_p7, %p1443_p8  ;;  %s1149_s0 = ssub.s32 %s7837_s22, %s9178_s1 }
  0x76   : > { %s9051_s18 = scalar_select %p8164_p9, 1, 0 }
  0x77   : > { %s1152_s28 = sadd.s32 1, %s7821_s11  ;;  %p1150_p11 = scmp.eq.s32.totalorder %s1149_s0, 0 }
  0x78   : > { %9052 = sst [smem:[#allocation58_spill]] %s9051_s18  ;;  %1447 = sbr.rel (%p1444_p10) target bundleno = 5130 (0x140a), region = 180 }
  0x79   : > { %s8172_s13 = scalar_select %p1150_p11, %s7821_s11, %s1152_s28  }
  0x7b   : > { %9053 = sst [smem:[#allocation59_spill]] %s8172_s13 }
  0x7d   : > { %s9056_s29 = sld [smem:[#allocation11_spill]]  ;;  %s8969_s26 = sand.u32 1, %s7817_s10  }
  0x7e   : > { %s9057_s3 = sld [smem:[#allocation12_spill]]  ;;  %p1678_p12 = scmp.lt.s32.totalorder %s7829_s16, 1 }
  0x7f   : > { %s9058_s8 = sld [smem:[#allocation13_spill]]  ;;  %s8178_s28 = sshll.u32 %s8969_s26, 2 }
  0x80   : > { %s9059_s14 = sld [smem:[#allocation14_spill]]  ;;  %p1686_p13 = scmp.lt.s32.totalorder %s7825_s15, 1 }
  0x81   : > { %s9061_s19 = sld [smem:[#allocation15_spill]] }
  0x82   : > { %9062 = sst [smem:[#allocation60_spill]] %s8178_s28 }
  0x83   : > { %s9063_s24 = sld [smem:[#allocation16_spill]] }
  0x84   : > { %s9064_s30 = sld [smem:[#allocation17_spill]] }
  0x85   : > { %s1679_s0 = scalar_select %p1678_p12, %s7829_s16, 1 }
  0x86   : > { %s8183_s1 = scalar_select %p1686_p13, %s7825_s15, 1 }
  0x87   : > { %s8185_s22 = sshll.u32 %s1679_s0, 2  ;;  %s9068_s27 = sld [smem:[#allocation21_spill]] }
  0x88   : > { %9067 = sst [smem:[#allocation61_spill]] %s8185_s22  ;;  %s8192_s11 = sshll.u32 %s8183_s1, 7 }
  0x89   : > { %s9069_s4 = sld [smem:[#allocation22_spill]]  ;;  %s6741_s18 = sshll.u32 %s8183_s1, 5 }
  0x8a   : > { %s9070_s7 = sld [smem:[#allocation23_spill]]  ;;  %s8197_s23 = scalar_lea.vmem %s9056_s29, %s8192_s11 }
  0x8b   : > { %9071 = sst [smem:[#allocation62_spill]] %s8197_s23  ;;  %s8201_s2 = scalar_lea.vmem %s9057_s3, %s8192_s11 }
  0x8c   : > { %9073 = sst [smem:[#allocation63_spill]] %s8201_s2  ;;  %s8205_s10 = scalar_lea.vmem %s9058_s8, %s8192_s11 }
  0x8d   : > { %9075 = sst [smem:[#allocation64_spill]] %s8205_s10  ;;  %s8208_s16 = scalar_lea.vmem %s9059_s14, %s6741_s18 }
  0x8e   : > { %9077 = sst [smem:[#allocation65_spill]] %s8208_s16  ;;  %s6458_s25 = sshll.u32 %s8183_s1, 2 }
  0x8f   : > { %s9078_s17 = sld [smem:[#allocation27_spill]]  ;;  %s8214_s23 = scalar_lea.vmem %s9061_s19, %s6458_s25 }
  0x90   : > { %s9079_s9 = sld [smem:[#allocation28_spill]]  ;;  %s8217_s2 = scalar_lea.vmem %s9063_s24, %s6458_s25 }
  0x91   : > { %s9080_s29 = sld [smem:[#allocation29_spill]]  ;;  %s8220_s8 = scalar_lea.vmem %s9064_s30, %s6458_s25 }
  0x92   : > { %9081 = sst [smem:[#allocation66_spill]] %s8214_s23  ;;  %s6742_s22 = sshll.u32 %s8183_s1, 6 }
  0x93   : > { %s9082_s3 = sld [smem:[#allocation30_spill]]  ;;  %s8228_s6 = scalar_lea.vmem %s9068_s27, %s6742_s22 }
  0x94   : > { %9083 = sst [smem:[#allocation67_spill]] %s8217_s2  ;;  %s6463_s23 = sshll.u32 %s8183_s1, 1 }
  0x95   : > { %s9084_s15 = sld [smem:[#allocation31_spill]]  ;;  %s8232_s2 = scalar_lea.vmem %s9069_s4, %s6463_s23 }
  0x96   : > { %9085 = sst [smem:[#allocation68_spill]] %s8220_s8  ;;  %s8236_s30 = scalar_lea.vmem %s9070_s7, %s8192_s11 }
  0x97   : > { %s9086_s10 = sld [smem:[#allocation32_spill]]  ;;  %s8246_s4 = scalar_lea.vmem %s9078_s17, %s8192_s11 }
  0x98   : > { %s9087_s14 = sld [smem:[#allocation33_spill]]  ;;  %s8250_s7 = scalar_lea.vmem %s9079_s9, %s8192_s11 }
  0x99   : > { %s9088_s21 = sld [smem:[#allocation34_spill]]  ;;  %s8254_s12 = scalar_lea.vmem %s9080_s29, %s8192_s11 }
  0x9a   : > { %s9089_s5 = sld [smem:[#allocation35_spill]]  ;;  %s8257_s26 = scalar_lea.vmem %s9082_s3, %s6741_s18 }
  0x9b   : > { %9090 = sst [smem:[#allocation69_spill]] %s8228_s6  ;;  %s8260_s13 = scalar_lea.vmem %s9084_s15, %s6458_s25 }
  0x9c   : > { %s9091_s19 = sld [smem:[#allocation36_spill]] }
  0x9d   : > { %s9092_s24 = sld [smem:[#allocation37_spill]]  ;;  %s8263_s27 = scalar_lea.vmem %s9086_s10, %s6458_s25 }
  0x9e   : > { %9093 = sst [smem:[#allocation70_spill]] %s8232_s2  ;;  %s8266_s17 = scalar_lea.vmem %s9087_s14, %s6458_s25 }
  0x9f   : > { %9094 = sst [smem:[#allocation71_spill]] %s8236_s30 }
  0xa0   : > { %s9095_s8 = sld [smem:[#allocation38_spill]]  ;;  %s1787_s9 = scalar_lea.vmem %s9089_s5, %s8183_s1 }
  0xa1   : > { %s9096_s28 = sld [smem:[#allocation39_spill]] }
  0xa2   : > { %s9097_s20 = sld [smem:[#allocation40_spill]] }
  0xa3   : > { %s9098_s6 = sld [smem:[#allocation41_spill]]  ;;  %s8275_s29 = scalar_lea.vmem %s9092_s24, %s6742_s22 }
  0xa4   : > { %9099 = sst [smem:[#allocation72_spill]] %s8246_s4  ;;  %s1784_s4 = scalar_lea.vmem %s9088_s21, %s8183_s1 }
  0xa5   : > { %s9100_s2 = sld [smem:[#allocation42_spill]] }
  0xa6   : > { %9101 = sst [smem:[#allocation73_spill]] %s8250_s7  ;;  %s1790_s7 = scalar_lea.vmem %s9091_s19, %s8183_s1 }
  0xa7   : > { %s9102_s30 = sld [smem:[#allocation61_spill]]  ;;  %s8282_s3 = scalar_lea.vmem %s9096_s28, %s8192_s11 }
  0xa8   : > { %s9103_s0 = sld [smem:[#allocation45_spill]]  ;;  %s1807_s18 = scalar_lea.vmem %s9097_s20, %s8183_s1 }
  0xa9   : > { %9104 = sst [smem:[#allocation74_spill]] %s8254_s12  ;;  %s8278_s12 = scalar_lea.vmem %s9095_s8, %s6463_s23 }
  0xaa   : > { %s9105_s16 = sld [smem:[#allocation60_spill]] }
  0xab   : > { %9106 = sst [smem:[#allocation60_spill]] %s8257_s26  ;;  %s1810_s26 = scalar_lea.vmem %s9098_s6, %s8183_s1 }
  0xac   : > { %9107 = sst [smem:[#allocation75_spill]] %s8260_s13  ;;  %s1813_s15 = scalar_lea.vmem %s9100_s2, %s8183_s1 }
  0xad   : > { %9108 = sst [smem:[#allocation76_spill]] %s8263_s27 }
  0xae   : > { %s8292_s13 = scalar_lea.vmem %s9103_s0, %s9102_s30  ;;  %s9109_s27 = sld [smem:[#allocation50_spill]] }
  0xb0   : > { %s8295_s10 = scalar_lea.vmem [#allocation2], %s9105_s16 }
  0xb4   : > { %p6483_p0 = scmp.ne.s32.totalorder %s9109_s27, 0 }
  0xb5   : > { %s9110_s25 = sld [smem:[#allocation7_spill]] (!%p6483_p0) }
  0xb6   : > { %1822 = sbr.rel (%p6483_p0) target bundleno = 396 (0x18c), region = 184  ;;  %s9111_s21 = sld [smem:[#allocation9_spill]] (!%p6483_p0) }
  0xb7   : > { %s9112_s5 = sld [smem:[#allocation5_spill]] (!%p6483_p0) }
  0xb8   : > { %s9113_s14 = sld [smem:[#allocation61_spill]] (!%p6483_p0) }
  0xb9   : > { %s9114_s8 = sld [smem:[#allocation6_spill]] (!%p6483_p0) }
  0xba   : > { %s9115_s19 = sld [smem:[#allocation8_spill]] (!%p6483_p0) }
  0xbb   : > { %v7533_v0 = vld [vmem:[%s9110_s25 + $0x8] sm:$0xff]   ;;  %v7884_v1 = vmov 0.0   ;;  %v7535_v3 = vld [vmem:[%s9110_s25] sm:$0xff]   ;;  %vm7885_vm0 = vmmov 0   ;;  %s9116_s24 = sld [smem:[#allocation10_spill]]  ;;  %vm1848_vm1 = vcmask 261120  }
  0xbc   : > { %6968 = vmatprep.subr.bf16.mxu0 %v7884_v1  ;;  %6976 = vmatprep.subr.bf16.mxu1 %v7884_v1  ;;  %v7534_v2 = vld [vmem:[%s9111_s21 + $0x8] sm:$0xff]   ;;  %v7536_v4 = vld [vmem:[%s9111_s21] sm:$0xff]   ;;  %vm1892_vm2 = vcmask 519168  }
  0xbd   : > { %6969 = vmatpush3.bf16.msra.mxu0 %v7533_v0  ;;  %6972 = vmatprep.mubr.msk.bf16.mxu0 %vm7885_vm0, %v7884_v1 }
  0xbe   : > { %6977 = vmatpush3.bf16.msra.mxu1 %v7534_v2  ;;  %6970 = vmatprep.subr.bf16.mxu0 %v7884_v1  ;;  %s9117_s30 = scalar_lea.vmem %s9112_s5, %s9113_s14 }
  0xbf   : > { %6978 = vmatprep.subr.bf16.mxu1 %v7884_v1  ;;  %6980 = vmatprep.mubr.msk.bf16.mxu1 %vm7885_vm0, %v7884_v1  ;;  %v1823_v5 = vld [vmem:[%s9117_s30] sm:$0xf]  ;;  %s9118_s6 = scalar_lea.vmem %s9114_s8, %s9113_s14 }
  0xc0   : > { %v1894_v6 = vld [vmem:[%s9118_s6] sm:$0xf]  ;;  %v1828_v7 = vpack.c.bf16 %v1823_v5, %v1823_v5 }
  0xc1   : > { %6971 = vmatpush3.bf16.msra.mxu0 %v7535_v3  ;;  %v1899_v8 = vpack.c.bf16 %v1894_v6, %v1894_v6  ;;  %v6484_v9 = vld [vmem:[%s9115_s19] ss:$0 sm:$0xff] }
  0xc2   : > { %6979 = vmatpush3.bf16.msra.mxu1 %v7536_v4  ;;  %v6488_v10 = vld [vmem:[%s9116_s24] ss:$0 sm:$0xff] }
  0xc4   : > { %6973 = vmatmul.mubr.msk.bf16.vlgmr.msra.gmra.mxu0 %vm1848_vm1, %v1828_v7 }
  0xc5   : > { %6981 = vmatmul.mubr.msk.bf16.vlgmr.msra.gmra.mxu1 %vm1848_vm1, %v1899_v8 }
 0x184   : > { %v1886_v11 = vpop.f32.mrf.mxu0 }
 0x185   : > { %v1887_v12 = vadd.f32 %v6484_v9, %v1886_v11  ;;  %v1956_v13 = vpop.f32.mrf.mxu1 }
 0x186   : > { %v1957_v14 = vadd.f32 %v6488_v10, %v1956_v13  ;;  %v6974_v15 = vpop.f32.mrf.mxu0 }
 0x187   : > { %1893 = vst.msk [vmem:[%s8292_s13] sm:$0xf] %vm1892_vm2, %v1887_v12  ;;  %v6982_v16 = vpop.f32.mrf.mxu1 }
 0x188   : > { %1962 = vst.msk [vmem:[%s8295_s10] sm:$0xf] %vm1892_vm2, %v1957_v14  ;;  %v1889_v17 = vpop.f32.mrf.mxu0 }
 0x189   : > { %v1959_v18 = vpop.f32.mrf.mxu1 }
 0x18a   : > { %v6975_v19 = vpop.f32.mrf.mxu0 }
 0x18b   : > { %v6983_v20 = vpop.f32.mrf.mxu1 }
 0x18c PF: > { %s9119_s20 = sld [smem:[#allocation62_spill]]  ;;  %v7886_v22 = vmov 0.0   ;;  %vm7887_vm3 = vmmov 0   ;;  %vm2340_vm4 = vcmask 523264   ;;  %vm3152_vm5 = vcmask 130048  }
 0x18d   : > { %6984 = vmatprep.subr.bf16.mxu0 %v7886_v22  ;;  %6996 = vmatprep.subr.bf16.mxu1 %v7886_v22  ;;  %s9120_s27 = sld [smem:[#allocation63_spill]]  ;;  %vm3394_vm6 = vcmask 1041408   ;;  %vm3337_vm7 = vcmask 27648   ;;  %vm3390_vm8 = vcmask 31744   ;;  %vm3787_vm9 = vcmask 519168  }
 0x18e   : > { %6992 = vmatprep.mubr.msk.bf16.mxu0 %vm7887_vm3, %v7886_v22  ;;  %7004 = vmatprep.mubr.msk.bf16.mxu1 %vm7887_vm3, %v7886_v22  ;;  %v2289_v29 = vld [vmem:[%s8292_s13] sm:$0xf]  ;;  %s9121_s11 = sld [smem:[#allocation64_spill]] }
 0x18f   : > { %v2291_v31 = vpack.c.bf16 %v2289_v29, %v2289_v29  ;;  %v2290_v47 = vld [vmem:[%s8295_s10] sm:$0xf]  ;;  %s9122_s16 = sld [smem:[#allocation67_spill]] }
 0x190   : > { %v8379_v50 = vpack.c.bf16 %v2290_v47, %v2290_v47  ;;  %s9123_s22 = sld [smem:[#allocation66_spill]] }
 0x191   : > { %s9124_s23 = sld [smem:[#allocation68_spill]] }
 0x192   : > { %v7537_v21 = vld [vmem:[%s9119_s20 + $0x18] sm:$0xff]   ;;  %v7539_v24 = vld [vmem:[%s9119_s20 + $0x10] sm:$0xff]   ;;  %v7541_v26 = vld [vmem:[%s9119_s20 + $0x8] sm:$0xff]   ;;  %s9125_s2 = sld [smem:[#allocation65_spill]] }
 0x193   : > { %v7538_v23 = vld [vmem:[%s9119_s20 + $0x38] sm:$0xff]   ;;  %6985 = vmatpush3.bf16.msra.mxu0 %v7537_v21  ;;  %v7540_v25 = vld [vmem:[%s9119_s20 + $0x30] sm:$0xff]   ;;  %v7542_v27 = vld [vmem:[%s9119_s20 + $0x28] sm:$0xff]   ;;  %s9126_s28 = sld [smem:[#allocation18_spill]] }
 0x194   : > { %6997 = vmatpush3.bf16.msra.mxu1 %v7538_v23  ;;  %6986 = vmatprep.subr.bf16.mxu0 %v7886_v22  ;;  %v7543_v28 = vld [vmem:[%s9119_s20] sm:$0xff]   ;;  %v7545_v32 = vld [vmem:[%s9119_s20 + $0x58] sm:$0xff]   ;;  %v7547_v34 = vld [vmem:[%s9119_s20 + $0x50] sm:$0xff]   ;;  %s9128_s5 = sld [smem:[#allocation69_spill]] }
 0x195   : > { %6998 = vmatprep.subr.bf16.mxu1 %v7886_v22  ;;  %v7544_v30 = vld [vmem:[%s9119_s20 + $0x20] sm:$0xff]   ;;  %v7546_v33 = vld [vmem:[%s9119_s20 + $0x78] sm:$0xff]   ;;  %v7548_v35 = vld [vmem:[%s9119_s20 + $0x70] sm:$0xff]   ;;  %s9129_s14 = sld [smem:[#allocation71_spill]] }
 0x196   : > { %v7549_v36 = vld [vmem:[%s9119_s20 + $0x48] sm:$0xff]   ;;  %v7551_v38 = vld [vmem:[%s9119_s20 + $0x40] sm:$0xff]   ;;  %v7553_v40 = vld [vmem:[%s9120_s27 + $0x18] sm:$0xff]   ;;  %s9130_s8 = sld [smem:[#allocation19_spill]] }
 0x197   : > { %6987 = vmatpush3.bf16.msra.mxu0 %v7539_v24  ;;  %v7550_v37 = vld [vmem:[%s9119_s20 + $0x68] sm:$0xff]   ;;  %v7552_v39 = vld [vmem:[%s9119_s20 + $0x60] sm:$0xff]   ;;  %v7554_v41 = vld [vmem:[%s9120_s27 + $0x38] sm:$0xff]   ;;  %s9131_s19 = sld [smem:[#allocation20_spill]] }
 0x198   : > { %6999 = vmatpush3.bf16.msra.mxu1 %v7540_v25  ;;  %6988 = vmatprep.subr.bf16.mxu0 %v7886_v22  ;;  %v7555_v42 = vld [vmem:[%s9120_s27 + $0x10] sm:$0xff]   ;;  %v7557_v44 = vld [vmem:[%s9120_s27 + $0x8] sm:$0xff]   ;;  %v7559_v46 = vld [vmem:[%s9120_s27] sm:$0xff]   ;;  %s9134_s6 = sld [smem:[#allocation70_spill]] }
 0x199   : > { %7000 = vmatprep.subr.bf16.mxu1 %v7886_v22  ;;  %v7556_v43 = vld [vmem:[%s9120_s27 + $0x30] sm:$0xff]   ;;  %v7558_v45 = vld [vmem:[%s9120_s27 + $0x28] sm:$0xff]   ;;  %v7560_v48 = vld [vmem:[%s9120_s27 + $0x20] sm:$0xff]   ;;  %s9127_s0 = scalar_lea.vmem %s9126_s28, %s8183_s1  ;;  %s9135_s20 = sld [smem:[#allocation24_spill]] }
 0x19a   : > { %v7561_v49 = vld [vmem:[%s9120_s27 + $0x58] sm:$0xff]   ;;  %v7563_v52 = vld [vmem:[%s9120_s27 + $0x50] sm:$0xff]   ;;  %v7565_v54 = vld [vmem:[%s9120_s27 + $0x48] sm:$0xff]  }
 0x19b   : > { %6989 = vmatpush3.bf16.msra.mxu0 %v7541_v26  ;;  %v7562_v51 = vld [vmem:[%s9120_s27 + $0x78] sm:$0xff]   ;;  %v7564_v53 = vld [vmem:[%s9120_s27 + $0x70] sm:$0xff]   ;;  %v7566_v55 = vld [vmem:[%s9120_s27 + $0x68] sm:$0xff]  }
 0x19c   : > { %7001 = vmatpush3.bf16.msra.mxu1 %v7542_v27  ;;  %6990 = vmatprep.subr.bf16.mxu0 %v7886_v22  ;;  %v7567_v56 = vld [vmem:[%s9120_s27 + $0x40] sm:$0xff]   ;;  %v7569_v58 = vld [vmem:[%s9121_s11 + $0x18] sm:$0xff]   ;;  %v7570_v59 = vld [vmem:[%s9121_s11 + $0x10] sm:$0xff]   ;;  %s9132_s24 = scalar_lea.vmem %s9130_s8, %s8183_s1 }
 0x19d   : > { %7002 = vmatprep.subr.bf16.mxu1 %v7886_v22  ;;  %v7568_v57 = vld [vmem:[%s9120_s27 + $0x60] sm:$0xff]   ;;  %v7571_v60 = vld [vmem:[%s9121_s11 + $0x8] sm:$0xff]   ;;  %v7573_v62 = vld [vmem:[%s9121_s11 + $0x58] sm:$0xff]   ;;  %s9133_s30 = scalar_lea.vmem %s9131_s19, %s8183_s1  ;;  %s9136_s27 = sld [smem:[#allocation72_spill]] }
 0x19e   : > { %v7572_v61 = vld [vmem:[%s9121_s11] sm:$0xff]   ;;  %v7574_v63 = vld [vmem:[%s9121_s11 + $0x38] sm:$0xff]   ;;  %v7575_v0 = vld [vmem:[%s9121_s11 + $0x50] sm:$0xff]  }
 0x19f   : > { %6991 = vmatpush3.bf16.msra.mxu0 %v7543_v28  ;;  %v7576_v1 = vld [vmem:[%s9121_s11 + $0x30] sm:$0xff]   ;;  %v7577_v2 = vld [vmem:[%s9121_s11 + $0x48] sm:$0xff]   ;;  %v7579_v4 = vld [vmem:[%s9121_s11 + $0x40] sm:$0xff]  }
 0x1a0   : > { %7003 = vmatpush3.bf16.msra.mxu1 %v7544_v30  ;;  %7008 = vmatprep.subr.bf16.mxu0 %v7886_v22  ;;  %v7578_v3 = vld [vmem:[%s9121_s11 + $0x28] sm:$0xff]   ;;  %v7580_v5 = vld [vmem:[%s9121_s11 + $0x20] sm:$0xff]   ;;  %v7581_v6 = vld [vmem:[%s9121_s11 + $0x78] sm:$0xff]  }
 0x1a1   : > { %7020 = vmatprep.subr.bf16.mxu1 %v7886_v22  ;;  %v7582_v7 = vld [vmem:[%s9121_s11 + $0x70] sm:$0xff]   ;;  %v7583_v8 = vld [vmem:[%s9121_s11 + $0x68] sm:$0xff]   ;;  %v7584_v9 = vld [vmem:[%s9121_s11 + $0x60] sm:$0xff]   ;;  %s9137_s11 = scalar_lea.vmem %s9135_s20, %s8183_s1 }
 0x1a2   : > { %6993 = vmatmul.mubr.msk.bf16.vlgmr.msra.gmra.mxu0 %vm2340_vm4, %v2291_v31  ;;  %v6516_v27 = vld [vmem:[%s9122_s16] ss:$0 sm:$0xff] }
 0x1a3   : > { %7005 = vmatmul.mubr.msk.bf16.vlgmr.msra.gmra.mxu1 %vm2340_vm4, %v2291_v31  ;;  %7009 = vmatpush3.bf16.msra.mxu0 %v7545_v32  ;;  %v6492_v28 = vld [vmem:[%s9123_s22] ss:$0 sm:$0xff]  ;;  %v6517_v32 = vld [vmem:[%s9122_s16 + $0x1] ss:$0 sm:$0xff] }
 0x1a4   : > { %7021 = vmatpush3.bf16.msra.mxu1 %v7546_v33  ;;  %7010 = vmatprep.subr.bf16.mxu0 %v7886_v22 }
 0x1a5   : > { %7022 = vmatprep.subr.bf16.mxu1 %v7886_v22  ;;  %7016 = vmatprep.mubr.msk.bf16.mxu0 %vm7887_vm3, %v7886_v22 }
 0x1a6   : > { %7028 = vmatprep.mubr.msk.bf16.mxu1 %vm7887_vm3, %v7886_v22 }
 0x1a7   : > { %7011 = vmatpush3.bf16.msra.mxu0 %v7547_v34 }
 0x1a8   : > { %7023 = vmatpush3.bf16.msra.mxu1 %v7548_v35  ;;  %7012 = vmatprep.subr.bf16.mxu0 %v7886_v22 }
 0x1a9   : > { %7024 = vmatprep.subr.bf16.mxu1 %v7886_v22 }
 0x1ab   : > { %7013 = vmatpush3.bf16.msra.mxu0 %v7549_v36 }
 0x1ac   : > { %7025 = vmatpush3.bf16.msra.mxu1 %v7550_v37  ;;  %7014 = vmatprep.subr.bf16.mxu0 %v7886_v22 }
 0x1ad   : > { %7026 = vmatprep.subr.bf16.mxu1 %v7886_v22 }
 0x1af   : > { %7015 = vmatpush3.bf16.msra.mxu0 %v7551_v38 }
 0x1b0   : > { %7027 = vmatpush3.bf16.msra.mxu1 %v7552_v39  ;;  %7032 = vmatprep.subr.bf16.mxu0 %v7886_v22 }
 0x1b1   : > { %7044 = vmatprep.subr.bf16.mxu1 %v7886_v22 }
 0x1b2   : > { %7017 = vmatmul.mubr.msk.bf16.vlgmr.msra.gmra.mxu0 %vm2340_vm4, %v2291_v31 }
 0x1b3   : > { %7029 = vmatmul.mubr.msk.bf16.vlgmr.msra.gmra.mxu1 %vm2340_vm4, %v2291_v31  ;;  %7033 = vmatpush3.bf16.msra.mxu0 %v7553_v40 }
 0x1b4   : > { %7045 = vmatpush3.bf16.msra.mxu1 %v7554_v41  ;;  %7034 = vmatprep.subr.bf16.mxu0 %v7886_v22 }
 0x1b5   : > { %7046 = vmatprep.subr.bf16.mxu1 %v7886_v22  ;;  %7040 = vmatprep.mubr.msk.bf16.mxu0 %vm7887_vm3, %v7886_v22 }
 0x1b6   : > { %7052 = vmatprep.mubr.msk.bf16.mxu1 %vm7887_vm3, %v7886_v22 }
 0x1b7   : > { %7035 = vmatpush3.bf16.msra.mxu0 %v7555_v42 }
 0x1b8   : > { %7047 = vmatpush3.bf16.msra.mxu1 %v7556_v43  ;;  %7036 = vmatprep.subr.bf16.mxu0 %v7886_v22 }
 0x1b9   : > { %7048 = vmatprep.subr.bf16.mxu1 %v7886_v22 }
 0x1bb   : > { %7037 = vmatpush3.bf16.msra.mxu0 %v7557_v44  ;;  %v6493_v44 = vld [vmem:[%s9123_s22 + $0x1] ss:$0 sm:$0xff] }
 0x1bc   : > { %7049 = vmatpush3.bf16.msra.mxu1 %v7558_v45  ;;  %7038 = vmatprep.subr.bf16.mxu0 %v7886_v22 }
 0x1bd   : > { %7050 = vmatprep.subr.bf16.mxu1 %v7886_v22 }
 0x1bf   : > { %7039 = vmatpush3.bf16.msra.mxu0 %v7559_v46 }
 0x1c0   : > { %7051 = vmatpush3.bf16.msra.mxu1 %v7560_v48  ;;  %7056 = vmatprep.subr.bf16.mxu0 %v7886_v22 }
 0x1c1   : > { %7068 = vmatprep.subr.bf16.mxu1 %v7886_v22 }
 0x1c2   : > { %7041 = vmatmul.mubr.msk.bf16.vlgmr.msra.gmra.mxu0 %vm2340_vm4, %v8379_v50 }
 0x1c3   : > { %7053 = vmatmul.mubr.msk.bf16.vlgmr.msra.gmra.mxu1 %vm2340_vm4, %v8379_v50  ;;  %7057 = vmatpush3.bf16.msra.mxu0 %v7561_v49  ;;  %v6518_v49 = vld [vmem:[%s9122_s16 + $0x2] ss:$0 sm:$0xff] }
 0x1c4   : > { %7069 = vmatpush3.bf16.msra.mxu1 %v7562_v51  ;;  %7058 = vmatprep.subr.bf16.mxu0 %v7886_v22 }
 0x1c5   : > { %7070 = vmatprep.subr.bf16.mxu1 %v7886_v22  ;;  %7064 = vmatprep.mubr.msk.bf16.mxu0 %vm7887_vm3, %v7886_v22 }
 0x1c6   : > { %7076 = vmatprep.mubr.msk.bf16.mxu1 %vm7887_vm3, %v7886_v22 }
 0x1c7   : > { %7059 = vmatpush3.bf16.msra.mxu0 %v7563_v52  ;;  %v6519_v52 = vld [vmem:[%s9122_s16 + $0x3] ss:$0 sm:$0xff]  ;;  %s9138_s16 = sld [smem:[#allocation73_spill]] }
 0x1c8   : > { %7071 = vmatpush3.bf16.msra.mxu1 %v7564_v53  ;;  %7060 = vmatprep.subr.bf16.mxu0 %v7886_v22  ;;  %v6494_v53 = vld [vmem:[%s9123_s22 + $0x2] ss:$0 sm:$0xff] }
 0x1c9   : > { %7072 = vmatprep.subr.bf16.mxu1 %v7886_v22 }
 0x1cb   : > { %7061 = vmatpush3.bf16.msra.mxu0 %v7565_v54 }
 0x1cc   : > { %7073 = vmatpush3.bf16.msra.mxu1 %v7566_v55  ;;  %7062 = vmatprep.subr.bf16.mxu0 %v7886_v22  ;;  %v6495_v55 = vld [vmem:[%s9123_s22 + $0x3] ss:$0 sm:$0xff]  ;;  %s9139_s22 = sld [smem:[#allocation25_spill]] }
 0x1cd   : > { %7074 = vmatprep.subr.bf16.mxu1 %v7886_v22 }
 0x1cf   : > { %7063 = vmatpush3.bf16.msra.mxu0 %v7567_v56 }
 0x1d0   : > { %7075 = vmatpush3.bf16.msra.mxu1 %v7568_v57  ;;  %7080 = vmatprep.subr.bf16.mxu0 %v7886_v22 }
 0x1d1   : > { %7092 = vmatprep.subr.bf16.mxu1 %v7886_v22 }
 0x1d2   : > { %7065 = vmatmul.mubr.msk.bf16.vlgmr.msra.gmra.mxu0 %vm2340_vm4, %v8379_v50 }
 0x1d3   : > { %7077 = vmatmul.mubr.msk.bf16.vlgmr.msra.gmra.mxu1 %vm2340_vm4, %v8379_v50  ;;  %7088 = vmatprep.mubr.msk.bf16.mxu0 %vm7887_vm3, %v7886_v22 }
 0x1d4   : > { %7100 = vmatprep.mubr.msk.bf16.mxu1 %vm7887_vm3, %v7886_v22  ;;  %7081 = vmatpush3.bf16.msra.mxu0 %v7569_v58 }
 0x1d5   : > { %7082 = vmatprep.subr.bf16.mxu0 %v7886_v22  ;;  %7093 = vmatpush3.bf16.msra.mxu1 %v7574_v63 }
 0x1d6   : > { %7094 = vmatprep.subr.bf16.mxu1 %v7886_v22 }
 0x1d8   : > { %7083 = vmatpush3.bf16.msra.mxu0 %v7570_v59 }
 0x1d9   : > { %7084 = vmatprep.subr.bf16.mxu0 %v7886_v22  ;;  %7095 = vmatpush3.bf16.msra.mxu1 %v7576_v1 }
 0x1da   : > { %7096 = vmatprep.subr.bf16.mxu1 %v7886_v22 }
 0x1dc   : > { %7085 = vmatpush3.bf16.msra.mxu0 %v7571_v60 }
 0x1dd   : > { %7086 = vmatprep.subr.bf16.mxu0 %v7886_v22  ;;  %7097 = vmatpush3.bf16.msra.mxu1 %v7578_v3 }
 0x1de   : > { %7098 = vmatprep.subr.bf16.mxu1 %v7886_v22 }
 0x1e0   : > { %7087 = vmatpush3.bf16.msra.mxu0 %v7572_v61 }
 0x1e1   : > { %7104 = vmatprep.subr.bf16.mxu0 %v7886_v22  ;;  %7099 = vmatpush3.bf16.msra.mxu1 %v7580_v5 }
 0x1e2   : > { %7116 = vmatprep.subr.bf16.mxu1 %v7886_v22 }
 0x1e3   : > { %7089 = vmatmul.mubr.msk.bf16.vlgmr.msra.gmra.mxu0 %vm2340_vm4, %v8379_v50 }
 0x1e4   : > { %7105 = vmatpush3.bf16.msra.mxu0 %v7573_v62  ;;  %7112 = vmatprep.mubr.msk.bf16.mxu0 %vm7887_vm3, %v7886_v22 }
 0x1e5   : > { %7106 = vmatprep.subr.bf16.mxu0 %v7886_v22  ;;  %7101 = vmatmul.mubr.msk.bf16.vlgmr.msra.gmra.mxu1 %vm2340_vm4, %v8379_v50 }
 0x1e6   : > { %7117 = vmatpush3.bf16.msra.mxu1 %v7581_v6  ;;  %7124 = vmatprep.mubr.msk.bf16.mxu1 %vm7887_vm3, %v7886_v22 }
 0x1e7   : > { %7118 = vmatprep.subr.bf16.mxu1 %v7886_v22 }
 0x1e8   : > { %7107 = vmatpush3.bf16.msra.mxu0 %v7575_v0 }
 0x1e9   : > { %7108 = vmatprep.subr.bf16.mxu0 %v7886_v22 }
 0x1ea   : > { %7119 = vmatpush3.bf16.msra.mxu1 %v7582_v7 }
 0x1eb   : > { %7120 = vmatprep.subr.bf16.mxu1 %v7886_v22 }
 0x1ec   : > { %7109 = vmatpush3.bf16.msra.mxu0 %v7577_v2 }
 0x1ed   : > { %7110 = vmatprep.subr.bf16.mxu0 %v7886_v22 }
 0x1ee   : > { %7121 = vmatpush3.bf16.msra.mxu1 %v7583_v8 }
 0x1ef   : > { %7122 = vmatprep.subr.bf16.mxu1 %v7886_v22 }
 0x1f0   : > { %7111 = vmatpush3.bf16.msra.mxu0 %v7579_v4 }
 0x1f1   : > { %7128 = vmatprep.subr.bf16.mxu0 %v7886_v22 }
 0x1f2   : > { %7123 = vmatpush3.bf16.msra.mxu1 %v7584_v9 }
 0x1f3   : > { %7113 = vmatmul.mubr.msk.bf16.vlgmr.msra.gmra.mxu0 %vm2340_vm4, %v8379_v50  ;;  %7146 = vmatprep.subr.bf16.mxu1 %v7886_v22 }
 0x1f4   : > { %7130 = vmatprep.mubr.msk.bf16.mxu0 %vm7887_vm3, %v7886_v22 }
 0x1f5   : > { %7125 = vmatmul.mubr.msk.bf16.vlgmr.msra.gmra.mxu1 %vm2340_vm4, %v8379_v50 }
 0x1f6   : > { %7148 = vmatprep.mubr.msk.bf16.mxu1 %vm7887_vm3, %v7886_v22 }
 0x262   : > { %v2378_v10 = vpop.f32.mrf.mxu0 }
 0x263   : > { %v2442_v11 = vpop.f32.mrf.mxu1  ;;  %v2379_v34 = vadd.f32 %v6492_v28, %v2378_v10 }
 0x264   : > { %v6994_v12 = vpop.f32.mrf.mxu0  ;;  %v2443_v47 = vadd.f32 %v6493_v44, %v2442_v11 }
 0x265   : > { %v7006_v13 = vpop.f32.mrf.mxu1  ;;  %v3140_v42 = vmul.f32 0.25, %v2379_v34  ;;  %v6540_v12 = vld [vmem:[%s9124_s23] ss:$0 sm:$0xff] }
 0x266   : > { %v2381_v14 = vpop.f32.mrf.mxu0  ;;  %v3141_v51 = vmul.f32 0.25, %v2443_v47 }
 0x267   : > { %v2445_v15 = vpop.f32.mrf.mxu1  ;;  %v3144_v46 = vpack.c.bf16 %v3140_v42, %v3140_v42 }
 0x268   : > { %v6995_v16 = vpop.f32.mrf.mxu0  ;;  %v3145_v60 = vpack.c.bf16 %v3141_v51, %v3141_v51 }
 0x269   : > { %v7007_v17 = vpop.f32.mrf.mxu1 }
 0x272   : > { %v2506_v18 = vpop.f32.mrf.mxu0 }
 0x273   : > { %v2570_v19 = vpop.f32.mrf.mxu1  ;;  %v2507_v61 = vadd.f32 %v6494_v53, %v2506_v18 }
 0x274   : > { %v7018_v20 = vpop.f32.mrf.mxu0  ;;  %v2571_v0 = vadd.f32 %v6495_v55, %v2570_v19 }
 0x275   : > { %v7030_v21 = vpop.f32.mrf.mxu1  ;;  %v3142_v7 = vmul.f32 0.25, %v2507_v61 }
 0x276   : > { %v2509_v23 = vpop.f32.mrf.mxu0  ;;  %v3143_v9 = vmul.f32 0.25, %v2571_v0 }
 0x277   : > { %v2573_v24 = vpop.f32.mrf.mxu1  ;;  %v3146_v10 = vpack.c.bf16 %v3142_v7, %v3142_v7  ;;  %v6541_v23 = vld [vmem:[%s9124_s23 + $0x1] ss:$0 sm:$0xff] }
 0x278   : > { %v7019_v25 = vpop.f32.mrf.mxu0  ;;  %v3147_v11 = vpack.c.bf16 %v3143_v9, %v3143_v9 }
 0x279   : > { %v7031_v26 = vpop.f32.mrf.mxu1 }
 0x282   : > { %v2662_v29 = vpop.f32.mrf.mxu0 }
 0x283   : > { %v2663_v30 = vadd.f32 %v6516_v27, %v2662_v29  ;;  %v2726_v31 = vpop.f32.mrf.mxu1 }
 0x284   : > { %v7042_v33 = vpop.f32.mrf.mxu0  ;;  %v2727_v39 = vadd.f32 %v6517_v32, %v2726_v31 }
 0x285   : > { %v3148_v35 = vpack.c.bf16 %v2663_v30, %v2663_v30  ;;  %v7054_v36 = vpop.f32.mrf.mxu1 }
 0x286   : > { %v2665_v37 = vpop.f32.mrf.mxu0  ;;  %v3149_v45 = vpack.c.bf16 %v2727_v39, %v2727_v39 }
 0x287   : > { %v3157_v38 = vsel %vm3152_vm5, %v3148_v35, 0  ;;  %v2729_v40 = vpop.f32.mrf.mxu1 }
 0x288   : > { %v7043_v41 = vpop.f32.mrf.mxu0  ;;  %7129 = vmatpush3.bf16.xpose.msra.mxu0 %v3157_v38  ;;  %v3203_v48 = vsel %vm3152_vm5, %v3149_v45, 0 }
 0x289   : > { %v7055_v43 = vpop.f32.mrf.mxu1  ;;  %7134 = vmatprep.subr.bf16.mxu0 %v7886_v22 }
 0x28f   : > { %7131 = vmatmul.mubr.msk.bf16.vlgmr.msra.gmra.mxu0 %vm3152_vm5, %v3144_v46 }
 0x290   : > { %7135 = vmatpush3.bf16.xpose.msra.mxu0 %v3203_v48  ;;  %7136 = vmatprep.mubr.msk.bf16.mxu0 %vm7887_vm3, %v7886_v22 }
 0x291   : > { %7140 = vmatprep.subr.bf16.mxu0 %v7886_v22 }
 0x292   : > { %v2790_v54 = vpop.f32.mrf.mxu0 }
 0x293   : > { %v2791_v56 = vadd.f32 %v6518_v49, %v2790_v54  ;;  %v2854_v57 = vpop.f32.mrf.mxu1 }
 0x294   : > { %v2855_v58 = vadd.f32 %v6519_v52, %v2854_v57  ;;  %v7066_v59 = vpop.f32.mrf.mxu0 }
 0x295   : > { %v3150_v62 = vpack.c.bf16 %v2791_v56, %v2791_v56  ;;  %v7078_v63 = vpop.f32.mrf.mxu1 }
 0x296   : > { %v3151_v1 = vpack.c.bf16 %v2855_v58, %v2855_v58  ;;  %v2793_v2 = vpop.f32.mrf.mxu0 }
 0x297   : > { %v3249_v3 = vsel %vm3152_vm5, %v3150_v62, 0  ;;  %v2857_v4 = vpop.f32.mrf.mxu1  ;;  %7137 = vmatmul.mubr.msk.bf16.vlgmr.msra.gmra.mxu0 %vm3152_vm5, %v3145_v60 }
 0x298   : > { %v3295_v5 = vsel %vm3152_vm5, %v3151_v1, 0  ;;  %v7067_v6 = vpop.f32.mrf.mxu0  ;;  %7141 = vmatpush3.bf16.xpose.msra.mxu0 %v3249_v3  ;;  %7142 = vmatprep.mubr.msk.bf16.mxu0 %vm7887_vm3, %v7886_v22 }
 0x299   : > { %v7079_v8 = vpop.f32.mrf.mxu1  ;;  %7147 = vmatpush3.bf16.xpose.msra.mxu1 %v3295_v5  ;;  %7152 = vmatprep.subr.bf16.mxu0 %v7886_v22 }
 0x29a   : > { %7158 = vmatprep.subr.bf16.mxu1 %v7886_v22 }
 0x29f   : > { %7143 = vmatmul.mubr.msk.bf16.vlgmr.msra.gmra.mxu0 %vm3152_vm5, %v3146_v10 }
 0x2a0   : > { %7149 = vmatmul.mubr.msk.bf16.vlgmr.msra.gmra.mxu1 %vm3152_vm5, %v3147_v11  ;;  %7154 = vmatprep.mubr.msk.bf16.mxu0 %vm7887_vm3, %v7886_v22 }
 0x2a1   : > { %7160 = vmatprep.mubr.msk.bf16.mxu1 %vm7887_vm3, %v7886_v22 }
 0x2a3   : > { %v2942_v13 = vpop.f32.mrf.mxu0 }
 0x2a4   : > { %v2943_v14 = vadd.f32 %v6540_v12, %v2942_v13 }
 0x2a5   : > { %v7090_v15 = vpop.f32.mrf.mxu0  ;;  %v3006_v25 = vpop.f32.mrf.mxu1 }
 0x2a6   : > { %v3386_v16 = vpack.c.bf16 %v2943_v14, %v2943_v14  ;;  %v3007_v26 = vadd.f32 %v6541_v23, %v3006_v25  ;;  %v6542_v15 = vld [vmem:[%s9124_s23 + $0x2] ss:$0 sm:$0xff]  ;;  %v6543_v23 = vld [vmem:[%s9124_s23 + $0x3] ss:$0 sm:$0xff]  ;;  %s9140_s23 = sld [smem:[#allocation26_spill]] }
 0x2a7   : > { %v2945_v17 = vpop.f32.mrf.mxu0  ;;  %v7102_v28 = vpop.f32.mrf.mxu1 }
 0x2a8   : > { %v3396_v18 = vsel %vm3394_vm6, %v3386_v16, 0  ;;  %v3387_v29 = vpack.c.bf16 %v3007_v26, %v3007_v26 }
 0x2a9   : > { %v7091_v19 = vpop.f32.mrf.mxu0  ;;  %7153 = vmatpush3.bf16.msra.mxu0 %v3396_v18  ;;  %v3009_v30 = vpop.f32.mrf.mxu1 }
 0x2aa   : > { %7164 = vmatprep.subr.bf16.mxu0 %v7886_v22  ;;  %v3442_v31 = vsel %vm3394_vm6, %v3387_v29, 0 }
 0x2ab   : > { %v7103_v32 = vpop.f32.mrf.mxu1  ;;  %7159 = vmatpush3.bf16.msra.mxu1 %v3442_v31 }
 0x2ac   : > { %7170 = vmatprep.subr.bf16.mxu1 %v7886_v22  ;;  %s9142_s28 = scalar_lea.vmem %s9140_s23, %s8183_s1 }
 0x2b3   : > { %v8493_v20 = vpop.f32.mrf.mxu0 }
 0x2b4   : > { %v3071_v17 = vadd.f32 %v6542_v15, %v8493_v20 }
 0x2b5   : > { %v7114_v21 = vpop.f32.mrf.mxu0  ;;  %v8498_v33 = vpop.f32.mrf.mxu1 }
 0x2b6   : > { %v3388_v19 = vpack.c.bf16 %v3071_v17, %v3071_v17 }
 0x2b7   : > { %v3073_v24 = vpop.f32.mrf.mxu0  ;;  %v7126_v34 = vpop.f32.mrf.mxu1 }
 0x2b8   : > { %v3488_v26 = vsel %vm3394_vm6, %v3388_v19, 0 }
 0x2b9   : > { %v7115_v27 = vpop.f32.mrf.mxu0  ;;  %v3137_v35 = vpop.f32.mrf.mxu1 }
 0x2ba   : > { %v3135_v27 = vadd.f32 %v6543_v23, %v8498_v33 }
 0x2bb   : > { %v7127_v36 = vpop.f32.mrf.mxu1 }
 0x2bc   : > { %v3389_v29 = vpack.c.bf16 %v3135_v27, %v3135_v27 }
 0x2be   : > { %v3534_v32 = vsel %vm3394_vm6, %v3389_v29, 0 }
 0x34f   : > { %v3193_v37 = vpop.f32.mrf.mxu0 }
 0x350   : > { %v3338_v38 = vsel %vm3337_vm7, %v3193_v37, -inf }
 0x351   : > { %3339 = vmax.xlane.f32.xlu0 %v3338_v38  ;;  %v7132_v39 = vpop.f32.mrf.mxu0 }
 0x352   : > { %v7585_v39 = vld [vmem:[%s9125_s2] sm:$0xff]  }
 0x353   : > { %v3196_v40 = vpop.f32.mrf.mxu0 }
 0x354   : > { %v7586_v40 = vld [vmem:[%s9125_s2 + $0x8] sm:$0xff]  }
 0x355   : > { %v7133_v41 = vpop.f32.mrf.mxu0 }
 0x357   : > { %v3239_v42 = vpop.f32.mrf.mxu0 }
 0x358   : > { %v3341_v43 = vsel %vm3337_vm7, %v3239_v42, -inf }
 0x359   : > { %3342 = vmax.xlane.f32.xlu0 %v3341_v43  ;;  %v7138_v44 = vpop.f32.mrf.mxu0 }
 0x35b   : > { %v3242_v45 = vpop.f32.mrf.mxu0 }
 0x35d   : > { %v7139_v46 = vpop.f32.mrf.mxu0 }
 0x35f   : > { %v3285_v47 = vpop.f32.mrf.mxu0 }
 0x360   : > { %v3331_v48 = vpop.f32.mrf.mxu1  ;;  %v3344_v49 = vsel %vm3337_vm7, %v3285_v47, -inf }
 0x361   : > { %3345 = vmax.xlane.f32.xlu1 %v3344_v49  ;;  %v7144_v51 = vpop.f32.mrf.mxu0  ;;  %v3347_v55 = vsel %vm3337_vm7, %v3331_v48, -inf }
 0x362   : > { %v7150_v52 = vpop.f32.mrf.mxu1 }
 0x363   : > { %v3288_v53 = vpop.f32.mrf.mxu0 }
 0x364   : > { %v3334_v54 = vpop.f32.mrf.mxu1 }
 0x365   : > { %3348 = vmax.xlane.f32.xlu1 %v3347_v55  ;;  %v7145_v56 = vpop.f32.mrf.mxu0 }
 0x366   : > { %v7151_v57 = vpop.f32.mrf.mxu1 }
 0x3da   : > { %v3340_v58 = vpop.xlane.xlu0 %3339 }
 0x3db   : > { %v3350_v59 = vsub.f32 %v3193_v37, %v3340_v58 }
 0x3dd   : > { %v3354_v60 = vmul.f32 1.442695, %v3350_v59 }
 0x3df   : > { %7697 = vpow2.f32 %v3354_v60 }
 0x3e2   : > { %v3343_v61 = vpop.xlane.xlu0 %3342 }
 0x3e3   : > { %v3351_v62 = vsub.f32 %v3239_v42, %v3343_v61  ;;  %v7587_v42 = vld [vmem:[%s9125_s2 + $0x10] sm:$0xff]  }
 0x3e5   : > { %v3356_v63 = vmul.f32 1.442695, %v3351_v62 }
 0x3e7   : > { %7699 = vpow2.f32 %v3356_v63 }
 0x3ea   : > { %v3346_v0 = vpop.xlane.xlu1 %3345 }
 0x3eb   : > { %v3352_v1 = vsub.f32 %v3285_v47, %v3346_v0 }
 0x3ec   : > { %v7698_v2 = vpop.eup %7697 }
 0x3ed   : > { %v3358_v3 = vmul.f32 1.442695, %v3352_v1  ;;  %v3362_v4 = vsel %vm3337_vm7, %v7698_v2, 0.0 }
 0x3ee   : > { %3363 = vadd.xlane.f32.xlu0 %v3362_v4  ;;  %v3349_v5 = vpop.xlane.xlu1 %3348 }
 0x3ef   : > { %7701 = vpow2.f32 %v3358_v3  ;;  %v3353_v6 = vsub.f32 %v3331_v48, %v3349_v5  ;;  %v7588_v48 = vld [vmem:[%s9125_s2 + $0x18] sm:$0xff]   ;;  %s9141_s2 = scalar_lea.vmem %s9139_s22, %s8183_s1 }
 0x3f1   : > { %v3360_v7 = vmul.f32 1.442695, %v3353_v6 }
 0x3f3   : > { %7703 = vpow2.f32 %v3360_v7 }
 0x3f4   : > { %v7700_v8 = vpop.eup %7699 }
 0x3f5   : > { %v3365_v9 = vsel %vm3337_vm7, %v7700_v8, 0.0 }
 0x3f6   : > { %3366 = vadd.xlane.f32.xlu1 %v3365_v9 }
 0x3fc   : > { %v7702_v10 = vpop.eup %7701 }
 0x3fd   : > { %v3368_v11 = vsel %vm3337_vm7, %v7702_v10, 0.0 }
 0x3fe   : > { %3369 = vadd.xlane.f32.xlu0 %v3368_v11 }
 0x400   : > { %v7704_v12 = vpop.eup %7703 }
 0x401   : > { %v3371_v13 = vsel %vm3337_vm7, %v7704_v12, 0.0 }
 0x402   : > { %3372 = vadd.xlane.f32.xlu1 %v3371_v13  ;;  %v6580_v13 = vld [vmem:[%s9127_s0] ss:$0 sm:$0xff]  ;;  %s9143_s0 = sld [smem:[#allocation74_spill]] }
 0x477   : > { %v3364_v14 = vpop.xlane.xlu0 %3363 }
 0x478   : > { %7705 = vrcp.f32 %v3364_v14 }
 0x47f   : > { %v3367_v16 = vpop.xlane.xlu1 %3366 }
 0x480   : > { %7707 = vrcp.f32 %v3367_v16 }
 0x485   : > { %v7706_v18 = vpop.eup %7705 }
 0x486   : > { %v3378_v21 = vmul.f32 %v7706_v18, %v7698_v2 }
 0x487   : > { %v3370_v24 = vpop.xlane.xlu0 %3369 }
 0x488   : > { %7709 = vrcp.f32 %v3370_v24  ;;  %v3382_v25 = vpack.c.bf16 %v3378_v21, %v3378_v21  ;;  %v7745_v21 = vld [vmem:[%s8292_s13] sm:$0xf] }
 0x48a   : > { %7155 = vmatmul.mubr.msk.bf16.vlgmr.msra.gmra.mxu0 %vm3390_vm8, %v3382_v25 }
 0x48b   : > { %7165 = vmatpush3.bf16.msra.mxu0 %v3488_v26  ;;  %v3373_v28 = vpop.xlane.xlu1 %3372  ;;  %7166 = vmatprep.mubr.msk.bf16.mxu0 %vm7887_vm3, %v7886_v22 }
 0x48c   : > { %7711 = vrcp.f32 %v3373_v28  ;;  %7176 = vmatprep.subr.bf16.mxu0 %v7886_v22 }
 0x48d   : > { %v7708_v20 = vpop.eup %7707 }
 0x48e   : > { %v3379_v30 = vmul.f32 %v7708_v20, %v7700_v8 }
 0x490   : > { %v3383_v31 = vpack.c.bf16 %v3379_v30, %v3379_v30  ;;  %v7591_v30 = vld [vmem:[%s9128_s5 + $0x34] ss:$8 sps:$4 sm:$0xff]  }
 0x492   : > { %7161 = vmatmul.mubr.msk.bf16.vlgmr.msra.gmra.mxu1 %vm3390_vm8, %v3383_v31  ;;  %v7589_v31 = vld [vmem:[%s9128_s5 + $0x30] ss:$8 sps:$4 sm:$0xff]  }
 0x493   : > { %7171 = vmatpush3.bf16.msra.mxu1 %v3534_v32  ;;  %7172 = vmatprep.mubr.msk.bf16.mxu1 %vm7887_vm3, %v7886_v22  ;;  %v7594_v32 = vld [vmem:[%s9128_s5 + $0x24] ss:$8 sps:$4 sm:$0xff]  }
 0x494   : > { %7182 = vmatprep.subr.bf16.mxu1 %v7886_v22 }
 0x495   : > { %v7710_v33 = vpop.eup %7709 }
 0x496   : > { %v3380_v34 = vmul.f32 %v7710_v33, %v7702_v10  ;;  %v7592_v33 = vld [vmem:[%s9128_s5 + $0x20] ss:$8 sps:$4 sm:$0xff]  }
 0x498   : > { %v3384_v35 = vpack.c.bf16 %v3380_v34, %v3380_v34  ;;  %v7597_v34 = vld [vmem:[%s9128_s5 + $0x14] ss:$8 sps:$4 sm:$0xff]  }
 0x499   : > { %v7712_v36 = vpop.eup %7711 }
 0x49a   : > { %7167 = vmatmul.mubr.msk.bf16.vlgmr.msra.gmra.mxu0 %vm3390_vm8, %v3384_v35  ;;  %v3381_v37 = vmul.f32 %v7712_v36, %v7704_v12  ;;  %v7595_v35 = vld [vmem:[%s9128_s5 + $0x10] ss:$8 sps:$4 sm:$0xff]   ;;  %v7600_v36 = vld [vmem:[%s9128_s5 + $0x4] ss:$8 sps:$4 sm:$0xff]  }
 0x49b   : > { %7178 = vmatprep.mubr.msk.bf16.mxu0 %vm7887_vm3, %v7886_v22  ;;  %7177 = vmatpush3.bf16.msra.mxu0 %v7585_v39  ;;  %v7601_v39 = vld [vmem:[%s9129_s14 + $0x78] sm:$0xff]  }
 0x49c   : > { %v3385_v38 = vpack.c.bf16 %v3381_v37, %v3381_v37  ;;  %7188 = vmatprep.subr.bf16.mxu0 %v7886_v22  ;;  %v7598_v37 = vld [vmem:[%s9128_s5] ss:$8 sps:$4 sm:$0xff]   ;;  %s9144_s5 = sld [smem:[#allocation76_spill]] }
 0x49e   : > { %7173 = vmatmul.mubr.msk.bf16.vlgmr.msra.gmra.mxu1 %vm3390_vm8, %v3385_v38  ;;  %v7888_v38 = vmov 0  }
 0x49f   : > { %7184 = vmatprep.mubr.msk.bf16.mxu1 %vm7887_vm3, %v7886_v22  ;;  %7183 = vmatpush3.bf16.msra.mxu1 %v7586_v40  ;;  %v7602_v40 = vld [vmem:[%s9129_s14 + $0x38] sm:$0xff]  }
 0x4a0   : > { %7194 = vmatprep.subr.bf16.mxu1 %v7886_v22 }
 0x54a   : > { %v3432_v41 = vpop.f32.mrf.mxu0 }
 0x54b   : > { %v3576_v43 = vpack.c.bf16 %v3432_v41, %v3432_v41 }
 0x54c   : > { %v7156_v44 = vpop.f32.mrf.mxu0 }
 0x54d   : > { %7179 = vmatmul.mubr.msk.bf16.vlgmr.msra.gmra.mxu0 %vm3152_vm5, %v3576_v43 }
 0x54e   : > { %v3435_v45 = vpop.f32.mrf.mxu0  ;;  %7189 = vmatpush3.bf16.msra.mxu0 %v7587_v42  ;;  %7190 = vmatprep.mubr.msk.bf16.mxu0 %vm7887_vm3, %v7886_v22 }
 0x54f   : > { %3879 = vmatprep.subr.bf16.mxu0 %v7591_v30  ;;  %v6581_v45 = vld [vmem:[%s9132_s24] ss:$0 sm:$0xff] }
 0x550   : > { %v7157_v46 = vpop.f32.mrf.mxu0 }
 0x552   : > { %v3478_v47 = vpop.f32.mrf.mxu1 }
 0x553   : > { %v3577_v49 = vpack.c.bf16 %v3478_v47, %v3478_v47  ;;  %v6582_v47 = vld [vmem:[%s9133_s30] ss:$0 sm:$0xff] }
 0x554   : > { %v7162_v51 = vpop.f32.mrf.mxu1 }
 0x555   : > { %7185 = vmatmul.mubr.msk.bf16.vlgmr.msra.gmra.mxu1 %vm3152_vm5, %v3577_v49 }
 0x556   : > { %v3481_v52 = vpop.f32.mrf.mxu1  ;;  %7195 = vmatpush3.bf16.msra.mxu1 %v7588_v48  ;;  %7196 = vmatprep.mubr.msk.bf16.mxu1 %vm7887_vm3, %v7886_v22 }
 0x557   : > { %6840 = vmatprep.subr.bf16.mxu1 %v7601_v39  ;;  %v7603_v52 = vld [vmem:[%s9129_s14 + $0x70] sm:$0xff]  }
 0x558   : > { %v7163_v53 = vpop.f32.mrf.mxu1  ;;  %v7618_v39 = vld [vmem:[%s9136_s27 + $0x10] sm:$0xff]  }
 0x559   : > { %v7604_v53 = vld [vmem:[%s9129_s14 + $0x30] sm:$0xff]  }
 0x55a   : > { %v3524_v54 = vpop.f32.mrf.mxu0 }
 0x55b   : > { %v3578_v55 = vpack.c.bf16 %v3524_v54, %v3524_v54  ;;  %v7605_v54 = vld [vmem:[%s9129_s14 + $0x68] sm:$0xff]  }
 0x55c   : > { %v7168_v56 = vpop.f32.mrf.mxu0 }
 0x55d   : > { %7191 = vmatmul.mubr.msk.bf16.vlgmr.msra.gmra.mxu0 %vm3152_vm5, %v3578_v55  ;;  %v7606_v55 = vld [vmem:[%s9129_s14 + $0x28] sm:$0xff]   ;;  %v7607_v56 = vld [vmem:[%s9129_s14 + $0x60] sm:$0xff]  }
 0x55e   : > { %v3527_v57 = vpop.f32.mrf.mxu0  ;;  %v3570_v58 = vpop.f32.mrf.mxu1  ;;  %3880 = vmatpush1.bf16.msra.mxu0 %v7589_v31  ;;  %3903 = vmatprep.mubr.bf16.mxu0 %v7888_v38 }
 0x55f   : > { %v3579_v59 = vpack.c.bf16 %v3570_v58, %v3570_v58  ;;  %3881 = vmatprep.subr.bf16.mxu0 %v7594_v32  ;;  %v7608_v57 = vld [vmem:[%s9129_s14 + $0x20] sm:$0xff]   ;;  %v7609_v58 = vld [vmem:[%s9129_s14 + $0x58] sm:$0xff]  }
 0x560   : > { %v7169_v60 = vpop.f32.mrf.mxu0  ;;  %v7174_v61 = vpop.f32.mrf.mxu1 }
 0x561   : > { %7197 = vmatmul.mubr.msk.bf16.vlgmr.msra.gmra.mxu1 %vm3152_vm5, %v3579_v59  ;;  %v7610_v59 = vld [vmem:[%s9129_s14 + $0x18] sm:$0xff]   ;;  %v7611_v60 = vld [vmem:[%s9129_s14 + $0x50] sm:$0xff]  }
 0x562   : > { %v3573_v62 = vpop.f32.mrf.mxu1  ;;  %3882 = vmatpush1.bf16.msra.mxu0 %v7592_v33  ;;  %6841 = vmatpush3.bf16.msra.mxu1 %v7602_v40  ;;  %v7612_v61 = vld [vmem:[%s9129_s14 + $0x10] sm:$0xff]   ;;  %v7625_v40 = vld [vmem:[%s9136_s27 + $0x58] sm:$0xff]  }
 0x563   : > { %3883 = vmatprep.subr.bf16.mxu0 %v7597_v34  ;;  %6842 = vmatprep.subr.bf16.mxu1 %v7603_v52  ;;  %v7613_v62 = vld [vmem:[%s9129_s14 + $0x48] sm:$0xff]  }
 0x564   : > { %v7175_v63 = vpop.f32.mrf.mxu1  ;;  %v7630_v52 = vld [vmem:[%s9136_s27 + $0x68] sm:$0xff]  }
 0x565   : > { %v7614_v63 = vld [vmem:[%s9129_s14 + $0x8] sm:$0xff]  }
 0x566   : > { %3884 = vmatpush1.bf16.msra.mxu0 %v7595_v35  ;;  %6843 = vmatpush3.bf16.msra.mxu1 %v7604_v53 }
 0x567   : > { %3885 = vmatprep.subr.bf16.mxu0 %v7600_v36  ;;  %6844 = vmatprep.subr.bf16.mxu1 %v7605_v54 }
 0x56a   : > { %3886 = vmatpush1.bf16.msra.mxu0 %v7598_v37  ;;  %6845 = vmatpush3.bf16.msra.mxu1 %v7606_v55  ;;  %v7617_v37 = vld [vmem:[%s9136_s27 + $0x18] sm:$0xff]  }
 0x56b   : > { %7200 = vmatprep.subr.bf16.mxu0 %v7886_v22  ;;  %6846 = vmatprep.subr.bf16.mxu1 %v7607_v56 }
 0x56e   : > { %6847 = vmatpush3.bf16.msra.mxu1 %v7608_v57 }
 0x56f   : > { %6848 = vmatprep.subr.bf16.mxu1 %v7609_v58  ;;  %v7631_v58 = vld [vmem:[%s9136_s27 + $0x40] sm:$0xff]  }
 0x572   : > { %6849 = vmatpush3.bf16.msra.mxu1 %v7610_v59  ;;  %v7632_v59 = vld [vmem:[%s9136_s27 + $0x60] sm:$0xff]  }
 0x573   : > { %6850 = vmatprep.subr.bf16.mxu1 %v7611_v60  ;;  %v7633_v60 = vld [vmem:[%s9138_s16 + $0x18] sm:$0xff]  }
 0x576   : > { %6851 = vmatpush3.bf16.msra.mxu1 %v7612_v61  ;;  %v7634_v61 = vld [vmem:[%s9138_s16 + $0x38] sm:$0xff]  }
 0x577   : > { %6852 = vmatprep.subr.bf16.mxu1 %v7613_v62  ;;  %v7635_v62 = vld [vmem:[%s9138_s16 + $0x10] sm:$0xff]  }
 0x57a   : > { %6853 = vmatpush3.bf16.msra.mxu1 %v7614_v63  ;;  %v7636_v63 = vld [vmem:[%s9138_s16 + $0x30] sm:$0xff]  }
 0x60d   : > { %v3623_v0 = vpop.f32.mrf.mxu0 }
 0x60f   : > { %v7180_v1 = vpop.f32.mrf.mxu0 }
 0x610   : > { %v7616_v1 = vld [vmem:[%s9129_s14] sm:$0xff]  }
 0x611   : > { %v3626_v2 = vpop.f32.mrf.mxu0 }
 0x612   : > { %v3818_v2 = vlaneseq }
 0x613   : > { %v7181_v3 = vpop.f32.mrf.mxu0 }
 0x614   : > { %v8588_v3 = vshrl.u32 %v3818_v2, 7  ;;  %v7640_v2 = vld [vmem:[%s9138_s16 + $0x20] sm:$0xff]  }
 0x615   : > { %v3672_v4 = vpop.f32.mrf.mxu1 }
 0x616   : > { %v3776_v9 = vadd.f32 %v3672_v4, %v3623_v0  ;;  %v7615_v0 = vld [vmem:[%s9129_s14 + $0x40] sm:$0xff]   ;;  %v3820_v4 = vsub.s32 0, %v8588_v3  ;;  %s9145_s14 = sld [smem:[#allocation75_spill]] }
 0x617   : > { %v7186_v5 = vpop.f32.mrf.mxu1  ;;  %6854 = vmatprep.subr.bf16.mxu1 %v7615_v0  ;;  %v7638_v0 = vld [vmem:[%s9138_s16 + $0x28] sm:$0xff]  }
 0x618   : > { %6855 = vmatpush3.bf16.msra.mxu1 %v7616_v1  ;;  %v2090_v5 = vld [vmem:[%s9134_s6] sm:$0x3] }
 0x619   : > { %v3675_v6 = vpop.f32.mrf.mxu1  ;;  %7224 = vmatprep.subr.bf16.mxu1 %v7886_v22  ;;  %v7639_v1 = vld [vmem:[%s9138_s16] sm:$0xff]  }
 0x61a   : > { %v3824_v6 = vsub.s32 1, %v8588_v3 }
 0x61b   : > { %v7187_v7 = vpop.f32.mrf.mxu1 }
 0x61c   : > { %v3821_v7 = vrot.slane %v2090_v5, %v3820_v4 }
 0x61d   : > { %v3721_v8 = vpop.f32.mrf.mxu0 }
 0x61e   : > { %v3777_v11 = vadd.f32 %v3776_v9, %v3721_v8  ;;  %v3825_v8 = vrot.slane %v2090_v5, %v3824_v6 }
 0x61f   : > { %v7192_v10 = vpop.f32.mrf.mxu0 }
 0x621   : > { %v3724_v12 = vpop.f32.mrf.mxu0  ;;  %v3770_v14 = vpop.f32.mrf.mxu1 }
 0x622   : > { %v3778_v15 = vadd.f32 %v3777_v11, %v3770_v14 }
 0x623   : > { %v7193_v16 = vpop.f32.mrf.mxu0  ;;  %v7198_v17 = vpop.f32.mrf.mxu1 }
 0x624   : > { %v3785_v18 = vadd.f32 %v6580_v13, %v3778_v15 }
 0x625   : > { %v3773_v19 = vpop.f32.mrf.mxu1 }
 0x626   : > { %v3786_v23 = vadd.f32 %v7745_v21, %v3785_v18 }
 0x627   : > { %v7199_v24 = vpop.f32.mrf.mxu1 }
 0x628   : > { %v3788_v25 = vsel %vm3787_vm9, %v3786_v23, 0.0 }
 0x629   : > { %3789 = vadd.xlane.f32.xlu0 %v3788_v25 }
 0x6b2   : > { %v3790_v26 = vpop.xlane.xlu0 %3789 }
 0x6b3   : > { %v3792_v27 = vmul.f32 0.015625, %v3790_v26 }
 0x6b5   : > { %v3793_v28 = vsub.f32 %v3786_v23, %v3792_v27 }
 0x6b7   : > { %v3794_v20 = vmul.f32 %v3793_v28, %v3793_v28 }
 0x6b9   : > { %v3795_v29 = vsel %vm3787_vm9, %v3794_v20, 0.0 }
 0x6ba   : > { %3796 = vadd.xlane.f32.xlu1 %v3795_v29  ;;  %v6592_v29 = vld [vmem:[%s9137_s11] ss:$0 sm:$0xff] }
 0x743   : > { %v3797_v41 = vpop.xlane.xlu1 %3796 }
 0x744   : > { %v3798_v42 = vmul.f32 0.015625, %v3797_v41  ;;  %v7627_v41 = vld [vmem:[%s9136_s27 + $0x50] sm:$0xff]  }
 0x746   : > { %v3799_v43 = vadd.f32 1e-05, %v3798_v42  ;;  %v7619_v42 = vld [vmem:[%s9136_s27 + $0x8] sm:$0xff]  }
 0x748   : > { %7713 = vrsqrt.f32 %v3799_v43  ;;  %v7629_v43 = vld [vmem:[%s9136_s27 + $0x48] sm:$0xff]  }
 0x755   : > { %v7714_v44 = vpop.eup %7713 }
 0x756   : > { %v3801_v46 = vmul.f32 %v7714_v44, %v3793_v28  ;;  %v7620_v44 = vld [vmem:[%s9136_s27] sm:$0xff]  }
 0x758   : > { %v3808_v48 = vmul.f32 %v6581_v45, %v3801_v46  ;;  %v7621_v45 = vld [vmem:[%s9136_s27 + $0x38] sm:$0xff]   ;;  %v7622_v46 = vld [vmem:[%s9136_s27 + $0x30] sm:$0xff]  }
 0x75a   : > { %v8566_v49 = vadd.f32 %v6582_v47, %v3808_v48  ;;  %v7623_v47 = vld [vmem:[%s9136_s27 + $0x28] sm:$0xff]   ;;  %v7624_v48 = vld [vmem:[%s9136_s27 + $0x20] sm:$0xff]  }
 0x75c   : > { %v3816_v51 = vpack.c.bf16 %v8566_v49, %v8566_v49 }
 0x75e   : > { %6591 = vmatmul.mubr.msk.bf16.vlgmr.msra.gmra.mxu0 %vm2340_vm4, %v3816_v51  ;;  %v7628_v51 = vld [vmem:[%s9136_s27 + $0x70] sm:$0xff]  }
 0x75f   : > { %7208 = vmatprep.mubr.msk.bf16.mxu0 %vm7887_vm3, %v7886_v22  ;;  %7201 = vmatpush3.bf16.msra.mxu0 %v7617_v37  ;;  %v7653_v37 = vld [vmem:[%s9143_s0 + $0x8] sm:$0xff]  }
 0x760   : > { %7202 = vmatprep.subr.bf16.mxu0 %v7886_v22 }
 0x763   : > { %7203 = vmatpush3.bf16.msra.mxu0 %v7618_v39  ;;  %v7654_v39 = vld [vmem:[%s9143_s0 + $0x28] sm:$0xff]  }
 0x764   : > { %7204 = vmatprep.subr.bf16.mxu0 %v7886_v22 }
 0x767   : > { %7205 = vmatpush3.bf16.msra.mxu0 %v7619_v42  ;;  %v7657_v42 = vld [vmem:[%s9143_s0 + $0x58] sm:$0xff]  }
 0x768   : > { %7206 = vmatprep.subr.bf16.mxu0 %v7886_v22 }
 0x76b   : > { %7207 = vmatpush3.bf16.msra.mxu0 %v7620_v44  ;;  %v7659_v44 = vld [vmem:[%s9143_s0 + $0x50] sm:$0xff]  }
 0x76c   : > { %7212 = vmatprep.subr.bf16.mxu0 %v7886_v22 }
 0x76e   : > { %7209 = vmatmul.mubr.msk.bf16.vlgmr.msra.gmra.mxu0 %vm2340_vm4, %v8379_v50 }
 0x76f   : > { %7213 = vmatpush3.bf16.msra.mxu0 %v7621_v45  ;;  %7220 = vmatprep.mubr.msk.bf16.mxu0 %vm7887_vm3, %v7886_v22  ;;  %v7660_v45 = vld [vmem:[%s9143_s0 + $0x70] sm:$0xff]  }
 0x770   : > { %7214 = vmatprep.subr.bf16.mxu0 %v7886_v22 }
 0x773   : > { %7215 = vmatpush3.bf16.msra.mxu0 %v7622_v46  ;;  %v7661_v46 = vld [vmem:[%s9143_s0 + $0x48] sm:$0xff]  }
 0x774   : > { %7216 = vmatprep.subr.bf16.mxu0 %v7886_v22 }
 0x777   : > { %7217 = vmatpush3.bf16.msra.mxu0 %v7623_v47  ;;  %v7662_v47 = vld [vmem:[%s9143_s0 + $0x68] sm:$0xff]  }
 0x778   : > { %7218 = vmatprep.subr.bf16.mxu0 %v7886_v22 }
 0x77b   : > { %7219 = vmatpush3.bf16.msra.mxu0 %v7624_v48  ;;  %v7663_v48 = vld [vmem:[%s9143_s0 + $0x40] sm:$0xff]  }
 0x77c   : > { %7236 = vmatprep.subr.bf16.mxu0 %v7886_v22 }
 0x77e   : > { %7221 = vmatmul.mubr.msk.bf16.vlgmr.msra.gmra.mxu0 %vm2340_vm4, %v8379_v50 }
 0x77f   : > { %7244 = vmatprep.mubr.msk.bf16.mxu0 %vm7887_vm3, %v7886_v22 }
 0x81e   : > { %v3905_v9 = vpop.f32.mrf.mxu0 }
 0x81f   : > { %v3906_v10 = vadd.f32 %v3905_v9, %v3821_v7 }
 0x820   : > { %v3907_v11 = vpop.f32.mrf.mxu0 }
 0x821   : > { %v3914_v12 = vmul.f32 0.70710677, %v3906_v10  ;;  %v3908_v13 = vadd.f32 %v3907_v11, %v3825_v8  ;;  %v3912_v21 = vmul.f32 0.5, %v3906_v10 }
 0x822   : > { %v3909_v14 = vpop.f32.mrf.mxu0 }
 0x823   : > { %7715 = verf.f32 %v3914_v12  ;;  %v3915_v15 = vmul.f32 0.70710677, %v3908_v13  ;;  %v3913_v23 = vmul.f32 0.5, %v3908_v13 }
 0x824   : > { %v3910_v16 = vpop.f32.mrf.mxu0 }
 0x825   : > { %7717 = verf.f32 %v3915_v15 }
 0x82e   : > { %v8669_v5 = vpop.f32.mrf.mxu0 }
 0x830   : > { %v7716_v17 = vpop.eup %7715  ;;  %v7210_v7 = vpop.f32.mrf.mxu0 }
 0x831   : > { %v3918_v18 = vadd.f32 1.0, %v7716_v17 }
 0x832   : > { %v7718_v19 = vpop.eup %7717  ;;  %v4179_v8 = vpop.f32.mrf.mxu0 }
 0x833   : > { %v3919_v24 = vadd.f32 1.0, %v7718_v19  ;;  %v3920_v25 = vmul.f32 %v3918_v18, %v3912_v21  ;;  %v6609_v18 = vld [vmem:[%s9141_s2] ss:$0 sm:$0xff] }
 0x834   : > { %v7211_v9 = vpop.f32.mrf.mxu0  ;;  %v6610_v21 = vld [vmem:[%s9142_s28] ss:$0 sm:$0xff] }
 0x835   : > { %v3921_v26 = vmul.f32 %v3919_v24, %v3913_v23  ;;  %v3922_v28 = vpack.c.bf16 %v3920_v25, %v3920_v25  ;;  %v7641_v25 = vld [vmem:[%s9138_s16 + $0x58] sm:$0xff]  }
 0x837   : > { %v3923_v27 = vpack.c.bf16 %v3921_v26, %v3921_v26  ;;  %v7642_v26 = vld [vmem:[%s9138_s16 + $0x78] sm:$0xff]  }
 0x839   : > { %4058 = vmatprep.mubr.bf16.mxu1 %v3923_v27 }
 0x83a   : > { %4059 = vmatmul.mubr.bf16.vlgmr.msra.gmra.mxu1 %v3922_v28  ;;  %v7643_v28 = vld [vmem:[%s9138_s16 + $0x50] sm:$0xff]  }
 0x83b   : > { %7232 = vmatprep.mubr.msk.bf16.mxu1 %vm7887_vm3, %v7886_v22  ;;  %7225 = vmatpush3.bf16.msra.mxu1 %v7625_v40  ;;  %v7655_v40 = vld [vmem:[%s9143_s0] sm:$0xff]  }
 0x83c   : > { %7226 = vmatprep.subr.bf16.mxu1 %v7886_v22 }
 0x83e   : > { %v8671_v10 = vpop.f32.mrf.mxu0 }
 0x83f   : > { %7227 = vmatpush3.bf16.msra.mxu1 %v7627_v41  ;;  %v7656_v41 = vld [vmem:[%s9143_s0 + $0x20] sm:$0xff]  }
 0x840   : > { %7228 = vmatprep.subr.bf16.mxu1 %v7886_v22  ;;  %v7222_v11 = vpop.f32.mrf.mxu0 }
 0x842   : > { %v4243_v12 = vpop.f32.mrf.mxu0 }
 0x843   : > { %7229 = vmatpush3.bf16.msra.mxu1 %v7629_v43  ;;  %v7658_v43 = vld [vmem:[%s9143_s0 + $0x78] sm:$0xff]  }
 0x844   : > { %7230 = vmatprep.subr.bf16.mxu1 %v7886_v22  ;;  %v7223_v13 = vpop.f32.mrf.mxu0 }
 0x847   : > { %7231 = vmatpush3.bf16.msra.mxu1 %v7631_v58 }
 0x848   : > { %7248 = vmatprep.subr.bf16.mxu1 %v7886_v22 }
 0x84a   : > { %7233 = vmatmul.mubr.msk.bf16.vlgmr.msra.gmra.mxu1 %vm2340_vm4, %v8379_v50 }
 0x84b   : > { %7256 = vmatprep.mubr.msk.bf16.mxu1 %vm7887_vm3, %v7886_v22  ;;  %7249 = vmatpush3.bf16.msra.mxu1 %v7633_v60  ;;  %v6611_v60 = vld [vmem:[%s9145_s14] ss:$0 sm:$0xff] }
 0x84c   : > { %7250 = vmatprep.subr.bf16.mxu1 %v7886_v22 }
 0x84f   : > { %7251 = vmatpush3.bf16.msra.mxu1 %v7635_v62 }
 0x850   : > { %7252 = vmatprep.subr.bf16.mxu1 %v7886_v22 }
 0x8fa   : > { %v6856_v20 = vpop.f32.mrf.mxu1 }
 0x8fc   : > { %v6857_v30 = vpop.f32.mrf.mxu1 }
 0x8fd   : > { %v6858_v31 = vadd.f32 %v6857_v30, %v6856_v20  ;;  %v7644_v20 = vld [vmem:[%s9138_s16 + $0x70] sm:$0xff]   ;;  %v7646_v30 = vld [vmem:[%s9138_s16 + $0x68] sm:$0xff]  }
 0x8fe   : > { %v6859_v32 = vpop.f32.mrf.mxu1 }
 0x8ff   : > { %v4061_v33 = vadd.f32 %v6858_v31, %v6592_v29  ;;  %v7645_v29 = vld [vmem:[%s9138_s16 + $0x48] sm:$0xff]   ;;  %v7647_v31 = vld [vmem:[%s9138_s16 + $0x40] sm:$0xff]  }
 0x900   : > { %v6860_v34 = vpop.f32.mrf.mxu1  ;;  %v7648_v32 = vld [vmem:[%s9138_s16 + $0x60] sm:$0xff]  }
 0x901   : > { %v4066_v35 = vadd.f32 %v4061_v33, %v8566_v49  ;;  %v7626_v49 = vld [vmem:[%s9136_s27 + $0x78] sm:$0xff]  }
 0x902   : > { %7237 = vmatpush3.bf16.msra.mxu0 %v7626_v49  ;;  %v7649_v33 = vld [vmem:[%s9143_s0 + $0x18] sm:$0xff]   ;;  %v7664_v49 = vld [vmem:[%s9143_s0 + $0x60] sm:$0xff]  }
 0x903   : > { %v4067_v36 = vsel %vm3787_vm9, %v4066_v35, 0.0  ;;  %7238 = vmatprep.subr.bf16.mxu0 %v7886_v22  ;;  %v7650_v34 = vld [vmem:[%s9143_s0 + $0x38] sm:$0xff]  }
 0x904   : > { %4068 = vadd.xlane.f32.xlu0 %v4067_v36  ;;  %v7652_v36 = vld [vmem:[%s9143_s0 + $0x30] sm:$0xff]  }
 0x906   : > { %7239 = vmatpush3.bf16.msra.mxu0 %v7628_v51 }
 0x907   : > { %7240 = vmatprep.subr.bf16.mxu0 %v7886_v22 }
 0x90a   : > { %7241 = vmatpush3.bf16.msra.mxu0 %v7630_v52  ;;  %v4304_v51 = vpop.f32.mrf.mxu1 }
 0x90b   : > { %7242 = vmatprep.subr.bf16.mxu0 %v7886_v22 }
 0x90c   : > { %v7234_v52 = vpop.f32.mrf.mxu1 }
 0x90e   : > { %7243 = vmatpush3.bf16.msra.mxu0 %v7632_v59  ;;  %v6635_v59 = vld [vmem:[%s9144_s5] ss:$0 sm:$0xff] }
 0x90f   : > { %7260 = vmatprep.subr.bf16.mxu0 %v7886_v22 }
 0x911   : > { %7245 = vmatmul.mubr.msk.bf16.vlgmr.msra.gmra.mxu0 %vm2340_vm4, %v8379_v50  ;;  %v7637_v50 = vld [vmem:[%s9138_s16 + $0x8] sm:$0xff]  }
 0x912   : > { %7268 = vmatprep.mubr.msk.bf16.mxu0 %vm7887_vm3, %v7886_v22  ;;  %7261 = vmatpush3.bf16.msra.mxu0 %v7634_v61 }
 0x913   : > { %7262 = vmatprep.subr.bf16.mxu0 %v7886_v22  ;;  %7253 = vmatpush3.bf16.msra.mxu1 %v7637_v50  ;;  %v6636_v50 = vld [vmem:[%s9144_s5 + $0x1] ss:$0 sm:$0xff] }
 0x914   : > { %7254 = vmatprep.subr.bf16.mxu1 %v7886_v22 }
 0x916   : > { %7263 = vmatpush3.bf16.msra.mxu0 %v7636_v63 }
 0x917   : > { %7264 = vmatprep.subr.bf16.mxu0 %v7886_v22  ;;  %7255 = vmatpush3.bf16.msra.mxu1 %v7639_v1 }
 0x918   : > { %7272 = vmatprep.subr.bf16.mxu1 %v7886_v22 }
 0x91a   : > { %7265 = vmatpush3.bf16.msra.mxu0 %v7638_v0 }
 0x91b   : > { %7266 = vmatprep.subr.bf16.mxu0 %v7886_v22 }
 0x91e   : > { %7267 = vmatpush3.bf16.msra.mxu0 %v7640_v2  ;;  %v4177_v2 = vadd.f32 %v6611_v60, %v8669_v5 }
 0x91f   : > { %7284 = vmatprep.subr.bf16.mxu0 %v7886_v22 }
 0x98d   : > { %v4069_v53 = vpop.xlane.xlu0 %4068 }
 0x98e   : > { %v4070_v54 = vmul.f32 0.015625, %v4069_v53 }
 0x990   : > { %v4071_v55 = vsub.f32 %v4066_v35, %v4070_v54  ;;  %v7651_v35 = vld [vmem:[%s9143_s0 + $0x10] sm:$0xff]   ;;  %v4307_v54 = vpop.f32.mrf.mxu1 }
 0x992   : > { %v4072_v56 = vmul.f32 %v4071_v55, %v4071_v55 }
 0x994   : > { %v4073_v57 = vsel %vm3787_vm9, %v4072_v56, 0.0  ;;  %v7235_v56 = vpop.f32.mrf.mxu1 }
 0x995   : > { %4074 = vadd.xlane.f32.xlu1 %v4073_v57 }
 0x9d1   : > { %v4368_v53 = vpop.f32.mrf.mxu0 }
 0xa1e   : > { %v4075_v14 = vpop.xlane.xlu1 %4074 }
 0xa1f   : > { %v4076_v15 = vmul.f32 0.015625, %v4075_v14 }
 0xa21   : > { %v4077_v16 = vadd.f32 1e-05, %v4076_v15  ;;  %v4938_v15 = vmul.f32 0.25, %v4177_v2 }
 0xa23   : > { %7719 = vrsqrt.f32 %v4077_v16  ;;  %v6612_v16 = vld [vmem:[%s9145_s14 + $0x1] ss:$0 sm:$0xff] }
 0xa24   : > { %v4241_v5 = vadd.f32 %v6612_v16, %v8671_v10 }
 0xa30   : > { %v7720_v17 = vpop.eup %7719 }
 0xa31   : > { %v4079_v19 = vmul.f32 %v7720_v17, %v4071_v55  ;;  %v7246_v55 = vpop.f32.mrf.mxu0 }
 0xa33   : > { %v4086_v23 = vmul.f32 %v6609_v18, %v4079_v19  ;;  %v4371_v57 = vpop.f32.mrf.mxu0  ;;  %v4942_v18 = vpack.c.bf16 %v4938_v15, %v4938_v15 }
 0xa35   : > { %v8679_v24 = vadd.f32 %v6610_v21, %v4086_v23  ;;  %v7247_v58 = vpop.f32.mrf.mxu0  ;;  %v4939_v21 = vmul.f32 0.25, %v4241_v5  ;;  %v6637_v23 = vld [vmem:[%s9144_s5 + $0x2] ss:$0 sm:$0xff] }
 0xa37   : > { %v8685_v27 = vpack.c.bf16 %v8679_v24, %v8679_v24 }
 0xa39   : > { %7257 = vmatmul.mubr.msk.bf16.vlgmr.msra.gmra.mxu1 %vm2340_vm4, %v8685_v27  ;;  %7269 = vmatmul.mubr.msk.bf16.vlgmr.msra.gmra.mxu0 %vm2340_vm4, %v8685_v27 }
 0xa3a   : > { %7273 = vmatpush3.bf16.msra.mxu1 %v7641_v25  ;;  %7285 = vmatpush3.bf16.msra.mxu0 %v7642_v26  ;;  %v6638_v25 = vld [vmem:[%s9144_s5 + $0x3] ss:$0 sm:$0xff]  ;;  %v6613_v26 = vld [vmem:[%s9145_s14 + $0x2] ss:$0 sm:$0xff] }
 0xa3b   : > { %7274 = vmatprep.subr.bf16.mxu1 %v7886_v22  ;;  %7286 = vmatprep.subr.bf16.mxu0 %v7886_v22 }
 0xa3c   : > { %7280 = vmatprep.mubr.msk.bf16.mxu1 %vm7887_vm3, %v7886_v22  ;;  %7292 = vmatprep.mubr.msk.bf16.mxu0 %vm7887_vm3, %v7886_v22 }
 0xa3e   : > { %7275 = vmatpush3.bf16.msra.mxu1 %v7643_v28  ;;  %7287 = vmatpush3.bf16.msra.mxu0 %v7644_v20 }
 0xa3f   : > { %7276 = vmatprep.subr.bf16.mxu1 %v7886_v22  ;;  %7288 = vmatprep.subr.bf16.mxu0 %v7886_v22 }
 0xa42   : > { %7277 = vmatpush3.bf16.msra.mxu1 %v7645_v29  ;;  %7289 = vmatpush3.bf16.msra.mxu0 %v7646_v30  ;;  %v4943_v30 = vpack.c.bf16 %v4939_v21, %v4939_v21 }
 0xa43   : > { %7278 = vmatprep.subr.bf16.mxu1 %v7886_v22  ;;  %7290 = vmatprep.subr.bf16.mxu0 %v7886_v22 }
 0xa46   : > { %7279 = vmatpush3.bf16.msra.mxu1 %v7647_v31  ;;  %7291 = vmatpush3.bf16.msra.mxu0 %v7648_v32 }
 0xa47   : > { %7296 = vmatprep.subr.bf16.mxu1 %v7886_v22  ;;  %7308 = vmatprep.subr.bf16.mxu0 %v7886_v22 }
 0xa49   : > { %7281 = vmatmul.mubr.msk.bf16.vlgmr.msra.gmra.mxu1 %vm2340_vm4, %v8685_v27  ;;  %7293 = vmatmul.mubr.msk.bf16.vlgmr.msra.gmra.mxu0 %vm2340_vm4, %v8685_v27 }
 0xa4a   : > { %7297 = vmatpush3.bf16.msra.mxu1 %v7649_v33  ;;  %7309 = vmatpush3.bf16.msra.mxu0 %v7650_v34  ;;  %v4305_v33 = vadd.f32 %v6613_v26, %v4304_v51 }
 0xa4b   : > { %7298 = vmatprep.subr.bf16.mxu1 %v7886_v22  ;;  %7310 = vmatprep.subr.bf16.mxu0 %v7886_v22 }
 0xa4c   : > { %7304 = vmatprep.mubr.msk.bf16.mxu1 %vm7887_vm3, %v7886_v22  ;;  %7316 = vmatprep.mubr.msk.bf16.mxu0 %vm7887_vm3, %v7886_v22 }
 0xa4e   : > { %7299 = vmatpush3.bf16.msra.mxu1 %v7651_v35  ;;  %7311 = vmatpush3.bf16.msra.mxu0 %v7652_v36 }
 0xa4f   : > { %7300 = vmatprep.subr.bf16.mxu1 %v7886_v22  ;;  %7312 = vmatprep.subr.bf16.mxu0 %v7886_v22 }
 0xa52   : > { %7301 = vmatpush3.bf16.msra.mxu1 %v7653_v37  ;;  %7313 = vmatpush3.bf16.msra.mxu0 %v7654_v39 }
 0xa53   : > { %7302 = vmatprep.subr.bf16.mxu1 %v7886_v22  ;;  %7314 = vmatprep.subr.bf16.mxu0 %v7886_v22 }
 0xa56   : > { %7303 = vmatpush3.bf16.msra.mxu1 %v7655_v40  ;;  %7315 = vmatpush3.bf16.msra.mxu0 %v7656_v41 }
 0xa57   : > { %7320 = vmatprep.subr.bf16.mxu1 %v7886_v22  ;;  %7332 = vmatprep.subr.bf16.mxu0 %v7886_v22 }
 0xa59   : > { %7305 = vmatmul.mubr.msk.bf16.vlgmr.msra.gmra.mxu1 %vm2340_vm4, %v8685_v27  ;;  %7317 = vmatmul.mubr.msk.bf16.vlgmr.msra.gmra.mxu0 %vm2340_vm4, %v8685_v27 }
 0xa5a   : > { %7321 = vmatpush3.bf16.msra.mxu1 %v7657_v42  ;;  %7333 = vmatpush3.bf16.msra.mxu0 %v7658_v43 }
 0xa5b   : > { %7322 = vmatprep.subr.bf16.mxu1 %v7886_v22  ;;  %7334 = vmatprep.subr.bf16.mxu0 %v7886_v22 }
 0xa5c   : > { %7328 = vmatprep.mubr.msk.bf16.mxu1 %vm7887_vm3, %v7886_v22  ;;  %7340 = vmatprep.mubr.msk.bf16.mxu0 %vm7887_vm3, %v7886_v22 }
 0xa5e   : > { %7323 = vmatpush3.bf16.msra.mxu1 %v7659_v44  ;;  %7335 = vmatpush3.bf16.msra.mxu0 %v7660_v45  ;;  %v4940_v44 = vmul.f32 0.25, %v4305_v33 }
 0xa5f   : > { %7324 = vmatprep.subr.bf16.mxu1 %v7886_v22  ;;  %7336 = vmatprep.subr.bf16.mxu0 %v7886_v22 }
 0xa62   : > { %7325 = vmatpush3.bf16.msra.mxu1 %v7661_v46  ;;  %7337 = vmatpush3.bf16.msra.mxu0 %v7662_v47  ;;  %v4944_v46 = vpack.c.bf16 %v4940_v44, %v4940_v44 }
 0xa63   : > { %7326 = vmatprep.subr.bf16.mxu1 %v7886_v22  ;;  %7338 = vmatprep.subr.bf16.mxu0 %v7886_v22 }
 0xa66   : > { %7327 = vmatpush3.bf16.msra.mxu1 %v7663_v48  ;;  %7339 = vmatpush3.bf16.msra.mxu0 %v7664_v49  ;;  %v6659_v48 = vld [vmem:[%s8266_s17] ss:$0 sm:$0xff]  ;;  %v6660_v49 = vld [vmem:[%s8266_s17 + $0x1] ss:$0 sm:$0xff] }
 0xa67   : > { %7344 = vmatprep.subr.bf16.mxu1 %v7886_v22  ;;  %7356 = vmatprep.subr.bf16.mxu0 %v7886_v22 }
 0xa69   : > { %7329 = vmatmul.mubr.msk.bf16.vlgmr.msra.gmra.mxu1 %vm2340_vm4, %v8685_v27  ;;  %7341 = vmatmul.mubr.msk.bf16.vlgmr.msra.gmra.mxu0 %vm2340_vm4, %v8685_v27  ;;  %v6614_v27 = vld [vmem:[%s9145_s14 + $0x3] ss:$0 sm:$0xff] }
 0xa6a   : > { %7346 = vmatprep.mubr.msk.bf16.mxu1 %vm7887_vm3, %v7886_v22  ;;  %7358 = vmatprep.mubr.msk.bf16.mxu0 %vm7887_vm3, %v7886_v22  ;;  %v4369_v34 = vadd.f32 %v6614_v27, %v4368_v53 }
 0xa6c   : > { %v4941_v45 = vmul.f32 0.25, %v4369_v34 }
 0xa6e   : > { %v4945_v47 = vpack.c.bf16 %v4941_v45, %v4941_v45 }
 0xaf9   : > { %v4460_v61 = vpop.f32.mrf.mxu1  ;;  %v4524_v62 = vpop.f32.mrf.mxu0 }
 0xafa   : > { %v4461_v63 = vadd.f32 %v6635_v59, %v4460_v61  ;;  %v4525_v12 = vadd.f32 %v6636_v50, %v4524_v62 }
 0xafb   : > { %v7258_v0 = vpop.f32.mrf.mxu1  ;;  %v7270_v1 = vpop.f32.mrf.mxu0 }
 0xafc   : > { %v4946_v7 = vpack.c.bf16 %v4461_v63, %v4461_v63  ;;  %v4947_v17 = vpack.c.bf16 %v4525_v12, %v4525_v12 }
 0xafd   : > { %v4463_v8 = vpop.f32.mrf.mxu1  ;;  %v4527_v9 = vpop.f32.mrf.mxu0 }
 0xafe   : > { %v4954_v11 = vsel %vm3152_vm5, %v4946_v7, 0  ;;  %v5000_v19 = vsel %vm3152_vm5, %v4947_v17, 0 }
 0xaff   : > { %v7259_v13 = vpop.f32.mrf.mxu1  ;;  %v7271_v14 = vpop.f32.mrf.mxu0  ;;  %7345 = vmatpush3.bf16.xpose.msra.mxu1 %v4954_v11 }
 0xb00   : > { %7350 = vmatprep.subr.bf16.mxu1 %v7886_v22 }
 0xb06   : > { %7347 = vmatmul.mubr.msk.bf16.vlgmr.msra.gmra.mxu1 %vm3152_vm5, %v4942_v18 }
 0xb07   : > { %7351 = vmatpush3.bf16.xpose.msra.mxu1 %v5000_v19  ;;  %7352 = vmatprep.mubr.msk.bf16.mxu1 %vm7887_vm3, %v7886_v22 }
 0xb08   : > { %7362 = vmatprep.subr.bf16.mxu1 %v7886_v22 }
 0xb09   : > { %v4588_v28 = vpop.f32.mrf.mxu1  ;;  %v4652_v20 = vpop.f32.mrf.mxu0 }
 0xb0a   : > { %v4589_v29 = vadd.f32 %v6637_v23, %v4588_v28  ;;  %v4653_v10 = vadd.f32 %v6638_v25, %v4652_v20 }
 0xb0b   : > { %v7282_v31 = vpop.f32.mrf.mxu1  ;;  %v7294_v32 = vpop.f32.mrf.mxu0 }
 0xb0c   : > { %v4948_v35 = vpack.c.bf16 %v4589_v29, %v4589_v29  ;;  %v4949_v36 = vpack.c.bf16 %v4653_v10, %v4653_v10 }
 0xb0d   : > { %v4591_v37 = vpop.f32.mrf.mxu1  ;;  %v4655_v39 = vpop.f32.mrf.mxu0 }
 0xb0e   : > { %v5046_v40 = vsel %vm3152_vm5, %v4948_v35, 0  ;;  %v5092_v41 = vsel %vm3152_vm5, %v4949_v36, 0  ;;  %7353 = vmatmul.mubr.msk.bf16.vlgmr.msra.gmra.mxu1 %vm3152_vm5, %v4943_v30 }
 0xb0f   : > { %v7283_v42 = vpop.f32.mrf.mxu1  ;;  %v7295_v43 = vpop.f32.mrf.mxu0  ;;  %7357 = vmatpush3.bf16.xpose.msra.mxu0 %v5046_v40  ;;  %7363 = vmatpush3.bf16.xpose.msra.mxu1 %v5092_v41 }
 0xb10   : > { %7364 = vmatprep.mubr.msk.bf16.mxu1 %vm7887_vm3, %v7886_v22  ;;  %7368 = vmatprep.subr.bf16.mxu0 %v7886_v22 }
 0xb11   : > { %7374 = vmatprep.subr.bf16.mxu1 %v7886_v22 }
 0xb16   : > { %7359 = vmatmul.mubr.msk.bf16.vlgmr.msra.gmra.mxu0 %vm3152_vm5, %v4944_v46  ;;  %7365 = vmatmul.mubr.msk.bf16.vlgmr.msra.gmra.mxu1 %vm3152_vm5, %v4945_v47 }
 0xb17   : > { %7370 = vmatprep.mubr.msk.bf16.mxu0 %vm7887_vm3, %v7886_v22  ;;  %7376 = vmatprep.mubr.msk.bf16.mxu1 %vm7887_vm3, %v7886_v22 }
 0xb19   : > { %v4740_v51 = vpop.f32.mrf.mxu1  ;;  %v4804_v52 = vpop.f32.mrf.mxu0 }
 0xb1a   : > { %v4741_v53 = vadd.f32 %v6659_v48, %v4740_v51  ;;  %v4805_v54 = vadd.f32 %v6660_v49, %v4804_v52 }
 0xb1b   : > { %v7306_v55 = vpop.f32.mrf.mxu1  ;;  %v7318_v56 = vpop.f32.mrf.mxu0 }
 0xb1c   : > { %v5182_v57 = vpack.c.bf16 %v4741_v53, %v4741_v53  ;;  %v5183_v58 = vpack.c.bf16 %v4805_v54, %v4805_v54  ;;  %v6661_v56 = vld [vmem:[%s8266_s17 + $0x2] ss:$0 sm:$0xff] }
 0xb1d   : > { %v4743_v59 = vpop.f32.mrf.mxu1  ;;  %v4807_v60 = vpop.f32.mrf.mxu0 }
 0xb1e   : > { %v5190_v61 = vsel %vm3394_vm6, %v5182_v57, 0  ;;  %v5236_v62 = vsel %vm3394_vm6, %v5183_v58, 0 }
 0xb1f   : > { %v7307_v63 = vpop.f32.mrf.mxu1  ;;  %v7319_v50 = vpop.f32.mrf.mxu0  ;;  %7369 = vmatpush3.bf16.msra.mxu0 %v5190_v61  ;;  %7375 = vmatpush3.bf16.msra.mxu1 %v5236_v62  ;;  %v6662_v62 = vld [vmem:[%s8266_s17 + $0x3] ss:$0 sm:$0xff]  ;;  %s9146_s17 = sld [smem:[#allocation60_spill]] }
 0xb20   : > { %7380 = vmatprep.subr.bf16.mxu0 %v7886_v22  ;;  %7386 = vmatprep.subr.bf16.mxu1 %v7886_v22 }
 0xb29   : > { %v8801_v0 = vpop.f32.mrf.mxu1  ;;  %v8803_v1 = vpop.f32.mrf.mxu0 }
 0xb2a   : > { %v4869_v58 = vadd.f32 %v6661_v56, %v8801_v0 }
 0xb2b   : > { %v7330_v2 = vpop.f32.mrf.mxu1  ;;  %v7342_v7 = vpop.f32.mrf.mxu0 }
 0xb2c   : > { %v5184_v60 = vpack.c.bf16 %v4869_v58, %v4869_v58 }
 0xb2d   : > { %v4871_v8 = vpop.f32.mrf.mxu1  ;;  %v4935_v9 = vpop.f32.mrf.mxu0 }
 0xb2e   : > { %v5282_v7 = vsel %vm3394_vm6, %v5184_v60, 0  ;;  %v4933_v8 = vadd.f32 %v6662_v62, %v8803_v1 }
 0xb2f   : > { %v7331_v11 = vpop.f32.mrf.mxu1  ;;  %v7343_v12 = vpop.f32.mrf.mxu0 }
 0xb30   : > { %v5185_v9 = vpack.c.bf16 %v4933_v8, %v4933_v8 }
 0xbc6   : > { %v4990_v13 = vpop.f32.mrf.mxu1 }
 0xbc7   : > { %v5134_v14 = vsel %vm3337_vm7, %v4990_v13, -inf }
 0xbc8   : > { %5135 = vmax.xlane.f32.xlu0 %v5134_v14  ;;  %v7348_v15 = vpop.f32.mrf.mxu1 }
 0xbca   : > { %v4993_v16 = vpop.f32.mrf.mxu1 }
 0xbcc   : > { %v7349_v17 = vpop.f32.mrf.mxu1 }
 0xbce   : > { %v5036_v5 = vpop.f32.mrf.mxu1 }
 0xbcf   : > { %v5137_v18 = vsel %vm3337_vm7, %v5036_v5, -inf }
 0xbd0   : > { %5138 = vmax.xlane.f32.xlu1 %v5137_v18  ;;  %v7354_v19 = vpop.f32.mrf.mxu1  ;;  %v7665_v18 = vld [vmem:[%s9146_s17] sm:$0xff]  }
 0xbd1   : > { %v7666_v19 = vld [vmem:[%s9146_s17 + $0x8] sm:$0xff]  }
 0xbd2   : > { %v5039_v21 = vpop.f32.mrf.mxu1 }
 0xbd4   : > { %v7355_v23 = vpop.f32.mrf.mxu1 }
 0xbd5   : > { %v7667_v23 = vld [vmem:[%s9146_s17 + $0x10] sm:$0xff]  }
 0xbd6   : > { %v5082_v25 = vpop.f32.mrf.mxu0  ;;  %v5128_v26 = vpop.f32.mrf.mxu1 }
 0xbd7   : > { %v5140_v27 = vsel %vm3337_vm7, %v5082_v25, -inf  ;;  %v5143_v28 = vsel %vm3337_vm7, %v5128_v26, -inf }
 0xbd8   : > { %v7360_v20 = vpop.f32.mrf.mxu0  ;;  %5141 = vmax.xlane.f32.xlu0 %v5140_v27  ;;  %5144 = vmax.xlane.f32.xlu1 %v5143_v28  ;;  %v7366_v29 = vpop.f32.mrf.mxu1 }
 0xbd9   : > { %v7668_v29 = vld [vmem:[%s9146_s17 + $0x18] sm:$0xff]  }
 0xbda   : > { %v5085_v10 = vpop.f32.mrf.mxu0  ;;  %v5131_v30 = vpop.f32.mrf.mxu1 }
 0xbdc   : > { %v7361_v31 = vpop.f32.mrf.mxu0  ;;  %v7367_v32 = vpop.f32.mrf.mxu1 }
 0xc51   : > { %v5136_v33 = vpop.xlane.xlu0 %5135 }
 0xc52   : > { %v5146_v34 = vsub.f32 %v4990_v13, %v5136_v33  ;;  %v5328_v13 = vsel %vm3394_vm6, %v5185_v9, 0 }
 0xc54   : > { %v5150_v35 = vmul.f32 1.442695, %v5146_v34 }
 0xc56   : > { %7721 = vpow2.f32 %v5150_v35 }
 0xc59   : > { %v5139_v36 = vpop.xlane.xlu1 %5138 }
 0xc5a   : > { %v5147_v37 = vsub.f32 %v5036_v5, %v5139_v36 }
 0xc5c   : > { %v5152_v39 = vmul.f32 1.442695, %v5147_v37 }
 0xc5e   : > { %7723 = vpow2.f32 %v5152_v39 }
 0xc61   : > { %v5142_v40 = vpop.xlane.xlu0 %5141  ;;  %v5145_v41 = vpop.xlane.xlu1 %5144 }
 0xc62   : > { %v5148_v42 = vsub.f32 %v5082_v25, %v5142_v40  ;;  %v5149_v43 = vsub.f32 %v5128_v26, %v5145_v41 }
 0xc63   : > { %v7722_v44 = vpop.eup %7721 }
 0xc64   : > { %v5154_v45 = vmul.f32 1.442695, %v5148_v42  ;;  %v5156_v46 = vmul.f32 1.442695, %v5149_v43  ;;  %v5158_v47 = vsel %vm3337_vm7, %v7722_v44, 0.0 }
 0xc65   : > { %5159 = vadd.xlane.f32.xlu0 %v5158_v47 }
 0xc66   : > { %7725 = vpow2.f32 %v5154_v45 }
 0xc67   : > { %7727 = vpow2.f32 %v5156_v46 }
 0xc6b   : > { %v7724_v48 = vpop.eup %7723 }
 0xc6c   : > { %v5161_v49 = vsel %vm3337_vm7, %v7724_v48, 0.0 }
 0xc6d   : > { %5162 = vadd.xlane.f32.xlu1 %v5161_v49 }
 0xc73   : > { %v7726_v51 = vpop.eup %7725 }
 0xc74   : > { %v7728_v52 = vpop.eup %7727  ;;  %v5164_v53 = vsel %vm3337_vm7, %v7726_v51, 0.0 }
 0xc75   : > { %5165 = vadd.xlane.f32.xlu0 %v5164_v53  ;;  %v5167_v54 = vsel %vm3337_vm7, %v7728_v52, 0.0 }
 0xc76   : > { %5168 = vadd.xlane.f32.xlu1 %v5167_v54 }
 0xcee   : > { %v5160_v55 = vpop.xlane.xlu0 %5159 }
 0xcef   : > { %7729 = vrcp.f32 %v5160_v55 }
 0xcf6   : > { %v5163_v57 = vpop.xlane.xlu1 %5162 }
 0xcf7   : > { %7731 = vrcp.f32 %v5163_v57 }
 0xcfc   : > { %v7730_v59 = vpop.eup %7729 }
 0xcfd   : > { %v5174_v61 = vmul.f32 %v7730_v59, %v7722_v44 }
 0xcfe   : > { %v5166_v63 = vpop.xlane.xlu0 %5165 }
 0xcff   : > { %7733 = vrcp.f32 %v5166_v63  ;;  %v5169_v50 = vpop.xlane.xlu1 %5168  ;;  %v5178_v2 = vpack.c.bf16 %v5174_v61, %v5174_v61 }
 0xd00   : > { %7735 = vrcp.f32 %v5169_v50  ;;  %v7746_v50 = vld [vmem:[%s8295_s10] sm:$0xf] }
 0xd01   : > { %7371 = vmatmul.mubr.msk.bf16.vlgmr.msra.gmra.mxu0 %vm3390_vm8, %v5178_v2 }
 0xd02   : > { %7381 = vmatpush3.bf16.msra.mxu0 %v5282_v7  ;;  %7382 = vmatprep.mubr.msk.bf16.mxu0 %vm7887_vm3, %v7886_v22 }
 0xd03   : > { %7392 = vmatprep.subr.bf16.mxu0 %v7886_v22 }
 0xd04   : > { %v7732_v0 = vpop.eup %7731 }
 0xd05   : > { %v5175_v11 = vmul.f32 %v7732_v0, %v7724_v48 }
 0xd07   : > { %v5179_v12 = vpack.c.bf16 %v5175_v11, %v5175_v11 }
 0xd09   : > { %7377 = vmatmul.mubr.msk.bf16.vlgmr.msra.gmra.mxu1 %vm3390_vm8, %v5179_v12 }
 0xd0a   : > { %7387 = vmatpush3.bf16.msra.mxu1 %v5328_v13  ;;  %7388 = vmatprep.mubr.msk.bf16.mxu1 %vm7887_vm3, %v7886_v22  ;;  %v7671_v13 = vld [vmem:[%s8275_s29 + $0x34] ss:$8 sps:$4 sm:$0xff]  }
 0xd0b   : > { %7398 = vmatprep.subr.bf16.mxu1 %v7886_v22 }
 0xd0c   : > { %v7734_v1 = vpop.eup %7733 }
 0xd0d   : > { %v7736_v14 = vpop.eup %7735  ;;  %v5176_v15 = vmul.f32 %v7734_v1, %v7726_v51  ;;  %v7669_v1 = vld [vmem:[%s8275_s29 + $0x30] ss:$8 sps:$4 sm:$0xff]  }
 0xd0e   : > { %v5177_v16 = vmul.f32 %v7736_v14, %v7728_v52  ;;  %v7674_v14 = vld [vmem:[%s8275_s29 + $0x24] ss:$8 sps:$4 sm:$0xff]  }
 0xd0f   : > { %v5180_v17 = vpack.c.bf16 %v5176_v15, %v5176_v15  ;;  %v7672_v15 = vld [vmem:[%s8275_s29 + $0x20] ss:$8 sps:$4 sm:$0xff]  }
 0xd10   : > { %v5181_v5 = vpack.c.bf16 %v5177_v16, %v5177_v16  ;;  %v7677_v16 = vld [vmem:[%s8275_s29 + $0x14] ss:$8 sps:$4 sm:$0xff]  }
 0xd11   : > { %7383 = vmatmul.mubr.msk.bf16.vlgmr.msra.gmra.mxu0 %vm3390_vm8, %v5180_v17  ;;  %v7675_v17 = vld [vmem:[%s8275_s29 + $0x10] ss:$8 sps:$4 sm:$0xff]  }
 0xd12   : > { %7389 = vmatmul.mubr.msk.bf16.vlgmr.msra.gmra.mxu1 %vm3390_vm8, %v5181_v5  ;;  %7394 = vmatprep.mubr.msk.bf16.mxu0 %vm7887_vm3, %v7886_v22  ;;  %v7680_v5 = vld [vmem:[%s8275_s29 + $0x4] ss:$8 sps:$4 sm:$0xff]  }
 0xd13   : > { %7400 = vmatprep.mubr.msk.bf16.mxu1 %vm7887_vm3, %v7886_v22  ;;  %7393 = vmatpush3.bf16.msra.mxu0 %v7665_v18  ;;  %v7678_v18 = vld [vmem:[%s8275_s29] ss:$8 sps:$4 sm:$0xff]   ;;  %s9153_s29 = sld [smem:[#allocation50_spill]] }
 0xd14   : > { %7404 = vmatprep.subr.bf16.mxu0 %v7886_v22  ;;  %7399 = vmatpush3.bf16.msra.mxu1 %v7666_v19  ;;  %v7681_v19 = vld [vmem:[%s8282_s3 + $0x78] sm:$0xff]  }
 0xd15   : > { %7410 = vmatprep.subr.bf16.mxu1 %v7886_v22 }
 0xd19   : > { %p6730_p1 = scmp.ge.s32.totalorder %s9153_s29, 1 }
 0xdc1   : > { %v5226_v21 = vpop.f32.mrf.mxu0 }
 0xdc2   : > { %v5370_v25 = vpack.c.bf16 %v5226_v21, %v5226_v21  ;;  %v7682_v21 = vld [vmem:[%s8282_s3 + $0x38] sm:$0xff]  }
 0xdc3   : > { %v7372_v26 = vpop.f32.mrf.mxu0 }
 0xdc4   : > { %7395 = vmatmul.mubr.msk.bf16.vlgmr.msra.gmra.mxu0 %vm3152_vm5, %v5370_v25 }
 0xdc5   : > { %v5229_v27 = vpop.f32.mrf.mxu0  ;;  %7405 = vmatpush3.bf16.msra.mxu0 %v7667_v23  ;;  %7406 = vmatprep.mubr.msk.bf16.mxu0 %vm7887_vm3, %v7886_v22 }
 0xdc6   : > { %5671 = vmatprep.subr.bf16.mxu0 %v7671_v13 }
 0xdc7   : > { %v7373_v28 = vpop.f32.mrf.mxu0 }
 0xdc8   : > { %v6700_v28 = vld [vmem:[%s1787_s9] ss:$0 sm:$0xff] }
 0xdc9   : > { %v5272_v20 = vpop.f32.mrf.mxu1 }
 0xdca   : > { %v5371_v10 = vpack.c.bf16 %v5272_v20, %v5272_v20 }
 0xdcb   : > { %v7378_v30 = vpop.f32.mrf.mxu1 }
 0xdcc   : > { %7401 = vmatmul.mubr.msk.bf16.vlgmr.msra.gmra.mxu1 %vm3152_vm5, %v5371_v10 }
 0xdcd   : > { %v5275_v31 = vpop.f32.mrf.mxu1  ;;  %7411 = vmatpush3.bf16.msra.mxu1 %v7668_v29  ;;  %7412 = vmatprep.mubr.msk.bf16.mxu1 %vm7887_vm3, %v7886_v22  ;;  %v6701_v29 = vld [vmem:[%s1790_s7] ss:$0 sm:$0xff] }
 0xdce   : > { %6946 = vmatprep.subr.bf16.mxu1 %v7681_v19 }
 0xdcf   : > { %v7379_v32 = vpop.f32.mrf.mxu1 }
 0xdd0   : > { %v7683_v32 = vld [vmem:[%s8282_s3 + $0x70] sm:$0xff]  }
 0xdd1   : > { %v5318_v33 = vpop.f32.mrf.mxu0 }
 0xdd2   : > { %v5372_v34 = vpack.c.bf16 %v5318_v33, %v5318_v33  ;;  %v5364_v35 = vpop.f32.mrf.mxu1  ;;  %v7684_v33 = vld [vmem:[%s8282_s3 + $0x30] sm:$0xff]  }
 0xdd3   : > { %v5373_v36 = vpack.c.bf16 %v5364_v35, %v5364_v35  ;;  %v7384_v37 = vpop.f32.mrf.mxu0  ;;  %v7686_v35 = vld [vmem:[%s8282_s3 + $0x28] sm:$0xff]  }
 0xdd4   : > { %v7390_v39 = vpop.f32.mrf.mxu1  ;;  %7407 = vmatmul.mubr.msk.bf16.vlgmr.msra.gmra.mxu0 %vm3152_vm5, %v5372_v34  ;;  %v7685_v34 = vld [vmem:[%s8282_s3 + $0x68] sm:$0xff]   ;;  %v7688_v37 = vld [vmem:[%s8282_s3 + $0x20] sm:$0xff]  }
 0xdd5   : > { %v5321_v40 = vpop.f32.mrf.mxu0  ;;  %7413 = vmatmul.mubr.msk.bf16.vlgmr.msra.gmra.mxu1 %vm3152_vm5, %v5373_v36  ;;  %5695 = vmatprep.mubr.bf16.mxu0 %v7888_v38  ;;  %v6699_v38 = vld [vmem:[%s1784_s4] ss:$0 sm:$0xff]  ;;  %v7689_v39 = vld [vmem:[%s8282_s3 + $0x58] sm:$0xff]  }
 0xdd6   : > { %v5367_v41 = vpop.f32.mrf.mxu1  ;;  %5672 = vmatpush1.bf16.msra.mxu0 %v7669_v1  ;;  %6947 = vmatpush3.bf16.msra.mxu1 %v7682_v21  ;;  %v7687_v36 = vld [vmem:[%s8282_s3 + $0x60] sm:$0xff]   ;;  %v7690_v40 = vld [vmem:[%s8282_s3 + $0x18] sm:$0xff]  }
 0xdd7   : > { %v7385_v42 = vpop.f32.mrf.mxu0  ;;  %5673 = vmatprep.subr.bf16.mxu0 %v7674_v14  ;;  %6948 = vmatprep.subr.bf16.mxu1 %v7683_v32  ;;  %v7691_v41 = vld [vmem:[%s8282_s3 + $0x50] sm:$0xff]  }
 0xdd8   : > { %v7391_v43 = vpop.f32.mrf.mxu1  ;;  %v7692_v42 = vld [vmem:[%s8282_s3 + $0x10] sm:$0xff]  }
 0xdd9   : > { %v7693_v43 = vld [vmem:[%s8282_s3 + $0x48] sm:$0xff]  }
 0xdda   : > { %5674 = vmatpush1.bf16.msra.mxu0 %v7672_v15  ;;  %6949 = vmatpush3.bf16.msra.mxu1 %v7684_v33 }
 0xddb   : > { %5675 = vmatprep.subr.bf16.mxu0 %v7677_v16  ;;  %6950 = vmatprep.subr.bf16.mxu1 %v7685_v34 }
 0xdde   : > { %5676 = vmatpush1.bf16.msra.mxu0 %v7675_v17  ;;  %6951 = vmatpush3.bf16.msra.mxu1 %v7686_v35 }
 0xddf   : > { %5677 = vmatprep.subr.bf16.mxu0 %v7680_v5  ;;  %6952 = vmatprep.subr.bf16.mxu1 %v7687_v36 }
 0xde2   : > { %5678 = vmatpush1.bf16.msra.mxu0 %v7678_v18  ;;  %6953 = vmatpush3.bf16.msra.mxu1 %v7688_v37 }
 0xde3   : > { %6954 = vmatprep.subr.bf16.mxu1 %v7689_v39 }
 0xde6   : > { %6955 = vmatpush3.bf16.msra.mxu1 %v7690_v40 }
 0xde7   : > { %6956 = vmatprep.subr.bf16.mxu1 %v7691_v41 }
 0xdea   : > { %6957 = vmatpush3.bf16.msra.mxu1 %v7692_v42 }
 0xdeb   : > { %6958 = vmatprep.subr.bf16.mxu1 %v7693_v43 }
 0xe84   : > { %v5417_v22 = vpop.f32.mrf.mxu0 }
 0xe86   : > { %v7396_v44 = vpop.f32.mrf.mxu0 }
 0xe87   : > { %v7695_v44 = vld [vmem:[%s8282_s3 + $0x40] sm:$0xff]  }
 0xe88   : > { %v5420_v45 = vpop.f32.mrf.mxu0 }
 0xe89   : > { %v7696_v45 = vld [vmem:[%s8282_s3] sm:$0xff]  }
 0xe8a   : > { %v7397_v46 = vpop.f32.mrf.mxu0 }
 0xe8b   : > { %v2253_v46 = vld [vmem:[%s8278_s12] sm:$0x3] }
 0xe8c   : > { %v5466_v47 = vpop.f32.mrf.mxu1 }
 0xe8d   : > { %v5570_v52 = vadd.f32 %v5466_v47, %v5417_v22  ;;  %v7694_v22 = vld [vmem:[%s8282_s3 + $0x8] sm:$0xff]   ;;  %v5613_v47 = vrot.slane %v2253_v46, %v3820_v4 }
 0xe8e   : > { %v7402_v48 = vpop.f32.mrf.mxu1  ;;  %6959 = vmatpush3.bf16.msra.mxu1 %v7694_v22 }
 0xe8f   : > { %6960 = vmatprep.subr.bf16.mxu1 %v7695_v44  ;;  %v5617_v48 = vrot.slane %v2253_v46, %v3824_v6 }
 0xe90   : > { %v5469_v49 = vpop.f32.mrf.mxu1 }
 0xe92   : > { %v7403_v51 = vpop.f32.mrf.mxu1  ;;  %6961 = vmatpush3.bf16.msra.mxu1 %v7696_v45 }
 0xe94   : > { %v5515_v53 = vpop.f32.mrf.mxu0 }
 0xe95   : > { %v5571_v54 = vadd.f32 %v5570_v52, %v5515_v53  ;;  %v5564_v55 = vpop.f32.mrf.mxu1 }
 0xe96   : > { %v7408_v56 = vpop.f32.mrf.mxu0 }
 0xe97   : > { %v5572_v57 = vadd.f32 %v5571_v54, %v5564_v55  ;;  %v7414_v58 = vpop.f32.mrf.mxu1 }
 0xe98   : > { %v5518_v59 = vpop.f32.mrf.mxu0 }
 0xe99   : > { %v5579_v60 = vadd.f32 %v6699_v38, %v5572_v57  ;;  %v5567_v61 = vpop.f32.mrf.mxu1 }
 0xe9a   : > { %v7409_v62 = vpop.f32.mrf.mxu0 }
 0xe9b   : > { %v7415_v63 = vpop.f32.mrf.mxu1  ;;  %v5580_v2 = vadd.f32 %v7746_v50, %v5579_v60 }
 0xe9d   : > { %v5581_v7 = vsel %vm3787_vm9, %v5580_v2, 0.0 }
 0xe9e   : > { %5582 = vadd.xlane.f32.xlu0 %v5581_v7 }
 0xf27   : > { %v5583_v8 = vpop.xlane.xlu0 %5582 }
 0xf28   : > { %v5584_v0 = vmul.f32 0.015625, %v5583_v8 }
 0xf2a   : > { %v5585_v9 = vsub.f32 %v5580_v2, %v5584_v0  ;;  %v6711_v2 = vld [vmem:[%s1807_s18] ss:$0 sm:$0xff] }
 0xf2c   : > { %v5586_v11 = vmul.f32 %v5585_v9, %v5585_v9 }
 0xf2e   : > { %v5587_v12 = vsel %vm3787_vm9, %v5586_v11, 0.0 }
 0xf2f   : > { %5588 = vadd.xlane.f32.xlu1 %v5587_v12 }
 0xfb8   : > { %v5589_v23 = vpop.xlane.xlu1 %5588 }
 0xfb9   : > { %v5590_v25 = vmul.f32 0.015625, %v5589_v23  ;;  %v6728_v23 = vld [vmem:[%s1810_s26] ss:$0 sm:$0xff] }
 0xfbb   : > { %v5591_v26 = vadd.f32 1e-05, %v5590_v25 }
 0xfbd   : > { %7737 = vrsqrt.f32 %v5591_v26  ;;  %v6729_v26 = vld [vmem:[%s1813_s15] ss:$0 sm:$0xff] }
 0xfca   : > { %v7738_v27 = vpop.eup %7737 }
 0xfcb   : > { %v5593_v20 = vmul.f32 %v7738_v27, %v5585_v9 }
 0xfcd   : > { %v5600_v10 = vmul.f32 %v6700_v28, %v5593_v20 }
 0xfcf   : > { %v8870_v30 = vadd.f32 %v6701_v29, %v5600_v10 }
 0xfd1   : > { %v5608_v31 = vpack.c.bf16 %v8870_v30, %v8870_v30 }
 0xfd3   : > { %6710 = vmatmul.mubr.msk.bf16.vlgmr.msra.gmra.mxu0 %vm2340_vm4, %v5608_v31 }
0x1093   : > { %v5697_v49 = vpop.f32.mrf.mxu0 }
0x1094   : > { %v5698_v51 = vadd.f32 %v5697_v49, %v5613_v47 }
0x1095   : > { %v5699_v52 = vpop.f32.mrf.mxu0 }
0x1096   : > { %v5706_v53 = vmul.f32 0.70710677, %v5698_v51  ;;  %v5700_v54 = vadd.f32 %v5699_v52, %v5617_v48  ;;  %v5704_v60 = vmul.f32 0.5, %v5698_v51 }
0x1097   : > { %v5701_v55 = vpop.f32.mrf.mxu0 }
0x1098   : > { %7739 = verf.f32 %v5706_v53  ;;  %v5707_v38 = vmul.f32 0.70710677, %v5700_v54  ;;  %v5705_v4 = vmul.f32 0.5, %v5700_v54 }
0x1099   : > { %v5702_v56 = vpop.f32.mrf.mxu0 }
0x109a   : > { %7741 = verf.f32 %v5707_v38 }
0x10a5   : > { %v7740_v57 = vpop.eup %7739 }
0x10a6   : > { %v5710_v58 = vadd.f32 1.0, %v7740_v57 }
0x10a7   : > { %v7742_v59 = vpop.eup %7741 }
0x10a8   : > { %v5711_v61 = vadd.f32 1.0, %v7742_v59  ;;  %v5712_v3 = vmul.f32 %v5710_v58, %v5704_v60 }
0x10aa   : > { %v5713_v6 = vmul.f32 %v5711_v61, %v5705_v4  ;;  %v5714_v63 = vpack.c.bf16 %v5712_v3, %v5712_v3 }
0x10ac   : > { %v5715_v62 = vpack.c.bf16 %v5713_v6, %v5713_v6 }
0x10ae   : > { %5850 = vmatprep.mubr.bf16.mxu1 %v5715_v62 }
0x10af   : > { %5851 = vmatmul.mubr.bf16.vlgmr.msra.gmra.mxu1 %v5714_v63 }
0x116f   : > { %v6962_v50 = vpop.f32.mrf.mxu1 }
0x1171   : > { %v6963_v7 = vpop.f32.mrf.mxu1 }
0x1172   : > { %v6964_v8 = vadd.f32 %v6963_v7, %v6962_v50 }
0x1173   : > { %v6965_v0 = vpop.f32.mrf.mxu1 }
0x1174   : > { %v5853_v9 = vadd.f32 %v6964_v8, %v6711_v2 }
0x1175   : > { %v6966_v11 = vpop.f32.mrf.mxu1 }
0x1176   : > { %v5858_v12 = vadd.f32 %v5853_v9, %v8870_v30 }
0x1178   : > { %v5859_v13 = vsel %vm3787_vm9, %v5858_v12, 0.0 }
0x1179   : > { %5860 = vadd.xlane.f32.xlu0 %v5859_v13 }
0x1202   : > { %v5861_v1 = vpop.xlane.xlu0 %5860 }
0x1203   : > { %v5862_v14 = vmul.f32 0.015625, %v5861_v1 }
0x1205   : > { %v5863_v15 = vsub.f32 %v5858_v12, %v5862_v14 }
0x1207   : > { %v5864_v16 = vmul.f32 %v5863_v15, %v5863_v15 }
0x1209   : > { %v5865_v17 = vsel %vm3787_vm9, %v5864_v16, 0.0 }
0x120a   : > { %5866 = vadd.xlane.f32.xlu1 %v5865_v17 }
0x1293   : > { %v5867_v5 = vpop.xlane.xlu1 %5866 }
0x1294   : > { %v5868_v18 = vmul.f32 0.015625, %v5867_v5 }
0x1296   : > { %v5869_v19 = vadd.f32 1e-05, %v5868_v18 }
0x1298   : > { %7743 = vrsqrt.f32 %v5869_v19 }
0x12a5   : > { %v7744_v21 = vpop.eup %7743 }
0x12a6   : > { %v5871_v25 = vmul.f32 %v7744_v21, %v5863_v15 }
0x12a8   : > { %v5878_v27 = vmul.f32 %v6728_v23, %v5871_v25  ;;  %5890 = sbr.rel (%p6730_p1) target bundleno = 4782 (0x12ae), region = 188 }
0x12aa   : > { %v5885_v28 = vadd.f32 %v6729_v26, %v5878_v27 }
0x12ac   : > { %5886 = vst.msk [vmem:[%s8295_s10] sm:$0xf] %vm3787_vm9, %v5885_v28 }
0x12ad   : > { %5891 = vst.msk [vmem:[%s8292_s13] sm:$0xf] %vm3787_vm9, %v8679_v24 }
0x12ae PF: > { %s9154_s3 = sld [smem:[#allocation50_spill]] }
0x12b4   : > { %p6731_p2 = scmp.ne.s32.totalorder %s9154_s3, 1 }
0x12b5   : > { %s9155_s26 = sld [smem:[#allocation43_spill]] (!%p6731_p2) }
0x12b6   : > { %5895 = sbr.rel (%p6731_p2) target bundleno = 5104 (0x13f0), region = 192  ;;  %s9156_s1 = sld [smem:[#allocation44_spill]] (!%p6731_p2) }
0x12bb   : > { %v5898_v20 = vsel %vm3787_vm9, %v8679_v24, 0.0  ;;  %v6732_v37 = vld [vmem:[%s9155_s26] ss:$0 sm:$0xff] }
0x12bc   : > { %5899 = vadd.xlane.f32.xlu0 %v5898_v20  ;;  %v6733_v40 = vld [vmem:[%s9156_s1] ss:$0 sm:$0xff] }
0x1345   : > { %v5900_v29 = vpop.xlane.xlu0 %5899 }
0x1346   : > { %v5901_v10 = vmul.f32 0.015625, %v5900_v29 }
0x1348   : > { %v5902_v30 = vsub.f32 %v8679_v24, %v5901_v10 }
0x134a   : > { %v5903_v31 = vmul.f32 %v5902_v30, %v5902_v30 }
0x134c   : > { %v5904_v32 = vsel %vm3787_vm9, %v5903_v31, 0.0 }
0x134d   : > { %5905 = vadd.xlane.f32.xlu0 %v5904_v32 }
0x13d6   : > { %v5906_v33 = vpop.xlane.xlu0 %5905 }
0x13d7   : > { %v5907_v34 = vmul.f32 0.015625, %v5906_v33 }
0x13d9   : > { %v5908_v35 = vadd.f32 1e-05, %v5907_v34 }
0x13db   : > { %7747 = vrsqrt.f32 %v5908_v35 }
0x13e8   : > { %v7748_v36 = vpop.eup %7747 }
0x13e9   : > { %v5910_v39 = vmul.f32 %v7748_v36, %v5902_v30 }
0x13eb   : > { %v5917_v41 = vmul.f32 %v6732_v37, %v5910_v39 }
0x13ed   : > { %v5924_v42 = vadd.f32 %v6733_v40, %v5917_v41 }
0x13ef   : > { %5925 = vst.msk [vmem:[%s8292_s13] sm:$0xf] %vm3787_vm9, %v5924_v42 }
0x13f0 PF: > { %s9157_s18 = sld [smem:[#allocation51_spill]]  ;;  %s5947_s11 = sshll.u32 %s8295_s10, 4  ;;  %s5948_s11 = int_to_ptr.vmem [resolvable:$true] %s5947_s11 }
0x13f1   : > { %s9158_s15 = sld [smem:[#allocation46_spill]]  ;;  %s7749_s23 = scalar_lea.vmem %s5948_s11, 64 }
0x13f2   : > { %s9160_s30 = sld [smem:[#allocation48_spill]]  ;;  %p7750_p4 = scmp.ne.s32.totalorder %s5948_s11, %s7749_s23 }
0x13f3   : > { %s7889_s2 = smov [#allocation2]  }
0x13f4   : > { %p7751_p5 = pnand %p7750_p4, %p8154_p3  ;;  %s7753_s28 = sshll.u32 %s7889_s2, 4  ;;  %s7754_s28 = int_to_ptr.vmem [resolvable:$false] %s7753_s28 }
0x13f5   : > { %s7755_s13 = scalar_lea.vmem %s7754_s28, 128  ;;  %p7756_p7 = scmp.lt.s32.totalorder %s5948_s11, %s7754_s28 }
0x13f6   : > { %s6735_s20 = sshll.u32 %s9157_s18, 6  ;;  %p7752_p6 = pneg %p7751_p5 }
0x13f7   : > { %s9159_s24 = smov %s9158_s15  ;;  %s5945_s27 = scalar_lea.hbm %s9158_s15, %s6735_s20 }
0x13f8   : > { %s9162_s16 = sand.u32 1, %s9160_s30   ;;  %p7757_p8 = scmp.lt.s32.totalorder %s7755_s13, %s7749_s23 }
0x13f9   : > { %s5931_s22 = scalar_lea.sflag [#allocation3], %s9162_s16 }
0x13fa   : > { %p7758_p10 = por %p7757_p8, %p7756_p7 }
0x13fc   : > { %p7759_p11 = pnand %p7758_p10, %p7752_p6 }
0x13fe   : > { %7762 = shalt.err (!%p7759_p11)
}
0x13ff   : > { %s7763_s0 = scalar_lea.hbm %s5945_s27, 64  ;;  %s7767_s10 = scalar_lea.hbm %s9159_s24, 128 }
0x1400   : > { %p7764_p12 = scmp.ne.s32.totalorder %s5945_s27, %s7763_s0  ;;  %p7768_p1 = scmp.lt.s32.totalorder %s5945_s27, %s9159_s24 }
0x1401   : > { %p7769_p2 = scmp.lt.s32.totalorder %s7767_s10, %s7763_s0 }
0x1402   : > { %p7765_p13 = pnand %p7764_p12, %p8154_p3 }
0x1403   : > { %p7770_p4 = por %p7769_p2, %p7768_p1 }
0x1404   : > { %p7766_p0 = pneg %p7765_p13 }
0x1406   : > { %p7771_p5 = pnand %p7770_p4, %p7766_p0 }
0x1408   : > { %7774 = shalt.err (!%p7771_p5)
}
0x1409   : > { %7416 = dma.vmem_to_hbm [thread:$0]  (%p8154_p3), %s5948_s11, 64, %s5945_s27, %s5931_s22  }
0x140a PF: > { %s9163_s5 = sld [smem:[#allocation54_spill]] }
0x140b   : > { %s9164_s14 = sld [smem:[#allocation47_spill]] }
0x1410   : > { %p7422_p6 = scmp.ge.s32.totalorder %s9163_s5, 2 }
0x1411   : > { %s5966_s8 = sand.u32 1, %s9164_s14  }
0x1412   : > { %p7419_p7 = pnand %p7422_p6, %p8164_p9  ;;  %s5967_s4 = scalar_lea.sflag [#allocation3], %s5966_s8 }
0x1414   : > { %p7420_p8 = pneg %p7419_p7 }
0x1416   : > { %7808 = dma.done.wait (%p7420_p8), %s5967_s4, 64  }
0x1417   : > { %7810 = vsyncadd (%p7420_p8), %s5967_s4, 4294967232  ;;  %s97_s23 = sadd.s32 1, %s9163_s5   ;;  %s9166_s7 = sld [smem:[#allocation48_spill]] }
0x1418   : > { %p94_p10 = scmp.ge.s32.totalorder %s97_s23, 6   ;;  %s9167_s10 = sld [smem:[#allocation49_spill]] }
0x1419   : > { %s9168_s11 = sld [smem:[#allocation59_spill]] }
0x141a   : > { %s9169_s15 = sld [smem:[#allocation52_spill]]  ;;  %96 = sbr.rel (!%p94_p10) target bundleno = 102 (0x66), region = 379 }
0x141b   : > { %s9170_s16 = sld [smem:[#allocation53_spill]] }
0x141c   : > { %s9171_s18 = sld [smem:[#allocation55_spill]] }
0x141d   : > { %s9172_s22 = sld [smem:[#allocation57_spill]] }
0x141f   :  { %5972 = vsyncpa [#allocation3], 1 }
0x1420   :  { %5974 = vsyncpa [#allocation3 + $0x1], 1 }

// kernel: camft_forward.13
= control target key start
LH: loop header
LB: loop body
LE: loop exit
PB: predicated region body
PF: predicated region fallthrough
CT: control target
= control target key end

     0   :  { %v308_v1 = vmov 0.0   ;;  %vm309_vm0 = vmmov 0   ;;  %s387_s0 = inlined_call_operand.vmem [shape: f32[2,64], index: 0, kind: input, shape index: {}]   ;;  %s388_s1 = inlined_call_operand.vmem [shape: bf16[64,32], index: 1, kind: input, shape index: {}]   ;;  %s389_s2 = inlined_call_operand.vmem [shape: f32[1,32], index: 2, kind: input, shape index: {}]   ;;  %s390_s3 = inlined_call_operand.vmem [shape: f32[1,32], index: 3, kind: input, shape index: {}]   ;;  %s391_s4 = inlined_call_operand.vmem [shape: f32[1,32], index: 4, kind: input, shape index: {}]   ;;  %s392_s5 = inlined_call_operand.vmem [shape: bf16[32,4], index: 5, kind: input, shape index: {}]   ;;  %s393_s6 = inlined_call_operand.vmem [shape: f32[1,4], index: 6, kind: input, shape index: {}]   ;;  %s394_s7 = inlined_call_operand.hbm [shape: f32[2,4], index: 7, kind: output, shape index: {}]  }
   0x1   :  { %v276_v0 = vld [vmem:[%s388_s1 + $0x18] sm:$0xff]   ;;  %253 = vmatprep.subr.bf16.mxu0 %v308_v1  ;;  %265 = vmatprep.subr.bf16.mxu1 %v308_v1  ;;  %v277_v2 = vld [vmem:[%s388_s1 + $0x10] sm:$0xff]   ;;  %v278_v3 = vld [vmem:[%s388_s1 + $0x8] sm:$0xff]  }
   0x2   :  { %254 = vmatpush3.bf16.msra.mxu0 %v276_v0  ;;  %261 = vmatprep.mubr.msk.bf16.mxu0 %vm309_vm0, %v308_v1 }
   0x3   :  { %255 = vmatprep.subr.bf16.mxu0 %v308_v1  ;;  %269 = vmatprep.mubr.msk.bf16.mxu1 %vm309_vm0, %v308_v1 }
   0x6   :  { %256 = vmatpush3.bf16.msra.mxu0 %v277_v2 }
   0x7   :  { %12 = vsyncpa [#allocation3], 0  ;;  %257 = vmatprep.subr.bf16.mxu0 %v308_v1  ;;  %v279_v4 = vld [vmem:[%s388_s1] sm:$0xff]   ;;  %vm69_vm1 = vcmask 523264   ;;  %vm115_vm2 = vcmask 254976   ;;  %v280_v19 = vld [vmem:[%s392_s5 + $0x8] sm:$0xff]  }
   0x8   :  { %v28_v5 = vld [vmem:[%s387_s0] sm:$0x3]  ;;  %266 = vmatpush3.bf16.msra.mxu1 %v280_v19  ;;  %vm173_vm3 = vcmask 261120   ;;  %vm217_vm4 = vcmask 25600  }
   0x9   :  { %v37_v6 = vpack.c.bf16 %v28_v5, %v28_v5  ;;  %v233_v7 = vld [vmem:[%s389_s2] ss:$0 sm:$0xff]  ;;  %267 = vmatprep.subr.bf16.mxu1 %v308_v1 }
   0xa   :  { %258 = vmatpush3.bf16.msra.mxu0 %v278_v3  ;;  %v281_v20 = vld [vmem:[%s392_s5] sm:$0xff]  }
   0xb   :  { %259 = vmatprep.subr.bf16.mxu0 %v308_v1  ;;  %v239_v25 = vld [vmem:[%s390_s3] ss:$0 sm:$0xff]  ;;  %s310_s3 = smov [#allocation2]  }
   0xc   :  { %268 = vmatpush3.bf16.msra.mxu1 %v281_v20  ;;  %v240_v27 = vld [vmem:[%s391_s4] ss:$0 sm:$0xff]  ;;  %s225_s19 = sshll.u32 %s310_s3, 4  ;;  %s226_s19 = int_to_ptr.vmem [resolvable:$true] %s225_s19 }
   0xd   :  { %v241_v36 = vld [vmem:[%s393_s6] ss:$0 sm:$0xff]  ;;  %s286_s4 = scalar_lea.vmem %s226_s19, 32  ;;  %p291_p1 = scmp.lt.s32.totalorder %s226_s19, %s226_s19 }
   0xe   :  { %260 = vmatpush3.bf16.msra.mxu0 %v279_v4  ;;  %p287_p0 = scmp.ne.s32.totalorder %s226_s19, %s286_s4  ;;  %p292_p2 = scmp.lt.s32.totalorder %s286_s4, %s286_s4 }
  0x10   :  { %p293_p3 = por %p292_p2, %p291_p1 }
  0x11   :  { %262 = vmatmul.mubr.msk.bf16.vlgmr.msra.gmra.mxu0 %vm69_vm1, %v37_v6 }
  0x12   :  { %p294_p4 = pnand %p293_p3, %p287_p0 }
  0xd1   :  { %v107_v8 = vpop.f32.mrf.mxu0 }
  0xd2   :  { %v108_v9 = vadd.f32 %v233_v7, %v107_v8 }
  0xd3   :  { %v263_v10 = vpop.f32.mrf.mxu0 }
  0xd4   :  { %v116_v11 = vsel %vm115_vm2, %v108_v9, 0.0 }
  0xd5   :  { %117 = vadd.xlane.f32.xlu0 %v116_v11  ;;  %v110_v12 = vpop.f32.mrf.mxu0 }
  0xd7   :  { %v264_v13 = vpop.f32.mrf.mxu0 }
 0x15e   :  { %v118_v14 = vpop.xlane.xlu0 %117 }
 0x15f   :  { %v120_v15 = vmul.f32 0.03125, %v118_v14 }
 0x161   :  { %v121_v16 = vsub.f32 %v108_v9, %v120_v15 }
 0x163   :  { %v122_v17 = vmul.f32 %v121_v16, %v121_v16 }
 0x165   :  { %v123_v18 = vsel %vm115_vm2, %v122_v17, 0.0 }
 0x166   :  { %124 = vadd.xlane.f32.xlu0 %v123_v18 }
 0x1ef   :  { %v125_v21 = vpop.xlane.xlu0 %124 }
 0x1f0   :  { %v126_v22 = vmul.f32 0.03125, %v125_v21 }
 0x1f2   :  { %v127_v23 = vadd.f32 1e-05, %v126_v22 }
 0x1f4   :  { %282 = vrsqrt.f32 %v127_v23 }
 0x201   :  { %v283_v24 = vpop.eup %282 }
 0x202   :  { %v129_v26 = vmul.f32 %v283_v24, %v121_v16 }
 0x204   :  { %v136_v28 = vmul.f32 %v239_v25, %v129_v26 }
 0x206   :  { %v143_v29 = vadd.f32 %v240_v27, %v136_v28 }
 0x208   :  { %v145_v30 = vmul.f32 0.70710677, %v143_v29  ;;  %v144_v32 = vmul.f32 0.5, %v143_v29 }
 0x20a   :  { %284 = verf.f32 %v145_v30 }
 0x217   :  { %v285_v31 = vpop.eup %284 }
 0x218   :  { %v147_v33 = vadd.f32 1.0, %v285_v31 }
 0x21a   :  { %v148_v34 = vmul.f32 %v147_v33, %v144_v32 }
 0x21c   :  { %v153_v35 = vpack.c.bf16 %v148_v34, %v148_v34 }
 0x21e   :  { %270 = vmatmul.mubr.msk.bf16.vlgmr.msra.gmra.mxu1 %vm173_vm3, %v153_v35 }
 0x2de   :  { %v211_v37 = vpop.f32.mrf.mxu1 }
 0x2df   :  { %v212_v38 = vadd.f32 %v241_v36, %v211_v37 }
 0x2e0   :  { %v271_v39 = vpop.f32.mrf.mxu1 }
 0x2e1   :  { %218 = vst.msk [vmem:[#allocation2] sm:$0x3] %vm217_vm4, %v212_v38 }
 0x2e2   :  { %v214_v40 = vpop.f32.mrf.mxu1 }
 0x2e3   :  { %297 = shalt.err (!%p294_p4)
}
 0x2e4   :  { %228 = dma.vmem_to_hbm [thread:$0]  %s226_s19, 32, %s394_s7, [#allocation3]   ;;  %v272_v41 = vpop.f32.mrf.mxu1 }
 0x2e5   :  { %306 = dma.done.wait [#allocation3], 32  }
 0x2e6   :  { %307 = vsyncadd [#allocation3], 4294967264 }
 0x2e7   :  { %232 = vsyncpa [#allocation3], 1 }

// kernel: camft_forward.11
= control target key start
LH: loop header
LB: loop body
LE: loop exit
PB: predicated region body
PF: predicated region fallthrough
CT: control target
= control target key end

     0   :  { %s5655_s6 = smov 1   ;;  %s5656_s10 = smov 2   ;;  %s6403_s0 = inlined_call_operand.smem [shape: u32[32], index: -1, kind: input, shape index: {}] }
   0x1   :  { %s5697_s5 = sld [smem:[%s6403_s0]]   ;;  %s5657_s14 = smov 3  }
   0x2   :  { %s5702_s9 = sld [smem:[%s6403_s0 + %s5655_s6]]   ;;  %s5658_s18 = smov 4  }
   0x3   :  { %s5707_s13 = sld [smem:[%s6403_s0 + %s5656_s10]]   ;;  %s5659_s22 = smov 5  }
   0x4   :  { %s5712_s17 = sld [smem:[%s6403_s0 + %s5657_s14]]   ;;  %s5660_s26 = smov 6  }
   0x5   :  { %s5717_s21 = sld [smem:[%s6403_s0 + %s5658_s18]]   ;;  %s5661_s30 = smov 7  }
   0x6   :  { %s5722_s25 = sld [smem:[%s6403_s0 + %s5659_s22]]   ;;  %s5662_s4 = smov 8  }
   0x7   :  { %s5727_s29 = sld [smem:[%s6403_s0 + %s5660_s26]]   ;;  %s5663_s10 = smov 9  }
   0x8   :  { %s5732_s3 = sld [smem:[%s6403_s0 + %s5661_s30]]   ;;  %s5664_s15 = smov 10  }
   0x9   :  { %s5737_s8 = sld [smem:[%s6403_s0 + %s5662_s4]]   ;;  %s5665_s20 = smov 11  }
   0xa   :  { %s5742_s14 = sld [smem:[%s6403_s0 + %s5663_s10]]   ;;  %s5666_s26 = smov 12  }
   0xb   :  { %s5747_s19 = sld [smem:[%s6403_s0 + %s5664_s15]]   ;;  %s5667_s1 = smov 13  }
   0xc   :  { %s5752_s24 = sld [smem:[%s6403_s0 + %s5665_s20]]   ;;  %s5668_s7 = smov 14  }
   0xd   :  { %s5757_s30 = sld [smem:[%s6403_s0 + %s5666_s26]]   ;;  %s5669_s15 = smov 15  }
   0xe   :  { %s5762_s6 = sld [smem:[%s6403_s0 + %s5667_s1]]   ;;  %s5670_s22 = smov 16  }
   0xf   :  { %s5767_s12 = sld [smem:[%s6403_s0 + %s5668_s7]]   ;;  %s5671_s28 = smov 17  }
  0x10   :  { %s5772_s20 = sld [smem:[%s6403_s0 + %s5669_s15]]   ;;  %s5672_s7 = smov 18  }
  0x11   :  { %s5777_s27 = sld [smem:[%s6403_s0 + %s5670_s22]]   ;;  %s5673_s15 = smov 19  }
  0x12   :  { %s5782_s4 = sld [smem:[%s6403_s0 + %s5671_s28]]   ;;  %s5674_s22 = smov 20  }
  0x13   :  { %s5675_s28 = smov 21  }
  0x14   :  { %6415 = sst [smem:[#allocation2_spill]] %s5762_s6 }
  0x15   :  { %s5787_s6 = sld [smem:[%s6403_s0 + %s5672_s7]]   ;;  %s5676_s7 = smov 22  }
  0x16   :  { %6416 = sst [smem:[#allocation3_spill]] %s5772_s20 }
  0x17   :  { %6417 = sst [smem:[#allocation4_spill]] %s5777_s27 }
  0x18   :  { %6418 = sst [smem:[#allocation5_spill]] %s5782_s4 }
  0x19   :  { %s5792_s20 = sld [smem:[%s6403_s0 + %s5673_s15]]   ;;  %s5677_s15 = smov 23  }
  0x1a   :  { %s5797_s27 = sld [smem:[%s6403_s0 + %s5674_s22]]   ;;  %s5678_s22 = smov 24  }
  0x1b   :  { %6419 = sst [smem:[#allocation6_spill]] %s5787_s6 }
  0x1c   :  { %s5802_s4 = sld [smem:[%s6403_s0 + %s5675_s28]]   ;;  %s5679_s28 = smov 25  }
  0x1d   :  { %s5807_s6 = sld [smem:[%s6403_s0 + %s5676_s7]]   ;;  %s5680_s7 = smov 26  }
  0x1f   :  { %6420 = sst [smem:[#allocation7_spill]] %s5792_s20 }
  0x20   :  { %6421 = sst [smem:[#allocation8_spill]] %s5797_s27 }
  0x21   :  { %s5812_s20 = sld [smem:[%s6403_s0 + %s5677_s15]]   ;;  %s5681_s15 = smov 27  }
  0x22   :  { %6422 = sst [smem:[#allocation9_spill]] %s5802_s4 }
  0x23   :  { %6423 = sst [smem:[#allocation10_spill]] %s5807_s6 }
  0x24   :  { %s5817_s27 = sld [smem:[%s6403_s0 + %s5678_s22]]   ;;  %s5682_s22 = smov 28  }
  0x25   :  { %s5822_s4 = sld [smem:[%s6403_s0 + %s5679_s28]]   ;;  %s5683_s28 = smov 29  }
  0x26   :  { %s5827_s6 = sld [smem:[%s6403_s0 + %s5680_s7]]   ;;  %s5684_s7 = smov 30  }
  0x27   :  { %6424 = sst [smem:[#allocation11_spill]] %s5812_s20 }
  0x28   :  { %s5832_s20 = sld [smem:[%s6403_s0 + %s5681_s15]]   ;;  %s5685_s15 = smov 31  }
  0x2a   :  { %6425 = sst [smem:[#allocation12_spill]] %s5817_s27 }
  0x2b   :  { %6426 = sst [smem:[#allocation13_spill]] %s5822_s4 }
  0x2c   :  { %6427 = sst [smem:[#allocation14_spill]] %s5827_s6 }
  0x2d   :  { %s5837_s27 = sld [smem:[%s6403_s0 + %s5682_s22]]   ;;  %s5854_s22 = smov 0  }
  0x2e   :  { %6428 = sst [smem:[#allocation15_spill]] %s5832_s20 }
  0x2f   :  { %s5842_s4 = sld [smem:[%s6403_s0 + %s5683_s28]]  }
  0x30   :  { %s5847_s6 = sld [smem:[%s6403_s0 + %s5684_s7]]  }
  0x31   :  { %s5852_s20 = sld [smem:[%s6403_s0 + %s5685_s15]]  }
  0x32 LB: > { %s4549_s23 = sadd.s32 4294967295, %s5653_s22   ;;  %p4553_p0 = scmp.ge.s32.totalorder %s5653_s22, 1  ;;  %s5653_s22 = sphi %s5854_s22, %s73_s22  }
  0x33   : > { %p875_p1 = scmp.lt.s32.totalorder %s5653_s22, 3 }
  0x35   : > { %p876_p2 = pnand %p4553_p0, %p875_p1 }
  0x36   : > { %p954_p3 = scmp.lt.s32.totalorder (!%p876_p2), %s4549_s23, 1  ;;  %s6429_s28 = sld [smem:[#allocation3_spill]] (!%p876_p2) }
  0x37   : > { %879 = sbr.rel (%p876_p2) target bundleno = 2803 (0xaf3), region = 144  ;;  %s6430_s1 = sld [smem:[#allocation4_spill]] (!%p876_p2) }
  0x38   : > { %s6431_s2 = sld [smem:[#allocation7_spill]] (!%p876_p2) }
  0x39   : > { %s6432_s7 = sld [smem:[#allocation6_spill]] (!%p876_p2) }
  0x3a   : > { %s6433_s10 = sld [smem:[#allocation8_spill]] (!%p876_p2) }
  0x3b   : > { %s6434_s11 = sld [smem:[#allocation5_spill]] (!%p876_p2) }
  0x3c   : > { %v5476_v0 = vld [vmem:[%s5707_s13 + $0x18] sm:$0xff]   ;;  %v5686_v1 = vmov 0.0   ;;  %v5477_v2 = vld [vmem:[%s5707_s13 + $0x10] sm:$0xff]   ;;  %vm5687_vm0 = vmmov 0   ;;  %v5478_v3 = vld [vmem:[%s5707_s13 + $0x8] sm:$0xff]   ;;  %s6444_s23 = smov (!%p954_p3, %s4549_s23), 1 }
  0x3d   : > { %4934 = vmatprep.subr.bf16.mxu0 %v5686_v1  ;;  %4946 = vmatprep.subr.bf16.mxu1 %v5686_v1  ;;  %s959_s0 = scalar_lea.vmem %s5702_s9, %s6444_s23  ;;  %vm1000_vm1 = vcmask 523264   ;;  %v5479_v4 = vld [vmem:[%s5707_s13] sm:$0xff]   ;;  %v5480_v7 = vld [vmem:[%s5717_s21 + $0x8] sm:$0xff]   ;;  %v5483_v9 = vld [vmem:[%s5727_s29 + $0x38] sm:$0xff]   ;;  %s5894_s26 = scalar_lea.vmem %s5697_s5, %s6444_s23  ;;  %vm1067_vm2 = vcmask 261120   ;;  %vm2133_vm3 = vcmask 130048  }
  0x3e   : > { %4935 = vmatpush3.bf16.msra.mxu0 %v5476_v0  ;;  %4942 = vmatprep.mubr.msk.bf16.mxu0 %vm5687_vm0, %v5686_v1  ;;  %v965_v5 = vld [vmem:[%s959_s0] sm:$0x1]  ;;  %v5485_v10 = vld [vmem:[%s5727_s29 + $0x30] sm:$0xff]   ;;  %v5487_v11 = vld [vmem:[%s5727_s29 + $0x28] sm:$0xff]   ;;  %vm2354_vm4 = vcmask 1040384   ;;  %vm2350_vm5 = vcmask 7168  }
  0x3f   : > { %4936 = vmatprep.subr.bf16.mxu0 %v5686_v1  ;;  %4950 = vmatprep.mubr.msk.bf16.mxu1 %vm5687_vm0, %v5686_v1  ;;  %v974_v6 = vpack.c.bf16 %v965_v5, %v965_v5  ;;  %v5481_v8 = vld [vmem:[%s5717_s21] sm:$0xff]   ;;  %v5491_v15 = vld [vmem:[%s5727_s29 + $0x78] sm:$0xff]   ;;  %v5493_v16 = vld [vmem:[%s5727_s29 + $0x70] sm:$0xff]   ;;  %s6435_s15 = sld [smem:[#allocation10_spill]]  ;;  %vm4447_vm6 = vcmask 516096  }
  0x40   : > { %4947 = vmatpush3.bf16.msra.mxu1 %v5480_v7  ;;  %v964_v12 = vld [vmem:[%s5894_s26] sm:$0x1]  ;;  %v5495_v17 = vld [vmem:[%s5727_s29 + $0x68] sm:$0xff]   ;;  %v5499_v19 = vld [vmem:[%s5732_s3 + $0x38] sm:$0xff]   ;;  %s6436_s16 = sld [smem:[#allocation2_spill]] }
  0x41   : > { %4948 = vmatprep.subr.bf16.mxu1 %v5686_v1  ;;  %v5489_v13 = vld [vmem:[%s5727_s29 + $0x20] sm:$0xff]   ;;  %v5899_v14 = vpack.c.bf16 %v964_v12, %v964_v12  ;;  %v5501_v20 = vld [vmem:[%s5732_s3 + $0x30] sm:$0xff]   ;;  %v5503_v21 = vld [vmem:[%s5732_s3 + $0x28] sm:$0xff]   ;;  %s6437_s18 = sld [smem:[#allocation11_spill]] }
  0x42   : > { %4937 = vmatpush3.bf16.msra.mxu0 %v5477_v2  ;;  %v5497_v18 = vld [vmem:[%s5727_s29 + $0x60] sm:$0xff]   ;;  %v5482_v33 = vld [vmem:[%s5727_s29 + $0x18] sm:$0xff]   ;;  %v5484_v35 = vld [vmem:[%s5727_s29 + $0x10] sm:$0xff]   ;;  %s6438_s0 = sld [smem:[#allocation9_spill]] }
  0x43   : > { %4938 = vmatprep.subr.bf16.mxu0 %v5686_v1  ;;  %v975_v22 = vld [vmem:[%s5712_s17] sm:$0x1]  ;;  %v5486_v36 = vld [vmem:[%s5727_s29 + $0x8] sm:$0xff]   ;;  %v5490_v38 = vld [vmem:[%s5727_s29 + $0x58] sm:$0xff]  }
  0x44   : > { %4949 = vmatpush3.bf16.msra.mxu1 %v5481_v8  ;;  %v5488_v37 = vld [vmem:[%s5727_s29] sm:$0xff]   ;;  %v5492_v39 = vld [vmem:[%s5727_s29 + $0x50] sm:$0xff]   ;;  %v5494_v40 = vld [vmem:[%s5727_s29 + $0x48] sm:$0xff]  }
  0x45   : > { %4954 = vmatprep.subr.bf16.mxu1 %v5686_v1  ;;  %v5496_v41 = vld [vmem:[%s5727_s29 + $0x40] sm:$0xff]   ;;  %v5498_v42 = vld [vmem:[%s5732_s3 + $0x18] sm:$0xff]   ;;  %v5500_v43 = vld [vmem:[%s5732_s3 + $0x10] sm:$0xff]  }
  0x46   : > { %4939 = vmatpush3.bf16.msra.mxu0 %v5478_v3  ;;  %v5502_v44 = vld [vmem:[%s5732_s3 + $0x8] sm:$0xff]   ;;  %v5504_v45 = vld [vmem:[%s5732_s3] sm:$0xff]   ;;  %v5506_v59 = vld [vmem:[%s5732_s3 + $0x58] sm:$0xff]  }
  0x47   : > { %4940 = vmatprep.subr.bf16.mxu0 %v5686_v1  ;;  %v5505_v46 = vld [vmem:[%s5732_s3 + $0x20] sm:$0xff]   ;;  %v5507_v60 = vld [vmem:[%s5732_s3 + $0x78] sm:$0xff]   ;;  %v5508_v0 = vld [vmem:[%s5732_s3 + $0x50] sm:$0xff]  }
  0x48   : > { %v1054_v55 = vld [vmem:[%s5722_s25] sm:$0x1]  ;;  %v5509_v2 = vld [vmem:[%s5732_s3 + $0x70] sm:$0xff]   ;;  %v5510_v3 = vld [vmem:[%s5732_s3 + $0x48] sm:$0xff]  }
  0x49   : > { %v5512_v5 = vld [vmem:[%s5732_s3 + $0x40] sm:$0xff]   ;;  %v5514_v8 = vld [vmem:[%s5737_s8 + $0x18] sm:$0xff]   ;;  %v5516_v12 = vld [vmem:[%s5737_s8 + $0x10] sm:$0xff]  }
  0x4a   : > { %4941 = vmatpush3.bf16.msra.mxu0 %v5479_v4  ;;  %v5511_v4 = vld [vmem:[%s5732_s3 + $0x68] sm:$0xff]  }
  0x4b   : > { %4966 = vmatprep.subr.bf16.mxu0 %v5686_v1 }
  0x4d   : > { %4943 = vmatmul.mubr.msk.bf16.vlgmr.msra.gmra.mxu0 %vm1000_vm1, %v974_v6  ;;  %v5513_v6 = vld [vmem:[%s5732_s3 + $0x60] sm:$0xff]  }
  0x4e   : > { %4974 = vmatprep.mubr.msk.bf16.mxu0 %vm5687_vm0, %v5686_v1  ;;  %4967 = vmatpush3.bf16.msra.mxu0 %v5483_v9  ;;  %v5515_v9 = vld [vmem:[%s5737_s8 + $0x38] sm:$0xff]  }
  0x4f   : > { %4968 = vmatprep.subr.bf16.mxu0 %v5686_v1 }
  0x52   : > { %4969 = vmatpush3.bf16.msra.mxu0 %v5485_v10 }
  0x53   : > { %4970 = vmatprep.subr.bf16.mxu0 %v5686_v1 }
  0x56   : > { %4971 = vmatpush3.bf16.msra.mxu0 %v5487_v11 }
  0x57   : > { %4972 = vmatprep.subr.bf16.mxu0 %v5686_v1 }
  0x5a   : > { %4973 = vmatpush3.bf16.msra.mxu0 %v5489_v13  ;;  %v5517_v13 = vld [vmem:[%s5737_s8 + $0x30] sm:$0xff]  }
  0x5b   : > { %4990 = vmatprep.subr.bf16.mxu0 %v5686_v1 }
  0x5d   : > { %4975 = vmatmul.mubr.msk.bf16.vlgmr.msra.gmra.mxu0 %vm1000_vm1, %v5899_v14 }
  0x5e   : > { %4991 = vmatpush3.bf16.msra.mxu0 %v5491_v15  ;;  %4998 = vmatprep.mubr.msk.bf16.mxu0 %vm5687_vm0, %v5686_v1 }
  0x5f   : > { %4992 = vmatprep.subr.bf16.mxu0 %v5686_v1 }
  0x62   : > { %4993 = vmatpush3.bf16.msra.mxu0 %v5493_v16  ;;  %v5518_v16 = vld [vmem:[%s5737_s8 + $0x8] sm:$0xff]  }
  0x63   : > { %4994 = vmatprep.subr.bf16.mxu0 %v5686_v1 }
  0x66   : > { %4995 = vmatpush3.bf16.msra.mxu0 %v5495_v17  ;;  %v5519_v17 = vld [vmem:[%s5737_s8 + $0x28] sm:$0xff]  }
  0x67   : > { %4996 = vmatprep.subr.bf16.mxu0 %v5686_v1 }
  0x6a   : > { %4997 = vmatpush3.bf16.msra.mxu0 %v5497_v18  ;;  %v5520_v18 = vld [vmem:[%s5737_s8] sm:$0xff]  }
  0x6b   : > { %5014 = vmatprep.subr.bf16.mxu0 %v5686_v1 }
  0x6d   : > { %4999 = vmatmul.mubr.msk.bf16.vlgmr.msra.gmra.mxu0 %vm1000_vm1, %v5899_v14 }
  0x6e   : > { %5015 = vmatpush3.bf16.msra.mxu0 %v5499_v19  ;;  %5022 = vmatprep.mubr.msk.bf16.mxu0 %vm5687_vm0, %v5686_v1  ;;  %v5521_v19 = vld [vmem:[%s5737_s8 + $0x20] sm:$0xff]  }
  0x6f   : > { %5016 = vmatprep.subr.bf16.mxu0 %v5686_v1 }
  0x72   : > { %5017 = vmatpush3.bf16.msra.mxu0 %v5501_v20 }
  0x73   : > { %5018 = vmatprep.subr.bf16.mxu0 %v5686_v1 }
  0x76   : > { %5019 = vmatpush3.bf16.msra.mxu0 %v5503_v21  ;;  %v5522_v21 = vld [vmem:[%s5737_s8 + $0x58] sm:$0xff]  }
  0x77   : > { %5020 = vmatprep.subr.bf16.mxu0 %v5686_v1 }
  0x7a   : > { %5021 = vmatpush3.bf16.msra.mxu0 %v5505_v46 }
  0x7b   : > { %5038 = vmatprep.subr.bf16.mxu0 %v5686_v1 }
 0x10d   : > { %v1038_v23 = vpop.f32.mrf.mxu0 }
 0x10e   : > { %v1039_v24 = vadd.f32 %v1038_v23, %v975_v22  ;;  %v5523_v22 = vld [vmem:[%s5737_s8 + $0x78] sm:$0xff]  }
 0x10f   : > { %v4944_v25 = vpop.f32.mrf.mxu0 }
 0x110   : > { %v1045_v26 = vmul.f32 0.70710677, %v1039_v24  ;;  %v1044_v30 = vmul.f32 0.5, %v1039_v24  ;;  %v5524_v25 = vld [vmem:[%s5737_s8 + $0x50] sm:$0xff]  }
 0x111   : > { %v1041_v27 = vpop.f32.mrf.mxu0 }
 0x112   : > { %5602 = verf.f32 %v1045_v26  ;;  %v5525_v26 = vld [vmem:[%s5737_s8 + $0x70] sm:$0xff]  }
 0x113   : > { %v4945_v28 = vpop.f32.mrf.mxu0 }
 0x114   : > { %v5526_v28 = vld [vmem:[%s5737_s8 + $0x48] sm:$0xff]  }
 0x11d   : > { %v5961_v47 = vpop.f32.mrf.mxu0 }
 0x11f   : > { %v5603_v29 = vpop.eup %5602  ;;  %v4976_v48 = vpop.f32.mrf.mxu0 }
 0x120   : > { %v1047_v31 = vadd.f32 1.0, %v5603_v29  ;;  %v5527_v29 = vld [vmem:[%s5737_s8 + $0x68] sm:$0xff]  }
 0x121   : > { %v1474_v49 = vpop.f32.mrf.mxu0 }
 0x122   : > { %v1048_v32 = vmul.f32 %v1047_v31, %v1044_v30  ;;  %v5528_v30 = vld [vmem:[%s5737_s8 + $0x40] sm:$0xff]  }
 0x123   : > { %v4977_v50 = vpop.f32.mrf.mxu0  ;;  %v5529_v31 = vld [vmem:[%s5737_s8 + $0x60] sm:$0xff]  }
 0x124   : > { %v1053_v34 = vpack.c.bf16 %v1048_v32, %v1048_v32  ;;  %v1219_v32 = vld [vmem:[%s5752_s24] sm:$0x1] }
 0x126   : > { %4951 = vmatmul.mubr.msk.bf16.vlgmr.msra.gmra.mxu1 %vm1067_vm2, %v1053_v34  ;;  %v1215_v34 = vld [vmem:[%s5747_s19] sm:$0x1] }
 0x127   : > { %4955 = vmatpush3.bf16.msra.mxu1 %v5482_v33  ;;  %4962 = vmatprep.mubr.msk.bf16.mxu1 %vm5687_vm0, %v5686_v1  ;;  %v1220_v33 = vld [vmem:[%s5752_s24 + $0x1] sm:$0x1] }
 0x128   : > { %4956 = vmatprep.subr.bf16.mxu1 %v5686_v1 }
 0x12b   : > { %4957 = vmatpush3.bf16.msra.mxu1 %v5484_v35  ;;  %v1216_v35 = vld [vmem:[%s5747_s19 + $0x1] sm:$0x1] }
 0x12c   : > { %4958 = vmatprep.subr.bf16.mxu1 %v5686_v1 }
 0x12d   : > { %v5963_v51 = vpop.f32.mrf.mxu0 }
 0x12f   : > { %4959 = vmatpush3.bf16.msra.mxu1 %v5486_v36  ;;  %v5000_v52 = vpop.f32.mrf.mxu0 }
 0x130   : > { %4960 = vmatprep.subr.bf16.mxu1 %v5686_v1 }
 0x131   : > { %v1602_v53 = vpop.f32.mrf.mxu0 }
 0x133   : > { %4961 = vmatpush3.bf16.msra.mxu1 %v5488_v37  ;;  %v5001_v54 = vpop.f32.mrf.mxu0 }
 0x134   : > { %4978 = vmatprep.subr.bf16.mxu1 %v5686_v1 }
 0x136   : > { %4963 = vmatmul.mubr.msk.bf16.vlgmr.msra.gmra.mxu1 %vm1000_vm1, %v5899_v14 }
 0x137   : > { %4979 = vmatpush3.bf16.msra.mxu1 %v5490_v38  ;;  %4986 = vmatprep.mubr.msk.bf16.mxu1 %vm5687_vm0, %v5686_v1 }
 0x138   : > { %4980 = vmatprep.subr.bf16.mxu1 %v5686_v1 }
 0x13b   : > { %4981 = vmatpush3.bf16.msra.mxu1 %v5492_v39 }
 0x13c   : > { %4982 = vmatprep.subr.bf16.mxu1 %v5686_v1 }
 0x13f   : > { %4983 = vmatpush3.bf16.msra.mxu1 %v5494_v40 }
 0x140   : > { %4984 = vmatprep.subr.bf16.mxu1 %v5686_v1 }
 0x143   : > { %4985 = vmatpush3.bf16.msra.mxu1 %v5496_v41 }
 0x144   : > { %5002 = vmatprep.subr.bf16.mxu1 %v5686_v1 }
 0x146   : > { %4987 = vmatmul.mubr.msk.bf16.vlgmr.msra.gmra.mxu1 %vm1000_vm1, %v5899_v14 }
 0x147   : > { %5003 = vmatpush3.bf16.msra.mxu1 %v5498_v42  ;;  %5010 = vmatprep.mubr.msk.bf16.mxu1 %vm5687_vm0, %v5686_v1 }
 0x148   : > { %5004 = vmatprep.subr.bf16.mxu1 %v5686_v1 }
 0x14b   : > { %5005 = vmatpush3.bf16.msra.mxu1 %v5500_v43  ;;  %v1472_v43 = vadd.f32 %v5961_v47, %v1216_v35 }
 0x14c   : > { %5006 = vmatprep.subr.bf16.mxu1 %v5686_v1 }
 0x14f   : > { %5007 = vmatpush3.bf16.msra.mxu1 %v5502_v44 }
 0x150   : > { %5008 = vmatprep.subr.bf16.mxu1 %v5686_v1 }
 0x153   : > { %5009 = vmatpush3.bf16.msra.mxu1 %v5504_v45 }
 0x154   : > { %5026 = vmatprep.subr.bf16.mxu1 %v5686_v1 }
 0x1e6   : > { %v1105_v56 = vpop.f32.mrf.mxu1 }
 0x1e7   : > { %v1106_v57 = vadd.f32 %v1105_v56, %v1054_v55  ;;  %v2122_v55 = vmul.f32 0.25, %v1472_v43 }
 0x1e8   : > { %v4952_v58 = vpop.f32.mrf.mxu1 }
 0x1e9   : > { %v5968_v61 = vpack.c.bf16 %v1106_v57, %v1106_v57  ;;  %v2126_v56 = vpack.c.bf16 %v2122_v55, %v2122_v55  ;;  %v1221_v57 = vld [vmem:[%s5752_s24 + $0x2] sm:$0x1]  ;;  %v1222_v58 = vld [vmem:[%s5752_s24 + $0x3] sm:$0x1] }
 0x1ea   : > { %v1108_v62 = vpop.f32.mrf.mxu1 }
 0x1eb   : > { %5011 = vmatmul.mubr.msk.bf16.vlgmr.msra.gmra.mxu1 %vm1000_vm1, %v5968_v61  ;;  %5023 = vmatmul.mubr.msk.bf16.vlgmr.msra.gmra.mxu0 %vm1000_vm1, %v5968_v61 }
 0x1ec   : > { %5027 = vmatpush3.bf16.msra.mxu1 %v5506_v59  ;;  %5039 = vmatpush3.bf16.msra.mxu0 %v5507_v60  ;;  %v4953_v63 = vpop.f32.mrf.mxu1  ;;  %v1217_v59 = vld [vmem:[%s5747_s19 + $0x2] sm:$0x1]  ;;  %v1218_v60 = vld [vmem:[%s5747_s19 + $0x3] sm:$0x1] }
 0x1ed   : > { %5028 = vmatprep.subr.bf16.mxu1 %v5686_v1  ;;  %5040 = vmatprep.subr.bf16.mxu0 %v5686_v1 }
 0x1ee   : > { %5034 = vmatprep.mubr.msk.bf16.mxu1 %vm5687_vm0, %v5686_v1  ;;  %5046 = vmatprep.mubr.msk.bf16.mxu0 %vm5687_vm0, %v5686_v1 }
 0x1f0   : > { %5029 = vmatpush3.bf16.msra.mxu1 %v5508_v0  ;;  %5041 = vmatpush3.bf16.msra.mxu0 %v5509_v2 }
 0x1f1   : > { %5030 = vmatprep.subr.bf16.mxu1 %v5686_v1  ;;  %5042 = vmatprep.subr.bf16.mxu0 %v5686_v1 }
 0x1f4   : > { %5031 = vmatpush3.bf16.msra.mxu1 %v5510_v3  ;;  %5043 = vmatpush3.bf16.msra.mxu0 %v5511_v4 }
 0x1f5   : > { %5032 = vmatprep.subr.bf16.mxu1 %v5686_v1  ;;  %5044 = vmatprep.subr.bf16.mxu0 %v5686_v1 }
 0x1f6   : > { %v5990_v7 = vpop.f32.mrf.mxu1 }
 0x1f7   : > { %v1408_v42 = vadd.f32 %v5990_v7, %v1215_v34 }
 0x1f8   : > { %5033 = vmatpush3.bf16.msra.mxu1 %v5512_v5  ;;  %5045 = vmatpush3.bf16.msra.mxu0 %v5513_v6  ;;  %v4964_v10 = vpop.f32.mrf.mxu1  ;;  %v1600_v6 = vadd.f32 %v5963_v51, %v1218_v60 }
 0x1f9   : > { %5050 = vmatprep.subr.bf16.mxu1 %v5686_v1  ;;  %5062 = vmatprep.subr.bf16.mxu0 %v5686_v1  ;;  %v2121_v54 = vmul.f32 0.25, %v1408_v42 }
 0x1fa   : > { %v1410_v11 = vpop.f32.mrf.mxu1 }
 0x1fb   : > { %5035 = vmatmul.mubr.msk.bf16.vlgmr.msra.gmra.mxu1 %vm1000_vm1, %v5968_v61  ;;  %5047 = vmatmul.mubr.msk.bf16.vlgmr.msra.gmra.mxu0 %vm1000_vm1, %v5968_v61  ;;  %v2125_v47 = vpack.c.bf16 %v2121_v54, %v2121_v54 }
 0x1fc   : > { %5051 = vmatpush3.bf16.msra.mxu1 %v5514_v8  ;;  %5063 = vmatpush3.bf16.msra.mxu0 %v5515_v9  ;;  %v4965_v15 = vpop.f32.mrf.mxu1 }
 0x1fd   : > { %5052 = vmatprep.subr.bf16.mxu1 %v5686_v1  ;;  %5064 = vmatprep.subr.bf16.mxu0 %v5686_v1 }
 0x1fe   : > { %5058 = vmatprep.mubr.msk.bf16.mxu1 %vm5687_vm0, %v5686_v1  ;;  %5070 = vmatprep.mubr.msk.bf16.mxu0 %vm5687_vm0, %v5686_v1 }
 0x200   : > { %5053 = vmatpush3.bf16.msra.mxu1 %v5516_v12  ;;  %5065 = vmatpush3.bf16.msra.mxu0 %v5517_v13 }
 0x201   : > { %5054 = vmatprep.subr.bf16.mxu1 %v5686_v1  ;;  %5066 = vmatprep.subr.bf16.mxu0 %v5686_v1 }
 0x204   : > { %5055 = vmatpush3.bf16.msra.mxu1 %v5518_v16  ;;  %5067 = vmatpush3.bf16.msra.mxu0 %v5519_v17  ;;  %v2124_v17 = vmul.f32 0.25, %v1600_v6 }
 0x205   : > { %5056 = vmatprep.subr.bf16.mxu1 %v5686_v1  ;;  %5068 = vmatprep.subr.bf16.mxu0 %v5686_v1 }
 0x206   : > { %v6016_v20 = vpop.f32.mrf.mxu1 }
 0x207   : > { %v1536_v5 = vadd.f32 %v6016_v20, %v1217_v59  ;;  %v1224_v20 = vld [vmem:[%s5757_s30 + $0x1] sm:$0x1] }
 0x208   : > { %5057 = vmatpush3.bf16.msra.mxu1 %v5520_v18  ;;  %5069 = vmatpush3.bf16.msra.mxu0 %v5521_v19  ;;  %v4988_v23 = vpop.f32.mrf.mxu1  ;;  %v2128_v18 = vpack.c.bf16 %v2124_v17, %v2124_v17  ;;  %v1223_v19 = vld [vmem:[%s5757_s30] sm:$0x1] }
 0x209   : > { %5074 = vmatprep.subr.bf16.mxu1 %v5686_v1  ;;  %5086 = vmatprep.subr.bf16.mxu0 %v5686_v1  ;;  %v2123_v16 = vmul.f32 0.25, %v1536_v5 }
 0x20a   : > { %v1538_v24 = vpop.f32.mrf.mxu1 }
 0x20b   : > { %5059 = vmatmul.mubr.msk.bf16.vlgmr.msra.gmra.mxu1 %vm1000_vm1, %v5968_v61  ;;  %5071 = vmatmul.mubr.msk.bf16.vlgmr.msra.gmra.mxu0 %vm1000_vm1, %v5968_v61  ;;  %v2127_v51 = vpack.c.bf16 %v2123_v16, %v2123_v16 }
 0x20c   : > { %5075 = vmatpush3.bf16.msra.mxu1 %v5522_v21  ;;  %5087 = vmatpush3.bf16.msra.mxu0 %v5523_v22  ;;  %v4989_v27 = vpop.f32.mrf.mxu1 }
 0x20d   : > { %5076 = vmatprep.subr.bf16.mxu1 %v5686_v1  ;;  %5088 = vmatprep.subr.bf16.mxu0 %v5686_v1 }
 0x20e   : > { %5082 = vmatprep.mubr.msk.bf16.mxu1 %vm5687_vm0, %v5686_v1  ;;  %5094 = vmatprep.mubr.msk.bf16.mxu0 %vm5687_vm0, %v5686_v1 }
 0x210   : > { %5077 = vmatpush3.bf16.msra.mxu1 %v5524_v25  ;;  %5089 = vmatpush3.bf16.msra.mxu0 %v5525_v26  ;;  %v5688_v25 = vmov 0  }
 0x211   : > { %5078 = vmatprep.subr.bf16.mxu1 %v5686_v1  ;;  %5090 = vmatprep.subr.bf16.mxu0 %v5686_v1  ;;  %v6086_v26 = vsel %vm2354_vm4, 65535, %v5688_v25 }
 0x214   : > { %5079 = vmatpush3.bf16.msra.mxu1 %v5526_v28  ;;  %5091 = vmatpush3.bf16.msra.mxu0 %v5527_v29 }
 0x215   : > { %5080 = vmatprep.subr.bf16.mxu1 %v5686_v1  ;;  %5092 = vmatprep.subr.bf16.mxu0 %v5686_v1 }
 0x218   : > { %5081 = vmatpush3.bf16.msra.mxu1 %v5528_v30  ;;  %5093 = vmatpush3.bf16.msra.mxu0 %v5529_v31 }
 0x219   : > { %5098 = vmatprep.subr.bf16.mxu1 %v5686_v1  ;;  %5104 = vmatprep.subr.bf16.mxu0 %v5686_v1 }
 0x21b   : > { %5083 = vmatmul.mubr.msk.bf16.vlgmr.msra.gmra.mxu1 %vm1000_vm1, %v5968_v61  ;;  %5095 = vmatmul.mubr.msk.bf16.vlgmr.msra.gmra.mxu0 %vm1000_vm1, %v5968_v61 }
 0x21c   : > { %5100 = vmatprep.mubr.msk.bf16.mxu1 %vm5687_vm0, %v5686_v1  ;;  %5106 = vmatprep.mubr.msk.bf16.mxu0 %vm5687_vm0, %v5686_v1 }
 0x2ab   : > { %v1667_v36 = vpop.f32.mrf.mxu1  ;;  %v1731_v37 = vpop.f32.mrf.mxu0 }
 0x2ac   : > { %v1668_v38 = vadd.f32 %v1667_v36, %v1219_v32  ;;  %v1732_v39 = vadd.f32 %v1731_v37, %v1220_v33 }
 0x2ad   : > { %v5012_v40 = vpop.f32.mrf.mxu1  ;;  %v5024_v41 = vpop.f32.mrf.mxu0 }
 0x2ae   : > { %v2129_v44 = vpack.c.bf16 %v1668_v38, %v1668_v38  ;;  %v2130_v45 = vpack.c.bf16 %v1732_v39, %v1732_v39 }
 0x2af   : > { %v1670_v46 = vpop.f32.mrf.mxu1  ;;  %v1734_v48 = vpop.f32.mrf.mxu0 }
 0x2b0   : > { %v2138_v49 = vsel %vm2133_vm3, %v2129_v44, 0  ;;  %v2184_v50 = vsel %vm2133_vm3, %v2130_v45, 0 }
 0x2b1   : > { %v5013_v52 = vpop.f32.mrf.mxu1  ;;  %v5025_v53 = vpop.f32.mrf.mxu0  ;;  %5099 = vmatpush3.bf16.xpose.msra.mxu1 %v2138_v49  ;;  %5105 = vmatpush3.bf16.xpose.msra.mxu0 %v2184_v50 }
 0x2b2   : > { %5110 = vmatprep.subr.bf16.mxu1 %v5686_v1  ;;  %5116 = vmatprep.subr.bf16.mxu0 %v5686_v1 }
 0x2b8   : > { %5101 = vmatmul.mubr.msk.bf16.vlgmr.msra.gmra.mxu1 %vm2133_vm3, %v2125_v47  ;;  %5107 = vmatmul.mubr.msk.bf16.vlgmr.msra.gmra.mxu0 %vm2133_vm3, %v2126_v56 }
 0x2b9   : > { %5112 = vmatprep.mubr.msk.bf16.mxu1 %vm5687_vm0, %v5686_v1  ;;  %5118 = vmatprep.mubr.msk.bf16.mxu0 %vm5687_vm0, %v5686_v1 }
 0x2bb   : > { %v1795_v62 = vpop.f32.mrf.mxu1  ;;  %v1859_v63 = vpop.f32.mrf.mxu0 }
 0x2bc   : > { %v1796_v0 = vadd.f32 %v1795_v62, %v1221_v57  ;;  %v1860_v2 = vadd.f32 %v1859_v63, %v1222_v58 }
 0x2bd   : > { %v5036_v3 = vpop.f32.mrf.mxu1  ;;  %v5048_v4 = vpop.f32.mrf.mxu0 }
 0x2be   : > { %v2131_v7 = vpack.c.bf16 %v1796_v0, %v1796_v0  ;;  %v2132_v8 = vpack.c.bf16 %v1860_v2, %v1860_v2 }
 0x2bf   : > { %v1798_v9 = vpop.f32.mrf.mxu1  ;;  %v1862_v10 = vpop.f32.mrf.mxu0 }
 0x2c0   : > { %v2230_v11 = vsel %vm2133_vm3, %v2131_v7, 0  ;;  %v2276_v12 = vsel %vm2133_vm3, %v2132_v8, 0  ;;  %v1225_v10 = vld [vmem:[%s5757_s30 + $0x2] sm:$0x1] }
 0x2c1   : > { %v5037_v13 = vpop.f32.mrf.mxu1  ;;  %v5049_v15 = vpop.f32.mrf.mxu0  ;;  %5111 = vmatpush3.bf16.xpose.msra.mxu1 %v2230_v11  ;;  %5117 = vmatpush3.bf16.xpose.msra.mxu0 %v2276_v12  ;;  %v1226_v11 = vld [vmem:[%s5757_s30 + $0x3] sm:$0x1] }
 0x2c2   : > { %5122 = vmatprep.subr.bf16.mxu1 %v5686_v1  ;;  %5128 = vmatprep.subr.bf16.mxu0 %v5686_v1 }
 0x2c8   : > { %5113 = vmatmul.mubr.msk.bf16.vlgmr.msra.gmra.mxu1 %vm2133_vm3, %v2127_v51  ;;  %5119 = vmatmul.mubr.msk.bf16.vlgmr.msra.gmra.mxu0 %vm2133_vm3, %v2128_v18 }
 0x2c9   : > { %5124 = vmatprep.mubr.msk.bf16.mxu1 %vm5687_vm0, %v5686_v1  ;;  %5130 = vmatprep.mubr.msk.bf16.mxu0 %vm5687_vm0, %v5686_v1 }
 0x2cb   : > { %v1923_v21 = vpop.f32.mrf.mxu1  ;;  %v1987_v22 = vpop.f32.mrf.mxu0 }
 0x2cc   : > { %v1924_v23 = vadd.f32 %v1923_v21, %v1223_v19  ;;  %v1988_v24 = vadd.f32 %v1987_v22, %v1224_v20 }
 0x2cd   : > { %v5060_v27 = vpop.f32.mrf.mxu1  ;;  %v5072_v28 = vpop.f32.mrf.mxu0 }
 0x2ce   : > { %v2346_v29 = vpack.c.bf16 %v1924_v23, %v1924_v23  ;;  %v2347_v30 = vpack.c.bf16 %v1988_v24, %v1988_v24 }
 0x2cf   : > { %v1926_v31 = vpop.f32.mrf.mxu1  ;;  %v1990_v32 = vpop.f32.mrf.mxu0 }
 0x2d0   : > { %v2358_v33 = vand.u32 %v6086_v26, %v2346_v29  ;;  %v2404_v34 = vand.u32 %v6086_v26, %v2347_v30 }
 0x2d1   : > { %v5061_v35 = vpop.f32.mrf.mxu1  ;;  %v5073_v36 = vpop.f32.mrf.mxu0 }
 0x2d2   : > { %5123 = vmatpush3.bf16.msra.mxu1 %v2358_v33  ;;  %5129 = vmatpush3.bf16.msra.mxu0 %v2404_v34  ;;  %v5530_v33 = vld [vmem:[%s5742_s14] sm:$0xff]   ;;  %v5531_v34 = vld [vmem:[%s5742_s14 + $0x8] sm:$0xff]   ;;  %v5532_v36 = vld [vmem:[%s5742_s14 + $0x10] sm:$0xff]  }
 0x2d3   : > { %5134 = vmatprep.subr.bf16.mxu1 %v5686_v1  ;;  %5140 = vmatprep.subr.bf16.mxu0 %v5686_v1 }
 0x2db   : > { %v2051_v37 = vpop.f32.mrf.mxu1  ;;  %v2115_v38 = vpop.f32.mrf.mxu0 }
 0x2dc   : > { %v2052_v12 = vadd.f32 %v2051_v37, %v1225_v10  ;;  %v2116_v13 = vadd.f32 %v2115_v38, %v1226_v11  ;;  %v5548_v10 = vld [vmem:[%s5767_s12 + $0x40] sm:$0xff]  }
 0x2dd   : > { %v5084_v39 = vpop.f32.mrf.mxu1  ;;  %v5096_v40 = vpop.f32.mrf.mxu0  ;;  %v5549_v11 = vld [vmem:[%s5767_s12 + $0x60] sm:$0xff]  }
 0x2de   : > { %v2348_v16 = vpack.c.bf16 %v2052_v12, %v2052_v12  ;;  %v2349_v51 = vpack.c.bf16 %v2116_v13, %v2116_v13  ;;  %v5533_v39 = vld [vmem:[%s5742_s14 + $0x18] sm:$0xff]  }
 0x2df   : > { %v2054_v41 = vpop.f32.mrf.mxu1  ;;  %v2118_v42 = vpop.f32.mrf.mxu0  ;;  %v5550_v12 = vld [vmem:[%s6429_s28 + $0x18] sm:$0xff]  }
 0x2e0   : > { %v2450_v23 = vand.u32 %v6086_v26, %v2348_v16  ;;  %v2496_v25 = vand.u32 %v6086_v26, %v2349_v51  ;;  %v5551_v13 = vld [vmem:[%s6429_s28 + $0x38] sm:$0xff]   ;;  %v5553_v16 = vld [vmem:[%s6429_s28 + $0x30] sm:$0xff]   ;;  %v5556_v51 = vld [vmem:[%s6429_s28] sm:$0xff]  }
 0x2e1   : > { %v5085_v43 = vpop.f32.mrf.mxu1  ;;  %v5097_v44 = vpop.f32.mrf.mxu0 }
 0x378   : > { %v2174_v45 = vpop.f32.mrf.mxu1  ;;  %v2220_v46 = vpop.f32.mrf.mxu0 }
 0x379   : > { %v2318_v48 = vsub.f32 %v2174_v45, %v2174_v45  ;;  %v2319_v49 = vsub.f32 %v2220_v46, %v2220_v46 }
 0x37a   : > { %v5102_v50 = vpop.f32.mrf.mxu1  ;;  %v5108_v52 = vpop.f32.mrf.mxu0 }
 0x37b   : > { %v2322_v53 = vmul.f32 1.442695, %v2318_v48  ;;  %v2324_v54 = vmul.f32 1.442695, %v2319_v49  ;;  %v5534_v49 = vld [vmem:[%s5767_s12 + $0x18] sm:$0xff]  }
 0x37c   : > { %v2177_v55 = vpop.f32.mrf.mxu1  ;;  %v2223_v47 = vpop.f32.mrf.mxu0 }
 0x37d   : > { %5604 = vpow2.f32 %v2322_v53  ;;  %v5535_v53 = vld [vmem:[%s5767_s12 + $0x38] sm:$0xff]  }
 0x37e   : > { %5606 = vpow2.f32 %v2324_v54  ;;  %v5103_v56 = vpop.f32.mrf.mxu1  ;;  %v5109_v57 = vpop.f32.mrf.mxu0 }
 0x37f   : > { %v5536_v57 = vld [vmem:[%s5767_s12 + $0x10] sm:$0xff]  }
 0x388   : > { %v2266_v58 = vpop.f32.mrf.mxu1  ;;  %v2312_v59 = vpop.f32.mrf.mxu0 }
 0x389   : > { %v2320_v60 = vsub.f32 %v2266_v58, %v2266_v58  ;;  %v2321_v62 = vsub.f32 %v2312_v59, %v2312_v59  ;;  %v5537_v59 = vld [vmem:[%s5767_s12 + $0x30] sm:$0xff]  }
 0x38a   : > { %v5605_v63 = vpop.eup %5604  ;;  %v5114_v0 = vpop.f32.mrf.mxu1 }
 0x38b   : > { %v5120_v2 = vpop.f32.mrf.mxu0  ;;  %v5607_v3 = vpop.eup %5606  ;;  %5608 = vrcp.f32 %v5605_v63  ;;  %v2326_v4 = vmul.f32 1.442695, %v2320_v60  ;;  %v2328_v5 = vmul.f32 1.442695, %v2321_v62  ;;  %v5539_v0 = vld [vmem:[%s5767_s12 + $0x28] sm:$0xff]  }
 0x38c   : > { %5610 = vrcp.f32 %v5607_v3  ;;  %v2269_v6 = vpop.f32.mrf.mxu1  ;;  %v5540_v2 = vld [vmem:[%s5767_s12] sm:$0xff]  }
 0x38d   : > { %v2315_v7 = vpop.f32.mrf.mxu0  ;;  %5612 = vpow2.f32 %v2326_v4  ;;  %v5542_v4 = vld [vmem:[%s5767_s12 + $0x58] sm:$0xff]   ;;  %v5544_v6 = vld [vmem:[%s5767_s12 + $0x50] sm:$0xff]  }
 0x38e   : > { %5614 = vpow2.f32 %v2328_v5  ;;  %v5115_v8 = vpop.f32.mrf.mxu1  ;;  %v5543_v5 = vld [vmem:[%s5767_s12 + $0x78] sm:$0xff]   ;;  %v5545_v7 = vld [vmem:[%s5767_s12 + $0x70] sm:$0xff]  }
 0x38f   : > { %v5121_v9 = vpop.f32.mrf.mxu0  ;;  %v5546_v8 = vld [vmem:[%s5767_s12 + $0x48] sm:$0xff]  }
 0x390   : > { %v5547_v9 = vld [vmem:[%s5767_s12 + $0x68] sm:$0xff]  }
 0x398   : > { %v5609_v15 = vpop.eup %5608 }
 0x399   : > { %v5611_v17 = vpop.eup %5610  ;;  %v2338_v18 = vmul.f32 %v5609_v15, %v5605_v63  ;;  %v5538_v63 = vld [vmem:[%s5767_s12 + $0x8] sm:$0xff]   ;;  %v5552_v15 = vld [vmem:[%s6429_s28 + $0x10] sm:$0xff]  }
 0x39a   : > { %v5613_v19 = vpop.eup %5612  ;;  %v2339_v20 = vmul.f32 %v5611_v17, %v5607_v3  ;;  %v5541_v3 = vld [vmem:[%s5767_s12 + $0x20] sm:$0xff]   ;;  %v5555_v17 = vld [vmem:[%s6429_s28 + $0x28] sm:$0xff]  }
 0x39b   : > { %v5615_v21 = vpop.eup %5614  ;;  %5616 = vrcp.f32 %v5613_v19  ;;  %v2342_v22 = vpack.c.bf16 %v2338_v18, %v2338_v18  ;;  %v5557_v18 = vld [vmem:[%s6429_s28 + $0x20] sm:$0xff]  }
 0x39c   : > { %5618 = vrcp.f32 %v5615_v21  ;;  %v2343_v24 = vpack.c.bf16 %v2339_v20, %v2339_v20  ;;  %v5559_v20 = vld [vmem:[%s6429_s28 + $0x78] sm:$0xff]  }
 0x39d   : > { %5125 = vmatmul.mubr.msk.bf16.vlgmr.msra.gmra.mxu1 %vm2350_vm5, %v2342_v22  ;;  %v5561_v22 = vld [vmem:[%s6429_s28 + $0x70] sm:$0xff]  }
 0x39e   : > { %5131 = vmatmul.mubr.msk.bf16.vlgmr.msra.gmra.mxu0 %vm2350_vm5, %v2343_v24  ;;  %5135 = vmatpush3.bf16.msra.mxu1 %v2450_v23  ;;  %v5562_v23 = vld [vmem:[%s6429_s28 + $0x48] sm:$0xff]  }
 0x39f   : > { %5141 = vmatpush3.bf16.msra.mxu0 %v2496_v25  ;;  %5136 = vmatprep.mubr.msk.bf16.mxu1 %vm5687_vm0, %v5686_v1  ;;  %v5563_v24 = vld [vmem:[%s6429_s28 + $0x68] sm:$0xff]   ;;  %v5564_v25 = vld [vmem:[%s6429_s28 + $0x40] sm:$0xff]  }
 0x3a0   : > { %5142 = vmatprep.mubr.msk.bf16.mxu0 %vm5687_vm0, %v5686_v1  ;;  %5146 = vmatprep.subr.bf16.mxu1 %v5686_v1 }
 0x3a1   : > { %5152 = vmatprep.subr.bf16.mxu0 %v5686_v1 }
 0x3a8   : > { %v5617_v27 = vpop.eup %5616 }
 0x3a9   : > { %v5619_v28 = vpop.eup %5618  ;;  %v2340_v29 = vmul.f32 %v5617_v27, %v5613_v19  ;;  %v5558_v19 = vld [vmem:[%s6429_s28 + $0x58] sm:$0xff]   ;;  %v5565_v27 = vld [vmem:[%s6429_s28 + $0x60] sm:$0xff]  }
 0x3aa   : > { %v2341_v30 = vmul.f32 %v5619_v28, %v5615_v21  ;;  %v5560_v21 = vld [vmem:[%s6429_s28 + $0x50] sm:$0xff]   ;;  %v5566_v28 = vld [vmem:[%s6430_s1 + $0x18] sm:$0xff]  }
 0x3ab   : > { %v2344_v31 = vpack.c.bf16 %v2340_v29, %v2340_v29  ;;  %v5567_v29 = vld [vmem:[%s6430_s1 + $0x38] sm:$0xff]  }
 0x3ac   : > { %v2345_v32 = vpack.c.bf16 %v2341_v30, %v2341_v30  ;;  %v5568_v30 = vld [vmem:[%s6430_s1 + $0x10] sm:$0xff]  }
 0x3ad   : > { %5137 = vmatmul.mubr.msk.bf16.vlgmr.msra.gmra.mxu1 %vm2350_vm5, %v2344_v31  ;;  %v5569_v31 = vld [vmem:[%s6430_s1 + $0x30] sm:$0xff]  }
 0x3ae   : > { %5143 = vmatmul.mubr.msk.bf16.vlgmr.msra.gmra.mxu0 %vm2350_vm5, %v2345_v32  ;;  %5148 = vmatprep.mubr.msk.bf16.mxu1 %vm5687_vm0, %v5686_v1  ;;  %v5570_v32 = vld [vmem:[%s6430_s1 + $0x8] sm:$0xff]  }
 0x3af   : > { %5154 = vmatprep.mubr.msk.bf16.mxu0 %vm5687_vm0, %v5686_v1  ;;  %5147 = vmatpush3.bf16.msra.mxu1 %v5530_v33  ;;  %v5571_v33 = vld [vmem:[%s6430_s1 + $0x28] sm:$0xff]  }
 0x3b0   : > { %5153 = vmatpush3.bf16.msra.mxu0 %v5531_v34  ;;  %5158 = vmatprep.subr.bf16.mxu1 %v5686_v1  ;;  %v5572_v34 = vld [vmem:[%s6430_s1] sm:$0xff]  }
 0x3b1   : > { %5164 = vmatprep.subr.bf16.mxu0 %v5686_v1 }
 0x45d   : > { %v2394_v35 = vpop.f32.mrf.mxu1 }
 0x45e   : > { %v2538_v37 = vpack.c.bf16 %v2394_v35, %v2394_v35  ;;  %v2440_v38 = vpop.f32.mrf.mxu0  ;;  %v5573_v35 = vld [vmem:[%s6430_s1 + $0x20] sm:$0xff]  }
 0x45f   : > { %v2539_v40 = vpack.c.bf16 %v2440_v38, %v2440_v38  ;;  %v5126_v41 = vpop.f32.mrf.mxu1  ;;  %v5576_v38 = vld [vmem:[%s6430_s1 + $0x50] sm:$0xff]  }
 0x460   : > { %v5132_v42 = vpop.f32.mrf.mxu0  ;;  %5149 = vmatmul.mubr.msk.bf16.vlgmr.msra.gmra.mxu1 %vm2133_vm3, %v2538_v37  ;;  %v5575_v37 = vld [vmem:[%s6430_s1 + $0x78] sm:$0xff]   ;;  %v5579_v41 = vld [vmem:[%s6430_s1 + $0x68] sm:$0xff]  }
 0x461   : > { %5155 = vmatmul.mubr.msk.bf16.vlgmr.msra.gmra.mxu0 %vm2133_vm3, %v2539_v40  ;;  %v2397_v43 = vpop.f32.mrf.mxu1  ;;  %5159 = vmatpush3.bf16.msra.mxu1 %v5532_v36  ;;  %v5574_v36 = vld [vmem:[%s6430_s1 + $0x58] sm:$0xff]   ;;  %v5578_v40 = vld [vmem:[%s6430_s1 + $0x48] sm:$0xff]   ;;  %v5580_v42 = vld [vmem:[%s6430_s1 + $0x40] sm:$0xff]  }
 0x462   : > { %v2443_v44 = vpop.f32.mrf.mxu0  ;;  %5165 = vmatpush3.bf16.msra.mxu0 %v5533_v39  ;;  %5160 = vmatprep.mubr.msk.bf16.mxu1 %vm5687_vm0, %v5686_v1  ;;  %v5577_v39 = vld [vmem:[%s6430_s1 + $0x70] sm:$0xff]   ;;  %v5581_v43 = vld [vmem:[%s6430_s1 + $0x60] sm:$0xff]   ;;  %s6440_s1 = sld [smem:[#allocation15_spill]] }
 0x463   : > { %v5127_v45 = vpop.f32.mrf.mxu1  ;;  %5166 = vmatprep.mubr.msk.bf16.mxu0 %vm5687_vm0, %v5686_v1  ;;  %5170 = vmatprep.subr.bf16.mxu1 %v5686_v1 }
 0x464   : > { %v5133_v46 = vpop.f32.mrf.mxu0  ;;  %5182 = vmatprep.subr.bf16.mxu0 %v5686_v1 }
 0x46d   : > { %v2486_v48 = vpop.f32.mrf.mxu1 }
 0x46e   : > { %v2540_v50 = vpack.c.bf16 %v2486_v48, %v2486_v48  ;;  %v2532_v52 = vpop.f32.mrf.mxu0 }
 0x46f   : > { %v2541_v54 = vpack.c.bf16 %v2532_v52, %v2532_v52  ;;  %v5138_v55 = vpop.f32.mrf.mxu1 }
 0x470   : > { %v5144_v47 = vpop.f32.mrf.mxu0  ;;  %5161 = vmatmul.mubr.msk.bf16.vlgmr.msra.gmra.mxu1 %vm2133_vm3, %v2540_v50 }
 0x471   : > { %5167 = vmatmul.mubr.msk.bf16.vlgmr.msra.gmra.mxu0 %vm2133_vm3, %v2541_v54  ;;  %5171 = vmatpush3.bf16.msra.mxu1 %v5534_v49  ;;  %v2489_v56 = vpop.f32.mrf.mxu1 }
 0x472   : > { %5183 = vmatpush3.bf16.msra.mxu0 %v5535_v53  ;;  %v2535_v58 = vpop.f32.mrf.mxu0  ;;  %5172 = vmatprep.subr.bf16.mxu1 %v5686_v1 }
 0x473   : > { %v5139_v60 = vpop.f32.mrf.mxu1  ;;  %5184 = vmatprep.subr.bf16.mxu0 %v5686_v1  ;;  %5178 = vmatprep.mubr.msk.bf16.mxu1 %vm5687_vm0, %v5686_v1 }
 0x474   : > { %v5145_v62 = vpop.f32.mrf.mxu0  ;;  %5190 = vmatprep.mubr.msk.bf16.mxu0 %vm5687_vm0, %v5686_v1 }
 0x475   : > { %5173 = vmatpush3.bf16.msra.mxu1 %v5536_v57 }
 0x476   : > { %5185 = vmatpush3.bf16.msra.mxu0 %v5537_v59  ;;  %5174 = vmatprep.subr.bf16.mxu1 %v5686_v1 }
 0x477   : > { %5186 = vmatprep.subr.bf16.mxu0 %v5686_v1 }
 0x479   : > { %5175 = vmatpush3.bf16.msra.mxu1 %v5538_v63 }
 0x47a   : > { %5187 = vmatpush3.bf16.msra.mxu0 %v5539_v0  ;;  %5176 = vmatprep.subr.bf16.mxu1 %v5686_v1 }
 0x47b   : > { %5188 = vmatprep.subr.bf16.mxu0 %v5686_v1 }
 0x47d   : > { %5177 = vmatpush3.bf16.msra.mxu1 %v5540_v2 }
 0x47e   : > { %5189 = vmatpush3.bf16.msra.mxu0 %v5541_v3  ;;  %5194 = vmatprep.subr.bf16.mxu1 %v5686_v1 }
 0x47f   : > { %5206 = vmatprep.subr.bf16.mxu0 %v5686_v1 }
 0x480   : > { %5179 = vmatmul.mubr.msk.bf16.vlgmr.msra.gmra.mxu1 %vm1000_vm1, %v5968_v61 }
 0x481   : > { %5191 = vmatmul.mubr.msk.bf16.vlgmr.msra.gmra.mxu0 %vm1000_vm1, %v5968_v61  ;;  %5195 = vmatpush3.bf16.msra.mxu1 %v5542_v4 }
 0x482   : > { %5207 = vmatpush3.bf16.msra.mxu0 %v5543_v5  ;;  %5196 = vmatprep.subr.bf16.mxu1 %v5686_v1 }
 0x483   : > { %5208 = vmatprep.subr.bf16.mxu0 %v5686_v1  ;;  %5202 = vmatprep.mubr.msk.bf16.mxu1 %vm5687_vm0, %v5686_v1 }
 0x484   : > { %5214 = vmatprep.mubr.msk.bf16.mxu0 %vm5687_vm0, %v5686_v1 }
 0x485   : > { %5197 = vmatpush3.bf16.msra.mxu1 %v5544_v6 }
 0x486   : > { %5209 = vmatpush3.bf16.msra.mxu0 %v5545_v7  ;;  %5198 = vmatprep.subr.bf16.mxu1 %v5686_v1 }
 0x487   : > { %5210 = vmatprep.subr.bf16.mxu0 %v5686_v1 }
 0x489   : > { %5199 = vmatpush3.bf16.msra.mxu1 %v5546_v8 }
 0x48a   : > { %5211 = vmatpush3.bf16.msra.mxu0 %v5547_v9  ;;  %5200 = vmatprep.subr.bf16.mxu1 %v5686_v1 }
 0x48b   : > { %5212 = vmatprep.subr.bf16.mxu0 %v5686_v1 }
 0x48d   : > { %5201 = vmatpush3.bf16.msra.mxu1 %v5548_v10 }
 0x48e   : > { %5213 = vmatpush3.bf16.msra.mxu0 %v5549_v11  ;;  %5218 = vmatprep.subr.bf16.mxu1 %v5686_v1 }
 0x48f   : > { %5230 = vmatprep.subr.bf16.mxu0 %v5686_v1 }
 0x490   : > { %5203 = vmatmul.mubr.msk.bf16.vlgmr.msra.gmra.mxu1 %vm1000_vm1, %v5968_v61 }
 0x491   : > { %5215 = vmatmul.mubr.msk.bf16.vlgmr.msra.gmra.mxu0 %vm1000_vm1, %v5968_v61  ;;  %5219 = vmatpush3.bf16.msra.mxu1 %v5550_v12  ;;  %v5554_v61 = vld [vmem:[%s6429_s28 + $0x8] sm:$0xff]  }
 0x492   : > { %5231 = vmatpush3.bf16.msra.mxu0 %v5551_v13  ;;  %5220 = vmatprep.subr.bf16.mxu1 %v5686_v1 }
 0x493   : > { %5232 = vmatprep.subr.bf16.mxu0 %v5686_v1  ;;  %5226 = vmatprep.mubr.msk.bf16.mxu1 %vm5687_vm0, %v5686_v1 }
 0x494   : > { %5238 = vmatprep.mubr.msk.bf16.mxu0 %vm5687_vm0, %v5686_v1 }
 0x495   : > { %5221 = vmatpush3.bf16.msra.mxu1 %v5552_v15 }
 0x496   : > { %5233 = vmatpush3.bf16.msra.mxu0 %v5553_v16  ;;  %5222 = vmatprep.subr.bf16.mxu1 %v5686_v1 }
 0x497   : > { %5234 = vmatprep.subr.bf16.mxu0 %v5686_v1 }
 0x499   : > { %5223 = vmatpush3.bf16.msra.mxu1 %v5554_v61 }
 0x49a   : > { %5235 = vmatpush3.bf16.msra.mxu0 %v5555_v17  ;;  %5224 = vmatprep.subr.bf16.mxu1 %v5686_v1  ;;  %v1336_v17 = vld [vmem:[%s6431_s2] sm:$0x1] }
 0x49b   : > { %5236 = vmatprep.subr.bf16.mxu0 %v5686_v1 }
 0x49d   : > { %5225 = vmatpush3.bf16.msra.mxu1 %v5556_v51  ;;  %v1337_v51 = vld [vmem:[%s6431_s2 + $0x1] sm:$0x1] }
 0x49e   : > { %5237 = vmatpush3.bf16.msra.mxu0 %v5557_v18  ;;  %5242 = vmatprep.subr.bf16.mxu1 %v5686_v1  ;;  %v1332_v18 = vld [vmem:[%s6432_s7] sm:$0x1] }
 0x49f   : > { %5254 = vmatprep.subr.bf16.mxu0 %v5686_v1 }
 0x4a0   : > { %5227 = vmatmul.mubr.msk.bf16.vlgmr.msra.gmra.mxu1 %vm1000_vm1, %v5899_v14 }
 0x4a1   : > { %5239 = vmatmul.mubr.msk.bf16.vlgmr.msra.gmra.mxu0 %vm1000_vm1, %v5899_v14  ;;  %5243 = vmatpush3.bf16.msra.mxu1 %v5558_v19 }
 0x4a2   : > { %5255 = vmatpush3.bf16.msra.mxu0 %v5559_v20  ;;  %5244 = vmatprep.subr.bf16.mxu1 %v5686_v1  ;;  %v1333_v20 = vld [vmem:[%s6432_s7 + $0x1] sm:$0x1] }
 0x4a3   : > { %5256 = vmatprep.subr.bf16.mxu0 %v5686_v1  ;;  %5250 = vmatprep.mubr.msk.bf16.mxu1 %vm5687_vm0, %v5686_v1 }
 0x4a4   : > { %5262 = vmatprep.mubr.msk.bf16.mxu0 %vm5687_vm0, %v5686_v1 }
 0x4a5   : > { %5245 = vmatpush3.bf16.msra.mxu1 %v5560_v21 }
 0x4a6   : > { %5257 = vmatpush3.bf16.msra.mxu0 %v5561_v22  ;;  %5246 = vmatprep.subr.bf16.mxu1 %v5686_v1 }
 0x4a7   : > { %5258 = vmatprep.subr.bf16.mxu0 %v5686_v1 }
 0x4a9   : > { %5247 = vmatpush3.bf16.msra.mxu1 %v5562_v23 }
 0x4aa   : > { %5259 = vmatpush3.bf16.msra.mxu0 %v5563_v24  ;;  %5248 = vmatprep.subr.bf16.mxu1 %v5686_v1 }
 0x4ab   : > { %5260 = vmatprep.subr.bf16.mxu0 %v5686_v1 }
 0x4ad   : > { %5249 = vmatpush3.bf16.msra.mxu1 %v5564_v25 }
 0x4ae   : > { %5261 = vmatpush3.bf16.msra.mxu0 %v5565_v27  ;;  %5266 = vmatprep.subr.bf16.mxu1 %v5686_v1 }
 0x4af   : > { %5278 = vmatprep.subr.bf16.mxu0 %v5686_v1 }
 0x4b0   : > { %5251 = vmatmul.mubr.msk.bf16.vlgmr.msra.gmra.mxu1 %vm1000_vm1, %v5899_v14 }
 0x4b1   : > { %5263 = vmatmul.mubr.msk.bf16.vlgmr.msra.gmra.mxu0 %vm1000_vm1, %v5899_v14  ;;  %5274 = vmatprep.mubr.msk.bf16.mxu1 %vm5687_vm0, %v5686_v1 }
 0x4b2   : > { %5286 = vmatprep.mubr.msk.bf16.mxu0 %vm5687_vm0, %v5686_v1  ;;  %5267 = vmatpush3.bf16.msra.mxu1 %v5566_v28 }
 0x4b3   : > { %5279 = vmatpush3.bf16.msra.mxu0 %v5567_v29  ;;  %5268 = vmatprep.subr.bf16.mxu1 %v5686_v1 }
 0x4b4   : > { %5280 = vmatprep.subr.bf16.mxu0 %v5686_v1 }
 0x4b6   : > { %5269 = vmatpush3.bf16.msra.mxu1 %v5568_v30 }
 0x4b7   : > { %5281 = vmatpush3.bf16.msra.mxu0 %v5569_v31  ;;  %5270 = vmatprep.subr.bf16.mxu1 %v5686_v1 }
 0x4b8   : > { %5282 = vmatprep.subr.bf16.mxu0 %v5686_v1 }
 0x4ba   : > { %5271 = vmatpush3.bf16.msra.mxu1 %v5570_v32 }
 0x4bb   : > { %5283 = vmatpush3.bf16.msra.mxu0 %v5571_v33  ;;  %5272 = vmatprep.subr.bf16.mxu1 %v5686_v1 }
 0x4bc   : > { %5284 = vmatprep.subr.bf16.mxu0 %v5686_v1 }
 0x4be   : > { %5273 = vmatpush3.bf16.msra.mxu1 %v5572_v34 }
 0x4bf   : > { %5285 = vmatpush3.bf16.msra.mxu0 %v5573_v35  ;;  %5290 = vmatprep.subr.bf16.mxu1 %v5686_v1 }
 0x4c0   : > { %5302 = vmatprep.subr.bf16.mxu0 %v5686_v1 }
 0x4c1   : > { %5275 = vmatmul.mubr.msk.bf16.vlgmr.msra.gmra.mxu1 %vm1000_vm1, %v5899_v14 }
 0x4c2   : > { %5287 = vmatmul.mubr.msk.bf16.vlgmr.msra.gmra.mxu0 %vm1000_vm1, %v5899_v14  ;;  %5291 = vmatpush3.bf16.msra.mxu1 %v5574_v36 }
 0x4c3   : > { %5303 = vmatpush3.bf16.msra.mxu0 %v5575_v37  ;;  %5292 = vmatprep.subr.bf16.mxu1 %v5686_v1 }
 0x4c4   : > { %5304 = vmatprep.subr.bf16.mxu0 %v5686_v1  ;;  %5298 = vmatprep.mubr.msk.bf16.mxu1 %vm5687_vm0, %v5686_v1 }
 0x4c5   : > { %5310 = vmatprep.mubr.msk.bf16.mxu0 %vm5687_vm0, %v5686_v1 }
 0x4c6   : > { %5293 = vmatpush3.bf16.msra.mxu1 %v5576_v38 }
 0x4c7   : > { %5305 = vmatpush3.bf16.msra.mxu0 %v5577_v39  ;;  %5294 = vmatprep.subr.bf16.mxu1 %v5686_v1 }
 0x4c8   : > { %5306 = vmatprep.subr.bf16.mxu0 %v5686_v1 }
 0x4ca   : > { %5295 = vmatpush3.bf16.msra.mxu1 %v5578_v40 }
 0x4cb   : > { %5307 = vmatpush3.bf16.msra.mxu0 %v5579_v41  ;;  %5296 = vmatprep.subr.bf16.mxu1 %v5686_v1  ;;  %v1338_v41 = vld [vmem:[%s6431_s2 + $0x2] sm:$0x1] }
 0x4cc   : > { %5308 = vmatprep.subr.bf16.mxu0 %v5686_v1 }
 0x4ce   : > { %5297 = vmatpush3.bf16.msra.mxu1 %v5580_v42  ;;  %v1339_v42 = vld [vmem:[%s6431_s2 + $0x3] sm:$0x1] }
 0x4cf   : > { %5309 = vmatpush3.bf16.msra.mxu0 %v5581_v43  ;;  %5314 = vmatprep.subr.bf16.mxu1 %v5686_v1  ;;  %v1334_v43 = vld [vmem:[%s6432_s7 + $0x2] sm:$0x1] }
 0x4d0   : > { %5320 = vmatprep.subr.bf16.mxu0 %v5686_v1 }
 0x4d1   : > { %5299 = vmatmul.mubr.msk.bf16.vlgmr.msra.gmra.mxu1 %vm1000_vm1, %v5899_v14 }
 0x4d2   : > { %5311 = vmatmul.mubr.msk.bf16.vlgmr.msra.gmra.mxu0 %vm1000_vm1, %v5899_v14  ;;  %5316 = vmatprep.mubr.msk.bf16.mxu1 %vm5687_vm0, %v5686_v1 }
 0x4d3   : > { %5322 = vmatprep.mubr.msk.bf16.mxu0 %vm5687_vm0, %v5686_v1 }
 0x520   : > { %v2585_v44 = vpop.f32.mrf.mxu1 }
 0x521   : > { %v2634_v45 = vpop.f32.mrf.mxu0 }
 0x522   : > { %v2738_v46 = vadd.f32 %v2634_v45, %v2585_v44  ;;  %v5150_v48 = vpop.f32.mrf.mxu1  ;;  %v1335_v45 = vld [vmem:[%s6432_s7 + $0x3] sm:$0x1] }
 0x523   : > { %v5156_v49 = vpop.f32.mrf.mxu0 }
 0x524   : > { %v2588_v50 = vpop.f32.mrf.mxu1 }
 0x525   : > { %v2637_v52 = vpop.f32.mrf.mxu0 }
 0x526   : > { %v5151_v53 = vpop.f32.mrf.mxu1 }
 0x527   : > { %v5157_v54 = vpop.f32.mrf.mxu0 }
 0x530   : > { %v2683_v55 = vpop.f32.mrf.mxu1 }
 0x531   : > { %v2739_v47 = vadd.f32 %v2738_v46, %v2683_v55  ;;  %v2732_v56 = vpop.f32.mrf.mxu0 }
 0x532   : > { %v5162_v57 = vpop.f32.mrf.mxu1 }
 0x533   : > { %v6274_v14 = vadd.f32 %v2739_v47, %v2732_v56  ;;  %v5168_v58 = vpop.f32.mrf.mxu0 }
 0x534   : > { %v2686_v59 = vpop.f32.mrf.mxu1 }
 0x535   : > { %v2735_v60 = vpop.f32.mrf.mxu0 }
 0x536   : > { %v5163_v62 = vpop.f32.mrf.mxu1 }
 0x537   : > { %v5169_v63 = vpop.f32.mrf.mxu0 }
 0x540   : > { %v2800_v0 = vpop.f32.mrf.mxu1 }
 0x541   : > { %v2864_v2 = vpop.f32.mrf.mxu0  ;;  %v2801_v25 = vadd.f32 %v2800_v0, %v1332_v18 }
 0x542   : > { %v5180_v3 = vpop.f32.mrf.mxu1  ;;  %v2865_v29 = vadd.f32 %v2864_v2, %v1333_v20 }
 0x543   : > { %v5192_v4 = vpop.f32.mrf.mxu0  ;;  %v3510_v36 = vmul.f32 0.25, %v2801_v25 }
 0x544   : > { %v2803_v5 = vpop.f32.mrf.mxu1  ;;  %v3511_v38 = vmul.f32 0.25, %v2865_v29  ;;  %v1340_v4 = vld [vmem:[%s6433_s10] sm:$0x1] }
 0x545   : > { %v2867_v6 = vpop.f32.mrf.mxu0  ;;  %v3514_v39 = vpack.c.bf16 %v3510_v36, %v3510_v36  ;;  %v1341_v5 = vld [vmem:[%s6433_s10 + $0x1] sm:$0x1] }
 0x546   : > { %v5181_v7 = vpop.f32.mrf.mxu1  ;;  %v3515_v40 = vpack.c.bf16 %v3511_v38, %v3511_v38 }
 0x547   : > { %v5193_v8 = vpop.f32.mrf.mxu0 }
 0x550   : > { %v2928_v9 = vpop.f32.mrf.mxu1 }
 0x551   : > { %v2992_v10 = vpop.f32.mrf.mxu0  ;;  %v2929_v52 = vadd.f32 %v2928_v9, %v1334_v43 }
 0x552   : > { %v5204_v11 = vpop.f32.mrf.mxu1  ;;  %v2993_v55 = vadd.f32 %v2992_v10, %v1335_v45 }
 0x553   : > { %v5216_v12 = vpop.f32.mrf.mxu0  ;;  %v3512_v62 = vmul.f32 0.25, %v2929_v52 }
 0x554   : > { %v2931_v13 = vpop.f32.mrf.mxu1  ;;  %v3513_v0 = vmul.f32 0.25, %v2993_v55 }
 0x555   : > { %v2995_v15 = vpop.f32.mrf.mxu0  ;;  %v3516_v2 = vpack.c.bf16 %v3512_v62, %v3512_v62 }
 0x556   : > { %v5205_v16 = vpop.f32.mrf.mxu1  ;;  %v3517_v3 = vpack.c.bf16 %v3513_v0, %v3513_v0 }
 0x557   : > { %v5217_v61 = vpop.f32.mrf.mxu0 }
 0x560   : > { %v3056_v19 = vpop.f32.mrf.mxu1 }
 0x561   : > { %v3057_v21 = vadd.f32 %v3056_v19, %v1336_v17  ;;  %v3120_v22 = vpop.f32.mrf.mxu0 }
 0x562   : > { %v3121_v23 = vadd.f32 %v3120_v22, %v1337_v51  ;;  %v5228_v24 = vpop.f32.mrf.mxu1 }
 0x563   : > { %v3518_v27 = vpack.c.bf16 %v3057_v21, %v3057_v21  ;;  %v5240_v28 = vpop.f32.mrf.mxu0 }
 0x564   : > { %v3519_v30 = vpack.c.bf16 %v3121_v23, %v3121_v23  ;;  %v3059_v31 = vpop.f32.mrf.mxu1 }
 0x565   : > { %v3526_v32 = vsel %vm2133_vm3, %v3518_v27, 0  ;;  %v3123_v33 = vpop.f32.mrf.mxu0 }
 0x566   : > { %v3572_v34 = vsel %vm2133_vm3, %v3519_v30, 0  ;;  %v5229_v35 = vpop.f32.mrf.mxu1  ;;  %5315 = vmatpush3.bf16.xpose.msra.mxu1 %v3526_v32 }
 0x567   : > { %v5241_v37 = vpop.f32.mrf.mxu0  ;;  %5321 = vmatpush3.bf16.xpose.msra.mxu0 %v3572_v34  ;;  %5326 = vmatprep.subr.bf16.mxu1 %v5686_v1 }
 0x568   : > { %5332 = vmatprep.subr.bf16.mxu0 %v5686_v1 }
 0x56d   : > { %5317 = vmatmul.mubr.msk.bf16.vlgmr.msra.gmra.mxu1 %vm2133_vm3, %v3514_v39 }
 0x56e   : > { %5323 = vmatmul.mubr.msk.bf16.vlgmr.msra.gmra.mxu0 %vm2133_vm3, %v3515_v40  ;;  %5328 = vmatprep.mubr.msk.bf16.mxu1 %vm5687_vm0, %v5686_v1 }
 0x56f   : > { %5334 = vmatprep.mubr.msk.bf16.mxu0 %vm5687_vm0, %v5686_v1 }
 0x570   : > { %v3184_v44 = vpop.f32.mrf.mxu1 }
 0x571   : > { %v3185_v46 = vadd.f32 %v3184_v44, %v1338_v41  ;;  %v3248_v48 = vpop.f32.mrf.mxu0 }
 0x572   : > { %v3249_v49 = vadd.f32 %v3248_v48, %v1339_v42  ;;  %v5252_v50 = vpop.f32.mrf.mxu1 }
 0x573   : > { %v3520_v53 = vpack.c.bf16 %v3185_v46, %v3185_v46  ;;  %v5264_v54 = vpop.f32.mrf.mxu0 }
 0x574   : > { %v3521_v47 = vpack.c.bf16 %v3249_v49, %v3249_v49  ;;  %v3187_v56 = vpop.f32.mrf.mxu1 }
 0x575   : > { %v3618_v57 = vsel %vm2133_vm3, %v3520_v53, 0  ;;  %v3251_v58 = vpop.f32.mrf.mxu0  ;;  %v1343_v56 = vld [vmem:[%s6433_s10 + $0x3] sm:$0x1] }
 0x576   : > { %v3664_v59 = vsel %vm2133_vm3, %v3521_v47, 0  ;;  %v5253_v60 = vpop.f32.mrf.mxu1  ;;  %5327 = vmatpush3.bf16.xpose.msra.mxu1 %v3618_v57  ;;  %v1342_v47 = vld [vmem:[%s6433_s10 + $0x2] sm:$0x1] }
 0x577   : > { %v5265_v63 = vpop.f32.mrf.mxu0  ;;  %5333 = vmatpush3.bf16.xpose.msra.mxu0 %v3664_v59  ;;  %5338 = vmatprep.subr.bf16.mxu1 %v5686_v1 }
 0x578   : > { %5344 = vmatprep.subr.bf16.mxu0 %v5686_v1 }
 0x57d   : > { %5329 = vmatmul.mubr.msk.bf16.vlgmr.msra.gmra.mxu1 %vm2133_vm3, %v3516_v2 }
 0x57e   : > { %5335 = vmatmul.mubr.msk.bf16.vlgmr.msra.gmra.mxu0 %vm2133_vm3, %v3517_v3  ;;  %5340 = vmatprep.mubr.msk.bf16.mxu1 %vm5687_vm0, %v5686_v1 }
 0x57f   : > { %5346 = vmatprep.mubr.msk.bf16.mxu0 %vm5687_vm0, %v5686_v1 }
 0x581   : > { %v3312_v6 = vpop.f32.mrf.mxu1 }
 0x582   : > { %v3376_v7 = vpop.f32.mrf.mxu0  ;;  %v3313_v8 = vadd.f32 %v3312_v6, %v1340_v4 }
 0x583   : > { %v3377_v9 = vadd.f32 %v3376_v7, %v1341_v5  ;;  %v5276_v10 = vpop.f32.mrf.mxu1 }
 0x584   : > { %v5288_v11 = vpop.f32.mrf.mxu0  ;;  %v3734_v12 = vpack.c.bf16 %v3313_v8, %v3313_v8 }
 0x585   : > { %v3735_v13 = vpack.c.bf16 %v3377_v9, %v3377_v9  ;;  %v3315_v15 = vpop.f32.mrf.mxu1 }
 0x586   : > { %v3379_v16 = vpop.f32.mrf.mxu0  ;;  %v3742_v61 = vand.u32 %v3734_v12, %v6086_v26  ;;  %v5582_v15 = vld [vmem:[%s6434_s11] sm:$0xff]  }
 0x587   : > { %v3788_v17 = vand.u32 %v3735_v13, %v6086_v26  ;;  %v5277_v51 = vpop.f32.mrf.mxu1  ;;  %v5583_v16 = vld [vmem:[%s6434_s11 + $0x8] sm:$0xff]  }
 0x588   : > { %v5289_v18 = vpop.f32.mrf.mxu0  ;;  %5339 = vmatpush3.bf16.msra.mxu1 %v3742_v61 }
 0x589   : > { %5345 = vmatpush3.bf16.msra.mxu0 %v3788_v17  ;;  %5350 = vmatprep.subr.bf16.mxu1 %v5686_v1  ;;  %v5584_v17 = vld [vmem:[%s6434_s11 + $0x10] sm:$0xff]  }
 0x58a   : > { %5356 = vmatprep.subr.bf16.mxu0 %v5686_v1 }
 0x591   : > { %v3440_v19 = vpop.f32.mrf.mxu1 }
 0x592   : > { %v3504_v20 = vpop.f32.mrf.mxu0  ;;  %v3441_v57 = vadd.f32 %v3440_v19, %v1342_v47  ;;  %v5585_v19 = vld [vmem:[%s6434_s11 + $0x18] sm:$0xff]  }
 0x593   : > { %v5300_v21 = vpop.f32.mrf.mxu1  ;;  %v3505_v58 = vadd.f32 %v3504_v20, %v1343_v56 }
 0x594   : > { %v5312_v22 = vpop.f32.mrf.mxu0  ;;  %v3736_v60 = vpack.c.bf16 %v3441_v57, %v3441_v57 }
 0x595   : > { %v3443_v23 = vpop.f32.mrf.mxu1  ;;  %v3737_v63 = vpack.c.bf16 %v3505_v58, %v3505_v58 }
 0x596   : > { %v3507_v24 = vpop.f32.mrf.mxu0  ;;  %v3834_v6 = vand.u32 %v3736_v60, %v6086_v26 }
 0x597   : > { %v5301_v25 = vpop.f32.mrf.mxu1  ;;  %v3880_v8 = vand.u32 %v3737_v63, %v6086_v26 }
 0x598   : > { %v5313_v27 = vpop.f32.mrf.mxu0 }
 0x62d   : > { %v3562_v28 = vpop.f32.mrf.mxu1 }
 0x62e   : > { %v3706_v29 = vsub.f32 %v3562_v28, %v3562_v28  ;;  %v3608_v30 = vpop.f32.mrf.mxu0 }
 0x62f   : > { %v3707_v31 = vsub.f32 %v3608_v30, %v3608_v30  ;;  %v5318_v32 = vpop.f32.mrf.mxu1 }
 0x630   : > { %v3710_v33 = vmul.f32 1.442695, %v3706_v29  ;;  %v5324_v34 = vpop.f32.mrf.mxu0 }
 0x631   : > { %v3712_v35 = vmul.f32 1.442695, %v3707_v31  ;;  %v3565_v36 = vpop.f32.mrf.mxu1  ;;  %v5586_v31 = vld [vmem:[%s6435_s15 + $0x18] sm:$0xff]  }
 0x632   : > { %5620 = vpow2.f32 %v3710_v33  ;;  %v3611_v37 = vpop.f32.mrf.mxu0 }
 0x633   : > { %5622 = vpow2.f32 %v3712_v35  ;;  %v5319_v38 = vpop.f32.mrf.mxu1  ;;  %v5587_v37 = vld [vmem:[%s6435_s15 + $0x10] sm:$0xff]  }
 0x634   : > { %v5325_v39 = vpop.f32.mrf.mxu0 }
 0x63d   : > { %v3654_v40 = vpop.f32.mrf.mxu1 }
 0x63e   : > { %v3708_v41 = vsub.f32 %v3654_v40, %v3654_v40  ;;  %v3700_v42 = vpop.f32.mrf.mxu0  ;;  %v5588_v40 = vld [vmem:[%s6435_s15 + $0x8] sm:$0xff]  }
 0x63f   : > { %v5621_v43 = vpop.eup %5620  ;;  %v3709_v44 = vsub.f32 %v3700_v42, %v3700_v42  ;;  %v5330_v45 = vpop.f32.mrf.mxu1  ;;  %v5589_v42 = vld [vmem:[%s6435_s15] sm:$0xff]  }
 0x640   : > { %v5623_v46 = vpop.eup %5622  ;;  %5624 = vrcp.f32 %v5621_v43  ;;  %v3714_v48 = vmul.f32 1.442695, %v3708_v41  ;;  %v5336_v49 = vpop.f32.mrf.mxu0  ;;  %v1227_v41 = vld [vmem:[%s6436_s16] sm:$0x1]  ;;  %v5590_v45 = vld [vmem:[%s6437_s18 + $0x18] sm:$0xff]   ;;  %s6439_s16 = sld [smem:[#allocation13_spill]] }
 0x641   : > { %5626 = vrcp.f32 %v5623_v46  ;;  %v3716_v50 = vmul.f32 1.442695, %v3709_v44  ;;  %v3657_v52 = vpop.f32.mrf.mxu1 }
 0x642   : > { %5628 = vpow2.f32 %v3714_v48  ;;  %v3703_v53 = vpop.f32.mrf.mxu0  ;;  %v5593_v48 = vld [vmem:[%s6437_s18] sm:$0xff]  }
 0x643   : > { %5630 = vpow2.f32 %v3716_v50  ;;  %v5331_v54 = vpop.f32.mrf.mxu1 }
 0x644   : > { %v5337_v55 = vpop.f32.mrf.mxu0 }
 0x64d   : > { %v5625_v59 = vpop.eup %5624 }
 0x64e   : > { %v5627_v62 = vpop.eup %5626  ;;  %v3726_v0 = vmul.f32 %v5625_v59, %v5621_v43  ;;  %v2741_v43 = vadd.f32 %v6274_v14, %v1227_v41  ;;  %v5592_v14 = vld [vmem:[%s6437_s18 + $0x8] sm:$0xff]  }
 0x64f   : > { %v5629_v2 = vpop.eup %5628  ;;  %v3727_v3 = vmul.f32 %v5627_v62, %v5623_v46  ;;  %v5591_v46 = vld [vmem:[%s6437_s18 + $0x10] sm:$0xff]   ;;  %v1344_v62 = vld [vmem:[%s6438_s0] sm:$0x1]  ;;  %s6441_s0 = sld [smem:[#allocation12_spill]] }
 0x650   : > { %v5631_v4 = vpop.eup %5630  ;;  %5632 = vrcp.f32 %v5629_v2  ;;  %v3730_v5 = vpack.c.bf16 %v3726_v0, %v3726_v0  ;;  %v4134_v44 = vpack.c.bf16 %v2741_v43, %v2741_v43 }
 0x651   : > { %5634 = vrcp.f32 %v5631_v4  ;;  %v3731_v7 = vpack.c.bf16 %v3727_v3, %v3727_v3 }
 0x652   : > { %5341 = vmatmul.mubr.msk.bf16.vlgmr.msra.gmra.mxu1 %vm2350_vm5, %v3730_v5 }
 0x653   : > { %5347 = vmatmul.mubr.msk.bf16.vlgmr.msra.gmra.mxu0 %vm2350_vm5, %v3731_v7  ;;  %5351 = vmatpush3.bf16.msra.mxu1 %v3834_v6 }
 0x654   : > { %5357 = vmatpush3.bf16.msra.mxu0 %v3880_v8  ;;  %5352 = vmatprep.mubr.msk.bf16.mxu1 %vm5687_vm0, %v5686_v1 }
 0x655   : > { %5358 = vmatprep.mubr.msk.bf16.mxu0 %vm5687_vm0, %v5686_v1  ;;  %5362 = vmatprep.subr.bf16.mxu1 %v5686_v1 }
 0x656   : > { %5368 = vmatprep.subr.bf16.mxu0 %v5686_v1 }
 0x65d   : > { %v5633_v9 = vpop.eup %5632 }
 0x65e   : > { %v5635_v26 = vpop.eup %5634  ;;  %v3728_v10 = vmul.f32 %v5633_v9, %v5629_v2 }
 0x65f   : > { %v3729_v11 = vmul.f32 %v5635_v26, %v5631_v4 }
 0x660   : > { %v3732_v12 = vpack.c.bf16 %v3728_v10, %v3728_v10 }
 0x661   : > { %v3733_v13 = vpack.c.bf16 %v3729_v11, %v3729_v11 }
 0x662   : > { %5353 = vmatmul.mubr.msk.bf16.vlgmr.msra.gmra.mxu1 %vm2350_vm5, %v3732_v12  ;;  %v5594_v12 = vld [vmem:[%s6439_s16 + $0x18] sm:$0xff]  }
 0x663   : > { %5359 = vmatmul.mubr.msk.bf16.vlgmr.msra.gmra.mxu0 %vm2350_vm5, %v3733_v13  ;;  %5364 = vmatprep.mubr.msk.bf16.mxu1 %vm5687_vm0, %v5686_v1  ;;  %v5595_v13 = vld [vmem:[%s6440_s1 + $0x18] sm:$0xff]  }
 0x664   : > { %5370 = vmatprep.mubr.msk.bf16.mxu0 %vm5687_vm0, %v5686_v1  ;;  %5363 = vmatpush3.bf16.msra.mxu1 %v5582_v15  ;;  %v5596_v15 = vld [vmem:[%s6439_s16 + $0x10] sm:$0xff]  }
 0x665   : > { %5369 = vmatpush3.bf16.msra.mxu0 %v5583_v16  ;;  %5374 = vmatprep.subr.bf16.mxu1 %v5686_v1  ;;  %v5597_v16 = vld [vmem:[%s6440_s1 + $0x10] sm:$0xff]  }
 0x666   : > { %5380 = vmatprep.subr.bf16.mxu0 %v5686_v1 }
 0x712   : > { %v3778_v61 = vpop.f32.mrf.mxu1 }
 0x713   : > { %v3922_v51 = vpack.c.bf16 %v3778_v61, %v3778_v61  ;;  %v3824_v18 = vpop.f32.mrf.mxu0  ;;  %v5598_v61 = vld [vmem:[%s6439_s16 + $0x8] sm:$0xff]  }
 0x714   : > { %v3923_v20 = vpack.c.bf16 %v3824_v18, %v3824_v18  ;;  %v5342_v21 = vpop.f32.mrf.mxu1  ;;  %v5601_v18 = vld [vmem:[%s6440_s1] sm:$0xff]  }
 0x715   : > { %v5348_v22 = vpop.f32.mrf.mxu0  ;;  %5365 = vmatmul.mubr.msk.bf16.vlgmr.msra.gmra.mxu1 %vm2133_vm3, %v3922_v51  ;;  %v5600_v51 = vld [vmem:[%s6439_s16] sm:$0xff]  }
 0x716   : > { %5371 = vmatmul.mubr.msk.bf16.vlgmr.msra.gmra.mxu0 %vm2133_vm3, %v3923_v20  ;;  %v3781_v23 = vpop.f32.mrf.mxu1  ;;  %5375 = vmatpush3.bf16.msra.mxu1 %v5584_v17  ;;  %v5599_v17 = vld [vmem:[%s6440_s1 + $0x8] sm:$0xff]   ;;  %v4278_v20 = vld [vmem:[%s6441_s0] sm:$0x1]  ;;  %s6442_s0 = sld [smem:[#allocation14_spill]] }
 0x717   : > { %v3827_v24 = vpop.f32.mrf.mxu0  ;;  %5381 = vmatpush3.bf16.msra.mxu0 %v5585_v19  ;;  %5376 = vmatprep.mubr.msk.bf16.mxu1 %vm5687_vm0, %v5686_v1 }
 0x718   : > { %v5343_v25 = vpop.f32.mrf.mxu1  ;;  %5382 = vmatprep.mubr.msk.bf16.mxu0 %vm5687_vm0, %v5686_v1  ;;  %5398 = vmatprep.subr.bf16.mxu0 %v5686_v1 }
 0x719   : > { %v5349_v27 = vpop.f32.mrf.mxu0  ;;  %5386 = vmatprep.subr.bf16.mxu1 %v5686_v1 }
 0x722   : > { %v3870_v28 = vpop.f32.mrf.mxu1 }
 0x723   : > { %v3924_v29 = vpack.c.bf16 %v3870_v28, %v3870_v28  ;;  %v3916_v30 = vpop.f32.mrf.mxu0 }
 0x724   : > { %v3925_v32 = vpack.c.bf16 %v3916_v30, %v3916_v30  ;;  %v5354_v33 = vpop.f32.mrf.mxu1 }
 0x725   : > { %v5360_v34 = vpop.f32.mrf.mxu0  ;;  %5377 = vmatmul.mubr.msk.bf16.vlgmr.msra.gmra.mxu1 %vm2133_vm3, %v3924_v29 }
 0x726   : > { %5383 = vmatmul.mubr.msk.bf16.vlgmr.msra.gmra.mxu0 %vm2133_vm3, %v3925_v32  ;;  %v3873_v35 = vpop.f32.mrf.mxu1  ;;  %5394 = vmatprep.mubr.msk.bf16.mxu1 %vm5687_vm0, %v5686_v1  ;;  %v5646_v32 = vld [vmem:[%s5894_s26] sm:$0x1]  ;;  %s962_s26 = scalar_lea.vmem %s5852_s20, %s6444_s23 }
 0x727   : > { %5399 = vmatpush3.bf16.msra.mxu0 %v5586_v31  ;;  %v3919_v36 = vpop.f32.mrf.mxu0  ;;  %5406 = vmatprep.mubr.msk.bf16.mxu0 %vm5687_vm0, %v5686_v1  ;;  %v4373_v34 = vld [vmem:[%s5837_s27] sm:$0x1] }
 0x728   : > { %v5355_v38 = vpop.f32.mrf.mxu1  ;;  %5400 = vmatprep.subr.bf16.mxu0 %v5686_v1  ;;  %5387 = vmatpush3.bf16.msra.mxu1 %v5590_v45 }
 0x729   : > { %v5361_v39 = vpop.f32.mrf.mxu0  ;;  %5388 = vmatprep.subr.bf16.mxu1 %v5686_v1 }
 0x72b   : > { %5401 = vmatpush3.bf16.msra.mxu0 %v5587_v37 }
 0x72c   : > { %5402 = vmatprep.subr.bf16.mxu0 %v5686_v1  ;;  %5389 = vmatpush3.bf16.msra.mxu1 %v5591_v46 }
 0x72d   : > { %5390 = vmatprep.subr.bf16.mxu1 %v5686_v1 }
 0x72f   : > { %5403 = vmatpush3.bf16.msra.mxu0 %v5588_v40 }
 0x730   : > { %5404 = vmatprep.subr.bf16.mxu0 %v5686_v1  ;;  %5391 = vmatpush3.bf16.msra.mxu1 %v5592_v14  ;;  %v4297_v14 = vld [vmem:[%s6442_s0] sm:$0x1] }
 0x731   : > { %5392 = vmatprep.subr.bf16.mxu1 %v5686_v1 }
 0x733   : > { %5405 = vmatpush3.bf16.msra.mxu0 %v5589_v42 }
 0x734   : > { %5422 = vmatprep.subr.bf16.mxu0 %v5686_v1  ;;  %5393 = vmatpush3.bf16.msra.mxu1 %v5593_v48 }
 0x735   : > { %5410 = vmatprep.subr.bf16.mxu1 %v5686_v1 }
 0x736   : > { %5407 = vmatmul.mubr.msk.bf16.vlgmr.msra.gmra.mxu0 %vm1000_vm1, %v4134_v44 }
 0x737   : > { %5430 = vmatprep.mubr.msk.bf16.mxu0 %vm5687_vm0, %v5686_v1  ;;  %5423 = vmatpush3.bf16.msra.mxu0 %v5595_v13 }
 0x738   : > { %5424 = vmatprep.subr.bf16.mxu0 %v5686_v1 }
 0x73b   : > { %5425 = vmatpush3.bf16.msra.mxu0 %v5597_v16 }
 0x73c   : > { %5426 = vmatprep.subr.bf16.mxu0 %v5686_v1 }
 0x73f   : > { %5427 = vmatpush3.bf16.msra.mxu0 %v5599_v17 }
 0x740   : > { %5428 = vmatprep.subr.bf16.mxu0 %v5686_v1 }
 0x743   : > { %5429 = vmatpush3.bf16.msra.mxu0 %v5601_v18 }
 0x7d5   : > { %v3969_v49 = vpop.f32.mrf.mxu1 }
 0x7d6   : > { %v4018_v50 = vpop.f32.mrf.mxu0 }
 0x7d7   : > { %v5366_v52 = vpop.f32.mrf.mxu1  ;;  %v4122_v57 = vadd.f32 %v4018_v50, %v3969_v49 }
 0x7d8   : > { %v5372_v53 = vpop.f32.mrf.mxu0 }
 0x7d9   : > { %v3972_v54 = vpop.f32.mrf.mxu1 }
 0x7da   : > { %v4021_v55 = vpop.f32.mrf.mxu0 }
 0x7db   : > { %v5367_v47 = vpop.f32.mrf.mxu1 }
 0x7dc   : > { %v5373_v56 = vpop.f32.mrf.mxu0 }
 0x7e5   : > { %v4067_v58 = vpop.f32.mrf.mxu1 }
 0x7e6   : > { %v4123_v59 = vadd.f32 %v4122_v57, %v4067_v58  ;;  %v4116_v60 = vpop.f32.mrf.mxu0 }
 0x7e7   : > { %v5378_v63 = vpop.f32.mrf.mxu1 }
 0x7e8   : > { %v4124_v0 = vadd.f32 %v4123_v59, %v4116_v60  ;;  %v5384_v2 = vpop.f32.mrf.mxu0 }
 0x7e9   : > { %v4070_v3 = vpop.f32.mrf.mxu1 }
 0x7ea   : > { %v4125_v4 = vadd.f32 %v4124_v0, %v1344_v62  ;;  %v4119_v5 = vpop.f32.mrf.mxu0  ;;  %v4445_v62 = vld [vmem:[%s5842_s4] sm:$0x1] }
 0x7eb   : > { %v5379_v6 = vpop.f32.mrf.mxu1  ;;  %v4446_v0 = vld [vmem:[%s5847_s6] sm:$0x1] }
 0x7ec   : > { %v4143_v7 = vpack.c.bf16 %v4125_v4, %v4125_v4  ;;  %v5385_v8 = vpop.f32.mrf.mxu0 }
 0x7ee   : > { %5395 = vmatmul.mubr.msk.bf16.vlgmr.msra.gmra.mxu1 %vm1000_vm1, %v4143_v7 }
 0x7ef   : > { %5418 = vmatprep.mubr.msk.bf16.mxu1 %vm5687_vm0, %v5686_v1  ;;  %5411 = vmatpush3.bf16.msra.mxu1 %v5594_v12 }
 0x7f0   : > { %5412 = vmatprep.subr.bf16.mxu1 %v5686_v1 }
 0x7f3   : > { %5413 = vmatpush3.bf16.msra.mxu1 %v5596_v15 }
 0x7f4   : > { %5414 = vmatprep.subr.bf16.mxu1 %v5686_v1 }
 0x7f6   : > { %v4272_v9 = vpop.f32.mrf.mxu0 }
 0x7f7   : > { %5415 = vmatpush3.bf16.msra.mxu1 %v5598_v61 }
 0x7f8   : > { %v5408_v26 = vpop.f32.mrf.mxu0  ;;  %5416 = vmatprep.subr.bf16.mxu1 %v5686_v1 }
 0x7fa   : > { %v4275_v10 = vpop.f32.mrf.mxu0 }
 0x7fb   : > { %5417 = vmatpush3.bf16.msra.mxu1 %v5600_v51 }
 0x7fc   : > { %v5409_v11 = vpop.f32.mrf.mxu0 }
 0x8ae   : > { %v4205_v19 = vpop.f32.mrf.mxu1 }
 0x8af   : > { %v4273_v21 = vadd.f32 %v4272_v9, %v4205_v19 }
 0x8b0   : > { %v5396_v22 = vpop.f32.mrf.mxu1 }
 0x8b1   : > { %v4279_v23 = vadd.f32 %v4278_v20, %v4273_v21 }
 0x8b2   : > { %v4208_v24 = vpop.f32.mrf.mxu1 }
 0x8b3   : > { %v4724_v25 = vmul.f32 -1.442695, %v4279_v23 }
 0x8b4   : > { %v5397_v27 = vpop.f32.mrf.mxu1 }
 0x8b5   : > { %5636 = vpow2.f32 %v4724_v25 }
 0x8c2   : > { %v5637_v28 = vpop.eup %5636 }
 0x8c3   : > { %v4283_v29 = vadd.f32 1.0, %v5637_v28 }
 0x8c5   : > { %5638 = vrcp.f32 %v4283_v29 }
 0x8d2   : > { %v5639_v30 = vpop.eup %5638 }
 0x8d3   : > { %v4286_v31 = vmul.f32 %v5639_v30, %v4125_v4 }
 0x8d5   : > { %v4287_v1 = vadd.f32 %v5646_v32, %v4286_v31 }
 0x8d7   : > { %v4296_v33 = vpack.c.bf16 %v4287_v1, %v4287_v1 }
 0x8d9   : > { %5419 = vmatmul.mubr.msk.bf16.vlgmr.msra.gmra.mxu1 %vm1000_vm1, %v4296_v33  ;;  %5431 = vmatmul.mubr.msk.bf16.vlgmr.msra.gmra.mxu0 %vm1000_vm1, %v4296_v33 }
 0x999   : > { %v4359_v35 = vpop.f32.mrf.mxu1  ;;  %v4432_v36 = vpop.f32.mrf.mxu0 }
 0x99a   : > { %v4433_v37 = vadd.f32 %v4432_v36, %v4373_v34  ;;  %v4360_v48 = vadd.f32 %v4359_v35, %v4297_v14 }
 0x99b   : > { %v5420_v38 = vpop.f32.mrf.mxu1  ;;  %v5432_v39 = vpop.f32.mrf.mxu0 }
 0x99c   : > { %v4735_v40 = vmul.f32 -1.442695, %v4433_v37 }
 0x99d   : > { %v4362_v41 = vpop.f32.mrf.mxu1  ;;  %v4435_v42 = vpop.f32.mrf.mxu0 }
 0x99e   : > { %5640 = vpow2.f32 %v4735_v40 }
 0x99f   : > { %v5421_v43 = vpop.f32.mrf.mxu1  ;;  %v5433_v44 = vpop.f32.mrf.mxu0 }
 0x9ab   : > { %v5641_v45 = vpop.eup %5640 }
 0x9ac   : > { %v4441_v46 = vadd.f32 1.0, %v5641_v45 }
 0x9ae   : > { %5642 = vrcp.f32 %v4441_v46 }
 0x9bb   : > { %v5643_v49 = vpop.eup %5642 }
 0x9bc   : > { %v4444_v50 = vmul.f32 %v5643_v49, %v4360_v48 }
 0x9be   : > { %v4448_v52 = vsel %vm4447_vm6, %v4444_v50, 0.0 }
 0x9bf   : > { %4449 = vadd.xlane.f32.xlu0 %v4448_v52 }
 0xa48   : > { %v4450_v53 = vpop.xlane.xlu0 %4449 }
 0xa49   : > { %v4452_v54 = vmul.f32 0.015625, %v4450_v53 }
 0xa4b   : > { %v4453_v55 = vsub.f32 %v4444_v50, %v4452_v54 }
 0xa4d   : > { %v4454_v47 = vmul.f32 %v4453_v55, %v4453_v55 }
 0xa4f   : > { %v4455_v56 = vsel %vm4447_vm6, %v4454_v47, 0.0 }
 0xa50   : > { %4456 = vadd.xlane.f32.xlu0 %v4455_v56 }
 0xad9   : > { %v4457_v57 = vpop.xlane.xlu0 %4456 }
 0xada   : > { %v4458_v58 = vmul.f32 0.015625, %v4457_v57 }
 0xadc   : > { %v4459_v59 = vadd.f32 1e-05, %v4458_v58 }
 0xade   : > { %5644 = vrsqrt.f32 %v4459_v59 }
 0xaeb   : > { %v5645_v60 = vpop.eup %5644 }
 0xaec   : > { %v4461_v63 = vmul.f32 %v5645_v60, %v4453_v55 }
 0xaee   : > { %v4462_v2 = vmul.f32 %v4461_v63, %v4445_v62 }
 0xaf0   : > { %v4463_v3 = vadd.f32 %v4462_v2, %v4446_v0 }
 0xaf2   : > { %4464 = vst.msk [vmem:[%s962_s26] sm:$0x1] %vm4447_vm6, %v4463_v3 }
 0xaf3 PF: > { %s73_s22 = sadd.s32 1, %s5653_s22  }
 0xaf4   : > { %p70_p4 = scmp.ge.s32.totalorder %s73_s22, 4  }
 0xaf6   :  { %72 = sbr.rel (!%p70_p4) target bundleno = 50 (0x32), region = 208 }

</bundles_post_ra>
